<compile_context>
chip_gen: v7x
topology: tpu7x:2x2x1
jax: 0.10.0
libtpu: 0.0.40
codegen_flags: <defaults>
</compile_context>

<pallas_src>
import functools

import jax
import jax.numpy as jnp
from jax.experimental import pallas as pl
from jax.experimental.pallas import tpu as pltpu


# ----------------------------- in-kernel helpers -----------------------------

def _layer_norm(x, w, b, eps=1e-5):
    """LayerNorm with f32 statistics regardless of input dtype. w, b broadcast (1,E)."""
    xf = x.astype(jnp.float32)
    mu = jnp.mean(xf, axis=-1, keepdims=True)
    var = jnp.mean(jnp.square(xf - mu), axis=-1, keepdims=True)
    return (xf - mu) * jax.lax.rsqrt(var + eps) * w + b


def _gelu_exact(x):
    # torch nn.GELU() default = exact erf-based GELU (computed in f32)
    return 0.5 * x * (1.0 + jax.lax.erf(x * jnp.float32(0.7071067811865476)))


# ------------------------------- Pallas kernels -------------------------------

def gpt_blocks_kernel(x_ref,
                      ln1w_ref, ln1b_ref, ln2w_ref, ln2b_ref,
                      wqkv_ref, bqkv_ref, wproj_ref, bproj_ref,
                      w1_ref, b1_ref, w2_ref, b2_ref,
                      o_ref, xres_ref, *, num_heads):
    """One (batch b, layer l) grid step of the transformer stack.

    grid = (B, L), layer axis innermost & 'arbitrary'.  The bf16 residual stream
    is resident in VMEM scratch across the layer axis; per-layer weights are
    streamed by the BlockSpec pipeline (next layer's weight DMA overlaps this
    layer's compute).
    """
    l = pl.program_id(1)
    T, E = xres_ref.shape
    H = num_heads
    Dh = E // H

    @pl.when(l == 0)
    def _():
        xres_ref[...] = x_ref[0]

    x = xres_ref[...]                                           # (T, E) bf16 residual

    # ---- attention branch: x + proj(attn(LN1(x))) ----
    h = _layer_norm(x, ln1w_ref[0], ln1b_ref[0]).astype(jnp.bfloat16)          # (T, E)
    # fused QKV projection: single full-width (T,E)@(E,3E) MXU matmul
    qkv = jnp.dot(h, wqkv_ref[0], preferred_element_type=jnp.float32) + bqkv_ref[0]
    qkv = qkv.astype(jnp.bfloat16)                              # (T, 3E); Q cols pre-scaled

    # causal mask (finite fill value -> NaN-safe after row-max subtraction)
    row = jax.lax.broadcasted_iota(jnp.int32, (T, T), 0)
    col = jax.lax.broadcasted_iota(jnp.int32, (T, T), 1)
    causal = col <= row                                         # (T, T)

    # per-head attention on static lane slices of the fused QKV result
    # TODO(synk): flash-style kv tiling for long T (dense (T,T) scores kept here).
    head_outs = []
    for hh in range(H):
        q_h = qkv[:, hh * Dh:(hh + 1) * Dh]                     # (T, Dh)
        k_h = qkv[:, E + hh * Dh:E + (hh + 1) * Dh]             # (T, Dh)
        v_h = qkv[:, 2 * E + hh * Dh:2 * E + (hh + 1) * Dh]     # (T, Dh)
        s = jnp.einsum('td,sd->ts', q_h, k_h,
                       preferred_element_type=jnp.float32)      # (T, T)
        s = jnp.where(causal, s, jnp.float32(-1e30))
        s = s - jnp.max(s, axis=-1, keepdims=True)
        p = jnp.exp(s)
        p = p / jnp.sum(p, axis=-1, keepdims=True)              # exact softmax
        o_h = jnp.einsum('ts,sd->td', p.astype(jnp.bfloat16), v_h,
                         preferred_element_type=jnp.float32)    # (T, Dh)
        head_outs.append(o_h.astype(jnp.bfloat16))

    # merge heads, then one full-depth (T,E)@(E,E) output projection
    merged = jnp.concatenate(head_outs, axis=-1)                # (T, E) bf16
    attn = jnp.dot(merged, wproj_ref[0],
                   preferred_element_type=jnp.float32) + bproj_ref[0]
    x = (x.astype(jnp.float32) + attn).astype(jnp.bfloat16)

    # ---- MLP branch: x + W2(GELU(W1(LN2(x)))) ----
    h2 = _layer_norm(x, ln2w_ref[0], ln2b_ref[0]).astype(jnp.bfloat16)
    m = jnp.dot(h2, w1_ref[0], preferred_element_type=jnp.float32) + b1_ref[0]
    m = _gelu_exact(m).astype(jnp.bfloat16)
    m = jnp.dot(m, w2_ref[0], preferred_element_type=jnp.float32) + b2_ref[0]
    x = (x.astype(jnp.float32) + m).astype(jnp.bfloat16)

    xres_ref[...] = x

    @pl.when(l == pl.num_programs(1) - 1)
    def _():
        o_ref[0] = x


def final_head_kernel(x_ref, lnw_ref, lnb_ref, whead_ref, bhead_ref, o_ref, hx_ref):
    # final LayerNorm hoisted out of the vocab-tiled loop: once per m tile (v == 0)
    @pl.when(pl.program_id(1) == 0)
    def _():
        hx_ref[...] = _layer_norm(x_ref[...], lnw_ref[...], lnb_ref[...]
                                  ).astype(jnp.bfloat16)
    o_ref[...] = (jnp.dot(hx_ref[...], whead_ref[...],
                          preferred_element_type=jnp.float32)
                  + bhead_ref[...]).astype(o_ref.dtype)


# ------------------------------ kernel wrappers -------------------------------

def gpt_blocks(x, blk, num_heads):
    """Run the full stacked transformer (all layers) in one pallas_call."""
    B, T, E = x.shape
    L = blk["wqkv"].shape[0]

    def lspec(arr):
        nd = arr.ndim
        return pl.BlockSpec((1,) + tuple(arr.shape[1:]),
                            lambda b, l, _nd=nd: (l,) + (0,) * (_nd - 1))

    in_specs = [
        pl.BlockSpec((1, T, E), lambda b, l: (b, 0, 0)),        # x (bf16)
        lspec(blk["ln1_w"]), lspec(blk["ln1_b"]),
        lspec(blk["ln2_w"]), lspec(blk["ln2_b"]),
        lspec(blk["wqkv"]), lspec(blk["bqkv"]),
        lspec(blk["wproj"]), lspec(blk["bproj"]),
        lspec(blk["w1"]), lspec(blk["b1"]),
        lspec(blk["w2"]), lspec(blk["b2"]),
    ]

    flops = L * B * (24 * T * E * E + 4 * T * T * E)
    transcendentals = L * B * (num_heads * T * T + 4 * T * E)
    bytes_accessed = L * (12 * E * E * 2 + 18 * E * 4) + 2 * B * T * E * 2

    return pl.pallas_call(
        functools.partial(gpt_blocks_kernel, num_heads=num_heads),
        out_shape=jax.ShapeDtypeStruct((B, T, E), jnp.bfloat16),
        grid_spec=pltpu.PrefetchScalarGridSpec(
            num_scalar_prefetch=0,
            grid=(B, L),                                        # layer axis innermost
            in_specs=in_specs,
            out_specs=pl.BlockSpec((1, T, E), lambda b, l: (b, 0, 0)),
            scratch_shapes=[pltpu.VMEM((T, E), jnp.bfloat16)],  # resident bf16 residual
        ),
        compiler_params=pltpu.CompilerParams(
            dimension_semantics=("parallel", "arbitrary"),
            vmem_limit_bytes=64 * 1024 * 1024),
        cost_estimate=pl.CostEstimate(flops=int(flops),
                                      transcendentals=int(transcendentals),
                                      bytes_accessed=int(bytes_accessed)),
    )(x, blk["ln1_w"], blk["ln1_b"], blk["ln2_w"], blk["ln2_b"],
      blk["wqkv"], blk["bqkv"], blk["wproj"], blk["bproj"],
      blk["w1"], blk["b1"], blk["w2"], blk["b2"])


def final_head(x2d, params, *, tile_m=256, tile_v=512):
    M, E = x2d.shape
    Vp = params["w_head"].shape[1]
    tm = min(tile_m, M)
    tv = min(tile_v, Vp)
    assert M % tm == 0 and Vp % tv == 0, (M, tm, Vp, tv)

    flops = 2 * M * E * Vp
    bytes_accessed = M * E * 2 + (M // tm) * E * Vp * 2 + M * Vp * 4

    return pl.pallas_call(
        final_head_kernel,
        out_shape=jax.ShapeDtypeStruct((M, Vp), jnp.float32),
        grid_spec=pltpu.PrefetchScalarGridSpec(
            num_scalar_prefetch=0,
            grid=(M // tm, Vp // tv),                           # vocab axis innermost
            in_specs=[
                pl.BlockSpec((tm, E), lambda m, v: (m, 0)),     # x tile (bf16)
                pl.BlockSpec((1, E), lambda m, v: (0, 0)),      # ln_f w
                pl.BlockSpec((1, E), lambda m, v: (0, 0)),      # ln_f b
                pl.BlockSpec((E, tv), lambda m, v: (0, v)),     # head W (bf16, vocab-tiled)
                pl.BlockSpec((1, tv), lambda m, v: (0, v)),     # head b
            ],
            out_specs=pl.BlockSpec((tm, tv), lambda m, v: (m, v)),
            scratch_shapes=[pltpu.VMEM((tm, E), jnp.bfloat16)], # LN(x) cache per m tile
        ),
        compiler_params=pltpu.CompilerParams(
            dimension_semantics=("parallel", "arbitrary"),
            vmem_limit_bytes=64 * 1024 * 1024),
        cost_estimate=pl.CostEstimate(flops=int(flops), transcendentals=int(M * E),
                                      bytes_accessed=int(bytes_accessed)),
    )(x2d, params["ln_f_w"], params["ln_f_b"], params["w_head"], params["b_head"])


# ------------------------------ parameter setup -------------------------------

def _round_up(n, m):
    return ((n + m - 1) // m) * m


def init_gpt_params(key, vocab_size, block_size, embedding_dim, num_heads, num_layers):
    E = embedding_dim
    H = num_heads
    Dh = E // H
    H4 = 4 * E
    L = num_layers
    Vp = _round_up(vocab_size, 128)         # lane-dense (zero-padded) LM head
    std = 0.01
    scale = Dh ** -0.5
    keys = jax.random.split(key, 2 + 4 * L)
    ki = iter(keys)

    w_head = jnp.zeros((E, Vp), jnp.float32)
    w_head = w_head.at[:, :vocab_size].set(
        jax.random.normal(next(ki), (E, vocab_size), jnp.float32) * std)
    tok_emb = jax.random.normal(next(ki), (vocab_size, E), jnp.float32) * std

    wqkv, wproj, w1, w2 = [], [], [], []
    for _ in range(L):
        w = jax.random.normal(next(ki), (E, 3 * E), jnp.float32) * std   # y = x @ W
        w = w.at[:, :E].multiply(scale)     # fold 1/sqrt(Dh) into the Q columns
        wqkv.append(w)
        wproj.append(jax.random.normal(next(ki), (E, E), jnp.float32) * std)
        w1.append(jax.random.normal(next(ki), (E, H4), jnp.float32) * std)
        w2.append(jax.random.normal(next(ki), (H4, E), jnp.float32) * std)

    blocks = {
        "ln1_w": jnp.ones((L, 1, E), jnp.float32),
        "ln1_b": jnp.zeros((L, 1, E), jnp.float32),
        "ln2_w": jnp.ones((L, 1, E), jnp.float32),
        "ln2_b": jnp.zeros((L, 1, E), jnp.float32),
        "wqkv": jnp.stack(wqkv).astype(jnp.bfloat16),      # (L, E, 3E)
        "bqkv": jnp.zeros((L, 1, 3 * E), jnp.float32),     # Q-slice scale fold: no-op on zeros
        "wproj": jnp.stack(wproj).astype(jnp.bfloat16),    # (L, E, E)
        "bproj": jnp.zeros((L, 1, E), jnp.float32),
        "w1": jnp.stack(w1).astype(jnp.bfloat16),          # (L, E, 4E)
        "b1": jnp.zeros((L, 1, H4), jnp.float32),
        "w2": jnp.stack(w2).astype(jnp.bfloat16),          # (L, 4E, E)
        "b2": jnp.zeros((L, 1, E), jnp.float32),
    }

    return {
        "tok_emb": tok_emb,
        "pos_emb": jnp.zeros((1, block_size, E), jnp.float32),
        "ln_f_w": jnp.ones((1, E), jnp.float32),
        "ln_f_b": jnp.zeros((1, E), jnp.float32),
        "w_head": w_head.astype(jnp.bfloat16),
        "b_head": jnp.zeros((1, Vp), jnp.float32),
        "blocks": blocks,
    }


def gpt_forward(idx, params, num_heads, vocab_size):
    """idx: (B, T) int32 token ids. Returns (logits (B,T,V), None)."""
    B, T = idx.shape
    tok = jnp.take(params["tok_emb"], idx, axis=0)          # embedding gather (XLA glue)
    x = (tok + params["pos_emb"][:, :T, :]).astype(jnp.bfloat16)
    # dropout: eval-mode identity
    x = gpt_blocks(x, params["blocks"], num_heads)           # all layers, one pallas_call
    x2d = x.reshape(B * T, x.shape[-1])
    logits = final_head(x2d, params)                         # (B*T, Vpad) f32
    logits = logits.reshape(B, T, -1)[:, :, :vocab_size]
    return logits, None


# ------------------------------------ main ------------------------------------

if __name__ == "__main__":
    vocab_size = 65          # char-level vocab (zero-padded to 128 inside the LM head)
    block_size = 128
    embedding_dim = 128
    num_heads = 4
    num_layers = 2
    B, T = 2, 128

    key = jax.random.PRNGKey(0)
    pkey, ikey = jax.random.split(key)
    params = init_gpt_params(pkey, vocab_size, block_size, embedding_dim,
                             num_heads, num_layers)
    idx = jax.random.randint(ikey, (B, T), 0, vocab_size, dtype=jnp.int32)

    logits, loss = gpt_forward(idx, params, num_heads, vocab_size)
    logits = jax.block_until_ready(logits)
    assert logits.shape == (B, T, vocab_size), logits.shape
    assert loss is None
    assert bool(jnp.all(jnp.isfinite(logits)))
    print("KERNEL_OK")
</pallas_src>

<mosaic_0001>
module attributes {stable_mosaic.version = 11 : i64} {
  func.func @gpt_blocks_kernel(%arg0: i32, %arg1: i32, %arg2: memref<1x128x128xbf16, #tpu.memory_space<vmem>>, %arg3: memref<1x1x128xf32, #tpu.memory_space<vmem>>, %arg4: memref<1x1x128xf32, #tpu.memory_space<vmem>>, %arg5: memref<1x1x128xf32, #tpu.memory_space<vmem>>, %arg6: memref<1x1x128xf32, #tpu.memory_space<vmem>>, %arg7: memref<1x128x384xbf16, #tpu.memory_space<vmem>>, %arg8: memref<1x1x384xf32, #tpu.memory_space<vmem>>, %arg9: memref<1x128x128xbf16, #tpu.memory_space<vmem>>, %arg10: memref<1x1x128xf32, #tpu.memory_space<vmem>>, %arg11: memref<1x128x512xbf16, #tpu.memory_space<vmem>>, %arg12: memref<1x1x512xf32, #tpu.memory_space<vmem>>, %arg13: memref<1x512x128xbf16, #tpu.memory_space<vmem>>, %arg14: memref<1x1x128xf32, #tpu.memory_space<vmem>>, %arg15: memref<1x128x128xbf16, #tpu.memory_space<vmem>>, %arg16: memref<128x128xbf16, #tpu.memory_space<vmem>>) attributes {dimension_semantics = [#tpu.dimension_semantics<parallel>, #tpu.dimension_semantics<arbitrary>], iteration_bounds = array<i64: 2, 2>, scalar_prefetch = 0 : i64, scratch_operands = 1 : i64, tpu.core_type = #tpu.core_type<tc>, window_params = [{transform_indices = @transform_0, window_bounds = array<i64: 1, 128, 128>}, {transform_indices = @transform_1, window_bounds = array<i64: 1, 1, 128>}, {transform_indices = @transform_2, window_bounds = array<i64: 1, 1, 128>}, {transform_indices = @transform_3, window_bounds = array<i64: 1, 1, 128>}, {transform_indices = @transform_4, window_bounds = array<i64: 1, 1, 128>}, {transform_indices = @transform_5, window_bounds = array<i64: 1, 128, 384>}, {transform_indices = @transform_6, window_bounds = array<i64: 1, 1, 384>}, {transform_indices = @transform_7, window_bounds = array<i64: 1, 128, 128>}, {transform_indices = @transform_8, window_bounds = array<i64: 1, 1, 128>}, {transform_indices = @transform_9, window_bounds = array<i64: 1, 128, 512>}, {transform_indices = @transform_10, window_bounds = array<i64: 1, 1, 512>}, {transform_indices = @transform_11, window_bounds = array<i64: 1, 512, 128>}, {transform_indices = @transform_12, window_bounds = array<i64: 1, 1, 128>}, {transform_indices = @transform_13, window_bounds = array<i64: 1, 128, 128>}]} {
    %c0_i32 = arith.constant 0 : i32
    %0 = arith.cmpi eq, %arg1, %c0_i32 : i32
    %1 = arith.extui %0 : i1 to i32
    %c0_i32_0 = arith.constant 0 : i32
    %2 = arith.cmpi ne, %1, %c0_i32_0 : i32
    scf.if %2 {
      %c0_77 = arith.constant 0 : index
      %c0_78 = arith.constant 0 : index
      %c0_79 = arith.constant 0 : index
      %184 = vector.load %arg2[%c0_77, %c0_78, %c0_79] : memref<1x128x128xbf16, #tpu.memory_space<vmem>>, vector<1x128x128xbf16>
      %185 = vector.shape_cast %184 : vector<1x128x128xbf16> to vector<128x128xbf16>
      %c0_80 = arith.constant 0 : index
      %c0_81 = arith.constant 0 : index
      %186 = vector.load %arg16[%c0_80, %c0_81] : memref<128x128xbf16, #tpu.memory_space<vmem>>, vector<128x128xbf16>
      tpu.vector_store %arg16[%c0_80, %c0_81], %185 {strides = array<i32>} : memref<128x128xbf16, #tpu.memory_space<vmem>>, vector<128x128xbf16>,
    } else {
    }
    %c0 = arith.constant 0 : index
    %c0_1 = arith.constant 0 : index
    %3 = vector.load %arg16[%c0, %c0_1] : memref<128x128xbf16, #tpu.memory_space<vmem>>, vector<128x128xbf16>
    %c0_2 = arith.constant 0 : index
    %c0_3 = arith.constant 0 : index
    %c0_4 = arith.constant 0 : index
    %4 = vector.load %arg3[%c0_2, %c0_3, %c0_4] : memref<1x1x128xf32, #tpu.memory_space<vmem>>, vector<1x1x128xf32>
    %5 = vector.shape_cast %4 : vector<1x1x128xf32> to vector<1x128xf32>
    %c0_5 = arith.constant 0 : index
    %c0_6 = arith.constant 0 : index
    %c0_7 = arith.constant 0 : index
    %6 = vector.load %arg4[%c0_5, %c0_6, %c0_7] : memref<1x1x128xf32, #tpu.memory_space<vmem>>, vector<1x1x128xf32>
    %7 = vector.shape_cast %6 : vector<1x1x128xf32> to vector<1x128xf32>
    %8 = arith.extf %3 : vector<128x128xbf16> to vector<128x128xf32>
    %cst = arith.constant dense<0.000000e+00> : vector<128xf32>
    %9 = vector.multi_reduction <add>, %8, %cst [1] : vector<128x128xf32> to vector<128xf32>
    %10 = vector.shape_cast %9 : vector<128xf32> to vector<128x1xf32>
    %cst_8 = arith.constant 1.280000e+02 : f32
    %11 = vector.broadcast %cst_8 : f32 to vector<128x1xf32>
    %12 = arith.divf %10, %11 : vector<128x1xf32>
    %13 = vector.broadcast %12 : vector<128x1xf32> to vector<128x128xf32>
    %14 = arith.subf %8, %13 : vector<128x128xf32>
    %15 = arith.mulf %14, %14 : vector<128x128xf32>
    %cst_9 = arith.constant dense<0.000000e+00> : vector<128xf32>
    %16 = vector.multi_reduction <add>, %15, %cst_9 [1] : vector<128x128xf32> to vector<128xf32>
    %17 = vector.shape_cast %16 : vector<128xf32> to vector<128x1xf32>
    %cst_10 = arith.constant 1.280000e+02 : f32
    %18 = vector.broadcast %cst_10 : f32 to vector<128x1xf32>
    %19 = arith.divf %17, %18 : vector<128x1xf32>
    %20 = vector.broadcast %12 : vector<128x1xf32> to vector<128x128xf32>
    %21 = arith.subf %8, %20 : vector<128x128xf32>
    %cst_11 = arith.constant 9.99999974E-6 : f32
    %22 = vector.broadcast %cst_11 : f32 to vector<128x1xf32>
    %23 = arith.addf %19, %22 : vector<128x1xf32>
    %24 = math.rsqrt %23 : vector<128x1xf32>
    %25 = vector.broadcast %24 : vector<128x1xf32> to vector<128x128xf32>
    %26 = arith.mulf %21, %25 : vector<128x128xf32>
    %27 = vector.broadcast %5 : vector<1x128xf32> to vector<128x128xf32>
    %28 = arith.mulf %26, %27 : vector<128x128xf32>
    %29 = vector.broadcast %7 : vector<1x128xf32> to vector<128x128xf32>
    %30 = arith.addf %28, %29 : vector<128x128xf32>
    %31 = arith.truncf %30 : vector<128x128xf32> to vector<128x128xbf16>
    %c0_12 = arith.constant 0 : index
    %c0_13 = arith.constant 0 : index
    %c0_14 = arith.constant 0 : index
    %32 = vector.load %arg7[%c0_12, %c0_13, %c0_14] : memref<1x128x384xbf16, #tpu.memory_space<vmem>>, vector<1x128x384xbf16>
    %33 = vector.shape_cast %32 : vector<1x128x384xbf16> to vector<128x384xbf16>
    %cst_15 = arith.constant dense<0.000000e+00> : vector<128x384xf32>
    %34 = tpu.matmul %31, %33, %cst_15 {dimension_numbers = #tpu.dot_dimension_numbers<[1], [0], [0], [1], [0, 0, 1, 1], [], []>} : vector<128x128xbf16>, vector<128x384xbf16>, vector<128x384xf32> -> vector<128x384xf32>
    %c0_16 = arith.constant 0 : index
    %c0_17 = arith.constant 0 : index
    %c0_18 = arith.constant 0 : index
    %35 = vector.load %arg8[%c0_16, %c0_17, %c0_18] : memref<1x1x384xf32, #tpu.memory_space<vmem>>, vector<1x1x384xf32>
    %36 = vector.shape_cast %35 : vector<1x1x384xf32> to vector<1x384xf32>
    %37 = vector.broadcast %36 : vector<1x384xf32> to vector<128x384xf32>
    %38 = arith.addf %34, %37 : vector<128x384xf32>
    %39 = arith.truncf %38 : vector<128x384xf32> to vector<128x384xbf16>
    %40 = tpu.iota {dimensions = array<i32: 0>} : vector<128x128xi32>
    %41 = tpu.iota {dimensions = array<i32: 1>} : vector<128x128xi32>
    %42 = arith.cmpi sle, %41, %40 : vector<128x128xi32>
    %43 = vector.extract_strided_slice %39 {offsets = [0, 0], sizes = [128, 32], strides = [1, 1]} : vector<128x384xbf16> to vector<128x32xbf16>
    %44 = vector.extract_strided_slice %39 {offsets = [0, 128], sizes = [128, 32], strides = [1, 1]} : vector<128x384xbf16> to vector<128x32xbf16>
    %45 = vector.extract_strided_slice %39 {offsets = [0, 256], sizes = [128, 32], strides = [1, 1]} : vector<128x384xbf16> to vector<128x32xbf16>
    "tpu.trace_start"() <{level = 10 : i32, message = "td,sd->ts"}> : () -> ()
    %cst_19 = arith.constant dense<0.000000e+00> : vector<128x128xf32>
    %46 = tpu.matmul %43, %44, %cst_19 {dimension_numbers = #tpu.dot_dimension_numbers<[1], [1], [0], [0], [0, 0, 1, 0], [], []>} : vector<128x32xbf16>, vector<128x32xbf16>, vector<128x128xf32> -> vector<128x128xf32>
    %cst_20 = arith.constant -1.000000e+30 : f32
    "tpu.trace_stop"() : () -> ()
    %47 = vector.broadcast %cst_20 : f32 to vector<128x128xf32>
    %48 = arith.select %42, %46, %47 : vector<128x128xi1>, vector<128x128xf32>
    %cst_21 = arith.constant dense<0xFF800000> : vector<128xf32>
    %49 = vector.multi_reduction <maximumf>, %48, %cst_21 [1] : vector<128x128xf32> to vector<128xf32>
    %50 = vector.shape_cast %49 : vector<128xf32> to vector<128x1xf32>
    %51 = vector.broadcast %50 : vector<128x1xf32> to vector<128x128xf32>
    %52 = arith.subf %48, %51 : vector<128x128xf32>
    %53 = math.exp %52 : vector<128x128xf32>
    %cst_22 = arith.constant dense<0.000000e+00> : vector<128xf32>
    %54 = vector.multi_reduction <add>, %53, %cst_22 [1] : vector<128x128xf32> to vector<128xf32>
    %55 = vector.shape_cast %54 : vector<128xf32> to vector<128x1xf32>
    %56 = vector.broadcast %55 : vector<128x1xf32> to vector<128x128xf32>
    %57 = arith.divf %53, %56 : vector<128x128xf32>
    %58 = arith.truncf %57 : vector<128x128xf32> to vector<128x128xbf16>
    "tpu.trace_start"() <{level = 10 : i32, message = "ts,sd->td"}> : () -> ()
    %cst_23 = arith.constant dense<0.000000e+00> : vector<128x32xf32>
    %59 = tpu.matmul %58, %45, %cst_23 {dimension_numbers = #tpu.dot_dimension_numbers<[1], [0], [0], [1], [0, 0, 1, 1], [], []>} : vector<128x128xbf16>, vector<128x32xbf16>, vector<128x32xf32> -> vector<128x32xf32>
    "tpu.trace_stop"() : () -> ()
    %60 = arith.truncf %59 : vector<128x32xf32> to vector<128x32xbf16>
    %61 = vector.extract_strided_slice %39 {offsets = [0, 32], sizes = [128, 32], strides = [1, 1]} : vector<128x384xbf16> to vector<128x32xbf16>
    %62 = vector.extract_strided_slice %39 {offsets = [0, 160], sizes = [128, 32], strides = [1, 1]} : vector<128x384xbf16> to vector<128x32xbf16>
    %63 = vector.extract_strided_slice %39 {offsets = [0, 288], sizes = [128, 32], strides = [1, 1]} : vector<128x384xbf16> to vector<128x32xbf16>
    "tpu.trace_start"() <{level = 10 : i32, message = "td,sd->ts"}> : () -> ()
    %cst_24 = arith.constant dense<0.000000e+00> : vector<128x128xf32>
    %64 = tpu.matmul %61, %62, %cst_24 {dimension_numbers = #tpu.dot_dimension_numbers<[1], [1], [0], [0], [0, 0, 1, 0], [], []>} : vector<128x32xbf16>, vector<128x32xbf16>, vector<128x128xf32> -> vector<128x128xf32>
    %cst_25 = arith.constant -1.000000e+30 : f32
    "tpu.trace_stop"() : () -> ()
    %65 = vector.broadcast %cst_25 : f32 to vector<128x128xf32>
    %66 = arith.select %42, %64, %65 : vector<128x128xi1>, vector<128x128xf32>
    %cst_26 = arith.constant dense<0xFF800000> : vector<128xf32>
    %67 = vector.multi_reduction <maximumf>, %66, %cst_26 [1] : vector<128x128xf32> to vector<128xf32>
    %68 = vector.shape_cast %67 : vector<128xf32> to vector<128x1xf32>
    %69 = vector.broadcast %68 : vector<128x1xf32> to vector<128x128xf32>
    %70 = arith.subf %66, %69 : vector<128x128xf32>
    %71 = math.exp %70 : vector<128x128xf32>
    %cst_27 = arith.constant dense<0.000000e+00> : vector<128xf32>
    %72 = vector.multi_reduction <add>, %71, %cst_27 [1] : vector<128x128xf32> to vector<128xf32>
    %73 = vector.shape_cast %72 : vector<128xf32> to vector<128x1xf32>
    %74 = vector.broadcast %73 : vector<128x1xf32> to vector<128x128xf32>
    %75 = arith.divf %71, %74 : vector<128x128xf32>
    %76 = arith.truncf %75 : vector<128x128xf32> to vector<128x128xbf16>
    "tpu.trace_start"() <{level = 10 : i32, message = "ts,sd->td"}> : () -> ()
    %cst_28 = arith.constant dense<0.000000e+00> : vector<128x32xf32>
    %77 = tpu.matmul %76, %63, %cst_28 {dimension_numbers = #tpu.dot_dimension_numbers<[1], [0], [0], [1], [0, 0, 1, 1], [], []>} : vector<128x128xbf16>, vector<128x32xbf16>, vector<128x32xf32> -> vector<128x32xf32>
    "tpu.trace_stop"() : () -> ()
    %78 = arith.truncf %77 : vector<128x32xf32> to vector<128x32xbf16>
    %79 = vector.extract_strided_slice %39 {offsets = [0, 64], sizes = [128, 32], strides = [1, 1]} : vector<128x384xbf16> to vector<128x32xbf16>
    %80 = vector.extract_strided_slice %39 {offsets = [0, 192], sizes = [128, 32], strides = [1, 1]} : vector<128x384xbf16> to vector<128x32xbf16>
    %81 = vector.extract_strided_slice %39 {offsets = [0, 320], sizes = [128, 32], strides = [1, 1]} : vector<128x384xbf16> to vector<128x32xbf16>
    "tpu.trace_start"() <{level = 10 : i32, message = "td,sd->ts"}> : () -> ()
    %cst_29 = arith.constant dense<0.000000e+00> : vector<128x128xf32>
    %82 = tpu.matmul %79, %80, %cst_29 {dimension_numbers = #tpu.dot_dimension_numbers<[1], [1], [0], [0], [0, 0, 1, 0], [], []>} : vector<128x32xbf16>, vector<128x32xbf16>, vector<128x128xf32> -> vector<128x128xf32>
    %cst_30 = arith.constant -1.000000e+30 : f32
    "tpu.trace_stop"() : () -> ()
    %83 = vector.broadcast %cst_30 : f32 to vector<128x128xf32>
    %84 = arith.select %42, %82, %83 : vector<128x128xi1>, vector<128x128xf32>
    %cst_31 = arith.constant dense<0xFF800000> : vector<128xf32>
    %85 = vector.multi_reduction <maximumf>, %84, %cst_31 [1] : vector<128x128xf32> to vector<128xf32>
    %86 = vector.shape_cast %85 : vector<128xf32> to vector<128x1xf32>
    %87 = vector.broadcast %86 : vector<128x1xf32> to vector<128x128xf32>
    %88 = arith.subf %84, %87 : vector<128x128xf32>
    %89 = math.exp %88 : vector<128x128xf32>
    %cst_32 = arith.constant dense<0.000000e+00> : vector<128xf32>
    %90 = vector.multi_reduction <add>, %89, %cst_32 [1] : vector<128x128xf32> to vector<128xf32>
    %91 = vector.shape_cast %90 : vector<128xf32> to vector<128x1xf32>
    %92 = vector.broadcast %91 : vector<128x1xf32> to vector<128x128xf32>
    %93 = arith.divf %89, %92 : vector<128x128xf32>
    %94 = arith.truncf %93 : vector<128x128xf32> to vector<128x128xbf16>
    "tpu.trace_start"() <{level = 10 : i32, message = "ts,sd->td"}> : () -> ()
    %cst_33 = arith.constant dense<0.000000e+00> : vector<128x32xf32>
    %95 = tpu.matmul %94, %81, %cst_33 {dimension_numbers = #tpu.dot_dimension_numbers<[1], [0], [0], [1], [0, 0, 1, 1], [], []>} : vector<128x128xbf16>, vector<128x32xbf16>, vector<128x32xf32> -> vector<128x32xf32>
    "tpu.trace_stop"() : () -> ()
    %96 = arith.truncf %95 : vector<128x32xf32> to vector<128x32xbf16>
    %97 = vector.extract_strided_slice %39 {offsets = [0, 96], sizes = [128, 32], strides = [1, 1]} : vector<128x384xbf16> to vector<128x32xbf16>
    %98 = vector.extract_strided_slice %39 {offsets = [0, 224], sizes = [128, 32], strides = [1, 1]} : vector<128x384xbf16> to vector<128x32xbf16>
    %99 = vector.extract_strided_slice %39 {offsets = [0, 352], sizes = [128, 32], strides = [1, 1]} : vector<128x384xbf16> to vector<128x32xbf16>
    "tpu.trace_start"() <{level = 10 : i32, message = "td,sd->ts"}> : () -> ()
    %cst_34 = arith.constant dense<0.000000e+00> : vector<128x128xf32>
    %100 = tpu.matmul %97, %98, %cst_34 {dimension_numbers = #tpu.dot_dimension_numbers<[1], [1], [0], [0], [0, 0, 1, 0], [], []>} : vector<128x32xbf16>, vector<128x32xbf16>, vector<128x128xf32> -> vector<128x128xf32>
    %cst_35 = arith.constant -1.000000e+30 : f32
    "tpu.trace_stop"() : () -> ()
    %101 = vector.broadcast %cst_35 : f32 to vector<128x128xf32>
    %102 = arith.select %42, %100, %101 : vector<128x128xi1>, vector<128x128xf32>
    %cst_36 = arith.constant dense<0xFF800000> : vector<128xf32>
    %103 = vector.multi_reduction <maximumf>, %102, %cst_36 [1] : vector<128x128xf32> to vector<128xf32>
    %104 = vector.shape_cast %103 : vector<128xf32> to vector<128x1xf32>
    %105 = vector.broadcast %104 : vector<128x1xf32> to vector<128x128xf32>
    %106 = arith.subf %102, %105 : vector<128x128xf32>
    %107 = math.exp %106 : vector<128x128xf32>
    %cst_37 = arith.constant dense<0.000000e+00> : vector<128xf32>
    %108 = vector.multi_reduction <add>, %107, %cst_37 [1] : vector<128x128xf32> to vector<128xf32>
    %109 = vector.shape_cast %108 : vector<128xf32> to vector<128x1xf32>
    %110 = vector.broadcast %109 : vector<128x1xf32> to vector<128x128xf32>
    %111 = arith.divf %107, %110 : vector<128x128xf32>
    %112 = arith.truncf %111 : vector<128x128xf32> to vector<128x128xbf16>
    "tpu.trace_start"() <{level = 10 : i32, message = "ts,sd->td"}> : () -> ()
    %cst_38 = arith.constant dense<0.000000e+00> : vector<128x32xf32>
    %113 = tpu.matmul %112, %99, %cst_38 {dimension_numbers = #tpu.dot_dimension_numbers<[1], [0], [0], [1], [0, 0, 1, 1], [], []>} : vector<128x128xbf16>, vector<128x32xbf16>, vector<128x32xf32> -> vector<128x32xf32>
    "tpu.trace_stop"() : () -> ()
    %114 = arith.truncf %113 : vector<128x32xf32> to vector<128x32xbf16>
    %115 = tpu.concatenate %60, %78, %96, %114 in 1 : vector<128x32xbf16>, vector<128x32xbf16>, vector<128x32xbf16>, vector<128x32xbf16> -> vector<128x128xbf16>
    %c0_39 = arith.constant 0 : index
    %c0_40 = arith.constant 0 : index
    %c0_41 = arith.constant 0 : index
    %116 = vector.load %arg9[%c0_39, %c0_40, %c0_41] : memref<1x128x128xbf16, #tpu.memory_space<vmem>>, vector<1x128x128xbf16>
    %117 = vector.shape_cast %116 : vector<1x128x128xbf16> to vector<128x128xbf16>
    %cst_42 = arith.constant dense<0.000000e+00> : vector<128x128xf32>
    %118 = tpu.matmul %115, %117, %cst_42 {dimension_numbers = #tpu.dot_dimension_numbers<[1], [0], [0], [1], [0, 0, 1, 1], [], []>} : vector<128x128xbf16>, vector<128x128xbf16>, vector<128x128xf32> -> vector<128x128xf32>
    %c0_43 = arith.constant 0 : index
    %c0_44 = arith.constant 0 : index
    %c0_45 = arith.constant 0 : index
    %119 = vector.load %arg10[%c0_43, %c0_44, %c0_45] : memref<1x1x128xf32, #tpu.memory_space<vmem>>, vector<1x1x128xf32>
    %120 = vector.shape_cast %119 : vector<1x1x128xf32> to vector<1x128xf32>
    %121 = vector.broadcast %120 : vector<1x128xf32> to vector<128x128xf32>
    %122 = arith.addf %118, %121 : vector<128x128xf32>
    %123 = arith.extf %3 : vector<128x128xbf16> to vector<128x128xf32>
    %124 = arith.addf %123, %122 : vector<128x128xf32>
    %125 = arith.truncf %124 : vector<128x128xf32> to vector<128x128xbf16>
    %c0_46 = arith.constant 0 : index
    %c0_47 = arith.constant 0 : index
    %c0_48 = arith.constant 0 : index
    %126 = vector.load %arg5[%c0_46, %c0_47, %c0_48] : memref<1x1x128xf32, #tpu.memory_space<vmem>>, vector<1x1x128xf32>
    %127 = vector.shape_cast %126 : vector<1x1x128xf32> to vector<1x128xf32>
    %c0_49 = arith.constant 0 : index
    %c0_50 = arith.constant 0 : index
    %c0_51 = arith.constant 0 : index
    %128 = vector.load %arg6[%c0_49, %c0_50, %c0_51] : memref<1x1x128xf32, #tpu.memory_space<vmem>>, vector<1x1x128xf32>
    %129 = vector.shape_cast %128 : vector<1x1x128xf32> to vector<1x128xf32>
    %130 = arith.extf %125 : vector<128x128xbf16> to vector<128x128xf32>
    %cst_52 = arith.constant dense<0.000000e+00> : vector<128xf32>
    %131 = vector.multi_reduction <add>, %130, %cst_52 [1] : vector<128x128xf32> to vector<128xf32>
    %132 = vector.shape_cast %131 : vector<128xf32> to vector<128x1xf32>
    %cst_53 = arith.constant 1.280000e+02 : f32
    %133 = vector.broadcast %cst_53 : f32 to vector<128x1xf32>
    %134 = arith.divf %132, %133 : vector<128x1xf32>
    %135 = vector.broadcast %134 : vector<128x1xf32> to vector<128x128xf32>
    %136 = arith.subf %130, %135 : vector<128x128xf32>
    %137 = arith.mulf %136, %136 : vector<128x128xf32>
    %cst_54 = arith.constant dense<0.000000e+00> : vector<128xf32>
    %138 = vector.multi_reduction <add>, %137, %cst_54 [1] : vector<128x128xf32> to vector<128xf32>
    %139 = vector.shape_cast %138 : vector<128xf32> to vector<128x1xf32>
    %cst_55 = arith.constant 1.280000e+02 : f32
    %140 = vector.broadcast %cst_55 : f32 to vector<128x1xf32>
    %141 = arith.divf %139, %140 : vector<128x1xf32>
    %142 = vector.broadcast %134 : vector<128x1xf32> to vector<128x128xf32>
    %143 = arith.subf %130, %142 : vector<128x128xf32>
    %cst_56 = arith.constant 9.99999974E-6 : f32
    %144 = vector.broadcast %cst_56 : f32 to vector<128x1xf32>
    %145 = arith.addf %141, %144 : vector<128x1xf32>
    %146 = math.rsqrt %145 : vector<128x1xf32>
    %147 = vector.broadcast %146 : vector<128x1xf32> to vector<128x128xf32>
    %148 = arith.mulf %143, %147 : vector<128x128xf32>
    %149 = vector.broadcast %127 : vector<1x128xf32> to vector<128x128xf32>
    %150 = arith.mulf %148, %149 : vector<128x128xf32>
    %151 = vector.broadcast %129 : vector<1x128xf32> to vector<128x128xf32>
    %152 = arith.addf %150, %151 : vector<128x128xf32>
    %153 = arith.truncf %152 : vector<128x128xf32> to vector<128x128xbf16>
    %c0_57 = arith.constant 0 : index
    %c0_58 = arith.constant 0 : index
    %c0_59 = arith.constant 0 : index
    %154 = vector.load %arg11[%c0_57, %c0_58, %c0_59] : memref<1x128x512xbf16, #tpu.memory_space<vmem>>, vector<1x128x512xbf16>
    %155 = vector.shape_cast %154 : vector<1x128x512xbf16> to vector<128x512xbf16>
    %cst_60 = arith.constant dense<0.000000e+00> : vector<128x512xf32>
    %156 = tpu.matmul %153, %155, %cst_60 {dimension_numbers = #tpu.dot_dimension_numbers<[1], [0], [0], [1], [0, 0, 1, 1], [], []>} : vector<128x128xbf16>, vector<128x512xbf16>, vector<128x512xf32> -> vector<128x512xf32>
    %c0_61 = arith.constant 0 : index
    %c0_62 = arith.constant 0 : index
    %c0_63 = arith.constant 0 : index
    %157 = vector.load %arg12[%c0_61, %c0_62, %c0_63] : memref<1x1x512xf32, #tpu.memory_space<vmem>>, vector<1x1x512xf32>
    %158 = vector.shape_cast %157 : vector<1x1x512xf32> to vector<1x512xf32>
    %159 = vector.broadcast %158 : vector<1x512xf32> to vector<128x512xf32>
    %160 = arith.addf %156, %159 : vector<128x512xf32>
    %cst_64 = arith.constant 5.000000e-01 : f32
    %161 = vector.broadcast %cst_64 : f32 to vector<128x512xf32>
    %162 = arith.mulf %161, %160 : vector<128x512xf32>
    %cst_65 = arith.constant 0.707106769 : f32
    %163 = vector.broadcast %cst_65 : f32 to vector<128x512xf32>
    %164 = arith.mulf %160, %163 : vector<128x512xf32>
    %165 = math.erf %164 : vector<128x512xf32>
    %cst_66 = arith.constant 1.000000e+00 : f32
    %166 = vector.broadcast %cst_66 : f32 to vector<128x512xf32>
    %167 = arith.addf %166, %165 : vector<128x512xf32>
    %168 = arith.mulf %162, %167 : vector<128x512xf32>
    %169 = arith.truncf %168 : vector<128x512xf32> to vector<128x512xbf16>
    %c0_67 = arith.constant 0 : index
    %c0_68 = arith.constant 0 : index
    %c0_69 = arith.constant 0 : index
    %170 = vector.load %arg13[%c0_67, %c0_68, %c0_69] : memref<1x512x128xbf16, #tpu.memory_space<vmem>>, vector<1x512x128xbf16>
    %171 = vector.shape_cast %170 : vector<1x512x128xbf16> to vector<512x128xbf16>
    %cst_70 = arith.constant dense<0.000000e+00> : vector<128x128xf32>
    %172 = tpu.matmul %169, %171, %cst_70 {dimension_numbers = #tpu.dot_dimension_numbers<[1], [0], [0], [1], [0, 0, 1, 1], [], []>} : vector<128x512xbf16>, vector<512x128xbf16>, vector<128x128xf32> -> vector<128x128xf32>
    %c0_71 = arith.constant 0 : index
    %c0_72 = arith.constant 0 : index
    %c0_73 = arith.constant 0 : index
    %173 = vector.load %arg14[%c0_71, %c0_72, %c0_73] : memref<1x1x128xf32, #tpu.memory_space<vmem>>, vector<1x1x128xf32>
    %174 = vector.shape_cast %173 : vector<1x1x128xf32> to vector<1x128xf32>
    %175 = vector.broadcast %174 : vector<1x128xf32> to vector<128x128xf32>
    %176 = arith.addf %172, %175 : vector<128x128xf32>
    %177 = arith.extf %125 : vector<128x128xbf16> to vector<128x128xf32>
    %178 = arith.addf %177, %176 : vector<128x128xf32>
    %179 = arith.truncf %178 : vector<128x128xf32> to vector<128x128xbf16>
    %c0_74 = arith.constant 0 : index
    %c0_75 = arith.constant 0 : index
    %180 = vector.load %arg16[%c0_74, %c0_75] : memref<128x128xbf16, #tpu.memory_space<vmem>>, vector<128x128xbf16>
    tpu.vector_store %arg16[%c0_74, %c0_75], %179 {strides = array<i32>} : memref<128x128xbf16, #tpu.memory_space<vmem>>, vector<128x128xbf16>,
    %c1_i32 = arith.constant 1 : i32
    %181 = arith.cmpi eq, %arg1, %c1_i32 : i32
    %182 = arith.extui %181 : i1 to i32
    %c0_i32_76 = arith.constant 0 : i32
    %183 = arith.cmpi ne, %182, %c0_i32_76 : i32
    scf.if %183 {
      %c0_77 = arith.constant 0 : index
      %c0_78 = arith.constant 0 : index
      %c0_79 = arith.constant 0 : index
      %184 = vector.load %arg15[%c0_77, %c0_78, %c0_79] : memref<1x128x128xbf16, #tpu.memory_space<vmem>>, vector<1x128x128xbf16>
      %185 = vector.shape_cast %184 : vector<1x128x128xbf16> to vector<128x128xbf16>
      %186 = vector.shape_cast %179 : vector<128x128xbf16> to vector<1x128x128xbf16>
      tpu.vector_store %arg15[%c0_77, %c0_78, %c0_79], %186 {strides = array<i32>} : memref<1x128x128xbf16, #tpu.memory_space<vmem>>, vector<1x128x128xbf16>,
    } else {
    }
    return
  }
  func.func @transform_0(%arg0: i32, %arg1: i32) -> (i32, i32, i32) {
    %c0_i32 = arith.constant 0 : i32
    %c0_i32_0 = arith.constant 0 : i32
    %c0_i32_1 = arith.constant 0 : i32
    return %arg0, %c0_i32, %c0_i32_0 : i32, i32, i32
  }
  func.func @transform_1(%arg0: i32, %arg1: i32) -> (i32, i32, i32) {
    %c0_i32 = arith.constant 0 : i32
    %c0_i32_0 = arith.constant 0 : i32
    %c0_i32_1 = arith.constant 0 : i32
    return %arg1, %c0_i32, %c0_i32_0 : i32, i32, i32
  }
  func.func @transform_2(%arg0: i32, %arg1: i32) -> (i32, i32, i32) {
    %c0_i32 = arith.constant 0 : i32
    %c0_i32_0 = arith.constant 0 : i32
    %c0_i32_1 = arith.constant 0 : i32
    return %arg1, %c0_i32, %c0_i32_0 : i32, i32, i32
  }
  func.func @transform_3(%arg0: i32, %arg1: i32) -> (i32, i32, i32) {
    %c0_i32 = arith.constant 0 : i32
    %c0_i32_0 = arith.constant 0 : i32
    %c0_i32_1 = arith.constant 0 : i32
    return %arg1, %c0_i32, %c0_i32_0 : i32, i32, i32
  }
  func.func @transform_4(%arg0: i32, %arg1: i32) -> (i32, i32, i32) {
    %c0_i32 = arith.constant 0 : i32
    %c0_i32_0 = arith.constant 0 : i32
    %c0_i32_1 = arith.constant 0 : i32
    return %arg1, %c0_i32, %c0_i32_0 : i32, i32, i32
  }
  func.func @transform_5(%arg0: i32, %arg1: i32) -> (i32, i32, i32) {
    %c0_i32 = arith.constant 0 : i32
    %c0_i32_0 = arith.constant 0 : i32
    %c0_i32_1 = arith.constant 0 : i32
    return %arg1, %c0_i32, %c0_i32_0 : i32, i32, i32
  }
  func.func @transform_6(%arg0: i32, %arg1: i32) -> (i32, i32, i32) {
    %c0_i32 = arith.constant 0 : i32
    %c0_i32_0 = arith.constant 0 : i32
    %c0_i32_1 = arith.constant 0 : i32
    return %arg1, %c0_i32, %c0_i32_0 : i32, i32, i32
  }
  func.func @transform_7(%arg0: i32, %arg1: i32) -> (i32, i32, i32) {
    %c0_i32 = arith.constant 0 : i32
    %c0_i32_0 = arith.constant 0 : i32
    %c0_i32_1 = arith.constant 0 : i32
    return %arg1, %c0_i32, %c0_i32_0 : i32, i32, i32
  }
  func.func @transform_8(%arg0: i32, %arg1: i32) -> (i32, i32, i32) {
    %c0_i32 = arith.constant 0 : i32
    %c0_i32_0 = arith.constant 0 : i32
    %c0_i32_1 = arith.constant 0 : i32
    return %arg1, %c0_i32, %c0_i32_0 : i32, i32, i32
  }
  func.func @transform_9(%arg0: i32, %arg1: i32) -> (i32, i32, i32) {
    %c0_i32 = arith.constant 0 : i32
    %c0_i32_0 = arith.constant 0 : i32
    %c0_i32_1 = arith.constant 0 : i32
    return %arg1, %c0_i32, %c0_i32_0 : i32, i32, i32
  }
  func.func @transform_10(%arg0: i32, %arg1: i32) -> (i32, i32, i32) {
    %c0_i32 = arith.constant 0 : i32
    %c0_i32_0 = arith.constant 0 : i32
    %c0_i32_1 = arith.constant 0 : i32
    return %arg1, %c0_i32, %c0_i32_0 : i32, i32, i32
  }
  func.func @transform_11(%arg0: i32, %arg1: i32) -> (i32, i32, i32) {
    %c0_i32 = arith.constant 0 : i32
    %c0_i32_0 = arith.constant 0 : i32
    %c0_i32_1 = arith.constant 0 : i32
    return %arg1, %c0_i32, %c0_i32_0 : i32, i32, i32
  }
  func.func @transform_12(%arg0: i32, %arg1: i32) -> (i32, i32, i32) {
    %c0_i32 = arith.constant 0 : i32
    %c0_i32_0 = arith.constant 0 : i32
    %c0_i32_1 = arith.constant 0 : i32
    return %arg1, %c0_i32, %c0_i32_0 : i32, i32, i32
  }
  func.func @transform_13(%arg0: i32, %arg1: i32) -> (i32, i32, i32) {
    %c0_i32 = arith.constant 0 : i32
    %c0_i32_0 = arith.constant 0 : i32
    %c0_i32_1 = arith.constant 0 : i32
    return %arg0, %c0_i32, %c0_i32_0 : i32, i32, i32
  }
}

</mosaic_0001>

<bundles_post_ra>
// kernel: tpu_custom_call.1
= control target key start
LH: loop header
LB: loop body
LE: loop exit
PB: predicated region body
PF: predicated region fallthrough
CT: control target
= control target key end

     0   :  { %s11255_s0 = inlined_call_operand.hbm [shape: bf16[2,128,128], index: 0, kind: input, shape index: {}]   ;;  %s11256_s1 = inlined_call_operand.hbm [shape: f32[2,1,128], index: 1, kind: input, shape index: {}]   ;;  %s11257_s2 = inlined_call_operand.hbm [shape: f32[2,1,128], index: 2, kind: input, shape index: {}]   ;;  %s11258_s3 = inlined_call_operand.hbm [shape: f32[2,1,128], index: 3, kind: input, shape index: {}]   ;;  %s11259_s4 = inlined_call_operand.hbm [shape: f32[2,1,128], index: 4, kind: input, shape index: {}]   ;;  %s11260_s5 = inlined_call_operand.hbm [shape: bf16[2,128,384], index: 5, kind: input, shape index: {}]   ;;  %s11261_s6 = inlined_call_operand.hbm [shape: f32[2,1,384], index: 6, kind: input, shape index: {}]   ;;  %s11262_s7 = inlined_call_operand.hbm [shape: bf16[2,128,128], index: 7, kind: input, shape index: {}]   ;;  %s11263_s8 = inlined_call_operand.hbm [shape: f32[2,1,128], index: 8, kind: input, shape index: {}]   ;;  %s11264_s9 = inlined_call_operand.hbm [shape: bf16[2,128,512], index: 9, kind: input, shape index: {}]   ;;  %s11265_s10 = inlined_call_operand.hbm [shape: f32[2,1,512], index: 10, kind: input, shape index: {}]   ;;  %s11266_s11 = inlined_call_operand.hbm [shape: bf16[2,512,128], index: 11, kind: input, shape index: {}]   ;;  %s11267_s12 = inlined_call_operand.hbm [shape: f32[2,1,128], index: 12, kind: input, shape index: {}]   ;;  %s11268_s13 = inlined_call_operand.hbm [shape: bf16[2,128,128], index: 13, kind: output, shape index: {}]  }
   0x1   :  { %11414 = sst [smem:[#allocation110_spill]] %s11255_s0 }
   0x2   :  { %11415 = sst [smem:[#allocation111_spill]] %s11256_s1 }
   0x3   :  { %11416 = sst [smem:[#allocation112_spill]] %s11257_s2 }
   0x4   :  { %11417 = sst [smem:[#allocation113_spill]] %s11258_s3 }
   0x5   :  { %11418 = sst [smem:[#allocation114_spill]] %s11259_s4 }
   0x6   :  { %11419 = sst [smem:[#allocation115_spill]] %s11260_s5 }
   0x7   :  { %11420 = sst [smem:[#allocation116_spill]] %s11261_s6 }
   0x8   :  { %11421 = sst [smem:[#allocation117_spill]] %s11262_s7 }
   0x9   :  { %11422 = sst [smem:[#allocation118_spill]] %s11263_s8 }
   0xa   :  { %11423 = sst [smem:[#allocation119_spill]] %s11264_s9 }
   0xb   :  { %11424 = sst [smem:[#allocation120_spill]] %s11265_s10 }
   0xc   :  { %11425 = sst [smem:[#allocation121_spill]] %s11266_s11 }
   0xd   :  { %11426 = sst [smem:[#allocation122_spill]] %s11267_s12 }
   0xe   :  { %11427 = sst [smem:[#allocation123_spill]] %s11268_s13 }
   0xf   :  { %18 = vsyncpa [#allocation4], 0 }
  0x10   :  { %20 = vsyncpa [#allocation4 + $0x1], 0 }
  0x11   :  { %21 = vsyncpa [#allocation7], 0 }
  0x12   :  { %23 = vsyncpa [#allocation7 + $0x1], 0 }
  0x13   :  { %24 = vsyncpa [#allocation10], 0 }
  0x14   :  { %26 = vsyncpa [#allocation10 + $0x1], 0 }
  0x15   :  { %27 = vsyncpa [#allocation13], 0 }
  0x16   :  { %29 = vsyncpa [#allocation13 + $0x1], 0 }
  0x17   :  { %30 = vsyncpa [#allocation16], 0 }
  0x18   :  { %32 = vsyncpa [#allocation16 + $0x1], 0 }
  0x19   :  { %33 = vsyncpa [#allocation19], 0 }
  0x1a   :  { %35 = vsyncpa [#allocation19 + $0x1], 0 }
  0x1b   :  { %36 = vsyncpa [#allocation22], 0 }
  0x1c   :  { %38 = vsyncpa [#allocation22 + $0x1], 0 }
  0x1d   :  { %39 = vsyncpa [#allocation5], 0 }
  0x1e   :  { %41 = vsyncpa [#allocation5 + $0x1], 0  ;;  %s8119_s25 = smov 0   ;;  %s8121_s26 = smov 0  }
  0x1f   :  { %s8123_s27 = smov 0   ;;  %s8125_s28 = smov 0  }
  0x20   :  { %s8127_s29 = smov 0   ;;  %s8129_s30 = smov 0  }
  0x21   :  { %s8131_s14 = smov 0   ;;  %s8133_s15 = smov 0  }
  0x22   :  { %s8135_s16 = smov 0   ;;  %s8137_s17 = smov 0  }
  0x23   :  { %s8139_s18 = smov 0  }
  0x24 LB: > { %11428 = sst [smem:[#allocation33_spill]] %s7990_s27  ;;  %p11276_p0 = scmp.eq.s32.totalorder %s8022_s18, 0  ;;  %s8022_s18 = sphi %s8139_s18, %s47_s18   ;;  %s8018_s17 = sphi %s8137_s17, %s11732_s17   ;;  %s8014_s16 = sphi %s8135_s16, %s11731_s16   ;;  %s8010_s15 = sphi %s8133_s15, %s11723_s15   ;;  %s8006_s14 = sphi %s8131_s14, %s11730_s14   ;;  %s8002_s30 = sphi %s8129_s30, %s11722_s30   ;;  %s7998_s29 = sphi %s8127_s29, %s11729_s29   ;;  %s7994_s28 = sphi %s8125_s28, %s11728_s28   ;;  %s7990_s27 = sphi %s8123_s27, %s11720_s27   ;;  %s7986_s26 = sphi %s8121_s26, %s11727_s26   ;;  %s7982_s25 = sphi %s8119_s25, %s11726_s25  }
  0x25   : > { %11429 = sst [smem:[#allocation34_spill]] %s7994_s28  ;;  %p99_p1 = scmp.ne.s32.totalorder %s7990_s27, %s7986_s26 }
  0x26   : > { %11430 = sst [smem:[#allocation35_spill]] %s8002_s30  ;;  %p11275_p2 = scmp.lt.s32.totalorder %s8022_s18, 4 }
  0x27   : > { %11431 = sst [smem:[#allocation36_spill]] %s8006_s14  ;;  %p101_p3 = por %p99_p1, %p11276_p0 }
  0x28   : > { %11432 = sst [smem:[#allocation37_spill]] %s8010_s15  ;;  %s8181_s19 = sand.u32 1, %s8022_s18  }
  0x29   : > { %11433 = sst [smem:[#allocation38_spill]] %s8018_s17  ;;  %s8184_s20 = sand.u32 1, %s7990_s27  }
  0x2a   : > { %s8187_s21 = sshll.u32 %s8014_s16, 4  ;;  %s11434_s1 = sld [smem:[#allocation111_spill]] }
  0x2b   : > { %s465_s13 = scalar_lea.vmem [#allocation6], %s8184_s20  ;;  %p8200_p4 = pnand %p11275_p2, %p101_p3 }
  0x2c   : > { %s472_s15 = sshll.u32 %s465_s13, 4  ;;  %s8196_s15 = int_to_ptr.vmem [resolvable:$true] %s472_s15 }
  0x2d   : > { %s11435_s14 = scalar_select %p8200_p4, 1, 0 }
  0x2e   : > { %p8211_p8 = pneg %p8200_p4 }
  0x30   : > { %s8193_s24 = scalar_lea.hbm %s11434_s1, %s8187_s21  ;;  %s7491_s8 = scalar_lea.hbm %s11434_s1, 32 }
  0x31   : > { %s7486_s22 = scalar_lea.hbm %s8193_s24, 16  ;;  %p7492_p11 = scmp.lt.u32.totalorder %s8193_s24, %s11434_s1 }
  0x32   : > { %p7487_p7 = scmp.ne.s32.totalorder %s8193_s24, %s7486_s22  ;;  %p7493_p12 = scmp.lt.u32.totalorder %s7491_s8, %s7486_s22 }
  0x33   : > { %p7495_p1 = scmp.lt.u32.totalorder %s7486_s22, %s8193_s24 }
  0x34   : > { %p7489_p9 = pnand %p8211_p8, %p7487_p7  ;;  %p7494_p13 = por %p7493_p12, %p7492_p11 }
  0x36   : > { %p7490_p10 = pneg %p7489_p9  ;;  %p7496_p3 = por %p7495_p1, %p7494_p13 }
  0x38   : > { %p7497_p2 = pnand %p7496_p3, %p7490_p10 }
  0x3a   : > { %7500 = shalt.err (!%p7497_p2)
}
  0x3b   : > { %s7501_s12 = scalar_lea.vmem %s8196_s15, 16  ;;  %s8024_s10 = smov [#allocation6]  }
  0x3c   : > { %p7502_p7 = scmp.ne.s32.totalorder %s8196_s15, %s7501_s12  ;;  %s7506_s13 = sshll.u32 %s8024_s10, 4  ;;  %s7507_s13 = int_to_ptr.vmem [resolvable:$false] %s7506_s13 }
  0x3d   : > { %s7508_s4 = scalar_lea.vmem %s7507_s13, 32  ;;  %p7509_p5 = scmp.lt.s32.totalorder %s8196_s15, %s7507_s13 }
  0x3e   : > { %p7504_p9 = pnand %p7502_p7, %p8211_p8  ;;  %p7510_p6 = scmp.lt.s32.totalorder %s7508_s4, %s7501_s12 }
  0x40   : > { %p7505_p0 = pneg %p7504_p9  ;;  %p7511_p11 = por %p7510_p6, %p7509_p5 }
  0x42   : > { %p7512_p12 = pnand %p7511_p11, %p7505_p0 }
  0x44   : > { %7515 = shalt.err (!%p7512_p12)
}
  0x45   : > { %s11437_s6 = scalar_lea.sflag [#allocation7], %s8181_s19  ;;  %p11438_p2 = scmp.lt.s32.totalorder %s8022_s18, 5 }
  0x46   : > { %6771 = dma.hbm_to_vmem [thread:$0]  (!%p8200_p4), %s8193_s24, 16, %s8196_s15, %s11437_s6  }
  0x47   : > { %p11439_p10 = scmp.ge.s32.totalorder %s8022_s18, 1  ;;  %s11442_s3 = sld [smem:[#allocation113_spill]] }
  0x48   : > { %s499_s13 = scalar_lea.vmem [#allocation9], %s8184_s20 }
  0x49   : > { %p8240_p13 = pnand %p11439_p10, %p11438_p2  ;;  %s506_s4 = sshll.u32 %s499_s13, 4  ;;  %s507_s4 = int_to_ptr.vmem [resolvable:$true] %s506_s4 }
  0x4b   : > { %s11440_s8 = scalar_select %p8240_p13, 1, 0 }
  0x4d   : > { %11441 = sst [smem:[#allocation39_spill]] %s11440_s8  ;;  %s8248_s10 = scalar_lea.hbm %s11442_s3, %s8187_s21 }
  0x4e   : > { %s7516_s15 = scalar_lea.hbm %s8248_s10, 16  ;;  %s7521_s8 = scalar_lea.hbm %s11442_s3, 32 }
  0x4f   : > { %p7517_p0 = scmp.ne.s32.totalorder %s8248_s10, %s7516_s15  ;;  %p7522_p1 = scmp.lt.u32.totalorder %s8248_s10, %s11442_s3 }
  0x50   : > { %p7523_p3 = scmp.lt.u32.totalorder %s7521_s8, %s7516_s15  ;;  %p7525_p9 = scmp.lt.u32.totalorder %s7516_s15, %s8248_s10 }
  0x51   : > { %p7519_p5 = pnand %p7517_p0, %p8211_p8 }
  0x52   : > { %p7524_p7 = por %p7523_p3, %p7522_p1 }
  0x53   : > { %p7520_p6 = pneg %p7519_p5 }
  0x54   : > { %p7526_p11 = por %p7525_p9, %p7524_p7 }
  0x56   : > { %p7527_p12 = pnand %p7526_p11, %p7520_p6 }
  0x58   : > { %7530 = shalt.err (!%p7527_p12)
}
  0x59   : > { %s7531_s13 = scalar_lea.vmem %s507_s4, 16  ;;  %s8025_s1 = smov [#allocation9]  }
  0x5a   : > { %p7532_p2 = scmp.ne.s32.totalorder %s507_s4, %s7531_s13  ;;  %s7536_s2 = sshll.u32 %s8025_s1, 4  ;;  %s7537_s2 = int_to_ptr.vmem [resolvable:$false] %s7536_s2 }
  0x5b   : > { %s7538_s24 = scalar_lea.vmem %s7537_s2, 32  ;;  %p7539_p5 = scmp.lt.s32.totalorder %s507_s4, %s7537_s2 }
  0x5c   : > { %p7534_p10 = pnand %p7532_p2, %p8211_p8  ;;  %p7540_p13 = scmp.lt.s32.totalorder %s7538_s24, %s7531_s13 }
  0x5e   : > { %p7535_p0 = pneg %p7534_p10  ;;  %p7541_p4 = por %p7540_p13, %p7539_p5 }
  0x60   : > { %p7542_p1 = pnand %p7541_p4, %p7535_p0 }
  0x62   : > { %7545 = shalt.err (!%p7542_p1)
}
  0x63   : > { %p11443_p3 = scmp.ne.s32.totalorder %s11435_s14, 0  ;;  %s11444_s8 = scalar_lea.sflag [#allocation10], %s8181_s19 }
  0x64   : > { %s6731_s15 = smul.u32 192, %s8184_s20  ;;  %s11445_s5 = sld [smem:[#allocation115_spill]] }
  0x65   : > { %6777 = dma.hbm_to_vmem [thread:$0]  (!%p11443_p3), %s8248_s10, 16, %s507_s4, %s11444_s8  }
  0x66   : > { %s6732_s6 = smul.u32 3072, %s8014_s16  ;;  %s534_s22 = scalar_lea.vmem [#allocation12], %s6731_s15 }
  0x67   : > { %s541_s13 = sshll.u32 %s534_s22, 4  ;;  %s11282_s24 = scalar_lea.sflag [#allocation13], %s8181_s19  ;;  %s8278_s13 = int_to_ptr.vmem [resolvable:$true] %s541_s13 }
  0x6a   : > { %s8276_s2 = scalar_lea.hbm %s11445_s5, %s6732_s6  ;;  %s7551_s8 = scalar_lea.hbm %s11445_s5, 6144 }
  0x6b   : > { %s7546_s3 = scalar_lea.hbm %s8276_s2, 3072  ;;  %p7552_p7 = scmp.lt.u32.totalorder %s8276_s2, %s11445_s5 }
  0x6c   : > { %p7547_p4 = scmp.ne.s32.totalorder %s8276_s2, %s7546_s3  ;;  %p7553_p9 = scmp.lt.u32.totalorder %s7551_s8, %s7546_s3 }
  0x6d   : > { %p7555_p12 = scmp.lt.u32.totalorder %s7546_s3, %s8276_s2 }
  0x6e   : > { %p7549_p13 = pnand %p7547_p4, %p8211_p8  ;;  %p7554_p11 = por %p7553_p9, %p7552_p7 }
  0x70   : > { %p7550_p6 = pneg %p7549_p13  ;;  %p7556_p2 = por %p7555_p12, %p7554_p11 }
  0x72   : > { %p7557_p10 = pnand %p7556_p2, %p7550_p6 }
  0x74   : > { %7560 = shalt.err (!%p7557_p10)
}
  0x75   : > { %s7561_s15 = scalar_lea.vmem %s8278_s13, 3072  ;;  %s8026_s12 = smov [#allocation12]  }
  0x76   : > { %p7562_p0 = scmp.ne.s32.totalorder %s8278_s13, %s7561_s15  ;;  %s7566_s22 = sshll.u32 %s8026_s12, 4  ;;  %s7567_s22 = int_to_ptr.vmem [resolvable:$false] %s7566_s22 }
  0x77   : > { %s7568_s10 = scalar_lea.vmem %s7567_s22, 6144  ;;  %p7569_p4 = scmp.lt.s32.totalorder %s8278_s13, %s7567_s22 }
  0x78   : > { %p7564_p5 = pnand %p7562_p0, %p8211_p8  ;;  %p7570_p13 = scmp.lt.s32.totalorder %s7568_s10, %s7561_s15 }
  0x7a   : > { %p7565_p1 = pneg %p7564_p5  ;;  %p7571_p7 = por %p7570_p13, %p7569_p4 }
  0x7c   : > { %p7572_p9 = pnand %p7571_p7, %p7565_p1 }
  0x7e   : > { %7575 = shalt.err (!%p7572_p9)
}
  0x7f   : > { %s8027_s3 = smov 192   ;;  %s8028_s4 = smov 12  }
  0x80   : > { %6783 = dma.hbm_to_vmem [thread:$0]  (!%p11443_p3), %s8276_s2, 3072, %s8278_s13, %s11282_s24, %s8027_s3, %s8027_s3, %s8028_s4  }
  0x81   : > { %s5820_s8 = sshll.u32 %s8184_s20, 6  ;;  %s6007_s6 = sshll.u32 %s8014_s16, 10 }
  0x82   : > { %s11446_s7 = sld [smem:[#allocation117_spill]]  ;;  %s574_s22 = scalar_lea.vmem [#allocation15], %s5820_s8 }
  0x83   : > { %s581_s10 = sshll.u32 %s574_s22, 4  ;;  %s11283_s5 = scalar_lea.sflag [#allocation16], %s8181_s19  ;;  %s8311_s10 = int_to_ptr.vmem [resolvable:$true] %s581_s10 }
  0x88   : > { %s8309_s12 = scalar_lea.hbm %s11446_s7, %s6007_s6  ;;  %s7581_s3 = scalar_lea.hbm %s11446_s7, 2048 }
  0x89   : > { %s7576_s0 = scalar_lea.hbm %s8309_s12, 1024  ;;  %p7582_p2 = scmp.lt.u32.totalorder %s8309_s12, %s11446_s7 }
  0x8a   : > { %p7577_p6 = scmp.ne.s32.totalorder %s8309_s12, %s7576_s0  ;;  %p7583_p10 = scmp.lt.u32.totalorder %s7581_s3, %s7576_s0 }
  0x8b   : > { %p7585_p5 = scmp.lt.u32.totalorder %s7576_s0, %s8309_s12 }
  0x8c   : > { %p7579_p11 = pnand %p7577_p6, %p8211_p8  ;;  %p7584_p0 = por %p7583_p10, %p7582_p2 }
  0x8e   : > { %p7580_p12 = pneg %p7579_p11  ;;  %p7586_p1 = por %p7585_p5, %p7584_p0 }
  0x90   : > { %p7587_p4 = pnand %p7586_p1, %p7580_p12 }
  0x92   : > { %7590 = shalt.err (!%p7587_p4)
}
  0x93   : > { %s7591_s8 = scalar_lea.vmem %s8311_s10, 1024  ;;  %s8029_s1 = smov [#allocation15]  }
  0x94   : > { %p7592_p13 = scmp.ne.s32.totalorder %s8311_s10, %s7591_s8  ;;  %s7596_s15 = sshll.u32 %s8029_s1, 4  ;;  %s7597_s15 = int_to_ptr.vmem [resolvable:$false] %s7596_s15 }
  0x95   : > { %s7598_s22 = scalar_lea.vmem %s7597_s15, 2048  ;;  %p7599_p6 = scmp.lt.s32.totalorder %s8311_s10, %s7597_s15 }
  0x96   : > { %p7594_p7 = pnand %p7592_p13, %p8211_p8  ;;  %p7600_p11 = scmp.lt.s32.totalorder %s7598_s22, %s7591_s8 }
  0x98   : > { %p7595_p9 = pneg %p7594_p7  ;;  %p7601_p2 = por %p7600_p11, %p7599_p6 }
  0x9a   : > { %p7602_p10 = pnand %p7601_p2, %p7595_p9 }
  0x9c   : > { %7605 = shalt.err (!%p7602_p10)
}
  0x9d   : > { %s11284_s0 = smov 64   ;;  %s11286_s2 = smov 4  }
  0x9e   : > { %6789 = dma.hbm_to_vmem [thread:$0]  (!%p11443_p3), %s8309_s12, 1024, %s8311_s10, %s11283_s5, %s11284_s0, %s11284_s0, %s11286_s2  }
  0x9f   : > { %s5824_s13 = sshll.u32 %s8184_s20, 8  ;;  %s6008_s3 = sshll.u32 %s8014_s16, 12 }
  0xa0   : > { %s11447_s9 = sld [smem:[#allocation119_spill]]  ;;  %s612_s1 = scalar_lea.vmem [#allocation18], %s5824_s13 }
  0xa1   : > { %s619_s15 = sshll.u32 %s612_s1, 4  ;;  %s11289_s22 = scalar_lea.sflag [#allocation19], %s8181_s19  ;;  %s8351_s15 = int_to_ptr.vmem [resolvable:$true] %s619_s15 }
  0xa6   : > { %s8347_s8 = scalar_lea.hbm %s11447_s9, %s6008_s3  ;;  %s7611_s4 = scalar_lea.hbm %s11447_s9, 8192 }
  0xa7   : > { %s7606_s24 = scalar_lea.hbm %s8347_s8, 4096  ;;  %p7612_p1 = scmp.lt.u32.totalorder %s8347_s8, %s11447_s9 }
  0xa8   : > { %p7607_p12 = scmp.ne.s32.totalorder %s8347_s8, %s7606_s24  ;;  %p7613_p4 = scmp.lt.u32.totalorder %s7611_s4, %s7606_s24 }
  0xa9   : > { %p7615_p7 = scmp.lt.u32.totalorder %s7606_s24, %s8347_s8 }
  0xaa   : > { %p7609_p0 = pnand %p7607_p12, %p8211_p8  ;;  %p7614_p13 = por %p7613_p4, %p7612_p1 }
  0xac   : > { %p7610_p5 = pneg %p7609_p0  ;;  %p7616_p9 = por %p7615_p7, %p7614_p13 }
  0xae   : > { %p7617_p6 = pnand %p7616_p9, %p7610_p5 }
  0xb0   : > { %7620 = shalt.err (!%p7617_p6)
}
  0xb1   : > { %s7621_s1 = scalar_lea.vmem %s8351_s15, 4096  ;;  %s8032_s12 = smov [#allocation18]  }
  0xb2   : > { %p7622_p11 = scmp.ne.s32.totalorder %s8351_s15, %s7621_s1  ;;  %s7626_s10 = sshll.u32 %s8032_s12, 4  ;;  %s7627_s10 = int_to_ptr.vmem [resolvable:$false] %s7626_s10 }
  0xb3   : > { %s7628_s5 = scalar_lea.vmem %s7627_s10, 8192  ;;  %p7629_p12 = scmp.lt.s32.totalorder %s8351_s15, %s7627_s10 }
  0xb4   : > { %p7624_p2 = pnand %p7622_p11, %p8211_p8  ;;  %p7630_p0 = scmp.lt.s32.totalorder %s7628_s5, %s7621_s1 }
  0xb6   : > { %p7625_p10 = pneg %p7624_p2  ;;  %p7631_p1 = por %p7630_p0, %p7629_p12 }
  0xb8   : > { %p7632_p4 = pnand %p7631_p1, %p7625_p10 }
  0xba   : > { %7635 = shalt.err (!%p7632_p4)
}
  0xbb   : > { %s8033_s24 = smov 256   ;;  %s8034_s4 = smov 16  }
  0xbc   : > { %6795 = dma.hbm_to_vmem [thread:$0]  (!%p11443_p3), %s8347_s8, 4096, %s8351_s15, %s11289_s22, %s8033_s24, %s8033_s24, %s8034_s4  }
  0xbd   : > { %s11448_s11 = sld [smem:[#allocation121_spill]]  ;;  %s652_s10 = scalar_lea.vmem [#allocation21], %s5824_s13 }
  0xbe   : > { %s659_s5 = sshll.u32 %s652_s10, 4  ;;  %s11288_s0 = scalar_lea.sflag [#allocation22], %s8181_s19  ;;  %s8386_s5 = int_to_ptr.vmem [resolvable:$true] %s659_s5 }
  0xc3   : > { %s8382_s1 = scalar_lea.hbm %s11448_s11, %s6008_s3  ;;  %s7641_s3 = scalar_lea.hbm %s11448_s11, 8192 }
  0xc4   : > { %s7636_s2 = scalar_lea.hbm %s8382_s1, 4096  ;;  %p7642_p9 = scmp.lt.u32.totalorder %s8382_s1, %s11448_s11 }
  0xc5   : > { %p7637_p5 = scmp.ne.s32.totalorder %s8382_s1, %s7636_s2  ;;  %p7643_p6 = scmp.lt.u32.totalorder %s7641_s3, %s7636_s2 }
  0xc6   : > { %p7645_p2 = scmp.lt.u32.totalorder %s7636_s2, %s8382_s1 }
  0xc7   : > { %p7639_p13 = pnand %p7637_p5, %p8211_p8  ;;  %p7644_p11 = por %p7643_p6, %p7642_p9 }
  0xc9   : > { %p7640_p7 = pneg %p7639_p13  ;;  %p7646_p10 = por %p7645_p2, %p7644_p11 }
  0xcb   : > { %p7647_p12 = pnand %p7646_p10, %p7640_p7 }
  0xcd   : > { %7650 = shalt.err (!%p7647_p12)
}
  0xce   : > { %s7651_s13 = scalar_lea.vmem %s8386_s5, 4096  ;;  %s8035_s6 = smov [#allocation21]  }
  0xcf   : > { %p7652_p0 = scmp.ne.s32.totalorder %s8386_s5, %s7651_s13  ;;  %s7656_s12 = sshll.u32 %s8035_s6, 4  ;;  %s7657_s12 = int_to_ptr.vmem [resolvable:$false] %s7656_s12 }
  0xd0   : > { %s7658_s10 = scalar_lea.vmem %s7657_s12, 8192  ;;  %p7659_p5 = scmp.lt.s32.totalorder %s8386_s5, %s7657_s12 }
  0xd1   : > { %p7654_p1 = pnand %p7652_p0, %p8211_p8  ;;  %p7660_p13 = scmp.lt.s32.totalorder %s7658_s10, %s7651_s13 }
  0xd3   : > { %p7655_p4 = pneg %p7654_p1  ;;  %p7661_p9 = por %p7660_p13, %p7659_p5 }
  0xd5   : > { %p7662_p6 = pnand %p7661_p9, %p7655_p4 }
  0xd7   : > { %7665 = shalt.err (!%p7662_p6)
}
  0xd8   : > { %s11449_s2 = smov 4   ;;  %s11450_s8 = smov 64  }
  0xd9   : > { %6801 = dma.hbm_to_vmem [thread:$0]  (!%p11443_p3), %s8382_s1, 4096, %s8386_s5, %s11288_s0, %s11450_s8, %s11450_s8, %s11449_s2  }
  0xda   : > { %s8416_s15 = sadd.s32 4294967295, %s8022_s18   ;;  %s5808_s3 = sadd.s32 4294967294, %s8022_s18  }
  0xdb   : > { %s56_s24 = sadd.s32 1, %s8014_s16  ;;  %s59_s4 = sadd.s32 1, %s8018_s17 }
  0xdc   : > { %p57_p7 = scmp.ge.s32.totalorder %s56_s24, 2  ;;  %s66_s13 = sadd.s32 1, %s8002_s30 }
  0xdd   : > { %p73_p11 = scmp.ne.s32.totalorder %s8002_s30, %s7998_s29  ;;  %p11452_p2 = scmp.eq.s32.totalorder %s8022_s18, 0 }
  0xde   : > { %s11734_s24 = smov (%p57_p7, %s56_s24), 0  ;;  %s11736_s4 = smov (!%p57_p7, %s59_s4), %s8018_s17 }
  0xdf   : > { %11451 = sst [smem:[#allocation40_spill]] %s11734_s24  ;;  %p8432_p10 = por %p11452_p2, %p73_p11 }
  0xe0   : > { %p79_p12 = scmp.ne.s32.totalorder %s7998_s29, %s7994_s28  ;;  %p61_p0 = scmp.ge.s32.totalorder %s11736_s4, 2 }
  0xe1   : > { %p80_p1 = scmp.eq.s32.totalorder %s8416_s15, 0  ;;  %s89_s5 = ssub.s32 %s8014_s16, %s11734_s24 }
  0xe2   : > { %s92_s6 = sadd.s32 1, %s7990_s27  ;;  %s11738_s4 = smov (%p61_p0, %s11736_s4), 0 }
  0xe3   : > { %11454 = sst [smem:[#allocation41_spill]] %s11738_s4  ;;  %p8447_p4 = por %p80_p1, %p79_p12 }
  0xe4   : > { %p90_p5 = scmp.eq.s32.totalorder %s89_s5, 0  ;;  %s63_s10 = ssub.s32 %s8018_s17, %s11738_s4 }
  0xe5   : > { %s11455_s12 = scalar_select %p8447_p4, 1, 0 }
  0xe6   : > { %p105_p13 = scmp.ne.s32.totalorder %s7986_s26, %s7982_s25  ;;  %p64_p9 = scmp.eq.s32.totalorder %s63_s10, 0 }
  0xe7   : > { %p415_p6 = scmp.eq.s32.totalorder %s8416_s15, 3  ;;  %p421_p0 = scmp.eq.s32.totalorder %s5808_s3, 3 }
  0xe8   : > { %s8457_s0 = scalar_select %p90_p5, %s7990_s27, %s92_s6  }
  0xe9   : > { %s8460_s22 = scalar_select %p64_p9, %s8002_s30, %s66_s13  }
  0xea   : > { %11456 = sst [smem:[#allocation42_spill]] %s8457_s0  ;;  %p8462_p7 = por %p105_p13, %p80_p1 }
  0xeb   : > { %11457 = sst [smem:[#allocation43_spill]] %s8460_s22  ;;  %p8469_p2 = por %p415_p6, %p73_p11 }
  0xec   : > { %s11458_s7 = scalar_select %p8462_p7, 1, 0 }
  0xed   : > { %s11459_s9 = scalar_select %p8469_p2, 1, 0 }
  0xee   : > { %s441_s25 = sand.u32 1, %s8002_s30   ;;  %p8477_p4 = por %p421_p0, %p79_p12 }
  0xef   : > { %s5811_s5 = sshll.u32 %s441_s25, 6  ;;  %s6006_s6 = sshll.u32 %s8018_s17, 10 }
  0xf0   : > { %s11460_s10 = scalar_select %p8477_p4, 1, 0 }
  0xf1   : > { %s445_s13 = scalar_lea.vmem [#allocation3], %s5811_s5  ;;  %s11462_s22 = sld [smem:[#allocation110_spill]] }
  0xf2   : > { %11461 = sst [smem:[#allocation44_spill]] %s11460_s10  ;;  %s452_s11 = sshll.u32 %s445_s13, 4  ;;  %s8487_s11 = int_to_ptr.vmem [resolvable:$true] %s452_s11 }
  0xf3   : > { %p11463_p11 = scmp.lt.s32.totalorder %s8022_s18, 4  ;;  %s11465_s13 = sld [smem:[#allocation112_spill]] }
  0xf4   : > { %s482_s4 = scalar_lea.vmem [#allocation8], %s8184_s20  ;;  %s8506_s30 = scalar_lea.sflag [#allocation4], %s441_s25 }
  0xf5   : > { %p8493_p12 = pnand %p11463_p11, %p8432_p10 }
  0xf7   : > { %s8485_s0 = scalar_lea.hbm %s11462_s22, %s6006_s6  ;;  %s489_s6 = sshll.u32 %s482_s4, 4  ;;  %s8504_s6 = int_to_ptr.vmem [resolvable:$true] %s489_s6 }
  0xf8   : > { %s7666_s1 = scalar_lea.hbm %s8485_s0, 1024  ;;  %p7668_p10 = pneg %p8493_p12 }
  0xf9   : > { %s8501_s24 = scalar_lea.hbm %s11465_s13, %s8187_s21  ;;  %p7667_p1 = scmp.ne.s32.totalorder %s8485_s0, %s7666_s1 }
  0xfa   : > { %s7671_s5 = scalar_lea.hbm %s11462_s22, 2048  ;;  %p7672_p9 = scmp.lt.u32.totalorder %s8485_s0, %s11462_s22 }
  0xfb   : > { %p7669_p5 = pnand %p7668_p10, %p7667_p1  ;;  %p7673_p6 = scmp.lt.u32.totalorder %s7671_s5, %s7666_s1 }
  0xfc   : > { %p7675_p11 = scmp.lt.u32.totalorder %s7666_s1, %s8485_s0 }
  0xfd   : > { %p7670_p13 = pneg %p7669_p5  ;;  %p7674_p0 = por %p7673_p6, %p7672_p9 }
  0xff   : > { %p7676_p4 = por %p7675_p11, %p7674_p0 }
 0x101   : > { %p7677_p2 = pnand %p7676_p4, %p7670_p13 }
 0x103   : > { %7680 = shalt.err (!%p7677_p2)
}
 0x104   : > { %s7681_s25 = scalar_lea.vmem %s8487_s11, 1024  ;;  %s8036_s27 = smov [#allocation3]  }
 0x105   : > { %p7682_p1 = scmp.ne.s32.totalorder %s8487_s11, %s7681_s25  ;;  %s7686_s4 = sshll.u32 %s8036_s27, 4  ;;  %s7687_s4 = int_to_ptr.vmem [resolvable:$false] %s7686_s4 }
 0x106   : > { %s7688_s28 = scalar_lea.vmem %s7687_s4, 2048  ;;  %p7689_p3 = scmp.lt.s32.totalorder %s8487_s11, %s7687_s4 }
 0x107   : > { %p7684_p5 = pnand %p7682_p1, %p7668_p10  ;;  %p7690_p9 = scmp.lt.s32.totalorder %s7688_s28, %s7681_s25 }
 0x109   : > { %p7685_p7 = pneg %p7684_p5  ;;  %p7691_p6 = por %p7690_p9, %p7689_p3 }
 0x10b   : > { %p7692_p0 = pnand %p7691_p6, %p7685_p7 }
 0x10d   : > { %7695 = shalt.err (!%p7692_p0)
}
 0x10e   : > { %6768 = dma.hbm_to_vmem [thread:$0]  (!%p8493_p12), %s8485_s0, 1024, %s8487_s11, %s8506_s30, %s11450_s8, %s11450_s8, %s11449_s2  }
 0x10f   : > { %s7696_s10 = scalar_lea.hbm %s8501_s24, 16  ;;  %s7701_s3 = scalar_lea.hbm %s11465_s13, 32 }
 0x110   : > { %p7697_p4 = scmp.ne.s32.totalorder %s8501_s24, %s7696_s10  ;;  %p7702_p2 = scmp.lt.u32.totalorder %s8501_s24, %s11465_s13 }
 0x111   : > { %p7703_p10 = scmp.lt.u32.totalorder %s7701_s3, %s7696_s10  ;;  %p7705_p11 = scmp.lt.u32.totalorder %s7696_s10, %s8501_s24 }
 0x112   : > { %p7699_p3 = pnand %p7697_p4, %p8211_p8 }
 0x113   : > { %p7704_p13 = por %p7703_p10, %p7702_p2 }
 0x114   : > { %p7700_p7 = pneg %p7699_p3 }
 0x115   : > { %p7706_p1 = por %p7705_p11, %p7704_p13 }
 0x117   : > { %p7707_p5 = pnand %p7706_p1, %p7700_p7 }
 0x119   : > { %7710 = shalt.err (!%p7707_p5)
}
 0x11a   : > { %s7711_s11 = scalar_lea.vmem %s8504_s6, 16  ;;  %s8037_s30 = smov [#allocation8]  }
 0x11b   : > { %p7712_p12 = scmp.ne.s32.totalorder %s8504_s6, %s7711_s11  ;;  %s7716_s0 = sshll.u32 %s8037_s30, 4  ;;  %s7717_s0 = int_to_ptr.vmem [resolvable:$false] %s7716_s0 }
 0x11c   : > { %s7718_s2 = scalar_lea.vmem %s7717_s0, 32  ;;  %p7719_p0 = scmp.lt.s32.totalorder %s8504_s6, %s7717_s0 }
 0x11d   : > { %p7714_p9 = pnand %p7712_p12, %p8211_p8  ;;  %p7720_p4 = scmp.lt.s32.totalorder %s7718_s2, %s7711_s11 }
 0x11f   : > { %p7715_p6 = pneg %p7714_p9  ;;  %p7721_p3 = por %p7720_p4, %p7719_p0 }
 0x121   : > { %p7722_p2 = pnand %p7721_p3, %p7715_p6 }
 0x123   : > { %7725 = shalt.err (!%p7722_p2)
}
 0x124   : > { %p11466_p7 = scmp.ne.s32.totalorder %s11435_s14, 0  ;;  %s11467_s8 = scalar_lea.sflag [#allocation7], %s8181_s19 }
 0x125   : > { %s11468_s28 = sld [smem:[#allocation114_spill]]  ;;  %s516_s17 = scalar_lea.vmem [#allocation11], %s8184_s20 }
 0x126   : > { %6774 = dma.hbm_to_vmem [thread:$0]  (!%p11466_p7), %s8501_s24, 16, %s8504_s6, %s11467_s8  }
 0x127   : > { %s523_s3 = sshll.u32 %s516_s17, 4  ;;  %s6733_s5 = smul.u32 3, %s8184_s20  ;;  %s524_s3 = int_to_ptr.vmem [resolvable:$true] %s523_s3 }
 0x128   : > { %s6734_s25 = smul.u32 48, %s8014_s16 }
 0x12b   : > { %s11469_s10 = smov %s11468_s28  ;;  %s8564_s1 = scalar_lea.hbm %s11468_s28, %s8187_s21 }
 0x12c   : > { %s7726_s11 = scalar_lea.hbm %s8564_s1, 16  ;;  %s7731_s30 = scalar_lea.hbm %s11469_s10, 32 }
 0x12d   : > { %p7727_p10 = scmp.ne.s32.totalorder %s8564_s1, %s7726_s11  ;;  %p7732_p1 = scmp.lt.u32.totalorder %s8564_s1, %s11469_s10 }
 0x12e   : > { %p7733_p5 = scmp.lt.u32.totalorder %s7731_s30, %s7726_s11  ;;  %p7735_p9 = scmp.lt.u32.totalorder %s7726_s11, %s8564_s1 }
 0x12f   : > { %p7729_p13 = pnand %p7727_p10, %p8211_p8 }
 0x130   : > { %p7734_p12 = por %p7733_p5, %p7732_p1 }
 0x131   : > { %p7730_p11 = pneg %p7729_p13 }
 0x132   : > { %p7736_p6 = por %p7735_p9, %p7734_p12 }
 0x134   : > { %p7737_p0 = pnand %p7736_p6, %p7730_p11 }
 0x136   : > { %7740 = shalt.err (!%p7737_p0)
}
 0x137   : > { %s7741_s8 = scalar_lea.vmem %s524_s3, 16  ;;  %s8038_s27 = smov [#allocation11]  }
 0x138   : > { %p7742_p4 = scmp.ne.s32.totalorder %s524_s3, %s7741_s8  ;;  %s7746_s4 = sshll.u32 %s8038_s27, 4  ;;  %s7747_s4 = int_to_ptr.vmem [resolvable:$false] %s7746_s4 }
 0x139   : > { %s7748_s28 = scalar_lea.vmem %s7747_s4, 32  ;;  %p7749_p10 = scmp.lt.s32.totalorder %s524_s3, %s7747_s4 }
 0x13a   : > { %p7744_p3 = pnand %p7742_p4, %p8211_p8  ;;  %p7750_p13 = scmp.lt.s32.totalorder %s7748_s28, %s7741_s8 }
 0x13c   : > { %p7745_p2 = pneg %p7744_p3  ;;  %p7751_p7 = por %p7750_p13, %p7749_p10 }
 0x13e   : > { %p7752_p1 = pnand %p7751_p7, %p7745_p2 }
 0x140   : > { %7755 = shalt.err (!%p7752_p1)
}
 0x141   : > { %p11470_p5 = scmp.ne.s32.totalorder %s11435_s14, 0  ;;  %s11471_s17 = scalar_lea.sflag [#allocation10], %s8181_s19 }
 0x142   : > { %s11472_s6 = sld [smem:[#allocation116_spill]]  ;;  %s555_s0 = scalar_lea.vmem [#allocation14], %s6733_s5 }
 0x143   : > { %6780 = dma.hbm_to_vmem [thread:$0]  (!%p11470_p5), %s8564_s1, 16, %s524_s3, %s11471_s17  }
 0x144   : > { %s563_s2 = sshll.u32 %s555_s0, 4  ;;  %s11473_s4 = sld [smem:[#allocation118_spill]]  ;;  %s564_s2 = int_to_ptr.vmem [resolvable:$true] %s563_s2 }
 0x148   : > { %s8591_s30 = scalar_lea.hbm %s11472_s6, %s6734_s25  ;;  %s7761_s25 = scalar_lea.hbm %s11472_s6, 96 }
 0x149   : > { %s7756_s10 = scalar_lea.hbm %s8591_s30, 48  ;;  %p7762_p9 = scmp.lt.u32.totalorder %s8591_s30, %s11472_s6 }
 0x14a   : > { %s8599_s28 = scalar_lea.hbm %s11473_s4, %s8187_s21  ;;  %p7757_p7 = scmp.ne.s32.totalorder %s8591_s30, %s7756_s10 }
 0x14b   : > { %p7763_p6 = scmp.lt.u32.totalorder %s7761_s25, %s7756_s10  ;;  %p7765_p4 = scmp.lt.u32.totalorder %s7756_s10, %s8591_s30 }
 0x14c   : > { %p7759_p11 = pnand %p7757_p7, %p8211_p8 }
 0x14d   : > { %p7764_p0 = por %p7763_p6, %p7762_p9 }
 0x14e   : > { %p7760_p12 = pneg %p7759_p11 }
 0x14f   : > { %p7766_p3 = por %p7765_p4, %p7764_p0 }
 0x151   : > { %p7767_p2 = pnand %p7766_p3, %p7760_p12 }
 0x153   : > { %7770 = shalt.err (!%p7767_p2)
}
 0x154   : > { %s7771_s5 = scalar_lea.vmem %s564_s2, 48  ;;  %s8039_s24 = smov [#allocation14]  }
 0x155   : > { %p7772_p10 = scmp.ne.s32.totalorder %s564_s2, %s7771_s5  ;;  %s7776_s0 = sshll.u32 %s8039_s24, 4  ;;  %s7777_s0 = int_to_ptr.vmem [resolvable:$false] %s7776_s0 }
 0x156   : > { %s7778_s8 = scalar_lea.vmem %s7777_s0, 96  ;;  %p7779_p7 = scmp.lt.s32.totalorder %s564_s2, %s7777_s0 }
 0x157   : > { %p7774_p13 = pnand %p7772_p10, %p8211_p8  ;;  %p7780_p11 = scmp.lt.s32.totalorder %s7778_s8, %s7771_s5 }
 0x159   : > { %p7775_p1 = pneg %p7774_p13  ;;  %p7781_p5 = por %p7780_p11, %p7779_p7 }
 0x15b   : > { %p7782_p6 = pnand %p7781_p5, %p7775_p1 }
 0x15d   : > { %7785 = shalt.err (!%p7782_p6)
}
 0x15e   : > { %p11474_p9 = scmp.ne.s32.totalorder %s11435_s14, 0  ;;  %s11475_s10 = scalar_lea.sflag [#allocation13], %s8181_s19 }
 0x15f   : > { %s594_s27 = scalar_lea.vmem [#allocation17], %s8184_s20  ;;  %s5827_s3 = sshll.u32 %s8184_s20, 2 }
 0x160   : > { %6786 = dma.hbm_to_vmem [thread:$0]  (!%p11474_p9), %s8591_s30, 48, %s564_s2, %s11475_s10  }
 0x161   : > { %s601_s1 = sshll.u32 %s594_s27, 4  ;;  %s7786_s25 = scalar_lea.hbm %s8599_s28, 16  ;;  %s602_s1 = int_to_ptr.vmem [resolvable:$true] %s601_s1 }
 0x162   : > { %p7787_p5 = scmp.ne.s32.totalorder %s8599_s28, %s7786_s25  ;;  %s7791_s5 = scalar_lea.hbm %s11473_s4, 32 }
 0x163   : > { %p7792_p4 = scmp.lt.u32.totalorder %s8599_s28, %s11473_s4  ;;  %p7793_p3 = scmp.lt.u32.totalorder %s7791_s5, %s7786_s25 }
 0x164   : > { %p7789_p12 = pnand %p7787_p5, %p8211_p8  ;;  %p7795_p10 = scmp.lt.u32.totalorder %s7786_s25, %s8599_s28 }
 0x165   : > { %p7794_p2 = por %p7793_p3, %p7792_p4 }
 0x166   : > { %p7790_p0 = pneg %p7789_p12 }
 0x167   : > { %p7796_p13 = por %p7795_p10, %p7794_p2 }
 0x169   : > { %p7797_p1 = pnand %p7796_p13, %p7790_p0 }
 0x16b   : > { %7800 = shalt.err (!%p7797_p1)
}
 0x16c   : > { %s7801_s30 = scalar_lea.vmem %s602_s1, 16  ;;  %s8040_s2 = smov [#allocation17]  }
 0x16d   : > { %p7802_p7 = scmp.ne.s32.totalorder %s602_s1, %s7801_s30  ;;  %s7806_s8 = sshll.u32 %s8040_s2, 4  ;;  %s7807_s8 = int_to_ptr.vmem [resolvable:$false] %s7806_s8 }
 0x16e   : > { %s7808_s10 = scalar_lea.vmem %s7807_s8, 32  ;;  %p7809_p5 = scmp.lt.s32.totalorder %s602_s1, %s7807_s8 }
 0x16f   : > { %p7804_p11 = pnand %p7802_p7, %p8211_p8  ;;  %p7810_p12 = scmp.lt.s32.totalorder %s7808_s10, %s7801_s30 }
 0x171   : > { %p7805_p6 = pneg %p7804_p11  ;;  %p7811_p9 = por %p7810_p12, %p7809_p5 }
 0x173   : > { %p7812_p3 = pnand %p7811_p9, %p7805_p6 }
 0x175   : > { %7815 = shalt.err (!%p7812_p3)
}
 0x176   : > { %p11476_p4 = scmp.ne.s32.totalorder %s11435_s14, 0  ;;  %s11477_s27 = scalar_lea.sflag [#allocation16], %s8181_s19 }
 0x177   : > { %s6009_s25 = sshll.u32 %s8014_s16, 6  ;;  %s633_s17 = scalar_lea.vmem [#allocation20], %s5827_s3 }
 0x178   : > { %6792 = dma.hbm_to_vmem [thread:$0]  (!%p11476_p4), %s8599_s28, 16, %s602_s1, %s11477_s27  }
 0x179   : > { %s641_s11 = sshll.u32 %s633_s17, 4  ;;  %s11478_s0 = sld [smem:[#allocation120_spill]]  ;;  %s642_s11 = int_to_ptr.vmem [resolvable:$true] %s641_s11 }
 0x17f   : > { %s639_s30 = scalar_lea.hbm %s11478_s0, %s6009_s25  ;;  %s7821_s4 = scalar_lea.hbm %s11478_s0, 128 }
 0x180   : > { %s7816_s2 = scalar_lea.hbm %s639_s30, 64  ;;  %p7822_p10 = scmp.lt.u32.totalorder %s639_s30, %s11478_s0 }
 0x181   : > { %p7817_p9 = scmp.ne.s32.totalorder %s639_s30, %s7816_s2  ;;  %p7823_p13 = scmp.lt.u32.totalorder %s7821_s4, %s7816_s2 }
 0x182   : > { %p7825_p7 = scmp.lt.u32.totalorder %s7816_s2, %s639_s30 }
 0x183   : > { %p7819_p0 = pnand %p7817_p9, %p8211_p8  ;;  %p7824_p1 = por %p7823_p13, %p7822_p10 }
 0x185   : > { %p7820_p2 = pneg %p7819_p0  ;;  %p7826_p11 = por %p7825_p7, %p7824_p1 }
 0x187   : > { %p7827_p6 = pnand %p7826_p11, %p7820_p2 }
 0x189   : > { %7830 = shalt.err (!%p7827_p6)
}
 0x18a   : > { %s7831_s1 = scalar_lea.vmem %s642_s11, 64  ;;  %s8041_s3 = smov [#allocation20]  }
 0x18b   : > { %p7832_p5 = scmp.ne.s32.totalorder %s642_s11, %s7831_s1  ;;  %s7836_s27 = sshll.u32 %s8041_s3, 4  ;;  %s7837_s27 = int_to_ptr.vmem [resolvable:$false] %s7836_s27 }
 0x18c   : > { %s7838_s25 = scalar_lea.vmem %s7837_s27, 128  ;;  %p7839_p9 = scmp.lt.s32.totalorder %s642_s11, %s7837_s27 }
 0x18d   : > { %p7834_p12 = pnand %p7832_p5, %p8211_p8  ;;  %p7840_p0 = scmp.lt.s32.totalorder %s7838_s25, %s7831_s1 }
 0x18f   : > { %p7835_p3 = pneg %p7834_p12  ;;  %p7841_p4 = por %p7840_p0, %p7839_p9 }
 0x191   : > { %p7842_p10 = pnand %p7841_p4, %p7835_p3 }
 0x193   : > { %7845 = shalt.err (!%p7842_p10)
}
 0x194   : > { %p11479_p13 = scmp.ne.s32.totalorder %s11435_s14, 0  ;;  %s11480_s6 = scalar_lea.sflag [#allocation19], %s8181_s19 }
 0x195   : > { %s11481_s5 = sld [smem:[#allocation122_spill]]  ;;  %s672_s2 = scalar_lea.vmem [#allocation23], %s8184_s20 }
 0x196   : > { %6798 = dma.hbm_to_vmem [thread:$0]  (!%p11479_p13), %s639_s30, 64, %s642_s11, %s11480_s6  }
 0x197   : > { %s679_s8 = sshll.u32 %s672_s2, 4  ;;  %s680_s8 = int_to_ptr.vmem [resolvable:$true] %s679_s8 }
 0x19b   : > { %s8665_s24 = scalar_lea.hbm %s11481_s5, %s8187_s21  ;;  %s7851_s11 = scalar_lea.hbm %s11481_s5, 32 }
 0x19c   : > { %s7846_s10 = scalar_lea.hbm %s8665_s24, 16  ;;  %p7852_p7 = scmp.lt.u32.totalorder %s8665_s24, %s11481_s5 }
 0x19d   : > { %p7847_p4 = scmp.ne.s32.totalorder %s8665_s24, %s7846_s10  ;;  %p7853_p11 = scmp.lt.u32.totalorder %s7851_s11, %s7846_s10 }
 0x19e   : > { %p7855_p5 = scmp.lt.u32.totalorder %s7846_s10, %s8665_s24 }
 0x19f   : > { %p7849_p2 = pnand %p7847_p4, %p8211_p8  ;;  %p7854_p6 = por %p7853_p11, %p7852_p7 }
 0x1a1   : > { %p7850_p1 = pneg %p7849_p2  ;;  %p7856_p12 = por %p7855_p5, %p7854_p6 }
 0x1a3   : > { %p7857_p3 = pnand %p7856_p12, %p7850_p1 }
 0x1a5   : > { %7860 = shalt.err (!%p7857_p3)
}
 0x1a6   : > { %s7861_s20 = scalar_lea.vmem %s680_s8, 16  ;;  %s8042_s21 = smov [#allocation23]  }
 0x1a7   : > { %p7862_p9 = scmp.ne.s32.totalorder %s680_s8, %s7861_s20  ;;  %s7866_s27 = sshll.u32 %s8042_s21, 4  ;;  %s7867_s27 = int_to_ptr.vmem [resolvable:$false] %s7866_s27 }
 0x1a8   : > { %s7868_s25 = scalar_lea.vmem %s7867_s27, 32  ;;  %p7869_p4 = scmp.lt.s32.totalorder %s680_s8, %s7867_s27 }
 0x1a9   : > { %p7864_p0 = pnand %p7862_p9, %p8211_p8  ;;  %p7870_p2 = scmp.lt.s32.totalorder %s7868_s25, %s7861_s20 }
 0x1ab   : > { %p7865_p10 = pneg %p7864_p0  ;;  %p7871_p13 = por %p7870_p2, %p7869_p4 }
 0x1ad   : > { %p7872_p7 = pnand %p7871_p13, %p7865_p10 }
 0x1af   : > { %7875 = shalt.err (!%p7872_p7)
}
 0x1b0   : > { %p11482_p11 = scmp.ne.s32.totalorder %s11435_s14, 0  ;;  %s11483_s6 = scalar_lea.sflag [#allocation22], %s8181_s19 }
 0x1b1   : > { %s11484_s4 = sld [smem:[#allocation39_spill]] }
 0x1b2   : > { %6804 = dma.hbm_to_vmem [thread:$0]  (!%p11482_p11), %s8665_s24, 16, %s680_s8, %s11483_s6  }
 0x1b7   : > { %p11485_p1 = scmp.ne.s32.totalorder %s11484_s4, 0 }
 0x1b9   : > { %688 = sbr.rel (%p11485_p1) target bundleno = 4976 (0x1370), region = 72 }
 0x1c0   : > { %s8690_s23 = sand.u32 1, %s7998_s29   ;;  %p11486_p8 = scmp.ne.s32.totalorder %s11455_s12, 0 }
 0x1c1   : > { %s5835_s17 = sshll.u32 %s8690_s23, 6  ;;  %s691_s2 = scalar_lea.sflag [#allocation4], %s8690_s23 }
 0x1c2   : > { %s8696_s10 = scalar_lea.vmem [#allocation3], %s5835_s17 }
 0x1c3   : > { %7949 = dma.done.wait (%p11486_p8), %s691_s2, 1024  }
 0x1c4   : > { %7951 = vsyncadd (%p11486_p8), %s691_s2, 4294966272  ;;  %s8703_s14 = sand.u32 1, %s8416_s15   ;;  %s8706_s19 = sand.u32 1, %s7986_s26  }
 0x1c5   : > { %s700_s24 = scalar_lea.sflag [#allocation7], %s8703_s14  ;;  %s702_s8 = scalar_lea.vmem [#allocation6], %s8706_s19 }
 0x1c6   : > { %p11487_p13 = scmp.ne.s32.totalorder %s11458_s7, 0 }
 0x1c8   : > { %7953 = dma.done.wait (%p11487_p13), %s700_s24, 32  }
 0x1c9   : > { %7955 = vsyncadd (%p11487_p13), %s700_s24, 4294967264  ;;  %s710_s12 = scalar_lea.vmem [#allocation8], %s8706_s19  ;;  %s716_s28 = scalar_lea.sflag [#allocation10], %s8703_s14 }
 0x1ca   : > { %s718_s1 = scalar_lea.vmem [#allocation9], %s8706_s19 }
 0x1cb   : > { %7957 = dma.done.wait (%p11487_p13), %s716_s28, 32  }
 0x1cc   : > { %7959 = vsyncadd (%p11487_p13), %s716_s28, 4294967264  ;;  %s6735_s15 = smul.u32 192, %s8706_s19  ;;  %s732_s30 = scalar_lea.sflag [#allocation13], %s8703_s14 }
 0x1ce   : > { %s8724_s3 = scalar_lea.vmem [#allocation12], %s6735_s15 }
 0x1cf   : > { %7961 = dma.done.wait (%p11487_p13), %s732_s30, 3120  }
 0x1d0   : > { %7963 = vsyncadd (%p11487_p13), %s732_s30, 4294964176  ;;  %s6736_s20 = smul.u32 3, %s8706_s19  ;;  %s5836_s21 = sshll.u32 %s8706_s19, 6 }
 0x1d1   : > { %s750_s25 = scalar_lea.sflag [#allocation16], %s8703_s14  ;;  %s8735_s6 = scalar_lea.vmem [#allocation15], %s5836_s21 }
 0x1d2   : > { %s8732_s27 = scalar_lea.vmem [#allocation14], %s6736_s20 }
 0x1d3   : > { %7965 = dma.done.wait (%p11487_p13), %s750_s25, 1040  }
 0x1d4   : > { %7967 = vsyncadd (%p11487_p13), %s750_s25, 4294966256  ;;  %s5837_s4 = sshll.u32 %s8706_s19, 8  ;;  %s761_s2 = scalar_lea.vmem [#allocation17], %s8706_s19 }
 0x1d5   : > { %s767_s24 = scalar_lea.sflag [#allocation19], %s8703_s14  ;;  %s8744_s28 = scalar_lea.vmem [#allocation18], %s5837_s4 }
 0x1d6   : > { %7969 = dma.done.wait (%p11487_p13), %s767_s24, 4160  }
 0x1d7   : > { %7971 = vsyncadd (%p11487_p13), %s767_s24, 4294963136  ;;  %s5838_s15 = sshll.u32 %s8706_s19, 2  ;;  %s785_s20 = scalar_lea.sflag [#allocation22], %s8703_s14 }
 0x1d8   : > { %s8751_s30 = scalar_lea.vmem [#allocation20], %s5838_s15  ;;  %s8754_s21 = scalar_lea.vmem [#allocation21], %s5837_s4 }
 0x1d9   : > { %7973 = dma.done.wait (%p11487_p13), %s785_s20, 4112  }
 0x1da   : > { %7975 = vsyncadd (%p11487_p13), %s785_s20, 4294963184  ;;  %s796_s25 = scalar_lea.vmem [#allocation23], %s8706_s19  ;;  %s8763_s11 = scalar_lea.vmem [#allocation24], %s5835_s17 }
 0x1db   : > { %s11488_s24 = sld [smem:[#allocation36_spill]] }
 0x1e1   : > { %p5841_p6 = scmp.ne.s32.totalorder %s11488_s24, 0 }
 0x1e2   : > { %v6910_v0 = vld [vmem:[%s8696_s10] sm:$0xff] (!%p5841_p6)   ;;  %v6911_v1 = vld [vmem:[%s8696_s10 + $0x8] sm:$0xff] (!%p5841_p6)   ;;  %v6912_v2 = vld [vmem:[%s8696_s10 + $0x10] sm:$0xff] (!%p5841_p6)  }
 0x1e3   : > { %897 = sbr.rel (%p5841_p6) target bundleno = 490 (0x1ea), region = 128  ;;  %962 = vst [vmem:[#allocation2] sm:$0xff] (!%p5841_p6), %v6910_v0  ;;  %963 = vst [vmem:[#allocation2 + $0x8] sm:$0xff] (!%p5841_p6), %v6911_v1  ;;  %v6913_v3 = vld [vmem:[%s8696_s10 + $0x18] sm:$0xff] (!%p5841_p6)   ;;  %v6914_v4 = vld [vmem:[%s8696_s10 + $0x20] sm:$0xff] (!%p5841_p6)  }
 0x1e4   : > { %964 = vst [vmem:[#allocation2 + $0x10] sm:$0xff] (!%p5841_p6), %v6912_v2  ;;  %965 = vst [vmem:[#allocation2 + $0x18] sm:$0xff] (!%p5841_p6), %v6913_v3  ;;  %v6915_v5 = vld [vmem:[%s8696_s10 + $0x28] sm:$0xff] (!%p5841_p6)   ;;  %v6916_v6 = vld [vmem:[%s8696_s10 + $0x30] sm:$0xff] (!%p5841_p6)  }
 0x1e5   : > { %966 = vst [vmem:[#allocation2 + $0x20] sm:$0xff] (!%p5841_p6), %v6914_v4  ;;  %967 = vst [vmem:[#allocation2 + $0x28] sm:$0xff] (!%p5841_p6), %v6915_v5  ;;  %v6917_v7 = vld [vmem:[%s8696_s10 + $0x38] sm:$0xff] (!%p5841_p6)  }
 0x1e6   : > { %968 = vst [vmem:[#allocation2 + $0x30] sm:$0xff] (!%p5841_p6), %v6916_v6  ;;  %969 = vst [vmem:[#allocation2 + $0x38] sm:$0xff] (!%p5841_p6), %v6917_v7 }
 0x1ea PF: > { %v970_v8 = vld [vmem:[#allocation2] sm:$0xff]  ;;  %v971_v9 = vld [vmem:[#allocation2 + $0x8] sm:$0xff]  ;;  %v6923_v35 = vld [vmem:[%s8724_s3 + $0x8] ss:$12 sps:$4 sm:$0xff]   ;;  %vm1671_vm0 = vcmask 261120   ;;  %s8044_s7 = smov 96  }
 0x1eb   : > { %v8774_v10 = vunpack.c.l.bf16 %v970_v8  ;;  %v8776_v11 = vunpack.c.l.bf16 %v971_v9  ;;  %v972_v12 = vld [vmem:[#allocation2 + $0x10] sm:$0xff]  ;;  %v8780_v13 = vunpack.c.h.bf16 %v970_v8  ;;  %v8782_v14 = vunpack.c.h.bf16 %v971_v9  ;;  %v973_v15 = vld [vmem:[#allocation2 + $0x18] sm:$0xff]  ;;  %6363 = vmatprep.subr.bf16.mxu1 %v6923_v35  ;;  %s8045_s17 = smov 64   ;;  %s8046_s10 = smov 32  }
 0x1ec   : > { %v8786_v16 = vunpack.c.l.bf16 %v972_v12  ;;  %v8788_v17 = vunpack.c.h.bf16 %v972_v12  ;;  %v974_v18 = vld [vmem:[#allocation2 + $0x20] sm:$0xff]  ;;  %v8792_v19 = vunpack.c.l.bf16 %v973_v15  ;;  %v8794_v20 = vunpack.c.h.bf16 %v973_v15  ;;  %v975_v21 = vld [vmem:[#allocation2 + $0x28] sm:$0xff]  ;;  %6364 = vmatpush3.bf16.msra.mxu1 %v6923_v35  ;;  %s11675_s14 = scalar_lea.vmem [#allocation11], %s8706_s19  ;;  %s11711_s19 = sld [smem:[#allocation36_spill]] }
 0x1ed   : > { %11489 = vst [vmem:[#allocation45_spill] sm:$0xff] %v8774_v10  ;;  %11490 = vst [vmem:[#allocation46_spill] sm:$0xff] %v8776_v11  ;;  %996 = vadd.xlane.f32.xlu0 %v8774_v10  ;;  %1000 = vadd.xlane.f32.xlu1 %v8776_v11  ;;  %v8798_v22 = vunpack.c.l.bf16 %v974_v18  ;;  %v8800_v23 = vunpack.c.h.bf16 %v974_v18  ;;  %v976_v24 = vld [vmem:[#allocation2 + $0x30] sm:$0xff]  ;;  %v8804_v25 = vunpack.c.l.bf16 %v975_v21  ;;  %v8806_v26 = vunpack.c.h.bf16 %v975_v21  ;;  %v977_v27 = vld [vmem:[#allocation2 + $0x38] sm:$0xff] }
 0x1ee   : > { %11491 = vst [vmem:[#allocation47_spill] sm:$0xff] %v8780_v13  ;;  %11492 = vst [vmem:[#allocation48_spill] sm:$0xff] %v8782_v14  ;;  %v8810_v28 = vunpack.c.l.bf16 %v976_v24  ;;  %v8812_v29 = vunpack.c.h.bf16 %v976_v24  ;;  %v8816_v30 = vunpack.c.l.bf16 %v977_v27  ;;  %v8818_v31 = vunpack.c.h.bf16 %v977_v27  ;;  %v6918_v32 = vld [vmem:[%s8724_s3 + $0x4] ss:$12 sps:$4 sm:$0xff]   ;;  %v6920_v33 = vld [vmem:[%s8724_s3] ss:$12 sps:$4 sm:$0xff]  }
 0x1ef   : > { %11493 = vst [vmem:[#allocation49_spill] sm:$0xff] %v8786_v16  ;;  %11494 = vst [vmem:[#allocation50_spill] sm:$0xff] %v8788_v17  ;;  %v6921_v34 = vld [vmem:[%s8724_s3 + $0x1c] ss:$12 sps:$4 sm:$0xff]   ;;  %1402 = vmatprep.subr.bf16.mxu0 %v6918_v32  ;;  %v6924_v12 = vld [vmem:[%s8724_s3 + $0x18] ss:$12 sps:$4 sm:$0xff]  }
 0x1f0   : > { %11495 = vst [vmem:[#allocation51_spill] sm:$0xff] %v8792_v19  ;;  %11496 = vst [vmem:[#allocation52_spill] sm:$0xff] %v8794_v20  ;;  %1403 = vmatpush1.bf16.msra.mxu0 %v6920_v33  ;;  %v6925_v32 = vld [vmem:[%s8724_s3 + $0x34] ss:$12 sps:$4 sm:$0xff]  }
 0x1f1   : > { %998 = vadd.xlane.f32.xlu0 %v8780_v13  ;;  %1002 = vadd.xlane.f32.xlu1 %v8782_v14  ;;  %11497 = vst [vmem:[#allocation53_spill] sm:$0xff] %v8798_v22  ;;  %11498 = vst [vmem:[#allocation54_spill] sm:$0xff] %v8800_v23  ;;  %v6927_v33 = vld [vmem:[%s8724_s3 + $0x20] ss:$12 sps:$4 sm:$0xff]  }
 0x1f2   : > { %11499 = vst [vmem:[#allocation55_spill] sm:$0xff] %v8804_v25  ;;  %11500 = vst [vmem:[#allocation56_spill] sm:$0xff] %v8806_v26  ;;  %1404 = vmatprep.subr.bf16.mxu0 %v6921_v34  ;;  %6365 = vmatprep.subr.bf16.mxu1 %v6927_v33  ;;  %p5984_p5 = scmp.ne.s32.totalorder %s11711_s19, 1 }
 0x1f3   : > { %11501 = vst [vmem:[#allocation57_spill] sm:$0xff] %v8810_v28  ;;  %11502 = vst [vmem:[#allocation58_spill] sm:$0xff] %v8812_v29  ;;  %6366 = vmatpush3.bf16.msra.mxu1 %v6927_v33  ;;  %v6949_v33 = vld [vmem:[%s8724_s3 + $0xb0] ss:$12 sps:$4 sm:$0xff]  }
 0x1f4   : > { %11503 = vst [vmem:[#allocation59_spill] sm:$0xff] %v8816_v30  ;;  %11504 = vst [vmem:[#allocation60_spill] sm:$0xff] %v8818_v31  ;;  %1405 = vmatpush1.bf16.msra.mxu0 %v6924_v12  ;;  %v6940_v12 = vld [vmem:[%s8724_s3 + $0x78] ss:$12 sps:$4 sm:$0xff]  }
 0x1f5   : > { %1004 = vadd.xlane.f32.xlu0 %v8786_v16  ;;  %1006 = vadd.xlane.f32.xlu1 %v8788_v17 }
 0x1f6   : > { %1406 = vmatprep.subr.bf16.mxu0 %v6925_v32  ;;  %v6948_v32 = vld [vmem:[%s8724_s3 + $0xa8] ss:$12 sps:$4 sm:$0xff]  }
 0x1f9   : > { %1008 = vadd.xlane.f32.xlu0 %v8792_v19  ;;  %1010 = vadd.xlane.f32.xlu1 %v8794_v20 }
 0x1fd   : > { %1012 = vadd.xlane.f32.xlu0 %v8798_v22  ;;  %1014 = vadd.xlane.f32.xlu1 %v8800_v23 }
 0x201   : > { %1016 = vadd.xlane.f32.xlu0 %v8804_v25  ;;  %1018 = vadd.xlane.f32.xlu1 %v8806_v26 }
 0x205   : > { %1020 = vadd.xlane.f32.xlu0 %v8810_v28  ;;  %1022 = vadd.xlane.f32.xlu1 %v8812_v29 }
 0x209   : > { %1024 = vadd.xlane.f32.xlu0 %v8816_v30  ;;  %1026 = vadd.xlane.f32.xlu1 %v8818_v31 }
 0x27a   : > { %v997_v36 = vpop.xlane.xlu0 %996  ;;  %v1001_v37 = vpop.xlane.xlu1 %1000 }
 0x27b   : > { %v1029_v38 = vmul.f32 0.0078125, %v997_v36  ;;  %v1031_v39 = vmul.f32 0.0078125, %v1001_v37 }
 0x27d   : > { %v8827_v40 = vsub.f32 %v8774_v10, %v1029_v38  ;;  %v8830_v41 = vsub.f32 %v8776_v11, %v1031_v39  ;;  %v6928_v39 = vld [vmem:[%s8724_s3 + $0x30] ss:$12 sps:$4 sm:$0xff]  }
 0x27e   : > { %v999_v42 = vpop.xlane.xlu0 %998  ;;  %v1003_v43 = vpop.xlane.xlu1 %1002  ;;  %1407 = vmatpush1.bf16.msra.mxu0 %v6928_v39 }
 0x27f   : > { %v1030_v44 = vmul.f32 0.0078125, %v999_v42  ;;  %v1061_v45 = vmul.f32 %v8827_v40, %v8827_v40  ;;  %v1032_v46 = vmul.f32 0.0078125, %v1003_v43  ;;  %v1063_v47 = vmul.f32 %v8830_v41, %v8830_v41 }
 0x281   : > { %1077 = vadd.xlane.f32.xlu0 %v1061_v45  ;;  %v8837_v48 = vsub.f32 %v8780_v13, %v1030_v44  ;;  %v8840_v49 = vsub.f32 %v8782_v14, %v1032_v46 }
 0x282   : > { %v1005_v50 = vpop.xlane.xlu0 %1004  ;;  %v1007_v51 = vpop.xlane.xlu1 %1006 }
 0x283   : > { %v1033_v52 = vmul.f32 0.0078125, %v1005_v50  ;;  %v1062_v53 = vmul.f32 %v8837_v48, %v8837_v48  ;;  %v1034_v54 = vmul.f32 0.0078125, %v1007_v51  ;;  %v1064_v55 = vmul.f32 %v8840_v49, %v8840_v49  ;;  %v6929_v50 = vld [vmem:[%s8724_s3 + $0x4c] ss:$12 sps:$4 sm:$0xff]  }
 0x284   : > { %v6931_v51 = vld [vmem:[%s8724_s3 + $0x38] ss:$12 sps:$4 sm:$0xff]   ;;  %1408 = vmatprep.subr.bf16.mxu0 %v6929_v50 }
 0x285   : > { %1081 = vadd.xlane.f32.xlu0 %v1063_v47  ;;  %1079 = vadd.xlane.f32.xlu1 %v1062_v53  ;;  %v8847_v56 = vsub.f32 %v8786_v16, %v1033_v52  ;;  %v8850_v57 = vsub.f32 %v8788_v17, %v1034_v54  ;;  %v6932_v54 = vld [vmem:[%s8724_s3 + $0x48] ss:$12 sps:$4 sm:$0xff]  }
 0x286   : > { %v1009_v58 = vpop.xlane.xlu0 %1008  ;;  %v1011_v59 = vpop.xlane.xlu1 %1010  ;;  %6367 = vmatprep.subr.bf16.mxu1 %v6931_v51  ;;  %1409 = vmatpush1.bf16.msra.mxu0 %v6932_v54 }
 0x287   : > { %v1035_v60 = vmul.f32 0.0078125, %v1009_v58  ;;  %v1065_v61 = vmul.f32 %v8847_v56, %v8847_v56  ;;  %v1036_v62 = vmul.f32 0.0078125, %v1011_v59  ;;  %v1066_v63 = vmul.f32 %v8850_v57, %v8850_v57  ;;  %6368 = vmatpush3.bf16.msra.mxu1 %v6931_v51 }
 0x289   : > { %1083 = vadd.xlane.f32.xlu1 %v1064_v55  ;;  %1085 = vadd.xlane.f32.xlu0 %v1065_v61  ;;  %v8857_v0 = vsub.f32 %v8792_v19, %v1035_v60  ;;  %v8860_v1 = vsub.f32 %v8794_v20, %v1036_v62 }
 0x28a   : > { %v1013_v2 = vpop.xlane.xlu0 %1012  ;;  %v1015_v3 = vpop.xlane.xlu1 %1014 }
 0x28b   : > { %v1037_v4 = vmul.f32 0.0078125, %v1013_v2  ;;  %v1067_v5 = vmul.f32 %v8857_v0, %v8857_v0  ;;  %v1038_v6 = vmul.f32 0.0078125, %v1015_v3  ;;  %v1068_v7 = vmul.f32 %v8860_v1, %v8860_v1  ;;  %v6935_v2 = vld [vmem:[%s8724_s3 + $0x50] ss:$12 sps:$4 sm:$0xff]   ;;  %v6936_v3 = vld [vmem:[%s8724_s3 + $0x60] ss:$12 sps:$4 sm:$0xff]  }
 0x28c   : > { %6369 = vmatprep.subr.bf16.mxu1 %v6935_v2 }
 0x28d   : > { %1087 = vadd.xlane.f32.xlu1 %v1066_v63  ;;  %1089 = vadd.xlane.f32.xlu0 %v1067_v5  ;;  %v8867_v8 = vsub.f32 %v8798_v22, %v1037_v4  ;;  %v8870_v9 = vsub.f32 %v8800_v23, %v1038_v6  ;;  %v6933_v63 = vld [vmem:[%s8724_s3 + $0x64] ss:$12 sps:$4 sm:$0xff]   ;;  %v6937_v6 = vld [vmem:[%s8724_s3 + $0x7c] ss:$12 sps:$4 sm:$0xff]  }
 0x28e   : > { %v1017_v15 = vpop.xlane.xlu0 %1016  ;;  %v1019_v18 = vpop.xlane.xlu1 %1018  ;;  %1410 = vmatprep.subr.bf16.mxu0 %v6933_v63  ;;  %6370 = vmatpush3.bf16.msra.mxu1 %v6935_v2 }
 0x28f   : > { %v1039_v21 = vmul.f32 0.0078125, %v1017_v15  ;;  %v1069_v24 = vmul.f32 %v8867_v8, %v8867_v8  ;;  %v1040_v27 = vmul.f32 0.0078125, %v1019_v18  ;;  %v1070_v34 = vmul.f32 %v8870_v9, %v8870_v9  ;;  %1411 = vmatpush1.bf16.msra.mxu0 %v6936_v3  ;;  %v6941_v15 = vld [vmem:[%s8724_s3 + $0x94] ss:$12 sps:$4 sm:$0xff]  }
 0x290   : > { %1412 = vmatprep.subr.bf16.mxu0 %v6937_v6  ;;  %v6943_v18 = vld [vmem:[%s8724_s3 + $0x80] ss:$12 sps:$4 sm:$0xff]  }
 0x291   : > { %1091 = vadd.xlane.f32.xlu1 %v1068_v7  ;;  %1093 = vadd.xlane.f32.xlu0 %v1069_v24  ;;  %v8880_v35 = vsub.f32 %v8804_v25, %v1039_v21  ;;  %v8883_v36 = vsub.f32 %v8806_v26, %v1040_v27  ;;  %v6939_v7 = vld [vmem:[%s8724_s3 + $0x68] ss:$12 sps:$4 sm:$0xff]   ;;  %v6944_v21 = vld [vmem:[%s8724_s3 + $0x90] ss:$12 sps:$4 sm:$0xff]   ;;  %v6945_v24 = vld [vmem:[%s8724_s3 + $0xac] ss:$12 sps:$4 sm:$0xff]  }
 0x292   : > { %v1021_v37 = vpop.xlane.xlu0 %1020  ;;  %v1023_v38 = vpop.xlane.xlu1 %1022  ;;  %6371 = vmatprep.subr.bf16.mxu1 %v6939_v7  ;;  %v6947_v27 = vld [vmem:[%s8724_s3 + $0x98] ss:$12 sps:$4 sm:$0xff]  }
 0x293   : > { %v1041_v42 = vmul.f32 0.0078125, %v1021_v37  ;;  %v1071_v43 = vmul.f32 %v8880_v35, %v8880_v35  ;;  %v1042_v44 = vmul.f32 0.0078125, %v1023_v38  ;;  %v1072_v45 = vmul.f32 %v8883_v36, %v8883_v36  ;;  %1413 = vmatpush1.bf16.msra.mxu0 %v6940_v12  ;;  %6372 = vmatpush3.bf16.msra.mxu1 %v6939_v7 }
 0x294   : > { %1414 = vmatprep.subr.bf16.mxu0 %v6941_v15  ;;  %6373 = vmatprep.subr.bf16.mxu1 %v6943_v18 }
 0x295   : > { %1095 = vadd.xlane.f32.xlu1 %v1070_v34  ;;  %1097 = vadd.xlane.f32.xlu0 %v1071_v43  ;;  %v8891_v46 = vsub.f32 %v8810_v28, %v1041_v42  ;;  %v8894_v47 = vsub.f32 %v8812_v29, %v1042_v44  ;;  %v11307_v34 = vmov 0  }
 0x296   : > { %v1025_v52 = vpop.xlane.xlu0 %1024  ;;  %v1027_v53 = vpop.xlane.xlu1 %1026  ;;  %1434 = vmatprep.mubr.bf16.mxu0 %v11307_v34 }
 0x297   : > { %v1043_v55 = vmul.f32 0.0078125, %v1025_v52  ;;  %v1073_v58 = vmul.f32 %v8891_v46, %v8891_v46  ;;  %v1044_v59 = vmul.f32 0.0078125, %v1027_v53  ;;  %v1074_v60 = vmul.f32 %v8894_v47, %v8894_v47  ;;  %1415 = vmatpush1.bf16.msra.mxu0 %v6944_v21  ;;  %6374 = vmatpush3.bf16.msra.mxu1 %v6943_v18 }
 0x298   : > { %1416 = vmatprep.subr.bf16.mxu0 %v6945_v24  ;;  %6375 = vmatprep.subr.bf16.mxu1 %v6947_v27  ;;  %v8930_v24 = vld [vmem:[%s702_s8] ss:$0 sm:$0xff] }
 0x299   : > { %1099 = vadd.xlane.f32.xlu1 %v1072_v45  ;;  %1101 = vadd.xlane.f32.xlu0 %v1073_v58  ;;  %v8904_v61 = vsub.f32 %v8816_v30, %v1043_v55  ;;  %v8907_v62 = vsub.f32 %v8818_v31, %v1044_v59 }
 0x29b   : > { %v1075_v4 = vmul.f32 %v8904_v61, %v8904_v61  ;;  %v1076_v5 = vmul.f32 %v8907_v62, %v8907_v62  ;;  %1417 = vmatpush1.bf16.msra.mxu0 %v6948_v32  ;;  %6376 = vmatpush3.bf16.msra.mxu1 %v6947_v27 }
 0x29c   : > { %6377 = vmatprep.subr.bf16.mxu1 %v6949_v33 }
 0x29d   : > { %1103 = vadd.xlane.f32.xlu1 %v1074_v60  ;;  %1105 = vadd.xlane.f32.xlu0 %v1075_v4 }
 0x29f   : > { %6378 = vmatpush3.bf16.msra.mxu1 %v6949_v33 }
 0x2a1   : > { %1107 = vadd.xlane.f32.xlu1 %v1076_v5 }
 0x30e   : > { %v1078_v37 = vpop.xlane.xlu0 %1077 }
 0x30f   : > { %v1109_v38 = vmul.f32 0.0078125, %v1078_v37 }
 0x311   : > { %v1125_v39 = vadd.f32 1e-05, %v1109_v38 }
 0x312   : > { %v1080_v42 = vpop.xlane.xlu1 %1079  ;;  %v1082_v43 = vpop.xlane.xlu0 %1081 }
 0x313   : > { %7038 = vrsqrt.f32 %v1125_v39  ;;  %v1110_v44 = vmul.f32 0.0078125, %v1080_v42  ;;  %v1111_v45 = vmul.f32 0.0078125, %v1082_v43 }
 0x315   : > { %v1126_v50 = vadd.f32 1e-05, %v1110_v44  ;;  %v1127_v51 = vadd.f32 1e-05, %v1111_v45  ;;  %v8936_v45 = vld [vmem:[%s710_s12] ss:$0 sm:$0xff] }
 0x316   : > { %v1084_v52 = vpop.xlane.xlu1 %1083  ;;  %v1086_v53 = vpop.xlane.xlu0 %1085 }
 0x317   : > { %7040 = vrsqrt.f32 %v1126_v50  ;;  %v1112_v54 = vmul.f32 0.0078125, %v1084_v52  ;;  %v1113_v55 = vmul.f32 0.0078125, %v1086_v53 }
 0x318   : > { %7042 = vrsqrt.f32 %v1127_v51 }
 0x319   : > { %v1128_v58 = vadd.f32 1e-05, %v1112_v54  ;;  %v1129_v59 = vadd.f32 1e-05, %v1113_v55 }
 0x31a   : > { %v1088_v60 = vpop.xlane.xlu1 %1087  ;;  %v1090_v63 = vpop.xlane.xlu0 %1089 }
 0x31b   : > { %7044 = vrsqrt.f32 %v1128_v58  ;;  %v1114_v2 = vmul.f32 0.0078125, %v1088_v60  ;;  %v1115_v3 = vmul.f32 0.0078125, %v1090_v63 }
 0x31c   : > { %7046 = vrsqrt.f32 %v1129_v59 }
 0x31d   : > { %v7039_v4 = vpop.eup %7038  ;;  %v1130_v5 = vadd.f32 1e-05, %v1114_v2  ;;  %v1131_v6 = vadd.f32 1e-05, %v1115_v3 }
 0x31e   : > { %v1092_v7 = vpop.xlane.xlu1 %1091  ;;  %v1094_v12 = vpop.xlane.xlu0 %1093  ;;  %v1157_v15 = vmul.f32 %v7039_v4, %v8827_v40 }
 0x31f   : > { %7048 = vrsqrt.f32 %v1130_v5  ;;  %v1116_v18 = vmul.f32 0.0078125, %v1092_v7  ;;  %v1117_v21 = vmul.f32 0.0078125, %v1094_v12 }
 0x320   : > { %7050 = vrsqrt.f32 %v1131_v6  ;;  %v1179_v43 = vmul.f32 %v8930_v24, %v1157_v15 }
 0x321   : > { %v7041_v27 = vpop.eup %7040  ;;  %v1132_v32 = vadd.f32 1e-05, %v1116_v18  ;;  %v1133_v33 = vadd.f32 1e-05, %v1117_v21 }
 0x322   : > { %v7043_v37 = vpop.eup %7042  ;;  %v1096_v38 = vpop.xlane.xlu1 %1095  ;;  %v1158_v42 = vmul.f32 %v7041_v27, %v8837_v48  ;;  %v1201_v60 = vadd.f32 %v8936_v45, %v1179_v43 }
 0x323   : > { %v1098_v39 = vpop.xlane.xlu0 %1097  ;;  %7052 = vrsqrt.f32 %v1132_v32  ;;  %v1118_v40 = vmul.f32 0.0078125, %v1096_v38  ;;  %v1159_v50 = vmul.f32 %v7043_v37, %v8830_v41 }
 0x324   : > { %v1119_v44 = vmul.f32 0.0078125, %v1098_v39  ;;  %7054 = vrsqrt.f32 %v1133_v33  ;;  %v1180_v51 = vmul.f32 %v8930_v24, %v1158_v42 }
 0x325   : > { %v7045_v52 = vpop.eup %7044  ;;  %v1134_v53 = vadd.f32 1e-05, %v1118_v40  ;;  %v1181_v55 = vmul.f32 %v8930_v24, %v1159_v50 }
 0x326   : > { %v1135_v54 = vadd.f32 1e-05, %v1119_v44  ;;  %v7047_v58 = vpop.eup %7046  ;;  %v1100_v48 = vpop.xlane.xlu1 %1099  ;;  %v1202_v63 = vadd.f32 %v8936_v45, %v1180_v51  ;;  %v1160_v2 = vmul.f32 %v7045_v52, %v8840_v49 }
 0x327   : > { %v1102_v59 = vpop.xlane.xlu0 %1101  ;;  %7056 = vrsqrt.f32 %v1134_v53  ;;  %v1120_v3 = vmul.f32 0.0078125, %v1100_v48  ;;  %v1161_v6 = vmul.f32 %v7047_v58, %v8847_v56  ;;  %v1203_v18 = vadd.f32 %v8936_v45, %v1181_v55 }
 0x328   : > { %v1121_v41 = vmul.f32 0.0078125, %v1102_v59  ;;  %7058 = vrsqrt.f32 %v1135_v54  ;;  %v1217_v4 = vpack.c.bf16 %v1202_v63, %v1201_v60  ;;  %v1182_v5 = vmul.f32 %v8930_v24, %v1160_v2 }
 0x329   : > { %v7049_v7 = vpop.eup %7048  ;;  %v1136_v12 = vadd.f32 1e-05, %v1120_v3  ;;  %v1183_v37 = vmul.f32 %v8930_v24, %v1161_v6 }
 0x32a   : > { %v1137_v15 = vadd.f32 1e-05, %v1121_v41  ;;  %v7051_v21 = vpop.eup %7050  ;;  %v1104_v27 = vpop.xlane.xlu1 %1103  ;;  %1435 = vmatmul.mubr.bf16.vlgmr.msra.gmra.mrb[0].mxu0 %v1217_v4  ;;  %6379 = vmatprep.mubr.bf16.mxu1 %v1217_v4  ;;  %v1204_v49 = vadd.f32 %v8936_v45, %v1182_v5  ;;  %v1162_v33 = vmul.f32 %v7049_v7, %v8850_v57 }
 0x32b   : > { %v1106_v32 = vpop.xlane.xlu0 %1105  ;;  %7060 = vrsqrt.f32 %v1136_v12  ;;  %v1122_v38 = vmul.f32 0.0078125, %v1104_v27  ;;  %1444 = vmatprep.mubr.bf16.mxu0 %v11307_v34  ;;  %v1163_v56 = vmul.f32 %v7051_v21, %v8857_v0  ;;  %v1205_v53 = vadd.f32 %v8936_v45, %v1183_v37 }
 0x32c   : > { %v1123_v39 = vmul.f32 0.0078125, %v1106_v32  ;;  %7062 = vrsqrt.f32 %v1137_v15  ;;  %v1218_v42 = vpack.c.bf16 %v1204_v49, %v1203_v18  ;;  %v1184_v43 = vmul.f32 %v8930_v24, %v1162_v33 }
 0x32d   : > { %v7053_v40 = vpop.eup %7052  ;;  %v1138_v44 = vadd.f32 1e-05, %v1122_v38  ;;  %v1185_v51 = vmul.f32 %v8930_v24, %v1163_v56 }
 0x32e   : > { %v1139_v50 = vadd.f32 1e-05, %v1123_v39  ;;  %v7055_v52 = vpop.eup %7054  ;;  %v1108_v57 = vpop.xlane.xlu1 %1107  ;;  %6380 = vmatmul.mubr.bf16.vlgmr.msra.gmra.mrb[0].mxu1 %v1218_v42  ;;  %v1206_v54 = vadd.f32 %v8936_v45, %v1184_v43  ;;  %v1164_v55 = vmul.f32 %v7053_v40, %v8860_v1 }
 0x32f   : > { %7064 = vrsqrt.f32 %v1138_v44  ;;  %v1124_v0 = vmul.f32 0.0078125, %v1108_v57  ;;  %v1165_v58 = vmul.f32 %v7055_v52, %v8867_v8  ;;  %v1207_v2 = vadd.f32 %v8936_v45, %v1185_v51 }
 0x330   : > { %7066 = vrsqrt.f32 %v1139_v50  ;;  %v1219_v48 = vpack.c.bf16 %v1206_v54, %v1205_v53  ;;  %v1186_v59 = vmul.f32 %v8930_v24, %v1164_v55  ;;  %v1257_v54 = vld [vmem:[%s8732_s27] sm:$0x7] }
 0x331   : > { %v7057_v60 = vpop.eup %7056  ;;  %v1140_v63 = vadd.f32 1e-05, %v1124_v0  ;;  %v1187_v1 = vmul.f32 %v8930_v24, %v1165_v58 }
 0x332   : > { %v7059_v3 = vpop.eup %7058  ;;  %1445 = vmatmul.mubr.bf16.gmra.mrb[4].mxu0 %v1218_v42  ;;  %6383 = vmatprep.mubr.bf16.mxu1 %v1219_v48  ;;  %v1208_v41 = vadd.f32 %v8936_v45, %v1186_v59  ;;  %v1166_v4 = vmul.f32 %v7057_v60, %v8870_v9 }
 0x333   : > { %7068 = vrsqrt.f32 %v1140_v63  ;;  %1454 = vmatprep.mubr.bf16.mxu0 %v11307_v34  ;;  %v1167_v8 = vmul.f32 %v7059_v3, %v8880_v35  ;;  %v1209_v18 = vadd.f32 %v8936_v45, %v1187_v1 }
 0x334   : > { %v1220_v5 = vpack.c.bf16 %v1208_v41, %v1207_v2  ;;  %v1188_v6 = vmul.f32 %v8930_v24, %v1166_v4 }
 0x335   : > { %v7061_v7 = vpop.eup %7060  ;;  %v1189_v12 = vmul.f32 %v8930_v24, %v1167_v8 }
 0x336   : > { %v7063_v15 = vpop.eup %7062  ;;  %6384 = vmatmul.mubr.bf16.gmra.mrb[4].mxu1 %v1220_v5  ;;  %v1210_v21 = vadd.f32 %v8936_v45, %v1188_v6  ;;  %v1168_v9 = vmul.f32 %v7061_v7, %v8883_v36 }
 0x337   : > { %v1169_v27 = vmul.f32 %v7063_v15, %v8891_v46  ;;  %v1211_v33 = vadd.f32 %v8936_v45, %v1189_v12 }
 0x338   : > { %v1221_v32 = vpack.c.bf16 %v1210_v21, %v1209_v18  ;;  %v1190_v49 = vmul.f32 %v8930_v24, %v1168_v9 }
 0x339   : > { %v7065_v35 = vpop.eup %7064  ;;  %v1191_v56 = vmul.f32 %v8930_v24, %v1169_v27 }
 0x33a   : > { %v7067_v37 = vpop.eup %7066  ;;  %1455 = vmatmul.mubr.bf16.gmra.mrb[8].mxu0 %v1219_v48  ;;  %6387 = vmatprep.mubr.bf16.mxu1 %v1221_v32  ;;  %v1212_v38 = vadd.f32 %v8936_v45, %v1190_v49  ;;  %v1170_v39 = vmul.f32 %v7065_v35, %v8894_v47 }
 0x33b   : > { %1464 = vmatprep.mubr.bf16.mxu0 %v11307_v34  ;;  %v1171_v36 = vmul.f32 %v7067_v37, %v8904_v61  ;;  %v1213_v40 = vadd.f32 %v8936_v45, %v1191_v56 }
 0x33c   : > { %v1222_v46 = vpack.c.bf16 %v1212_v38, %v1211_v33  ;;  %v1192_v42 = vmul.f32 %v8930_v24, %v1170_v39 }
 0x33d   : > { %v7069_v43 = vpop.eup %7068  ;;  %v1193_v51 = vmul.f32 %v8930_v24, %v1171_v36 }
 0x33e   : > { %6388 = vmatmul.mubr.bf16.gmra.mrb[8].mxu1 %v1222_v46  ;;  %v1214_v44 = vadd.f32 %v8936_v45, %v1192_v42  ;;  %v1172_v50 = vmul.f32 %v7069_v43, %v8907_v62  ;;  %v1259_v62 = vlaneseq }
 0x33f   : > { %v1215_v61 = vadd.f32 %v8936_v45, %v1193_v51 }
 0x340   : > { %v1223_v47 = vpack.c.bf16 %v1214_v44, %v1213_v40  ;;  %v1194_v52 = vmul.f32 %v8930_v24, %v1172_v50  ;;  %v8991_v24 = vshrl.u32 %v1259_v62, 7 }
 0x342   : > { %1465 = vmatmul.mubr.bf16.gmra.mrb[12].mxu0 %v1220_v5  ;;  %6391 = vmatprep.mubr.bf16.mxu1 %v1223_v47  ;;  %v1216_v57 = vadd.f32 %v8936_v45, %v1194_v52  ;;  %v11306_v45 = vsub.s32 0, %v8991_v24  ;;  %v11304_v55 = vsub.s32 1, %v8991_v24  ;;  %v11305_v58 = vsub.s32 2, %v8991_v24 }
 0x343   : > { %1474 = vmatprep.mubr.bf16.mxu0 %v11307_v34  ;;  %v9309_v22 = vadd.s32 96, %v8991_v24  ;;  %v9341_v20 = vadd.s32 104, %v8991_v24 }
 0x344   : > { %v1224_v53 = vpack.c.bf16 %v1216_v57, %v1215_v61  ;;  %v8998_v0 = vrot.slane %v1257_v54, %v11306_v45  ;;  %v9003_v59 = vrot.slane %v1257_v54, %v11304_v55  ;;  %v9009_v4 = vrot.slane %v1257_v54, %v11305_v58 }
 0x345   : > { %11520 = vst [vmem:[#allocation76_spill] sm:$0xff] %v9309_v22  ;;  %11522 = vst [vmem:[#allocation78_spill] sm:$0xff] %v9341_v20 }
 0x346   : > { %6392 = vmatmul.mubr.bf16.gmra.mrb[12].mxu1 %v1224_v53 }
 0x34a   : > { %1475 = vmatmul.mubr.bf16.gmra.mrb[16].mxu0 %v1221_v32 }
 0x34b   : > { %1484 = vmatprep.mubr.bf16.mxu0 %v11307_v34 }
 0x352   : > { %1485 = vmatmul.mubr.bf16.gmra.mrb[20].mxu0 %v1222_v46 }
 0x353   : > { %1494 = vmatprep.mubr.bf16.mxu0 %v11307_v34 }
 0x35a   : > { %1495 = vmatmul.mubr.bf16.gmra.mrb[24].mxu0 %v1223_v47 }
 0x35b   : > { %1504 = vmatprep.mubr.bf16.mxu0 %v11307_v34 }
 0x362   : > { %1505 = vmatmul.mubr.bf16.gmra.mrb[28].mxu0 %v1224_v53 }
 0x3fd   : > { %v1436_v48 = vpop.f32.mrb[0].mxu0 }
 0x3fe   : > { %v1438_v60 = vpop.f32.mrb[1].mxu0  ;;  %v1437_v2 = vadd.f32 %v1436_v48, %v8998_v0 }
 0x3ff   : > { %v1440_v63 = vpop.f32.mrb[2].mxu0  ;;  %v1439_v1 = vadd.f32 %v1438_v60, %v9003_v59 }
 0x400   : > { %v1441_v3 = vadd.f32 %v1440_v63, %v8998_v0  ;;  %v1442_v41 = vpop.f32.mrb[3].mxu0 }
 0x401   : > { %v1443_v8 = vadd.f32 %v1442_v41, %v9003_v59  ;;  %v6381_v5 = vpop.f32.mrb[0].mxu1 }
 0x402   : > { %v9013_v6 = vpack.c.bf16 %v1441_v3, %v1437_v2  ;;  %v1549_v7 = vpop.f32.mrb[1].mxu1  ;;  %v1558_v18 = vadd.f32 %v6381_v5, %v9009_v4 }
 0x403   : > { %v9015_v12 = vpack.c.bf16 %v1443_v8, %v1439_v1  ;;  %v6382_v15 = vpop.f32.mrb[2].mxu1  ;;  %v1550_v27 = vadd.f32 %v1549_v7, %v9009_v4 }
 0x404   : > { %v1561_v21 = vadd.f32 %v6382_v15, %v9009_v4  ;;  %v1552_v9 = vpop.f32.mrb[3].mxu1  ;;  %6411 = vmatprep.mubr.msk.bf16.mxu0 %vm1671_vm0, %v9013_v6 }
 0x405   : > { %v1553_v32 = vadd.f32 %v1552_v9, %v9009_v4  ;;  %2122 = vrot.lane.b32.xlu0 %v9015_v12, %s8044_s7  ;;  %v1446_v49 = vpop.f32.mrb[4].mxu0  ;;  %6699 = vmatprep.subr.msk.bf16.mxu0 %vm1671_vm0, %v9015_v12  ;;  %v1697_v35 = vsel %vm1671_vm0, %v9015_v12, 0 }
 0x406   : > { %v9029_v33 = vpack.c.bf16 %v1561_v21, %v1558_v18  ;;  %v1447_v37 = vadd.f32 %v1446_v49, %v8998_v0  ;;  %v1448_v38 = vpop.f32.mrb[5].mxu0  ;;  %6396 = vmatpush3.bf16.xpose.msra.mxu0 %v1697_v35 }
 0x407   : > { %v9032_v39 = vpack.c.bf16 %v1553_v32, %v1550_v27  ;;  %v1450_v56 = vpop.f32.mrb[6].mxu0  ;;  %v1449_v42 = vadd.f32 %v1448_v38, %v9003_v59 }
 0x408   : > { %v1451_v36 = vadd.f32 %v1450_v56, %v8998_v0  ;;  %v1452_v46 = vpop.f32.mrb[7].mxu0 }
 0x409   : > { %v1453_v43 = vadd.f32 %v1452_v46, %v9003_v59  ;;  %v6385_v40 = vpop.f32.mrb[4].mxu1  ;;  %6427 = vmatprep.subr.bf16.mxu1 %v9032_v39 }
 0x40a   : > { %v9038_v44 = vpack.c.bf16 %v1451_v36, %v1447_v37  ;;  %v1565_v50 = vpop.f32.mrb[5].mxu1  ;;  %6428 = vmatpush3.bf16.msra.mxu1 %v9032_v39  ;;  %v1574_v52 = vadd.f32 %v6385_v40, %v9009_v4 }
 0x40b   : > { %v9041_v51 = vpack.c.bf16 %v1453_v43, %v1449_v42  ;;  %v6386_v47 = vpop.f32.mrb[6].mxu1  ;;  %6429 = vmatprep.subr.bf16.mxu1 %v9029_v33  ;;  %v1566_v53 = vadd.f32 %v1565_v50, %v9009_v4 }
 0x40c   : > { %v1577_v61 = vadd.f32 %v6386_v47, %v9009_v4  ;;  %v1568_v57 = vpop.f32.mrb[7].mxu1 }
 0x40d   : > { %v1569_v54 = vadd.f32 %v1568_v57, %v9009_v4  ;;  %2124 = vrot.lane.b32.xlu1 %v9041_v51, %s8044_s7  ;;  %v1456_v48 = vpop.f32.mrb[8].mxu0  ;;  %6700 = vmatprep.subr.msk.bf16.mxu0 %vm1671_vm0, %v9041_v51  ;;  %v1700_v60 = vsel %vm1671_vm0, %v9041_v51, 0 }
 0x40e   : > { %v9054_v63 = vpack.c.bf16 %v1577_v61, %v1574_v52  ;;  %v1457_v2 = vadd.f32 %v1456_v48, %v8998_v0  ;;  %v1458_v3 = vpop.f32.mrb[9].mxu0  ;;  %6398 = vmatpush3.bf16.xpose.msra.mxu0 %v1700_v60  ;;  %6430 = vmatpush3.bf16.msra.mxu1 %v9029_v33 }
 0x40f   : > { %v9058_v41 = vpack.c.bf16 %v1569_v54, %v1566_v53  ;;  %v1460_v1 = vpop.f32.mrb[10].mxu0  ;;  %v1459_v7 = vadd.f32 %v1458_v3, %v9003_v59 }
 0x410   : > { %v1461_v8 = vadd.f32 %v1460_v1, %v8998_v0  ;;  %v1462_v5 = vpop.f32.mrb[11].mxu0 }
 0x411   : > { %v1463_v15 = vadd.f32 %v1462_v5, %v9003_v59  ;;  %v6389_v18 = vpop.f32.mrb[8].mxu1  ;;  %6431 = vmatprep.subr.bf16.mxu1 %v9058_v41 }
 0x412   : > { %v9064_v21 = vpack.c.bf16 %v1461_v8, %v1457_v2  ;;  %v1581_v9 = vpop.f32.mrb[9].mxu1  ;;  %6432 = vmatpush3.bf16.msra.mxu1 %v9058_v41  ;;  %v1590_v49 = vadd.f32 %v6389_v18, %v9009_v4 }
 0x413   : > { %v9067_v27 = vpack.c.bf16 %v1463_v15, %v1459_v7  ;;  %v6390_v32 = vpop.f32.mrb[10].mxu1  ;;  %6433 = vmatprep.subr.bf16.mxu1 %v9054_v63  ;;  %v1582_v38 = vadd.f32 %v1581_v9, %v9009_v4 }
 0x414   : > { %v1593_v35 = vadd.f32 %v6390_v32, %v9009_v4  ;;  %v1584_v37 = vpop.f32.mrb[11].mxu1 }
 0x415   : > { %11505 = vst [vmem:[#allocation61_spill] sm:$0xff] %v9067_v27  ;;  %v1585_v56 = vadd.f32 %v1584_v37, %v9009_v4  ;;  %v1466_v36 = vpop.f32.mrb[12].mxu0  ;;  %6701 = vmatprep.subr.msk.bf16.mxu0 %vm1671_vm0, %v9067_v27  ;;  %v1703_v46 = vsel %vm1671_vm0, %v9067_v27, 0 }
 0x416   : > { %v9078_v42 = vpack.c.bf16 %v1593_v35, %v1590_v49  ;;  %v1467_v43 = vadd.f32 %v1466_v36, %v8998_v0  ;;  %v1468_v40 = vpop.f32.mrb[13].mxu0  ;;  %6400 = vmatpush3.bf16.xpose.msra.mxu0 %v1703_v46  ;;  %6434 = vmatpush3.bf16.msra.mxu1 %v9054_v63 }
 0x417   : > { %v9082_v50 = vpack.c.bf16 %v1585_v56, %v1582_v38  ;;  %v1470_v47 = vpop.f32.mrb[14].mxu0  ;;  %v1469_v57 = vadd.f32 %v1468_v40, %v9003_v59 }
 0x418   : > { %11506 = vst [vmem:[#allocation62_spill] sm:$0xff] %v9078_v42  ;;  %v1471_v52 = vadd.f32 %v1470_v47, %v8998_v0  ;;  %v1472_v61 = vpop.f32.mrb[15].mxu0 }
 0x419   : > { %11507 = vst [vmem:[#allocation63_spill] sm:$0xff] %v9082_v50  ;;  %v1473_v53 = vadd.f32 %v1472_v61, %v9003_v59  ;;  %v6393_v54 = vpop.f32.mrb[12].mxu1  ;;  %6435 = vmatprep.subr.bf16.mxu1 %v9082_v50 }
 0x41a   : > { %v9088_v48 = vpack.c.bf16 %v1471_v52, %v1467_v43  ;;  %v1597_v60 = vpop.f32.mrb[13].mxu1  ;;  %6436 = vmatpush3.bf16.msra.mxu1 %v9082_v50  ;;  %v1606_v1 = vadd.f32 %v6393_v54, %v9009_v4 }
 0x41b   : > { %v9091_v2 = vpack.c.bf16 %v1473_v53, %v1469_v57  ;;  %v6394_v3 = vpop.f32.mrb[14].mxu1  ;;  %6437 = vmatprep.subr.bf16.mxu1 %v9078_v42  ;;  %v1598_v7 = vadd.f32 %v1597_v60, %v9009_v4 }
 0x41c   : > { %v1609_v8 = vadd.f32 %v6394_v3, %v9009_v4  ;;  %v1600_v5 = vpop.f32.mrb[15].mxu1 }
 0x41d   : > { %11508 = vst [vmem:[#allocation64_spill] sm:$0xff] %v9091_v2  ;;  %v1601_v15 = vadd.f32 %v1600_v5, %v9009_v4  ;;  %v1476_v18 = vpop.f32.mrb[16].mxu0  ;;  %6702 = vmatprep.subr.msk.bf16.mxu0 %vm1671_vm0, %v9091_v2  ;;  %v1706_v9 = vsel %vm1671_vm0, %v9091_v2, 0 }
 0x41e   : > { %v9102_v32 = vpack.c.bf16 %v1609_v8, %v1606_v1  ;;  %v1477_v49 = vadd.f32 %v1476_v18, %v8998_v0  ;;  %v1478_v35 = vpop.f32.mrb[17].mxu0  ;;  %6402 = vmatpush3.bf16.xpose.msra.mxu0 %v1706_v9  ;;  %6438 = vmatpush3.bf16.msra.mxu1 %v9078_v42 }
 0x41f   : > { %v9106_v37 = vpack.c.bf16 %v1601_v15, %v1598_v7  ;;  %v1480_v38 = vpop.f32.mrb[18].mxu0  ;;  %v1479_v36 = vadd.f32 %v1478_v35, %v9003_v59 }
 0x420   : > { %11509 = vst [vmem:[#allocation65_spill] sm:$0xff] %v9102_v32  ;;  %v1481_v4 = vadd.f32 %v1480_v38, %v8998_v0  ;;  %v1482_v56 = vpop.f32.mrb[19].mxu0 }
 0x421   : > { %11510 = vst [vmem:[#allocation66_spill] sm:$0xff] %v9106_v37  ;;  %v1483_v46 = vadd.f32 %v1482_v56, %v9003_v59  ;;  %6439 = vmatprep.subr.bf16.mxu1 %v9106_v37 }
 0x422   : > { %v9112_v43 = vpack.c.bf16 %v1481_v4, %v1477_v49  ;;  %6440 = vmatpush3.bf16.msra.mxu1 %v9106_v37 }
 0x423   : > { %v9115_v40 = vpack.c.bf16 %v1483_v46, %v1479_v36  ;;  %6441 = vmatprep.subr.bf16.mxu1 %v9102_v32 }
 0x425   : > { %11511 = vst [vmem:[#allocation67_spill] sm:$0xff] %v9115_v40  ;;  %v1486_v47 = vpop.f32.mrb[20].mxu0  ;;  %6703 = vmatprep.subr.msk.bf16.mxu0 %vm1671_vm0, %v9115_v40  ;;  %v1709_v52 = vsel %vm1671_vm0, %v9115_v40, 0 }
 0x426   : > { %v1487_v61 = vadd.f32 %v1486_v47, %v8998_v0  ;;  %v1488_v57 = vpop.f32.mrb[21].mxu0  ;;  %6404 = vmatpush3.bf16.xpose.msra.mxu0 %v1709_v52  ;;  %6442 = vmatpush3.bf16.msra.mxu1 %v9102_v32 }
 0x427   : > { %v1490_v53 = vpop.f32.mrb[22].mxu0  ;;  %v1489_v3 = vadd.f32 %v1488_v57, %v9003_v59 }
 0x428   : > { %v1491_v54 = vadd.f32 %v1490_v53, %v8998_v0  ;;  %v1492_v60 = vpop.f32.mrb[23].mxu0 }
 0x429   : > { %v1493_v1 = vadd.f32 %v1492_v60, %v9003_v59 }
 0x42a   : > { %v9127_v8 = vpack.c.bf16 %v1491_v54, %v1487_v61 }
 0x42b   : > { %v9129_v5 = vpack.c.bf16 %v1493_v1, %v1489_v3 }
 0x42d   : > { %11512 = vst [vmem:[#allocation68_spill] sm:$0xff] %v9129_v5  ;;  %v1496_v7 = vpop.f32.mrb[24].mxu0  ;;  %6704 = vmatprep.subr.msk.bf16.mxu0 %vm1671_vm0, %v9129_v5  ;;  %v1712_v15 = vsel %vm1671_vm0, %v9129_v5, 0 }
 0x42e   : > { %v1497_v18 = vadd.f32 %v1496_v7, %v8998_v0  ;;  %v1498_v9 = vpop.f32.mrb[25].mxu0  ;;  %6406 = vmatpush3.bf16.xpose.msra.mxu0 %v1712_v15 }
 0x42f   : > { %v1500_v49 = vpop.f32.mrb[26].mxu0  ;;  %v1499_v4 = vadd.f32 %v1498_v9, %v9003_v59  ;;  %v9181_v9 = vand.u32 127, %v1259_v62 }
 0x430   : > { %v1501_v35 = vadd.f32 %v1500_v49, %v8998_v0  ;;  %v1502_v38 = vpop.f32.mrb[27].mxu0  ;;  %v9184_v49 = vadd.s32 24, %v8991_v24 }
 0x431   : > { %v1503_v56 = vadd.f32 %v1502_v38, %v9003_v59  ;;  %v9191_v38 = vadd.s32 8, %v8991_v24  ;;  %vm1655_vm3 = vcmp.le.s32.totalorder %v9181_v9, %v8991_v24  ;;  %vm11320_vm14 = vcmp.le.s32.totalorder %v9181_v9, %v9309_v22 }
 0x432   : > { %v9139_v36 = vpack.c.bf16 %v1501_v35, %v1497_v18  ;;  %vm1658_vm2 = vcmp.le.s32.totalorder %v9181_v9, %v9184_v49 }
 0x433   : > { %v9141_v46 = vpack.c.bf16 %v1503_v56, %v1499_v4  ;;  %vm1656_vm4 = vcmp.le.s32.totalorder %v9181_v9, %v9191_v38 }
 0x435   : > { %v1506_v47 = vpop.f32.mrb[28].mxu0  ;;  %6705 = vmatprep.subr.msk.bf16.mxu0 %vm1671_vm0, %v9141_v46  ;;  %v1715_v52 = vsel %vm1671_vm0, %v9141_v46, 0 }
 0x436   : > { %v1507_v61 = vadd.f32 %v1506_v47, %v8998_v0  ;;  %v1508_v57 = vpop.f32.mrb[29].mxu0  ;;  %6408 = vmatpush3.bf16.xpose.msra.mxu0 %v1715_v52  ;;  %v9202_v47 = vadd.s32 48, %v8991_v24 }
 0x437   : > { %v1510_v53 = vpop.f32.mrb[30].mxu0  ;;  %v1509_v3 = vadd.f32 %v1508_v57, %v9003_v59  ;;  %v9213_v57 = vadd.s32 56, %v8991_v24 }
 0x438   : > { %v1511_v54 = vadd.f32 %v1510_v53, %v8998_v0  ;;  %v1512_v60 = vpop.f32.mrb[31].mxu0  ;;  %vm1661_vm5 = vcmp.le.s32.totalorder %v9181_v9, %v9202_v47 }
 0x439   : > { %v1513_v1 = vadd.f32 %v1512_v60, %v9003_v59  ;;  %v9178_v59 = vadd.s32 16, %v8991_v24  ;;  %vm1662_vm6 = vcmp.le.s32.totalorder %v9181_v9, %v9213_v57 }
 0x43a   : > { %v9151_v7 = vpack.c.bf16 %v1511_v54, %v1507_v61  ;;  %v9224_v54 = vadd.s32 32, %v8991_v24 }
 0x43b   : > { %v9153_v15 = vpack.c.bf16 %v1513_v1, %v1509_v3  ;;  %vm1657_vm1 = vcmp.le.s32.totalorder %v9181_v9, %v9178_v59  ;;  %v9235_v1 = vadd.s32 40, %v8991_v24 }
 0x43c   : > { %11513 = vst [vmem:[#allocation69_spill] sm:$0xff] %v9224_v54  ;;  %vm1659_vm7 = vcmp.le.s32.totalorder %v9181_v9, %v9224_v54 }
 0x43d   : > { %6706 = vmatprep.subr.msk.bf16.mxu0 %vm1671_vm0, %v9153_v15  ;;  %v1718_v18 = vsel %vm1671_vm0, %v9153_v15, 0  ;;  %11514 = vst [vmem:[#allocation70_spill] sm:$0xff] %v9235_v1  ;;  %vm1660_vm8 = vcmp.le.s32.totalorder %v9181_v9, %v9235_v1 }
 0x43e   : > { %6410 = vmatpush3.bf16.xpose.msra.mxu0 %v1718_v18 }
 0x445   : > { %6412 = vmatmul.mubr.msk.bf16.vlgmr.msra.gmra.mrb[32].mxu0 %vm1671_vm0, %v9038_v44 }
 0x446   : > { %6415 = vmatprep.mubr.msk.bf16.mxu0 %vm1671_vm0, %v9064_v21 }
 0x44d   : > { %6416 = vmatmul.mubr.msk.bf16.gmra.mrb[36].mxu0 %vm1671_vm0, %v9088_v48 }
 0x44e   : > { %6419 = vmatprep.mubr.msk.bf16.mxu0 %vm1671_vm0, %v9112_v43 }
 0x455   : > { %6420 = vmatmul.mubr.msk.bf16.gmra.mrb[40].mxu0 %vm1671_vm0, %v9127_v8 }
 0x456   : > { %6423 = vmatprep.mubr.msk.bf16.mxu0 %vm1671_vm0, %v9139_v36 }
 0x45d   : > { %6424 = vmatmul.mubr.msk.bf16.gmra.mrb[44].mxu0 %vm1671_vm0, %v9151_v7 }
 0x477   : > { %v9173_v0 = vpop.permute.xlu0 %2122 }
 0x478   : > { %6707 = vmatprep.subr.msk.bf16.mxu1 %vm1671_vm0, %v9173_v0 }
 0x47f   : > { %v9357_v13 = vpop.permute.xlu1 %2124 }
 0x518   : > { %v6413_v35 = vpop.f32.mrb[32].mxu0 }
 0x519   : > { %v1754_v4 = vpop.f32.mrb[33].mxu0  ;;  %v9196_v56 = vsel %vm1657_vm1, %v6413_v35, -1e+30 }
 0x51a   : > { %1837 = vmax.xlane.f32.xlu0 %v9196_v56  ;;  %v6414_v62 = vpop.f32.mrb[34].mxu0  ;;  %v9218_v53 = vsel %vm1655_vm3, %v1754_v4, -1e+30 }
 0x51b   : > { %v1757_v52 = vpop.f32.mrb[35].mxu0  ;;  %v9207_v61 = vsel %vm1658_vm2, %v6414_v62, -1e+30  ;;  %v9246_v62 = vadd.s32 80, %v8991_v24 }
 0x51c   : > { %1839 = vmax.xlane.f32.xlu1 %v9207_v61  ;;  %v9229_v60 = vsel %vm1656_vm4, %v1757_v52, -1e+30 }
 0x51d   : > { %11515 = vst [vmem:[#allocation71_spill] sm:$0xff] %v9246_v62  ;;  %vm1665_vm9 = vcmp.le.s32.totalorder %v9181_v9, %v9246_v62 }
 0x51e   : > { %1833 = vmax.xlane.f32.xlu0 %v9218_v53 }
 0x520   : > { %1835 = vmax.xlane.f32.xlu1 %v9229_v60  ;;  %v6417_v3 = vpop.f32.mrb[36].mxu0 }
 0x521   : > { %v1770_v18 = vpop.f32.mrb[37].mxu0  ;;  %v9240_v35 = vsel %vm1661_vm5, %v6417_v3, -1e+30  ;;  %v9257_v3 = vadd.s32 88, %v8991_v24 }
 0x522   : > { %1845 = vmax.xlane.f32.xlu0 %v9240_v35  ;;  %v6418_v4 = vpop.f32.mrb[38].mxu0  ;;  %v9262_v58 = vsel %vm1659_vm7, %v1770_v18, -1e+30  ;;  %v9279_v18 = vadd.s32 72, %v8991_v24 }
 0x523   : > { %v1773_v52 = vpop.f32.mrb[39].mxu0  ;;  %v9251_v55 = vsel %vm1662_vm6, %v6418_v4, -1e+30  ;;  %11516 = vst [vmem:[#allocation72_spill] sm:$0xff] %v9257_v3  ;;  %v9268_v4 = vadd.s32 64, %v8991_v24  ;;  %vm1666_vm10 = vcmp.le.s32.totalorder %v9181_v9, %v9257_v3 }
 0x524   : > { %1847 = vmax.xlane.f32.xlu1 %v9251_v55  ;;  %v9273_v45 = vsel %vm1660_vm8, %v1773_v52, -1e+30  ;;  %11518 = vst [vmem:[#allocation74_spill] sm:$0xff] %v9279_v18  ;;  %v9290_v52 = vadd.s32 112, %v8991_v24  ;;  %vm11360_vm12 = vcmp.le.s32.totalorder %v9181_v9, %v9279_v18 }
 0x525   : > { %11517 = vst [vmem:[#allocation73_spill] sm:$0xff] %v9268_v4  ;;  %vm1663_vm11 = vcmp.le.s32.totalorder %v9181_v9, %v9268_v4 }
 0x526   : > { %1841 = vmax.xlane.f32.xlu0 %v9262_v58  ;;  %11519 = vst [vmem:[#allocation75_spill] sm:$0xff] %v9290_v52  ;;  %vm1669_vm13 = vcmp.le.s32.totalorder %v9181_v9, %v9290_v52 }
 0x528   : > { %1843 = vmax.xlane.f32.xlu1 %v9273_v45  ;;  %v6421_v34 = vpop.f32.mrb[40].mxu0 }
 0x529   : > { %v1786_v29 = vpop.f32.mrb[41].mxu0  ;;  %v9284_v28 = vsel %vm1665_vm9, %v6421_v34, -1e+30 }
 0x52a   : > { %1853 = vmax.xlane.f32.xlu0 %v9284_v28  ;;  %v6422_v31 = vpop.f32.mrb[42].mxu0  ;;  %v9303_v34 = vsel %vm1663_vm11, %v1786_v29, -1e+30 }
 0x52b   : > { %v1789_v30 = vpop.f32.mrb[43].mxu0  ;;  %v9295_v23 = vsel %vm1666_vm10, %v6422_v31, -1e+30 }
 0x52c   : > { %1855 = vmax.xlane.f32.xlu1 %v9295_v23  ;;  %v9314_v31 = vsel %vm11360_vm12, %v1789_v30, -1e+30 }
 0x52e   : > { %1849 = vmax.xlane.f32.xlu0 %v9303_v34 }
 0x530   : > { %1851 = vmax.xlane.f32.xlu1 %v9314_v31  ;;  %v6425_v26 = vpop.f32.mrb[44].mxu0 }
 0x531   : > { %v1802_v25 = vpop.f32.mrb[45].mxu0  ;;  %v9320_v29 = vsel %vm1669_vm13, %v6425_v26, -1e+30  ;;  %v9336_v26 = vadd.s32 120, %v8991_v24 }
 0x532   : > { %1861 = vmax.xlane.f32.xlu0 %v9320_v29  ;;  %v6426_v17 = vpop.f32.mrb[46].mxu0  ;;  %v9328_v30 = vsel %vm11320_vm14, %v1802_v25, -1e+30  ;;  %vm1668_vm14 = vcmp.le.s32.totalorder %v9181_v9, %v9341_v20 }
 0x533   : > { %v1805_v16 = vpop.f32.mrb[47].mxu0  ;;  %11521 = vst [vmem:[#allocation77_spill] sm:$0xff] %v9336_v26  ;;  %vm1670_vm15 = vcmp.le.s32.totalorder %v9181_v9, %v9336_v26 }
 0x534   : > { %v9346_v25 = vsel %vm1670_vm15, %v6426_v17, -1e+30  ;;  %v9354_v19 = vsel %vm1668_vm14, %v1805_v16, -1e+30 }
 0x536   : > { %1857 = vmax.xlane.f32.xlu0 %v9328_v30 }
 0x541   : > { %2128 = vrot.lane.b32.xlu1 %v9091_v2, %s8044_s7 }
 0x54c   : > { %2126 = vrot.lane.b32.xlu0 %v9067_v27, %s8044_s7 }
 0x565   : > { %1863 = vmax.xlane.f32.xlu1 %v9346_v25 }
 0x569   : > { %1859 = vmax.xlane.f32.xlu1 %v9354_v19 }
 0x5a7   : > { %v1838_v10 = vpop.xlane.xlu0 %1837 }
 0x5a8   : > { %v1867_v14 = vsub.f32 %v9196_v56, %v1838_v10 }
 0x5a9   : > { %v1840_v11 = vpop.xlane.xlu1 %1839 }
 0x5aa   : > { %v1885_v17 = vmul.f32 1.442695, %v1867_v14  ;;  %v1868_v26 = vsub.f32 %v9207_v61, %v1840_v11 }
 0x5ab   : > { %v1834_v27 = vpop.xlane.xlu0 %1833 }
 0x5ac   : > { %7070 = vpow2.f32 %v1885_v17  ;;  %v1887_v2 = vmul.f32 1.442695, %v1868_v26  ;;  %v1865_v22 = vsub.f32 %v9218_v53, %v1834_v27 }
 0x5ad   : > { %v1836_v52 = vpop.xlane.xlu1 %1835 }
 0x5ae   : > { %7072 = vpow2.f32 %v1887_v2  ;;  %v1881_v16 = vmul.f32 1.442695, %v1865_v22  ;;  %v1866_v20 = vsub.f32 %v9229_v60, %v1836_v52 }
 0x5af   : > { %v1846_v22 = vpop.xlane.xlu0 %1845 }
 0x5b0   : > { %7074 = vpow2.f32 %v1881_v16  ;;  %v1883_v4 = vmul.f32 1.442695, %v1866_v20  ;;  %v1871_v53 = vsub.f32 %v9240_v35, %v1846_v22 }
 0x5b1   : > { %v1848_v2 = vpop.xlane.xlu1 %1847 }
 0x5b2   : > { %7076 = vpow2.f32 %v1883_v4  ;;  %v1893_v52 = vmul.f32 1.442695, %v1871_v53  ;;  %v1872_v16 = vsub.f32 %v9251_v55, %v1848_v2 }
 0x5b3   : > { %v1842_v27 = vpop.xlane.xlu0 %1841 }
 0x5b4   : > { %v1869_v60 = vsub.f32 %v9262_v58, %v1842_v27  ;;  %7078 = vpow2.f32 %v1893_v52  ;;  %v1895_v54 = vmul.f32 1.442695, %v1872_v16 }
 0x5b5   : > { %v1844_v61 = vpop.xlane.xlu1 %1843 }
 0x5b6   : > { %v9363_v18 = vpop.eup %7070  ;;  %v1870_v26 = vsub.f32 %v9273_v45, %v1844_v61  ;;  %v1889_v62 = vmul.f32 1.442695, %v1869_v60 }
 0x5b7   : > { %1917 = vadd.xlane.f32.xlu0 %v9363_v18  ;;  %v1854_v20 = vpop.xlane.xlu0 %1853 }
 0x5b8   : > { %v9366_v10 = vpop.eup %7072  ;;  %7080 = vpow2.f32 %v1889_v62  ;;  %v1875_v1 = vsub.f32 %v9284_v28, %v1854_v20 }
 0x5b9   : > { %1919 = vadd.xlane.f32.xlu1 %v9366_v10  ;;  %v1856_v17 = vpop.xlane.xlu1 %1855 }
 0x5ba   : > { %v9369_v11 = vpop.eup %7074  ;;  %v1901_v45 = vmul.f32 1.442695, %v1875_v1  ;;  %v1876_v2 = vsub.f32 %v9295_v23, %v1856_v17 }
 0x5bb   : > { %1913 = vadd.xlane.f32.xlu0 %v9369_v11  ;;  %v1850_v56 = vpop.xlane.xlu0 %1849 }
 0x5bc   : > { %v9372_v14 = vpop.eup %7076  ;;  %v1873_v27 = vsub.f32 %v9303_v34, %v1850_v56 }
 0x5bd   : > { %1915 = vadd.xlane.f32.xlu1 %v9372_v14  ;;  %v1852_v35 = vpop.xlane.xlu1 %1851 }
 0x5be   : > { %v1897_v62 = vmul.f32 1.442695, %v1873_v27  ;;  %v1874_v23 = vsub.f32 %v9314_v31, %v1852_v35 }
 0x5bf   : > { %v1862_v4 = vpop.xlane.xlu0 %1861 }
 0x5c0   : > { %v1899_v56 = vmul.f32 1.442695, %v1874_v23 }
 0x5c1   : > { %v9388_v61 = vpop.permute.xlu1 %2128 }
 0x5c3   : > { %v1858_v3 = vpop.xlane.xlu0 %1857 }
 0x5c4   : > { %v1877_v22 = vsub.f32 %v9328_v30, %v1858_v3 }
 0x5c6   : > { %v1905_v55 = vmul.f32 1.442695, %v1877_v22 }
 0x5c7   : > { %v2127_v16 = vpop.permute.xlu0 %2126 }
 0x5ce   : > { %2132 = vrot.lane.b32.xlu1 %v9129_v5, %s8044_s7  ;;  %v1891_v5 = vmul.f32 1.442695, %v1870_v26 }
 0x5d0   : > { %7082 = vpow2.f32 %v1891_v5 }
 0x5d1   : > { %2130 = vrot.lane.b32.xlu0 %v9115_v40, %s8044_s7  ;;  %v1879_v40 = vsub.f32 %v9320_v29, %v1862_v4  ;;  %7084 = vpow2.f32 %v1895_v54  ;;  %v9390_v29 = vpop.eup %7078 }
 0x5d2   : > { %v9393_v28 = vpop.eup %7080 }
 0x5d3   : > { %v1909_v58 = vmul.f32 1.442695, %v1879_v40  ;;  %v1903_v40 = vmul.f32 1.442695, %v1876_v2 }
 0x5d5   : > { %7086 = vpow2.f32 %v1909_v58 }
 0x5d6   : > { %7088 = vpow2.f32 %v1901_v45 }
 0x5d7   : > { %7090 = vpow2.f32 %v1905_v55 }
 0x5d8   : > { %7092 = vpow2.f32 %v1897_v62 }
 0x5d9   : > { %7094 = vpow2.f32 %v1903_v40 }
 0x5da   : > { %v9396_v54 = vpop.eup %7082 }
 0x5db   : > { %v9401_v3 = vpop.eup %7084 }
 0x5df   : > { %v9404_v20 = vpop.eup %7086 }
 0x5e0   : > { %v9408_v31 = vpop.eup %7088 }
 0x5f0   : > { %1925 = vadd.xlane.f32.xlu0 %v9390_v29 }
 0x5f2   : > { %v1864_v5 = vpop.xlane.xlu1 %1863  ;;  %1921 = vadd.xlane.f32.xlu1 %v9393_v28 }
 0x5f3   : > { %v1880_v1 = vsub.f32 %v9346_v25, %v1864_v5  ;;  %v9411_v25 = vpop.eup %7090 }
 0x5f4   : > { %1923 = vadd.xlane.f32.xlu0 %v9396_v54  ;;  %v9414_v4 = vpop.eup %7092 }
 0x5f5   : > { %v1911_v34 = vmul.f32 1.442695, %v1880_v1  ;;  %v9417_v52 = vpop.eup %7094 }
 0x5f6   : > { %v1860_v30 = vpop.xlane.xlu1 %1859  ;;  %1927 = vadd.xlane.f32.xlu1 %v9401_v3 }
 0x5f7   : > { %7096 = vpow2.f32 %v1911_v34  ;;  %v1878_v53 = vsub.f32 %v9354_v19, %v1860_v30 }
 0x5f8   : > { %1941 = vadd.xlane.f32.xlu0 %v9404_v20  ;;  %7098 = vpow2.f32 %v1899_v56  ;;  %v2163_v56 = vsel %vm1671_vm0, %v9173_v0, 0 }
 0x5f9   : > { %v1907_v60 = vmul.f32 1.442695, %v1878_v53 }
 0x5fa   : > { %1933 = vadd.xlane.f32.xlu1 %v9408_v31 }
 0x5fb   : > { %7100 = vpow2.f32 %v1907_v60 }
 0x5fc   : > { %1937 = vadd.xlane.f32.xlu0 %v9411_v25 }
 0x5fe   : > { %1929 = vadd.xlane.f32.xlu1 %v9414_v4 }
 0x601   : > { %v9419_v19 = vpop.eup %7096 }
 0x602   : > { %1935 = vadd.xlane.f32.xlu1 %v9417_v52  ;;  %1943 = vadd.xlane.f32.xlu0 %v9419_v19  ;;  %v9423_v26 = vpop.eup %7098 }
 0x605   : > { %v9426_v17 = vpop.eup %7100 }
 0x606   : > { %1931 = vadd.xlane.f32.xlu1 %v9423_v26 }
 0x60a   : > { %1939 = vadd.xlane.f32.xlu1 %v9426_v17 }
 0x618   : > { %2134 = vrot.lane.b32.xlu0 %v9141_v46, %s8044_s7 }
 0x61b   : > { %2136 = vrot.lane.b32.xlu1 %v9153_v15, %s8044_s7 }
 0x61c   : > { %2098 = vrot.lane.b32.xlu0 %v9013_v6, %s8044_s7 }
 0x61f   : > { %2100 = vrot.lane.b32.xlu1 %v9038_v44, %s8044_s7 }
 0x620   : > { %2102 = vrot.lane.b32.xlu0 %v9064_v21, %s8044_s7 }
 0x623   : > { %2104 = vrot.lane.b32.xlu1 %v9088_v48, %s8044_s7 }
 0x624   : > { %2106 = vrot.lane.b32.xlu0 %v9112_v43, %s8044_s7 }
 0x627   : > { %2108 = vrot.lane.b32.xlu1 %v9127_v8, %s8044_s7 }
 0x628   : > { %2110 = vrot.lane.b32.xlu0 %v9139_v36, %s8044_s7 }
 0x62b   : > { %2112 = vrot.lane.b32.xlu1 %v9151_v7, %s8044_s7 }
 0x62c   : > { %2459 = vrot.lane.b32.xlu0 %v9032_v39, %s8044_s7 }
 0x62f   : > { %2461 = vrot.lane.b32.xlu1 %v9029_v33, %s8044_s7 }
 0x630   : > { %2463 = vrot.lane.b32.xlu0 %v9058_v41, %s8044_s7 }
 0x633   : > { %2465 = vrot.lane.b32.xlu1 %v9054_v63, %s8044_s7 }
 0x634   : > { %2467 = vrot.lane.b32.xlu0 %v9082_v50, %s8044_s7 }
 0x637   : > { %2469 = vrot.lane.b32.xlu1 %v9078_v42, %s8044_s7 }
 0x638   : > { %2471 = vrot.lane.b32.xlu0 %v9106_v37, %s8044_s7 }
 0x63b   : > { %2473 = vrot.lane.b32.xlu1 %v9102_v32, %s8044_s7 }
 0x63c   : > { %2604 = vrot.lane.b32.xlu0 %v9015_v12, %s8045_s17 }
 0x63f   : > { %2606 = vrot.lane.b32.xlu1 %v9041_v51, %s8045_s17 }
 0x644   : > { %v1918_v35 = vpop.xlane.xlu0 %1917 }
 0x646   : > { %v1920_v58 = vpop.xlane.xlu1 %1919 }
 0x647   : > { %7102 = vrcp.f32 %v1920_v58 }
 0x648   : > { %v1914_v22 = vpop.xlane.xlu0 %1913 }
 0x649   : > { %7104 = vrcp.f32 %v1914_v22 }
 0x64a   : > { %7106 = vrcp.f32 %v1918_v35  ;;  %v1916_v45 = vpop.xlane.xlu1 %1915 }
 0x64b   : > { %7108 = vrcp.f32 %v1916_v45 }
 0x64c   : > { %v2131_v0 = vpop.permute.xlu0 %2130 }
 0x64d   : > { %v2175_v53 = vsel %vm1671_vm0, %v2131_v0, 0 }
 0x651   : > { %v7103_v27 = vpop.eup %7102 }
 0x652   : > { %v1952_v40 = vmul.f32 %v7103_v27, %v9366_v10  ;;  %v2166_v10 = vsel %vm1671_vm0, %v9357_v13, 0 }
 0x653   : > { %v7105_v55 = vpop.eup %7104 }
 0x654   : > { %v7107_v2 = vpop.eup %7106  ;;  %v1946_v5 = vmul.f32 %v7105_v55, %v9369_v11  ;;  %v2169_v11 = vsel %vm1671_vm0, %v2127_v16, 0 }
 0x655   : > { %v7109_v62 = vpop.eup %7108  ;;  %v1950_v1 = vmul.f32 %v7107_v2, %v9363_v18  ;;  %v2172_v18 = vsel %vm1671_vm0, %v9388_v61, 0 }
 0x656   : > { %v1948_v23 = vmul.f32 %v7109_v62, %v9372_v14  ;;  %v2133_v14 = vpop.permute.xlu1 %2132 }
 0x657   : > { %v1978_v30 = vpack.c.bf16 %v1952_v40, %v1950_v1  ;;  %v2178_v58 = vsel %vm1671_vm0, %v2133_v14, 0 }
 0x658   : > { %v1977_v34 = vpack.c.bf16 %v1948_v23, %v1946_v5 }
 0x65a   : > { %6443 = vmatprep.mubr.bf16.mxu1 %v1977_v34 }
 0x65b   : > { %6444 = vmatmul.mubr.bf16.vlgmr.msra.gmra.mrb[16].mxu1 %v1978_v30 }
 0x65c   : > { %6460 = vmatpush3.bf16.xpose.msra.mxu1 %v2163_v56 }
 0x65d   : > { %6708 = vmatprep.subr.msk.bf16.mxu1 %vm1671_vm0, %v9357_v13 }
 0x664   : > { %6462 = vmatpush3.bf16.xpose.msra.mxu1 %v2166_v10 }
 0x665   : > { %6709 = vmatprep.subr.msk.bf16.mxu1 %vm1671_vm0, %v2127_v16 }
 0x66c   : > { %6464 = vmatpush3.bf16.xpose.msra.mxu1 %v2169_v11 }
 0x66d   : > { %6710 = vmatprep.subr.msk.bf16.mxu1 %vm1671_vm0, %v9388_v61 }
 0x674   : > { %6466 = vmatpush3.bf16.xpose.msra.mxu1 %v2172_v18 }
 0x675   : > { %6711 = vmatprep.subr.msk.bf16.mxu1 %vm1671_vm0, %v2131_v0 }
 0x67c   : > { %6468 = vmatpush3.bf16.xpose.msra.mxu1 %v2175_v53 }
 0x67d   : > { %6712 = vmatprep.subr.msk.bf16.mxu1 %vm1671_vm0, %v2133_v14  ;;  %v1926_v13 = vpop.xlane.xlu0 %1925 }
 0x67f   : > { %v1922_v60 = vpop.xlane.xlu1 %1921 }
 0x680   : > { %7110 = vrcp.f32 %v1922_v60 }
 0x681   : > { %7112 = vrcp.f32 %v1926_v13  ;;  %v1924_v16 = vpop.xlane.xlu0 %1923 }
 0x682   : > { %7114 = vrcp.f32 %v1924_v16 }
 0x683   : > { %v1928_v35 = vpop.xlane.xlu1 %1927 }
 0x684   : > { %7116 = vrcp.f32 %v1928_v35  ;;  %6470 = vmatpush3.bf16.xpose.msra.mxu1 %v2178_v58 }
 0x685   : > { %v1942_v61 = vpop.xlane.xlu0 %1941 }
 0x687   : > { %v1934_v22 = vpop.xlane.xlu1 %1933 }
 0x689   : > { %v1938_v55 = vpop.xlane.xlu0 %1937 }
 0x68a   : > { %v7111_v45 = vpop.eup %7110 }
 0x68b   : > { %v7113_v27 = vpop.eup %7112  ;;  %v1930_v2 = vpop.xlane.xlu1 %1929  ;;  %v1954_v40 = vmul.f32 %v7111_v45, %v9393_v28 }
 0x68c   : > { %v7115_v62 = vpop.eup %7114  ;;  %v1958_v56 = vmul.f32 %v7113_v27, %v9390_v29 }
 0x68d   : > { %v1956_v5 = vmul.f32 %v7115_v62, %v9396_v54 }
 0x68e   : > { %v7117_v23 = vpop.eup %7116 }
 0x68f   : > { %v1936_v1 = vpop.xlane.xlu1 %1935  ;;  %v1944_v34 = vpop.xlane.xlu0 %1943  ;;  %v1979_v30 = vpack.c.bf16 %v1956_v5, %v1954_v40  ;;  %v1960_v10 = vmul.f32 %v7117_v23, %v9401_v3 }
 0x690   : > { %7118 = vrcp.f32 %v1936_v1 }
 0x691   : > { %6447 = vmatprep.mubr.bf16.mxu1 %v1979_v30  ;;  %v1980_v11 = vpack.c.bf16 %v1960_v10, %v1958_v56  ;;  %7120 = vrcp.f32 %v1930_v2 }
 0x692   : > { %7122 = vrcp.f32 %v1934_v22 }
 0x693   : > { %v1932_v18 = vpop.xlane.xlu1 %1931  ;;  %6448 = vmatmul.mubr.bf16.gmra.mrb[20].mxu1 %v1980_v11  ;;  %v2135_v0 = vpop.permute.xlu0 %2134 }
 0x694   : > { %7124 = vrcp.f32 %v1932_v18  ;;  %6713 = vmatprep.subr.msk.bf16.mxu1 %vm1671_vm0, %v2135_v0  ;;  %v2181_v28 = vsel %vm1671_vm0, %v2135_v0, 0 }
 0x695   : > { %6472 = vmatpush3.bf16.xpose.msra.mxu1 %v2181_v28  ;;  %7126 = vrcp.f32 %v1938_v55 }
 0x697   : > { %v1940_v54 = vpop.xlane.xlu1 %1939  ;;  %v2099_v14 = vpop.permute.xlu0 %2098 }
 0x698   : > { %7128 = vrcp.f32 %v1940_v54 }
 0x699   : > { %7130 = vrcp.f32 %v1944_v34 }
 0x69a   : > { %v7119_v29 = vpop.eup %7118  ;;  %7132 = vrcp.f32 %v1942_v61 }
 0x69b   : > { %v2137_v3 = vpop.permute.xlu1 %2136  ;;  %v2103_v53 = vpop.permute.xlu0 %2102  ;;  %v1968_v58 = vmul.f32 %v7119_v29, %v9417_v52 }
 0x69c   : > { %v7121_v13 = vpop.eup %7120  ;;  %6714 = vmatprep.subr.msk.bf16.mxu1 %vm1671_vm0, %v2137_v3  ;;  %v2184_v60 = vsel %vm1671_vm0, %v2137_v3, 0 }
 0x69d   : > { %v7123_v16 = vpop.eup %7122  ;;  %6474 = vmatpush3.bf16.xpose.msra.mxu1 %v2184_v60  ;;  %v1962_v27 = vmul.f32 %v7121_v13, %v9414_v4 }
 0x69e   : > { %v7125_v35 = vpop.eup %7124  ;;  %v1966_v61 = vmul.f32 %v7123_v16, %v9408_v31 }
 0x69f   : > { %v2101_v22 = vpop.permute.xlu1 %2100  ;;  %v2107_v45 = vpop.permute.xlu0 %2106  ;;  %v1964_v55 = vmul.f32 %v7125_v35, %v9423_v26 }
 0x6a0   : > { %v7127_v2 = vpop.eup %7126  ;;  %v1982_v5 = vpack.c.bf16 %v1968_v58, %v1966_v61 }
 0x6a1   : > { %v1981_v62 = vpack.c.bf16 %v1964_v55, %v1962_v27  ;;  %v1970_v30 = vmul.f32 %v7127_v2, %v9411_v25 }
 0x6a2   : > { %v7129_v40 = vpop.eup %7128 }
 0x6a3   : > { %v7131_v23 = vpop.eup %7130  ;;  %v2105_v1 = vpop.permute.xlu1 %2104  ;;  %6451 = vmatprep.mubr.bf16.mxu1 %v1981_v62  ;;  %v1972_v52 = vmul.f32 %v7129_v40, %v9426_v17 }
 0x6a4   : > { %v2111_v34 = vpop.permute.xlu0 %2110  ;;  %6452 = vmatmul.mubr.bf16.gmra.mrb[24].mxu1 %v1982_v5  ;;  %v7133_v56 = vpop.eup %7132  ;;  %v1976_v4 = vmul.f32 %v7131_v23, %v9419_v19 }
 0x6a5   : > { %v1983_v10 = vpack.c.bf16 %v1972_v52, %v1970_v30  ;;  %v1974_v31 = vmul.f32 %v7133_v56, %v9404_v20 }
 0x6a7   : > { %v2109_v26 = vpop.permute.xlu1 %2108  ;;  %6455 = vmatprep.mubr.bf16.mxu1 %v1983_v10  ;;  %v1984_v18 = vpack.c.bf16 %v1976_v4, %v1974_v31 }
 0x6a8   : > { %v2460_v11 = vpop.permute.xlu0 %2459 }
 0x6a9   : > { %6491 = vmatprep.subr.bf16.mxu0 %v2460_v11 }
 0x6aa   : > { %6492 = vmatpush3.bf16.msra.mxu0 %v2460_v11 }
 0x6ab   : > { %v2113_v0 = vpop.permute.xlu1 %2112 }
 0x6ac   : > { %6456 = vmatmul.mubr.bf16.gmra.mrb[28].mxu1 %v1984_v18  ;;  %v2464_v17 = vpop.permute.xlu0 %2463 }
 0x6ad   : > { %6475 = vmatprep.mubr.msk.bf16.mxu1 %vm1671_vm0, %v2099_v14 }
 0x6af   : > { %v2462_v25 = vpop.permute.xlu1 %2461 }
 0x6b0   : > { %6493 = vmatprep.subr.bf16.mxu0 %v2462_v25  ;;  %v2468_v28 = vpop.permute.xlu0 %2467 }
 0x6b1   : > { %6494 = vmatpush3.bf16.msra.mxu0 %v2462_v25 }
 0x6b2   : > { %6495 = vmatprep.subr.bf16.mxu0 %v2464_v17 }
 0x6b3   : > { %v2466_v19 = vpop.permute.xlu1 %2465 }
 0x6b4   : > { %6476 = vmatmul.mubr.msk.bf16.vlgmr.msra.gmra.mrb[32].mxu1 %vm1671_vm0, %v2101_v22  ;;  %v2472_v54 = vpop.permute.xlu0 %2471 }
 0x6b5   : > { %6479 = vmatprep.mubr.msk.bf16.mxu1 %vm1671_vm0, %v2103_v53  ;;  %6496 = vmatpush3.bf16.msra.mxu0 %v2464_v17 }
 0x6b6   : > { %6497 = vmatprep.subr.bf16.mxu0 %v2466_v19 }
 0x6b7   : > { %v2470_v20 = vpop.permute.xlu1 %2469 }
 0x6b8   : > { %v9512_v29 = vpop.permute.xlu0 %2604 }
 0x6b9   : > { %6498 = vmatpush3.bf16.msra.mxu0 %v2466_v19 }
 0x6ba   : > { %6499 = vmatprep.subr.bf16.mxu0 %v2468_v28 }
 0x6bb   : > { %v2474_v14 = vpop.permute.xlu1 %2473 }
 0x6bc   : > { %6480 = vmatmul.mubr.msk.bf16.gmra.mrb[36].mxu1 %vm1671_vm0, %v2105_v1 }
 0x6bd   : > { %6483 = vmatprep.mubr.msk.bf16.mxu1 %vm1671_vm0, %v2107_v45  ;;  %6500 = vmatpush3.bf16.msra.mxu0 %v2468_v28 }
 0x6be   : > { %6501 = vmatprep.subr.bf16.mxu0 %v2470_v20 }
 0x6c1   : > { %6502 = vmatpush3.bf16.msra.mxu0 %v2470_v20 }
 0x6c2   : > { %6503 = vmatprep.subr.bf16.mxu0 %v2472_v54 }
 0x6c4   : > { %6484 = vmatmul.mubr.msk.bf16.gmra.mrb[40].mxu1 %vm1671_vm0, %v2109_v26 }
 0x6c5   : > { %6487 = vmatprep.mubr.msk.bf16.mxu1 %vm1671_vm0, %v2111_v34  ;;  %6504 = vmatpush3.bf16.msra.mxu0 %v2472_v54 }
 0x6c6   : > { %6505 = vmatprep.subr.bf16.mxu0 %v2474_v14 }
 0x6c9   : > { %6506 = vmatpush3.bf16.msra.mxu0 %v2474_v14 }
 0x6ca   : > { %6715 = vmatprep.subr.msk.bf16.mxu0 %vm1671_vm0, %v9512_v29 }
 0x6cc   : > { %6488 = vmatmul.mubr.msk.bf16.gmra.mrb[44].mxu1 %vm1671_vm0, %v2113_v0 }
 0x72e   : > { %v9517_v3 = vpop.f32.mrb[16].mxu1 }
 0x72f   : > { %11523 = vst [vmem:[#allocation79_spill] sm:$0xff] %v9517_v3  ;;  %v9519_v53 = vpop.f32.mrb[17].mxu1 }
 0x730   : > { %11524 = vst [vmem:[#allocation80_spill] sm:$0xff] %v9519_v53  ;;  %v9521_v13 = vpop.f32.mrb[18].mxu1 }
 0x731   : > { %11525 = vst [vmem:[#allocation81_spill] sm:$0xff] %v9521_v13  ;;  %v9525_v16 = vpop.f32.mrb[19].mxu1 }
 0x732   : > { %11526 = vst [vmem:[#allocation82_spill] sm:$0xff] %v9525_v16 }
 0x766   : > { %v9529_v58 = vpop.f32.mrb[20].mxu1 }
 0x767   : > { %11527 = vst [vmem:[#allocation83_spill] sm:$0xff] %v9529_v58  ;;  %v9531_v22 = vpop.f32.mrb[21].mxu1 }
 0x768   : > { %11528 = vst [vmem:[#allocation84_spill] sm:$0xff] %v9531_v22  ;;  %v9533_v45 = vpop.f32.mrb[22].mxu1  ;;  %v9653_v22 = vpop.permute.xlu1 %2606 }
 0x769   : > { %11529 = vst [vmem:[#allocation85_spill] sm:$0xff] %v9533_v45  ;;  %v9537_v55 = vpop.f32.mrb[23].mxu1 }
 0x76a   : > { %11530 = vst [vmem:[#allocation86_spill] sm:$0xff] %v9537_v55 }
 0x777   : > { %v9541_v61 = vpop.f32.mrb[24].mxu1 }
 0x778   : > { %11531 = vst [vmem:[#allocation87_spill] sm:$0xff] %v9541_v61  ;;  %v9543_v62 = vpop.f32.mrb[25].mxu1 }
 0x779   : > { %11532 = vst [vmem:[#allocation88_spill] sm:$0xff] %v9543_v62  ;;  %v9545_v40 = vpop.f32.mrb[26].mxu1 }
 0x77a   : > { %11533 = vst [vmem:[#allocation89_spill] sm:$0xff] %v9545_v40  ;;  %v9549_v23 = vpop.f32.mrb[27].mxu1 }
 0x77b   : > { %11534 = vst [vmem:[#allocation90_spill] sm:$0xff] %v9549_v23  ;;  %v11549_v23 = vld [vmem:[#allocation61_spill] sm:$0xff] }
 0x77f   : > { %v9553_v34 = vpop.f32.mrb[28].mxu1 }
 0x780   : > { %11535 = vst [vmem:[#allocation91_spill] sm:$0xff] %v9553_v34  ;;  %v9555_v30 = vpop.f32.mrb[29].mxu1 }
 0x781   : > { %11536 = vst [vmem:[#allocation92_spill] sm:$0xff] %v9555_v30  ;;  %v9557_v52 = vpop.f32.mrb[30].mxu1 }
 0x782   : > { %11537 = vst [vmem:[#allocation93_spill] sm:$0xff] %v9557_v52  ;;  %v9561_v10 = vpop.f32.mrb[31].mxu1 }
 0x783   : > { %11538 = vst [vmem:[#allocation94_spill] sm:$0xff] %v9561_v10 }
 0x787   : > { %v6477_v26 = vpop.f32.mrb[32].mxu1 }
 0x788   : > { %v2220_v11 = vpop.f32.mrb[33].mxu1  ;;  %v2285_v31 = vsel %vm1657_vm1, %v6477_v26, -1e+30 }
 0x789   : > { %2303 = vmax.xlane.f32.xlu0 %v2285_v31  ;;  %v6478_v18 = vpop.f32.mrb[34].mxu1  ;;  %v2283_v17 = vsel %vm1655_vm3, %v2220_v11, -1e+30 }
 0x78a   : > { %v2223_v0 = vpop.f32.mrb[35].mxu1  ;;  %v2286_v20 = vsel %vm1658_vm2, %v6478_v18, -1e+30 }
 0x78b   : > { %v2284_v25 = vsel %vm1656_vm4, %v2223_v0, -1e+30 }
 0x78c   : > { %2301 = vmax.xlane.f32.xlu1 %v2284_v25 }
 0x78d   : > { %2299 = vmax.xlane.f32.xlu0 %v2283_v17 }
 0x78f   : > { %v6481_v19 = vpop.f32.mrb[36].mxu1 }
 0x790   : > { %v2236_v28 = vpop.f32.mrb[37].mxu1  ;;  %v9586_v11 = vsel %vm1661_vm5, %v6481_v19, -1e+30 }
 0x791   : > { %2305 = vmax.xlane.f32.xlu0 %v2286_v20  ;;  %v6482_v54 = vpop.f32.mrb[38].mxu1  ;;  %v9598_v5 = vsel %vm1659_vm7, %v2236_v28, -1e+30 }
 0x792   : > { %v2239_v14 = vpop.f32.mrb[39].mxu1  ;;  %v9580_v26 = vsel %vm1662_vm6, %v6482_v54, -1e+30 }
 0x793   : > { %2313 = vmax.xlane.f32.xlu1 %v9580_v26  ;;  %v9592_v18 = vsel %vm1660_vm8, %v2239_v14, -1e+30 }
 0x795   : > { %2311 = vmax.xlane.f32.xlu0 %v9586_v11 }
 0x797   : > { %2309 = vmax.xlane.f32.xlu1 %v9592_v18  ;;  %v6485_v56 = vpop.f32.mrb[40].mxu1 }
 0x798   : > { %v2252_v4 = vpop.f32.mrb[41].mxu1  ;;  %v9610_v60 = vsel %vm1665_vm9, %v6485_v56, -1e+30 }
 0x799   : > { %2307 = vmax.xlane.f32.xlu0 %v9598_v5  ;;  %v6486_v19 = vpop.f32.mrb[42].mxu1  ;;  %v9622_v52 = vsel %vm1663_vm11, %v2252_v4, -1e+30  ;;  %v11548_v4 = vld [vmem:[#allocation64_spill] sm:$0xff] }
 0x79a   : > { %v9604_v27 = vsel %vm1666_vm10, %v6486_v19, -1e+30  ;;  %v2255_v2 = vpop.f32.mrb[43].mxu1 }
 0x79b   : > { %2321 = vmax.xlane.f32.xlu1 %v9604_v27  ;;  %v9616_v35 = vsel %vm11360_vm12, %v2255_v2, -1e+30  ;;  %v11546_v2 = vld [vmem:[#allocation76_spill] sm:$0xff] }
 0x79c   : > { %vm11547_vm12 = vcmp.le.s32.totalorder %v9181_v9, %v11546_v2 }
 0x79d   : > { %2319 = vmax.xlane.f32.xlu0 %v9610_v60 }
 0x79f   : > { %2317 = vmax.xlane.f32.xlu1 %v9616_v35  ;;  %v6489_v34 = vpop.f32.mrb[44].mxu1 }
 0x7a0   : > { %v2268_v30 = vpop.f32.mrb[45].mxu1  ;;  %v9628_v40 = vsel %vm1669_vm13, %v6489_v34, -1e+30 }
 0x7a1   : > { %2315 = vmax.xlane.f32.xlu0 %v9622_v52  ;;  %v6490_v56 = vpop.f32.mrb[46].mxu1  ;;  %v9634_v62 = vsel %vm11547_vm12, %v2268_v30, -1e+30 }
 0x7a2   : > { %v2271_v10 = vpop.f32.mrb[47].mxu1  ;;  %v9644_v34 = vsel %vm1670_vm15, %v6490_v56, -1e+30 }
 0x7a3   : > { %v9650_v30 = vsel %vm1668_vm14, %v2271_v10, -1e+30 }
 0x7a5   : > { %2327 = vmax.xlane.f32.xlu0 %v9628_v40 }
 0x7a9   : > { %2323 = vmax.xlane.f32.xlu0 %v9634_v62 }
 0x7b0   : > { %2610 = vrot.lane.b32.xlu1 %v11548_v4, %s8045_s17 }
 0x7bf   : > { %2608 = vrot.lane.b32.xlu0 %v11549_v23, %s8045_s17 }
 0x7d4   : > { %2329 = vmax.xlane.f32.xlu1 %v9644_v34 }
 0x7d8   : > { %2325 = vmax.xlane.f32.xlu1 %v9650_v30 }
 0x816   : > { %v2304_v55 = vpop.xlane.xlu0 %2303 }
 0x817   : > { %v2333_v3 = vsub.f32 %v2285_v31, %v2304_v55 }
 0x819   : > { %v2351_v13 = vmul.f32 1.442695, %v2333_v3  ;;  %v2302_v53 = vpop.xlane.xlu1 %2301 }
 0x81a   : > { %v2332_v16 = vsub.f32 %v2284_v25, %v2302_v53  ;;  %v2300_v23 = vpop.xlane.xlu0 %2299 }
 0x81b   : > { %7134 = vpow2.f32 %v2351_v13  ;;  %v2331_v56 = vsub.f32 %v2283_v17, %v2300_v23 }
 0x81c   : > { %v2349_v58 = vmul.f32 1.442695, %v2332_v16  ;;  %v11552_v16 = vld [vmem:[#allocation67_spill] sm:$0xff] }
 0x81d   : > { %v2347_v4 = vmul.f32 1.442695, %v2331_v56 }
 0x81e   : > { %7136 = vpow2.f32 %v2349_v58  ;;  %v2306_v2 = vpop.xlane.xlu0 %2305  ;;  %v11553_v58 = vld [vmem:[#allocation68_spill] sm:$0xff] }
 0x81f   : > { %7138 = vpow2.f32 %v2347_v4  ;;  %v2334_v45 = vsub.f32 %v2286_v20, %v2306_v2 }
 0x820   : > { %v2314_v55 = vpop.xlane.xlu1 %2313 }
 0x821   : > { %v2353_v10 = vmul.f32 1.442695, %v2334_v45  ;;  %v2338_v28 = vsub.f32 %v9580_v26, %v2314_v55 }
 0x822   : > { %v2312_v13 = vpop.xlane.xlu0 %2311 }
 0x823   : > { %7140 = vpow2.f32 %v2353_v10  ;;  %v2337_v31 = vsub.f32 %v9586_v11, %v2312_v13  ;;  %v2361_v1 = vmul.f32 1.442695, %v2338_v28 }
 0x824   : > { %v2310_v25 = vpop.xlane.xlu1 %2309 }
 0x825   : > { %v9655_v61 = vpop.eup %7134  ;;  %v2359_v20 = vmul.f32 1.442695, %v2337_v31  ;;  %v2336_v4 = vsub.f32 %v9592_v18, %v2310_v25 }
 0x826   : > { %2383 = vadd.xlane.f32.xlu1 %v9655_v61  ;;  %v2308_v45 = vpop.xlane.xlu0 %2307 }
 0x827   : > { %v2335_v2 = vsub.f32 %v9598_v5, %v2308_v45  ;;  %7142 = vpow2.f32 %v2359_v20  ;;  %v2357_v14 = vmul.f32 1.442695, %v2336_v4 }
 0x828   : > { %v9658_v19 = vpop.eup %7136  ;;  %v2322_v56 = vpop.xlane.xlu1 %2321 }
 0x829   : > { %v9660_v3 = vpop.eup %7138  ;;  %2381 = vadd.xlane.f32.xlu0 %v9658_v19  ;;  %v2342_v26 = vsub.f32 %v9604_v27, %v2322_v56 }
 0x82a   : > { %2379 = vadd.xlane.f32.xlu1 %v9660_v3  ;;  %v2320_v23 = vpop.xlane.xlu0 %2319 }
 0x82c   : > { %v2318_v54 = vpop.xlane.xlu1 %2317 }
 0x82d   : > { %v9664_v53 = vpop.eup %7140 }
 0x82e   : > { %2385 = vadd.xlane.f32.xlu1 %v9664_v53  ;;  %v2316_v17 = vpop.xlane.xlu0 %2315 }
 0x82f   : > { %v2339_v5 = vsub.f32 %v9622_v52, %v2316_v17  ;;  %v2340_v52 = vsub.f32 %v9616_v35, %v2318_v54 }
 0x831   : > { %v2363_v55 = vmul.f32 1.442695, %v2339_v5  ;;  %v9680_v25 = vpop.eup %7142 }
 0x832   : > { %v2328_v10 = vpop.xlane.xlu0 %2327 }
 0x833   : > { %v2345_v11 = vsub.f32 %v9628_v40, %v2328_v10 }
 0x835   : > { %v2375_v18 = vmul.f32 1.442695, %v2345_v11 }
 0x836   : > { %v2324_v45 = vpop.xlane.xlu0 %2323 }
 0x837   : > { %v2343_v31 = vsub.f32 %v9634_v62, %v2324_v45 }
 0x839   : > { %v2371_v40 = vmul.f32 1.442695, %v2343_v31 }
 0x83f   : > { %2612 = vrot.lane.b32.xlu0 %v11552_v16, %s8045_s17  ;;  %2614 = vrot.lane.b32.xlu1 %v11553_v58, %s8045_s17  ;;  %v2355_v16 = vmul.f32 1.442695, %v2335_v2  ;;  %v2341_v58 = vsub.f32 %v9610_v60, %v2320_v23  ;;  %v9682_v60 = vpop.permute.xlu1 %2610 }
 0x841   : > { %7144 = vpow2.f32 %v2355_v16  ;;  %v2367_v13 = vmul.f32 1.442695, %v2341_v58  ;;  %v2365_v16 = vmul.f32 1.442695, %v2340_v52 }
 0x842   : > { %7146 = vpow2.f32 %v2357_v14  ;;  %v2369_v14 = vmul.f32 1.442695, %v2342_v26 }
 0x843   : > { %7148 = vpow2.f32 %v2361_v1 }
 0x844   : > { %7150 = vpow2.f32 %v2367_v13  ;;  %v2609_v13 = vpop.permute.xlu0 %2608 }
 0x845   : > { %7152 = vpow2.f32 %v2375_v18 }
 0x846   : > { %7154 = vpow2.f32 %v2363_v55 }
 0x847   : > { %7156 = vpow2.f32 %v2371_v40 }
 0x848   : > { %7158 = vpow2.f32 %v2369_v14 }
 0x84b   : > { %v9686_v1 = vpop.eup %7144 }
 0x84c   : > { %v9688_v62 = vpop.eup %7146 }
 0x84d   : > { %v9693_v23 = vpop.eup %7148 }
 0x84e   : > { %v9695_v35 = vpop.eup %7150 }
 0x84f   : > { %v9700_v20 = vpop.eup %7152 }
 0x850   : > { %v9702_v2 = vpop.eup %7154 }
 0x851   : > { %v9706_v4 = vpop.eup %7156 }
 0x852   : > { %v9708_v56 = vpop.eup %7158 }
 0x85e   : > { %2391 = vadd.xlane.f32.xlu0 %v9680_v25 }
 0x861   : > { %v2330_v28 = vpop.xlane.xlu1 %2329 }
 0x862   : > { %v2346_v27 = vsub.f32 %v9644_v34, %v2330_v28  ;;  %2387 = vadd.xlane.f32.xlu0 %v9686_v1 }
 0x863   : > { %2389 = vadd.xlane.f32.xlu1 %v9688_v62 }
 0x864   : > { %v2377_v58 = vmul.f32 1.442695, %v2346_v27 }
 0x865   : > { %v2326_v17 = vpop.xlane.xlu1 %2325 }
 0x866   : > { %7160 = vpow2.f32 %v2377_v58  ;;  %v2344_v54 = vsub.f32 %v9650_v30, %v2326_v17  ;;  %2393 = vadd.xlane.f32.xlu0 %v9693_v23  ;;  %v2645_v58 = vsel %vm1671_vm0, %v9512_v29, 0 }
 0x867   : > { %2399 = vadd.xlane.f32.xlu1 %v9695_v35  ;;  %7162 = vpow2.f32 %v2365_v16 }
 0x868   : > { %v2373_v34 = vmul.f32 1.442695, %v2344_v54 }
 0x86a   : > { %2407 = vadd.xlane.f32.xlu0 %v9700_v20  ;;  %7164 = vpow2.f32 %v2373_v34 }
 0x86b   : > { %2395 = vadd.xlane.f32.xlu1 %v9702_v2 }
 0x86e   : > { %2403 = vadd.xlane.f32.xlu0 %v9706_v4 }
 0x86f   : > { %2401 = vadd.xlane.f32.xlu1 %v9708_v56 }
 0x870   : > { %v9712_v30 = vpop.eup %7160 }
 0x871   : > { %v9714_v10 = vpop.eup %7162 }
 0x872   : > { %2409 = vadd.xlane.f32.xlu0 %v9712_v30 }
 0x873   : > { %2397 = vadd.xlane.f32.xlu1 %v9714_v10 }
 0x874   : > { %v9718_v11 = vpop.eup %7164 }
 0x877   : > { %2405 = vadd.xlane.f32.xlu1 %v9718_v11 }
 0x888   : > { %2618 = vrot.lane.b32.xlu1 %v9153_v15, %s8045_s17  ;;  %2616 = vrot.lane.b32.xlu0 %v9141_v46, %s8045_s17 }
 0x88c   : > { %2590 = vrot.lane.b32.xlu1 %v9038_v44, %s8045_s17  ;;  %2588 = vrot.lane.b32.xlu0 %v9013_v6, %s8045_s17 }
 0x890   : > { %2594 = vrot.lane.b32.xlu1 %v9088_v48, %s8045_s17  ;;  %2592 = vrot.lane.b32.xlu0 %v9064_v21, %s8045_s17 }
 0x894   : > { %2598 = vrot.lane.b32.xlu1 %v9127_v8, %s8045_s17  ;;  %2596 = vrot.lane.b32.xlu0 %v9112_v43, %s8045_s17 }
 0x898   : > { %2602 = vrot.lane.b32.xlu1 %v9151_v7, %s8045_s17  ;;  %2600 = vrot.lane.b32.xlu0 %v9139_v36, %s8045_s17 }
 0x89c   : > { %2935 = vrot.lane.b32.xlu1 %v9029_v33, %s8045_s17  ;;  %2933 = vrot.lane.b32.xlu0 %v9032_v39, %s8045_s17 }
 0x8a0   : > { %2939 = vrot.lane.b32.xlu1 %v9054_v63, %s8045_s17  ;;  %2937 = vrot.lane.b32.xlu0 %v9058_v41, %s8045_s17 }
 0x8a4   : > { %2943 = vrot.lane.b32.xlu1 %v9078_v42, %s8045_s17  ;;  %2941 = vrot.lane.b32.xlu0 %v9082_v50, %s8045_s17 }
 0x8a8   : > { %2947 = vrot.lane.b32.xlu1 %v9102_v32, %s8045_s17  ;;  %2945 = vrot.lane.b32.xlu0 %v9106_v37, %s8045_s17 }
 0x8ac   : > { %3080 = vrot.lane.b32.xlu1 %v9041_v51, %s8046_s10  ;;  %3078 = vrot.lane.b32.xlu0 %v9015_v12, %s8046_s10 }
 0x8b3   : > { %v2384_v5 = vpop.xlane.xlu1 %2383 }
 0x8b6   : > { %v2382_v45 = vpop.xlane.xlu0 %2381 }
 0x8b7   : > { %7166 = vrcp.f32 %v2382_v45  ;;  %v2380_v18 = vpop.xlane.xlu1 %2379 }
 0x8b8   : > { %7168 = vrcp.f32 %v2380_v18 }
 0x8b9   : > { %7170 = vrcp.f32 %v2384_v5 }
 0x8ba   : > { %v2613_v29 = vpop.permute.xlu0 %2612 }
 0x8bb   : > { %v2386_v31 = vpop.xlane.xlu1 %2385 }
 0x8bc   : > { %7172 = vrcp.f32 %v2386_v31 }
 0x8c1   : > { %v7167_v26 = vpop.eup %7166 }
 0x8c2   : > { %v7169_v55 = vpop.eup %7168  ;;  %v2414_v40 = vmul.f32 %v7167_v26, %v9658_v19  ;;  %v2648_v19 = vsel %vm1671_vm0, %v9653_v22, 0 }
 0x8c3   : > { %v2412_v14 = vmul.f32 %v7169_v55, %v9660_v3  ;;  %v7171_v52 = vpop.eup %7170  ;;  %v2654_v3 = vsel %vm1671_vm0, %v9682_v60, 0 }
 0x8c4   : > { %v2416_v12 = vmul.f32 %v7171_v52, %v9655_v61  ;;  %v2651_v61 = vsel %vm1671_vm0, %v2609_v13, 0 }
 0x8c5   : > { %v2443_v51 = vpack.c.bf16 %v2414_v40, %v2412_v14 }
 0x8c6   : > { %v7173_v28 = vpop.eup %7172 }
 0x8c7   : > { %v2418_v27 = vmul.f32 %v7173_v28, %v9664_v53  ;;  %6507 = vmatprep.mubr.bf16.mxu0 %v2443_v51  ;;  %v2657_v53 = vsel %vm1671_vm0, %v2613_v29, 0 }
 0x8c9   : > { %v2444_v16 = vpack.c.bf16 %v2418_v27, %v2416_v12 }
 0x8cb   : > { %6508 = vmatmul.mubr.bf16.vlgmr.msra.gmra.mrb[48].mxu0 %v2444_v16 }
 0x8cc   : > { %6524 = vmatpush3.bf16.xpose.msra.mxu0 %v2645_v58 }
 0x8cd   : > { %6716 = vmatprep.subr.msk.bf16.mxu0 %vm1671_vm0, %v9653_v22  ;;  %v2615_v22 = vpop.permute.xlu1 %2614 }
 0x8d4   : > { %6526 = vmatpush3.bf16.xpose.msra.mxu0 %v2648_v19 }
 0x8d5   : > { %6717 = vmatprep.subr.msk.bf16.mxu0 %vm1671_vm0, %v2609_v13  ;;  %v2660_v13 = vsel %vm1671_vm0, %v2615_v22, 0 }
 0x8dc   : > { %6528 = vmatpush3.bf16.xpose.msra.mxu0 %v2651_v61 }
 0x8dd   : > { %6718 = vmatprep.subr.msk.bf16.mxu0 %vm1671_vm0, %v9682_v60 }
 0x8e4   : > { %6530 = vmatpush3.bf16.xpose.msra.mxu0 %v2654_v3 }
 0x8e5   : > { %6719 = vmatprep.subr.msk.bf16.mxu0 %vm1671_vm0, %v2613_v29 }
 0x8eb   : > { %v2392_v17 = vpop.xlane.xlu0 %2391 }
 0x8ec   : > { %6532 = vmatpush3.bf16.xpose.msra.mxu0 %v2657_v53 }
 0x8ed   : > { %6720 = vmatprep.subr.msk.bf16.mxu0 %vm1671_vm0, %v2615_v22 }
 0x8ef   : > { %v2388_v54 = vpop.xlane.xlu0 %2387 }
 0x8f0   : > { %7174 = vrcp.f32 %v2388_v54  ;;  %v2390_v34 = vpop.xlane.xlu1 %2389 }
 0x8f1   : > { %7176 = vrcp.f32 %v2390_v34 }
 0x8f2   : > { %7178 = vrcp.f32 %v2392_v17 }
 0x8f3   : > { %v2394_v5 = vpop.xlane.xlu0 %2393 }
 0x8f4   : > { %6534 = vmatpush3.bf16.xpose.msra.mxu0 %v2660_v13  ;;  %7180 = vrcp.f32 %v2394_v5  ;;  %v2400_v60 = vpop.xlane.xlu1 %2399 }
 0x8f7   : > { %v2408_v45 = vpop.xlane.xlu0 %2407 }
 0x8f8   : > { %v2396_v18 = vpop.xlane.xlu1 %2395 }
 0x8fa   : > { %v7175_v31 = vpop.eup %7174 }
 0x8fb   : > { %v7177_v26 = vpop.eup %7176  ;;  %v2404_v55 = vpop.xlane.xlu0 %2403  ;;  %v2420_v40 = vmul.f32 %v7175_v31, %v9686_v1 }
 0x8fc   : > { %v7179_v14 = vpop.eup %7178  ;;  %v2402_v52 = vpop.xlane.xlu1 %2401  ;;  %v2422_v51 = vmul.f32 %v7177_v26, %v9688_v62 }
 0x8fd   : > { %7182 = vrcp.f32 %v2402_v52  ;;  %v2424_v16 = vmul.f32 %v7179_v14, %v9680_v25 }
 0x8fe   : > { %v7181_v28 = vpop.eup %7180  ;;  %v2445_v12 = vpack.c.bf16 %v2422_v51, %v2420_v40  ;;  %7184 = vrcp.f32 %v2396_v18 }
 0x8ff   : > { %v2410_v27 = vpop.xlane.xlu0 %2409  ;;  %v2426_v58 = vmul.f32 %v7181_v28, %v9693_v23  ;;  %7186 = vrcp.f32 %v2400_v60 }
 0x900   : > { %v2398_v19 = vpop.xlane.xlu1 %2397  ;;  %6511 = vmatprep.mubr.bf16.mxu0 %v2445_v12 }
 0x901   : > { %7188 = vrcp.f32 %v2398_v19  ;;  %v2446_v61 = vpack.c.bf16 %v2426_v58, %v2424_v16 }
 0x902   : > { %7190 = vrcp.f32 %v2404_v55 }
 0x903   : > { %6512 = vmatmul.mubr.bf16.gmra.mrb[52].mxu0 %v2446_v61  ;;  %v2617_v1 = vpop.permute.xlu0 %2616 }
 0x904   : > { %v2406_v3 = vpop.xlane.xlu1 %2405  ;;  %6721 = vmatprep.subr.msk.bf16.mxu0 %vm1671_vm0, %v2617_v1  ;;  %v2663_v62 = vsel %vm1671_vm0, %v2617_v1, 0 }
 0x905   : > { %7192 = vrcp.f32 %v2406_v3  ;;  %6536 = vmatpush3.bf16.xpose.msra.mxu0 %v2663_v62 }
 0x906   : > { %7194 = vrcp.f32 %v2410_v27 }
 0x907   : > { %v2589_v29 = vpop.permute.xlu0 %2588  ;;  %v7183_v25 = vpop.eup %7182  ;;  %7196 = vrcp.f32 %v2408_v45 }
 0x908   : > { %v2619_v23 = vpop.permute.xlu1 %2618  ;;  %v7185_v53 = vpop.eup %7184  ;;  %v2434_v34 = vmul.f32 %v7183_v25, %v9708_v56 }
 0x909   : > { %6722 = vmatprep.subr.msk.bf16.mxu0 %vm1671_vm0, %v2619_v23  ;;  %v7187_v17 = vpop.eup %7186  ;;  %v2666_v5 = vsel %vm1671_vm0, %v2619_v23, 0  ;;  %v2428_v60 = vmul.f32 %v7185_v53, %v9702_v2 }
 0x90a   : > { %v2432_v45 = vmul.f32 %v7187_v17, %v9695_v35 }
 0x90b   : > { %v7189_v22 = vpop.eup %7188  ;;  %v2593_v54 = vpop.permute.xlu0 %2592 }
 0x90c   : > { %v2591_v13 = vpop.permute.xlu1 %2590  ;;  %v2430_v18 = vmul.f32 %v7189_v22, %v9714_v10  ;;  %v7191_v31 = vpop.eup %7190  ;;  %v2448_v14 = vpack.c.bf16 %v2434_v34, %v2432_v45 }
 0x90d   : > { %6538 = vmatpush3.bf16.xpose.msra.mxu0 %v2666_v5  ;;  %v2436_v56 = vmul.f32 %v7191_v31, %v9706_v4 }
 0x90e   : > { %v2447_v26 = vpack.c.bf16 %v2430_v18, %v2428_v60 }
 0x90f   : > { %v7193_v55 = vpop.eup %7192  ;;  %v2597_v40 = vpop.permute.xlu0 %2596 }
 0x910   : > { %v7195_v52 = vpop.eup %7194  ;;  %v2595_v51 = vpop.permute.xlu1 %2594  ;;  %6515 = vmatprep.mubr.bf16.mxu0 %v2447_v26  ;;  %v2438_v28 = vmul.f32 %v7193_v55, %v9718_v11 }
 0x911   : > { %6516 = vmatmul.mubr.bf16.gmra.mrb[56].mxu0 %v2448_v14  ;;  %v7197_v12 = vpop.eup %7196  ;;  %v2442_v10 = vmul.f32 %v7195_v52, %v9712_v30 }
 0x912   : > { %v2449_v2 = vpack.c.bf16 %v2438_v28, %v2436_v56  ;;  %v2440_v35 = vmul.f32 %v7197_v12, %v9700_v20 }
 0x913   : > { %v2601_v27 = vpop.permute.xlu0 %2600 }
 0x914   : > { %v2599_v16 = vpop.permute.xlu1 %2598  ;;  %6519 = vmatprep.mubr.bf16.mxu0 %v2449_v2  ;;  %v2450_v19 = vpack.c.bf16 %v2442_v10, %v2440_v35 }
 0x917   : > { %v2934_v58 = vpop.permute.xlu0 %2933 }
 0x918   : > { %v2603_v61 = vpop.permute.xlu1 %2602  ;;  %6555 = vmatprep.subr.bf16.mxu1 %v2934_v58 }
 0x919   : > { %6520 = vmatmul.mubr.bf16.gmra.mrb[60].mxu0 %v2450_v19  ;;  %6556 = vmatpush3.bf16.msra.mxu1 %v2934_v58 }
 0x91a   : > { %6539 = vmatprep.mubr.msk.bf16.mxu0 %vm1671_vm0, %v2589_v29 }
 0x91b   : > { %v2938_v11 = vpop.permute.xlu0 %2937 }
 0x91c   : > { %v2936_v4 = vpop.permute.xlu1 %2935 }
 0x91d   : > { %6557 = vmatprep.subr.bf16.mxu1 %v2936_v4 }
 0x91e   : > { %6558 = vmatpush3.bf16.msra.mxu1 %v2936_v4 }
 0x91f   : > { %6559 = vmatprep.subr.bf16.mxu1 %v2938_v11  ;;  %v2942_v20 = vpop.permute.xlu0 %2941 }
 0x920   : > { %v2940_v30 = vpop.permute.xlu1 %2939 }
 0x921   : > { %6540 = vmatmul.mubr.msk.bf16.vlgmr.msra.gmra.mrb[64].mxu0 %vm1671_vm0, %v2591_v13 }
 0x922   : > { %6543 = vmatprep.mubr.msk.bf16.mxu0 %vm1671_vm0, %v2593_v54  ;;  %6560 = vmatpush3.bf16.msra.mxu1 %v2938_v11 }
 0x923   : > { %6561 = vmatprep.subr.bf16.mxu1 %v2940_v30  ;;  %v2946_v3 = vpop.permute.xlu0 %2945 }
 0x924   : > { %v2944_v1 = vpop.permute.xlu1 %2943 }
 0x926   : > { %6562 = vmatpush3.bf16.msra.mxu1 %v2940_v30 }
 0x927   : > { %6563 = vmatprep.subr.bf16.mxu1 %v2942_v20  ;;  %v9804_v29 = vpop.permute.xlu0 %3078 }
 0x928   : > { %v2948_v62 = vpop.permute.xlu1 %2947 }
 0x929   : > { %6544 = vmatmul.mubr.msk.bf16.gmra.mrb[68].mxu0 %vm1671_vm0, %v2595_v51 }
 0x92a   : > { %6547 = vmatprep.mubr.msk.bf16.mxu0 %vm1671_vm0, %v2597_v40  ;;  %6564 = vmatpush3.bf16.msra.mxu1 %v2942_v20 }
 0x92b   : > { %6565 = vmatprep.subr.bf16.mxu1 %v2944_v1 }
 0x92e   : > { %6566 = vmatpush3.bf16.msra.mxu1 %v2944_v1 }
 0x92f   : > { %6567 = vmatprep.subr.bf16.mxu1 %v2946_v3 }
 0x931   : > { %6548 = vmatmul.mubr.msk.bf16.gmra.mrb[72].mxu0 %vm1671_vm0, %v2599_v16 }
 0x932   : > { %6551 = vmatprep.mubr.msk.bf16.mxu0 %vm1671_vm0, %v2601_v27  ;;  %6568 = vmatpush3.bf16.msra.mxu1 %v2946_v3 }
 0x933   : > { %6569 = vmatprep.subr.bf16.mxu1 %v2948_v62 }
 0x936   : > { %6570 = vmatpush3.bf16.msra.mxu1 %v2948_v62 }
 0x937   : > { %6723 = vmatprep.subr.msk.bf16.mxu1 %vm1671_vm0, %v9804_v29 }
 0x939   : > { %6552 = vmatmul.mubr.msk.bf16.gmra.mrb[76].mxu0 %vm1671_vm0, %v2603_v61 }
 0x99e   : > { %v9809_v25 = vpop.f32.mrb[48].mxu0 }
 0x99f   : > { %11554 = vst [vmem:[#allocation70_spill] sm:$0xff] %v9809_v25  ;;  %v9811_v23 = vpop.f32.mrb[49].mxu0 }
 0x9a0   : > { %11555 = vst [vmem:[#allocation95_spill] sm:$0xff] %v9811_v23  ;;  %v9813_v53 = vpop.f32.mrb[50].mxu0 }
 0x9a1   : > { %11556 = vst [vmem:[#allocation96_spill] sm:$0xff] %v9813_v53  ;;  %v9817_v22 = vpop.f32.mrb[51].mxu0 }
 0x9a2   : > { %11557 = vst [vmem:[#allocation97_spill] sm:$0xff] %v9817_v22 }
 0x9d6   : > { %v9821_v34 = vpop.f32.mrb[52].mxu0 }
 0x9d7   : > { %11558 = vst [vmem:[#allocation98_spill] sm:$0xff] %v9821_v34  ;;  %v9823_v13 = vpop.f32.mrb[53].mxu0 }
 0x9d8   : > { %11559 = vst [vmem:[#allocation99_spill] sm:$0xff] %v9823_v13  ;;  %v9825_v5 = vpop.f32.mrb[54].mxu0  ;;  %v9945_v13 = vpop.permute.xlu1 %3080 }
 0x9d9   : > { %11560 = vst [vmem:[#allocation100_spill] sm:$0xff] %v9825_v5  ;;  %v9829_v18 = vpop.f32.mrb[55].mxu0 }
 0x9da   : > { %11561 = vst [vmem:[#allocation101_spill] sm:$0xff] %v9829_v18 }
 0x9e4   : > { %v9833_v45 = vpop.f32.mrb[56].mxu0 }
 0x9e5   : > { %11562 = vst [vmem:[#allocation102_spill] sm:$0xff] %v9833_v45  ;;  %v9835_v26 = vpop.f32.mrb[57].mxu0 }
 0x9e6   : > { %11563 = vst [vmem:[#allocation103_spill] sm:$0xff] %v9835_v26  ;;  %v9837_v55 = vpop.f32.mrb[58].mxu0 }
 0x9e7   : > { %11564 = vst [vmem:[#allocation104_spill] sm:$0xff] %v9837_v55  ;;  %v9841_v14 = vpop.f32.mrb[59].mxu0 }
 0x9e8   : > { %11565 = vst [vmem:[#allocation105_spill] sm:$0xff] %v9841_v14  ;;  %v11580_v14 = vld [vmem:[#allocation61_spill] sm:$0xff] }
 0x9ec   : > { %v9845_v51 = vpop.f32.mrb[60].mxu0 }
 0x9ed   : > { %11566 = vst [vmem:[#allocation106_spill] sm:$0xff] %v9845_v51  ;;  %v9847_v56 = vpop.f32.mrb[61].mxu0 }
 0x9ee   : > { %11567 = vst [vmem:[#allocation107_spill] sm:$0xff] %v9847_v56  ;;  %v9849_v28 = vpop.f32.mrb[62].mxu0 }
 0x9ef   : > { %11568 = vst [vmem:[#allocation108_spill] sm:$0xff] %v9849_v28  ;;  %v9853_v2 = vpop.f32.mrb[63].mxu0 }
 0x9f0   : > { %11569 = vst [vmem:[#allocation109_spill] sm:$0xff] %v9853_v2 }
 0x9f4   : > { %v6541_v10 = vpop.f32.mrb[64].mxu0 }
 0x9f5   : > { %v2767_v16 = vsel %vm1657_vm1, %v6541_v10, -1e+30  ;;  %v2702_v35 = vpop.f32.mrb[65].mxu0 }
 0x9f6   : > { %2785 = vmax.xlane.f32.xlu0 %v2767_v16  ;;  %v6542_v58 = vpop.f32.mrb[66].mxu0  ;;  %v2765_v4 = vsel %vm1655_vm3, %v2702_v35, -1e+30 }
 0x9f7   : > { %v2705_v19 = vpop.f32.mrb[67].mxu0  ;;  %v2768_v30 = vsel %vm1658_vm2, %v6542_v58, -1e+30 }
 0x9f8   : > { %v2766_v61 = vsel %vm1656_vm4, %v2705_v19, -1e+30 }
 0x9f9   : > { %2783 = vmax.xlane.f32.xlu1 %v2766_v61 }
 0x9fa   : > { %2781 = vmax.xlane.f32.xlu0 %v2765_v4 }
 0x9fc   : > { %v6545_v11 = vpop.f32.mrb[68].mxu0 }
 0x9fd   : > { %v2718_v20 = vpop.f32.mrb[69].mxu0  ;;  %v9878_v10 = vsel %vm1661_vm5, %v6545_v11, -1e+30 }
 0x9fe   : > { %2787 = vmax.xlane.f32.xlu0 %v2768_v30  ;;  %v6546_v1 = vpop.f32.mrb[70].mxu0 }
 0x9ff   : > { %v9872_v3 = vsel %vm1662_vm6, %v6546_v1, -1e+30  ;;  %v2721_v62 = vpop.f32.mrb[71].mxu0  ;;  %v9890_v1 = vsel %vm1659_vm7, %v2718_v20, -1e+30  ;;  %v11573_v20 = vld [vmem:[#allocation74_spill] sm:$0xff] }
 0xa00   : > { %2795 = vmax.xlane.f32.xlu1 %v9872_v3  ;;  %v9884_v35 = vsel %vm1660_vm8, %v2721_v62, -1e+30  ;;  %vm11574_vm12 = vcmp.le.s32.totalorder %v9181_v9, %v11573_v20 }
 0xa02   : > { %2793 = vmax.xlane.f32.xlu0 %v9878_v10 }
 0xa04   : > { %2791 = vmax.xlane.f32.xlu1 %v9884_v35  ;;  %v6549_v58 = vpop.f32.mrb[72].mxu0 }
 0xa05   : > { %v2734_v27 = vpop.f32.mrb[73].mxu0  ;;  %v9902_v31 = vsel %vm1665_vm9, %v6549_v58, -1e+30 }
 0xa06   : > { %2789 = vmax.xlane.f32.xlu0 %v9890_v1  ;;  %v6550_v11 = vpop.f32.mrb[74].mxu0  ;;  %v9914_v17 = vsel %vm1663_vm11, %v2734_v27, -1e+30  ;;  %v11579_v27 = vld [vmem:[#allocation64_spill] sm:$0xff] }
 0xa07   : > { %v9896_v52 = vsel %vm1666_vm10, %v6550_v11, -1e+30  ;;  %v2737_v40 = vpop.f32.mrb[75].mxu0  ;;  %v11589_v11 = vld [vmem:[#allocation62_spill] sm:$0xff] }
 0xa08   : > { %2803 = vmax.xlane.f32.xlu1 %v9896_v52  ;;  %v9908_v60 = vsel %vm11574_vm12, %v2737_v40, -1e+30  ;;  %v11577_v40 = vld [vmem:[#allocation76_spill] sm:$0xff] }
 0xa09   : > { %vm11578_vm12 = vcmp.le.s32.totalorder %v9181_v9, %v11577_v40 }
 0xa0a   : > { %2801 = vmax.xlane.f32.xlu0 %v9902_v31 }
 0xa0c   : > { %2799 = vmax.xlane.f32.xlu1 %v9908_v60  ;;  %v6553_v54 = vpop.f32.mrb[76].mxu0 }
 0xa0d   : > { %v2750_v56 = vpop.f32.mrb[77].mxu0  ;;  %v9920_v28 = vsel %vm1669_vm13, %v6553_v54, -1e+30 }
 0xa0e   : > { %2797 = vmax.xlane.f32.xlu0 %v9914_v17  ;;  %v6554_v58 = vpop.f32.mrb[78].mxu0  ;;  %v9926_v26 = vsel %vm11578_vm12, %v2750_v56, -1e+30 }
 0xa0f   : > { %v2753_v2 = vpop.f32.mrb[79].mxu0  ;;  %v9936_v54 = vsel %vm1670_vm15, %v6554_v58, -1e+30 }
 0xa10   : > { %v9942_v56 = vsel %vm1668_vm14, %v2753_v2, -1e+30 }
 0xa12   : > { %2809 = vmax.xlane.f32.xlu0 %v9920_v28 }
 0xa16   : > { %2805 = vmax.xlane.f32.xlu0 %v9926_v26 }
 0xa1d   : > { %3084 = vrot.lane.b32.xlu1 %v11579_v27, %s8046_s10 }
 0xa2c   : > { %3082 = vrot.lane.b32.xlu0 %v11580_v14, %s8046_s10 }
 0xa41   : > { %2811 = vmax.xlane.f32.xlu1 %v9936_v54 }
 0xa45   : > { %2807 = vmax.xlane.f32.xlu1 %v9942_v56 }
 0xa83   : > { %v2786_v27 = vpop.xlane.xlu0 %2785 }
 0xa84   : > { %v2815_v18 = vsub.f32 %v2767_v16, %v2786_v27 }
 0xa86   : > { %v2833_v34 = vmul.f32 1.442695, %v2815_v18  ;;  %v2784_v14 = vpop.xlane.xlu1 %2783 }
 0xa87   : > { %v2814_v5 = vsub.f32 %v2766_v61, %v2784_v14  ;;  %v2782_v23 = vpop.xlane.xlu0 %2781 }
 0xa88   : > { %7198 = vpow2.f32 %v2833_v34  ;;  %v2813_v58 = vsub.f32 %v2765_v4, %v2782_v23 }
 0xa89   : > { %v2831_v22 = vmul.f32 1.442695, %v2814_v5 }
 0xa8a   : > { %v2829_v25 = vmul.f32 1.442695, %v2813_v58 }
 0xa8b   : > { %7200 = vpow2.f32 %v2831_v22  ;;  %v2788_v53 = vpop.xlane.xlu0 %2787 }
 0xa8c   : > { %7202 = vpow2.f32 %v2829_v25  ;;  %v2816_v37 = vsub.f32 %v2768_v30, %v2788_v53  ;;  %v11584_v53 = vld [vmem:[#allocation68_spill] sm:$0xff] }
 0xa8d   : > { %v2796_v34 = vpop.xlane.xlu1 %2795 }
 0xa8e   : > { %v2835_v2 = vmul.f32 1.442695, %v2816_v37  ;;  %v11583_v37 = vld [vmem:[#allocation67_spill] sm:$0xff]  ;;  %v2820_v45 = vsub.f32 %v9872_v3, %v2796_v34 }
 0xa8f   : > { %v2794_v25 = vpop.xlane.xlu0 %2793 }
 0xa90   : > { %7204 = vpow2.f32 %v2835_v2  ;;  %v2819_v16 = vsub.f32 %v9878_v10, %v2794_v25  ;;  %v2843_v42 = vmul.f32 1.442695, %v2820_v45 }
 0xa91   : > { %v2792_v61 = vpop.xlane.xlu1 %2791 }
 0xa92   : > { %v9947_v32 = vpop.eup %7198  ;;  %v2841_v30 = vmul.f32 1.442695, %v2819_v16  ;;  %v2818_v14 = vsub.f32 %v9884_v35, %v2792_v61 }
 0xa93   : > { %2865 = vadd.xlane.f32.xlu1 %v9947_v32  ;;  %v2790_v22 = vpop.xlane.xlu0 %2789 }
 0xa94   : > { %v2817_v27 = vsub.f32 %v9890_v1, %v2790_v22  ;;  %7206 = vpow2.f32 %v2841_v30  ;;  %v2839_v50 = vmul.f32 1.442695, %v2818_v14 }
 0xa95   : > { %v9950_v55 = vpop.eup %7200  ;;  %v2804_v58 = vpop.xlane.xlu1 %2803 }
 0xa96   : > { %v9952_v18 = vpop.eup %7202  ;;  %2863 = vadd.xlane.f32.xlu0 %v9950_v55  ;;  %v2824_v3 = vsub.f32 %v9896_v52, %v2804_v58 }
 0xa97   : > { %2861 = vadd.xlane.f32.xlu1 %v9952_v18  ;;  %v2802_v5 = vpop.xlane.xlu0 %2801 }
 0xa98   : > { %v2851_v45 = vmul.f32 1.442695, %v2824_v3 }
 0xa99   : > { %v2800_v40 = vpop.xlane.xlu1 %2799 }
 0xa9a   : > { %v9956_v23 = vpop.eup %7204 }
 0xa9b   : > { %2867 = vadd.xlane.f32.xlu1 %v9956_v23  ;;  %v2798_v4 = vpop.xlane.xlu0 %2797 }
 0xa9c   : > { %v2821_v1 = vsub.f32 %v9914_v17, %v2798_v4  ;;  %v2822_v17 = vsub.f32 %v9908_v60, %v2800_v40 }
 0xa9e   : > { %v2845_v34 = vmul.f32 1.442695, %v2821_v1  ;;  %v9972_v61 = vpop.eup %7206  ;;  %v3119_v1 = vsel %vm1671_vm0, %v9804_v29, 0 }
 0xa9f   : > { %v2810_v2 = vpop.xlane.xlu0 %2809 }
 0xaa0   : > { %v2827_v10 = vsub.f32 %v9920_v28, %v2810_v2 }
 0xaa2   : > { %v2857_v35 = vmul.f32 1.442695, %v2827_v10 }
 0xaa3   : > { %v2806_v22 = vpop.xlane.xlu0 %2805 }
 0xaa4   : > { %v2825_v16 = vsub.f32 %v9926_v26, %v2806_v22 }
 0xaac   : > { %3086 = vrot.lane.b32.xlu0 %v11583_v37, %s8046_s10  ;;  %3088 = vrot.lane.b32.xlu1 %v11584_v53, %s8046_s10  ;;  %v2837_v37 = vmul.f32 1.442695, %v2817_v27  ;;  %v2823_v53 = vsub.f32 %v9902_v31, %v2802_v5  ;;  %v9974_v31 = vpop.permute.xlu1 %3084  ;;  %v2847_v5 = vmul.f32 1.442695, %v2822_v17 }
 0xaae   : > { %7208 = vpow2.f32 %v2837_v37  ;;  %v2849_v25 = vmul.f32 1.442695, %v2823_v53 }
 0xaaf   : > { %7210 = vpow2.f32 %v2839_v50  ;;  %v2853_v50 = vmul.f32 1.442695, %v2825_v16 }
 0xab0   : > { %7212 = vpow2.f32 %v2843_v42 }
 0xab1   : > { %7214 = vpow2.f32 %v2849_v25 }
 0xab2   : > { %7216 = vpow2.f32 %v2857_v35 }
 0xab3   : > { %7218 = vpow2.f32 %v2845_v34 }
 0xab4   : > { %7220 = vpow2.f32 %v2853_v50 }
 0xab5   : > { %7222 = vpow2.f32 %v2851_v45 }
 0xab8   : > { %v9978_v42 = vpop.eup %7208 }
 0xab9   : > { %v9980_v26 = vpop.eup %7210 }
 0xaba   : > { %v9985_v30 = vpop.eup %7212 }
 0xabb   : > { %v9987_v60 = vpop.eup %7214 }
 0xabc   : > { %v9992_v14 = vpop.eup %7216 }
 0xabd   : > { %v9994_v58 = vpop.eup %7218 }
 0xabe   : > { %v9998_v2 = vpop.eup %7220 }
 0xabf   : > { %v10000_v37 = vpop.eup %7222 }
 0xacb   : > { %2873 = vadd.xlane.f32.xlu0 %v9972_v61 }
 0xace   : > { %v2812_v28 = vpop.xlane.xlu1 %2811 }
 0xacf   : > { %v2828_v52 = vsub.f32 %v9936_v54, %v2812_v28  ;;  %2869 = vadd.xlane.f32.xlu0 %v9978_v42 }
 0xad0   : > { %2871 = vadd.xlane.f32.xlu1 %v9980_v26 }
 0xad1   : > { %v2859_v4 = vmul.f32 1.442695, %v2828_v52 }
 0xad2   : > { %v2808_v27 = vpop.xlane.xlu1 %2807 }
 0xad3   : > { %7224 = vpow2.f32 %v2859_v4  ;;  %v2826_v40 = vsub.f32 %v9942_v56, %v2808_v27  ;;  %2875 = vadd.xlane.f32.xlu0 %v9985_v30 }
 0xad4   : > { %2881 = vadd.xlane.f32.xlu1 %v9987_v60  ;;  %7226 = vpow2.f32 %v2847_v5 }
 0xad5   : > { %v2855_v54 = vmul.f32 1.442695, %v2826_v40 }
 0xad7   : > { %2889 = vadd.xlane.f32.xlu0 %v9992_v14  ;;  %7228 = vpow2.f32 %v2855_v54 }
 0xad8   : > { %2877 = vadd.xlane.f32.xlu1 %v9994_v58 }
 0xadb   : > { %2885 = vadd.xlane.f32.xlu0 %v9998_v2 }
 0xadc   : > { %2883 = vadd.xlane.f32.xlu1 %v10000_v37 }
 0xadd   : > { %v10004_v56 = vpop.eup %7224 }
 0xade   : > { %v10006_v53 = vpop.eup %7226 }
 0xadf   : > { %2891 = vadd.xlane.f32.xlu0 %v10004_v56 }
 0xae0   : > { %2879 = vadd.xlane.f32.xlu1 %v10006_v53 }
 0xae1   : > { %v10010_v10 = vpop.eup %7228 }
 0xae4   : > { %2887 = vadd.xlane.f32.xlu1 %v10010_v10 }
 0xaf5   : > { %3092 = vrot.lane.b32.xlu1 %v9153_v15, %s8046_s10  ;;  %3090 = vrot.lane.b32.xlu0 %v9141_v46, %s8046_s10 }
 0xaf9   : > { %3064 = vrot.lane.b32.xlu1 %v9038_v44, %s8046_s10  ;;  %3062 = vrot.lane.b32.xlu0 %v9013_v6, %s8046_s10  ;;  %v3083_v6 = vpop.permute.xlu0 %3082 }
 0xafd   : > { %3068 = vrot.lane.b32.xlu1 %v9088_v48, %s8046_s10  ;;  %3066 = vrot.lane.b32.xlu0 %v9064_v21, %s8046_s10 }
 0xb01   : > { %3072 = vrot.lane.b32.xlu1 %v9127_v8, %s8046_s10  ;;  %3070 = vrot.lane.b32.xlu0 %v9112_v43, %s8046_s10 }
 0xb05   : > { %3076 = vrot.lane.b32.xlu1 %v9151_v7, %s8046_s10  ;;  %3074 = vrot.lane.b32.xlu0 %v9139_v36, %s8046_s10 }
 0xb09   : > { %3409 = vrot.lane.b32.xlu1 %v9029_v33, %s8046_s10  ;;  %3407 = vrot.lane.b32.xlu0 %v9032_v39, %s8046_s10 }
 0xb0d   : > { %3411 = vrot.lane.b32.xlu0 %v9058_v41, %s8046_s10 }
 0xb11   : > { %3413 = vrot.lane.b32.xlu0 %v9054_v63, %s8046_s10 }
 0xb20   : > { %v2866_v44 = vpop.xlane.xlu1 %2865 }
 0xb23   : > { %v2864_v21 = vpop.xlane.xlu0 %2863 }
 0xb24   : > { %7230 = vrcp.f32 %v2864_v21  ;;  %v2862_v48 = vpop.xlane.xlu1 %2861 }
 0xb25   : > { %7232 = vrcp.f32 %v2862_v48 }
 0xb26   : > { %7234 = vrcp.f32 %v2866_v44 }
 0xb27   : > { %v3087_v29 = vpop.permute.xlu0 %3086 }
 0xb28   : > { %v2868_v43 = vpop.xlane.xlu1 %2867 }
 0xb29   : > { %7236 = vrcp.f32 %v2868_v43 }
 0xb2e   : > { %v7231_v8 = vpop.eup %7230 }
 0xb2f   : > { %v7233_v33 = vpop.eup %7232  ;;  %v2896_v36 = vmul.f32 %v7231_v8, %v9950_v55  ;;  %v3122_v55 = vsel %vm1671_vm0, %v9945_v13, 0 }
 0xb30   : > { %v2894_v39 = vmul.f32 %v7233_v33, %v9952_v18  ;;  %v7235_v46 = vpop.eup %7234  ;;  %v3128_v18 = vsel %vm1671_vm0, %v9974_v31, 0 }
 0xb31   : > { %v2898_v63 = vmul.f32 %v7235_v46, %v9947_v32  ;;  %v3125_v32 = vsel %vm1671_vm0, %v3083_v6, 0 }
 0xb32   : > { %v2925_v41 = vpack.c.bf16 %v2896_v36, %v2894_v39 }
 0xb33   : > { %v7237_v7 = vpop.eup %7236 }
 0xb34   : > { %v2900_v15 = vmul.f32 %v7237_v7, %v9956_v23  ;;  %6571 = vmatprep.mubr.bf16.mxu1 %v2925_v41  ;;  %v3131_v23 = vsel %vm1671_vm0, %v3087_v29, 0 }
 0xb36   : > { %v2926_v25 = vpack.c.bf16 %v2900_v15, %v2898_v63 }
 0xb38   : > { %6572 = vmatmul.mubr.bf16.vlgmr.msra.gmra.mrb[48].mxu1 %v2926_v25 }
 0xb39   : > { %6588 = vmatpush3.bf16.xpose.msra.mxu1 %v3119_v1 }
 0xb3a   : > { %6724 = vmatprep.subr.msk.bf16.mxu1 %vm1671_vm0, %v9945_v13  ;;  %v3089_v13 = vpop.permute.xlu1 %3088 }
 0xb3b   : > { %v3134_v3 = vsel %vm1671_vm0, %v3089_v13, 0 }
 0xb41   : > { %6590 = vmatpush3.bf16.xpose.msra.mxu1 %v3122_v55 }
 0xb42   : > { %6725 = vmatprep.subr.msk.bf16.mxu1 %vm1671_vm0, %v3083_v6 }
 0xb49   : > { %6592 = vmatpush3.bf16.xpose.msra.mxu1 %v3125_v32 }
 0xb4a   : > { %6726 = vmatprep.subr.msk.bf16.mxu1 %vm1671_vm0, %v9974_v31 }
 0xb51   : > { %6594 = vmatpush3.bf16.xpose.msra.mxu1 %v3128_v18 }
 0xb52   : > { %6727 = vmatprep.subr.msk.bf16.mxu1 %vm1671_vm0, %v3087_v29 }
 0xb58   : > { %v2874_v22 = vpop.xlane.xlu0 %2873 }
 0xb59   : > { %6596 = vmatpush3.bf16.xpose.msra.mxu1 %v3131_v23 }
 0xb5a   : > { %6728 = vmatprep.subr.msk.bf16.mxu1 %vm1671_vm0, %v3089_v13 }
 0xb5c   : > { %v2870_v35 = vpop.xlane.xlu0 %2869 }
 0xb5d   : > { %7238 = vrcp.f32 %v2870_v35  ;;  %v2872_v16 = vpop.xlane.xlu1 %2871 }
 0xb5e   : > { %7240 = vrcp.f32 %v2872_v16 }
 0xb5f   : > { %7242 = vrcp.f32 %v2874_v22 }
 0xb60   : > { %v2876_v34 = vpop.xlane.xlu0 %2875 }
 0xb61   : > { %6598 = vmatpush3.bf16.xpose.msra.mxu1 %v3134_v3  ;;  %7244 = vrcp.f32 %v2876_v34  ;;  %v2882_v31 = vpop.xlane.xlu1 %2881 }
 0xb64   : > { %v2890_v50 = vpop.xlane.xlu0 %2889 }
 0xb65   : > { %v2878_v45 = vpop.xlane.xlu1 %2877 }
 0xb67   : > { %v7239_v17 = vpop.eup %7238 }
 0xb68   : > { %v7241_v28 = vpop.eup %7240  ;;  %v2886_v52 = vpop.xlane.xlu0 %2885  ;;  %v2902_v5 = vmul.f32 %v7239_v17, %v9978_v42 }
 0xb69   : > { %v7243_v4 = vpop.eup %7242  ;;  %v2884_v27 = vpop.xlane.xlu1 %2883  ;;  %v2904_v40 = vmul.f32 %v7241_v28, %v9980_v26 }
 0xb6a   : > { %7246 = vrcp.f32 %v2884_v27  ;;  %v2906_v21 = vmul.f32 %v7243_v4, %v9972_v61 }
 0xb6b   : > { %v7245_v54 = vpop.eup %7244  ;;  %v2927_v6 = vpack.c.bf16 %v2904_v40, %v2902_v5  ;;  %7248 = vrcp.f32 %v2878_v45 }
 0xb6c   : > { %v2892_v44 = vpop.xlane.xlu0 %2891  ;;  %v2908_v48 = vmul.f32 %v7245_v54, %v9985_v30  ;;  %7250 = vrcp.f32 %v2882_v31 }
 0xb6d   : > { %v2880_v43 = vpop.xlane.xlu1 %2879  ;;  %6575 = vmatprep.mubr.bf16.mxu1 %v2927_v6 }
 0xb6e   : > { %7252 = vrcp.f32 %v2880_v43  ;;  %v2928_v8 = vpack.c.bf16 %v2908_v48, %v2906_v21 }
 0xb6f   : > { %7254 = vrcp.f32 %v2886_v52 }
 0xb70   : > { %6576 = vmatmul.mubr.bf16.gmra.mrb[52].mxu1 %v2928_v8  ;;  %v3091_v42 = vpop.permute.xlu0 %3090 }
 0xb71   : > { %v2888_v33 = vpop.xlane.xlu1 %2887  ;;  %6729 = vmatprep.subr.msk.bf16.mxu1 %vm1671_vm0, %v3091_v42  ;;  %v3137_v26 = vsel %vm1671_vm0, %v3091_v42, 0 }
 0xb72   : > { %7256 = vrcp.f32 %v2888_v33  ;;  %6600 = vmatpush3.bf16.xpose.msra.mxu1 %v3137_v26 }
 0xb73   : > { %7258 = vrcp.f32 %v2892_v44 }
 0xb74   : > { %v3063_v36 = vpop.permute.xlu0 %3062  ;;  %v7247_v61 = vpop.eup %7246  ;;  %7260 = vrcp.f32 %v2890_v50 }
 0xb75   : > { %v3093_v30 = vpop.permute.xlu1 %3092  ;;  %v7249_v39 = vpop.eup %7248  ;;  %v2916_v63 = vmul.f32 %v7247_v61, %v10000_v37 }
 0xb76   : > { %6730 = vmatprep.subr.msk.bf16.mxu1 %vm1671_vm0, %v3093_v30  ;;  %v7251_v46 = vpop.eup %7250  ;;  %v3140_v25 = vsel %vm1671_vm0, %v3093_v30, 0  ;;  %v2910_v1 = vmul.f32 %v7249_v39, %v9994_v58 }
 0xb77   : > { %v2914_v18 = vmul.f32 %v7251_v46, %v9987_v60 }
 0xb78   : > { %v7253_v41 = vpop.eup %7252  ;;  %v3067_v7 = vpop.permute.xlu0 %3066 }
 0xb79   : > { %v3065_v15 = vpop.permute.xlu1 %3064  ;;  %v2912_v55 = vmul.f32 %v7253_v41, %v10006_v53  ;;  %v7255_v32 = vpop.eup %7254  ;;  %v2930_v13 = vpack.c.bf16 %v2916_v63, %v2914_v18 }
 0xb7a   : > { %6602 = vmatpush3.bf16.xpose.msra.mxu1 %v3140_v25  ;;  %v2918_v37 = vmul.f32 %v7255_v32, %v9998_v2 }
 0xb7b   : > { %v2929_v29 = vpack.c.bf16 %v2912_v55, %v2910_v1 }
 0xb7c   : > { %v7257_v23 = vpop.eup %7256  ;;  %v3071_v22 = vpop.permute.xlu0 %3070 }
 0xb7d   : > { %v7259_v35 = vpop.eup %7258  ;;  %v3069_v16 = vpop.permute.xlu1 %3068  ;;  %6579 = vmatprep.mubr.bf16.mxu1 %v2929_v29  ;;  %v2920_v3 = vmul.f32 %v7257_v23, %v10010_v10 }
 0xb7e   : > { %6580 = vmatmul.mubr.bf16.gmra.mrb[56].mxu1 %v2930_v13  ;;  %v7261_v34 = vpop.eup %7260  ;;  %v2924_v53 = vmul.f32 %v7259_v35, %v10004_v56 }
 0xb7f   : > { %v2931_v58 = vpack.c.bf16 %v2920_v3, %v2918_v37  ;;  %v2922_v60 = vmul.f32 %v7261_v34, %v9992_v14  ;;  %v11585_v14 = vmov 0  }
 0xb80   : > { %v3075_v31 = vpop.permute.xlu0 %3074 }
 0xb81   : > { %v3073_v50 = vpop.permute.xlu1 %3072  ;;  %6583 = vmatprep.mubr.bf16.mxu1 %v2931_v58  ;;  %v2932_v17 = vpack.c.bf16 %v2924_v53, %v2922_v60 }
 0xb84   : > { %v3408_v45 = vpop.permute.xlu0 %3407 }
 0xb85   : > { %v3077_v28 = vpop.permute.xlu1 %3076  ;;  %6619 = vmatprep.subr.bf16.mxu0 %v3408_v45 }
 0xb86   : > { %6584 = vmatmul.mubr.bf16.gmra.mrb[60].mxu1 %v2932_v17  ;;  %6620 = vmatpush3.bf16.msra.mxu0 %v3408_v45 }
 0xb87   : > { %6603 = vmatprep.mubr.msk.bf16.mxu1 %vm1671_vm0, %v3063_v36 }
 0xb88   : > { %v3412_v2 = vpop.permute.xlu0 %3411 }
 0xb89   : > { %v3410_v10 = vpop.permute.xlu1 %3409 }
 0xb8a   : > { %6621 = vmatprep.subr.bf16.mxu0 %v3410_v10 }
 0xb8b   : > { %6622 = vmatpush3.bf16.msra.mxu0 %v3410_v10 }
 0xb8c   : > { %6623 = vmatprep.subr.bf16.mxu0 %v3412_v2  ;;  %v3414_v56 = vpop.permute.xlu0 %3413 }
 0xb8e   : > { %6604 = vmatmul.mubr.msk.bf16.vlgmr.msra.gmra.mrb[64].mxu1 %vm1671_vm0, %v3065_v15 }
 0xb8f   : > { %6607 = vmatprep.mubr.msk.bf16.mxu1 %vm1671_vm0, %v3067_v7  ;;  %6624 = vmatpush3.bf16.msra.mxu0 %v3412_v2 }
 0xb90   : > { %6625 = vmatprep.subr.bf16.mxu0 %v3414_v56 }
 0xb93   : > { %6626 = vmatpush3.bf16.msra.mxu0 %v3414_v56 }
 0xb96   : > { %6608 = vmatmul.mubr.msk.bf16.gmra.mrb[68].mxu1 %vm1671_vm0, %v3069_v16 }
 0xb97   : > { %6611 = vmatprep.mubr.msk.bf16.mxu1 %vm1671_vm0, %v3071_v22 }
 0xb9e   : > { %6612 = vmatmul.mubr.msk.bf16.gmra.mrb[72].mxu1 %vm1671_vm0, %v3073_v50 }
 0xb9f   : > { %6615 = vmatprep.mubr.msk.bf16.mxu1 %vm1671_vm0, %v3075_v31 }
 0xba6   : > { %6616 = vmatmul.mubr.msk.bf16.gmra.mrb[76].mxu1 %vm1671_vm0, %v3077_v28  ;;  %v11590_v28 = vld [vmem:[#allocation63_spill] sm:$0xff] }
 0xba7   : > { %4358 = vmatprep.mubr.bf16.mxu1 %v11585_v14 }
 0xc0b   : > { %v10086_v52 = vpop.f32.mrb[48].mxu1 }
 0xc0c   : > { %v10088_v5 = vpop.f32.mrb[49].mxu1 }
 0xc0d   : > { %v10090_v4 = vpop.f32.mrb[50].mxu1 }
 0xc0e   : > { %v3055_v27 = vpack.c.bf16 %v10090_v4, %v10086_v52  ;;  %v10094_v40 = vpop.f32.mrb[51].mxu1 }
 0xc0f   : > { %v3054_v54 = vpack.c.bf16 %v10094_v40, %v10088_v5 }
 0xc43   : > { %v10098_v6 = vpop.f32.mrb[52].mxu1 }
 0xc44   : > { %v10100_v44 = vpop.f32.mrb[53].mxu1 }
 0xc45   : > { %v10102_v21 = vpop.f32.mrb[54].mxu1 }
 0xc46   : > { %v3057_v48 = vpack.c.bf16 %v10102_v21, %v10098_v6  ;;  %v10106_v43 = vpop.f32.mrb[55].mxu1 }
 0xc47   : > { %v3056_v8 = vpack.c.bf16 %v10106_v43, %v10100_v44 }
 0xc51   : > { %v10110_v42 = vpop.f32.mrb[56].mxu1 }
 0xc52   : > { %v10112_v33 = vpop.f32.mrb[57].mxu1 }
 0xc53   : > { %v10114_v26 = vpop.f32.mrb[58].mxu1 }
 0xc54   : > { %v3059_v36 = vpack.c.bf16 %v10114_v26, %v10110_v42  ;;  %v10118_v61 = vpop.f32.mrb[59].mxu1  ;;  %v11614_v42 = vld [vmem:[#allocation106_spill] sm:$0xff] }
 0xc55   : > { %v3058_v30 = vpack.c.bf16 %v10118_v61, %v10112_v33  ;;  %v11616_v33 = vld [vmem:[#allocation109_spill] sm:$0xff]  ;;  %v11617_v61 = vld [vmem:[#allocation107_spill] sm:$0xff] }
 0xc59   : > { %v10122_v39 = vpop.f32.mrb[60].mxu1 }
 0xc5a   : > { %v10124_v46 = vpop.f32.mrb[61].mxu1 }
 0xc5b   : > { %v10126_v41 = vpop.f32.mrb[62].mxu1 }
 0xc5c   : > { %v3061_v7 = vpack.c.bf16 %v10126_v41, %v10122_v39  ;;  %v10130_v63 = vpop.f32.mrb[63].mxu1  ;;  %v11622_v41 = vld [vmem:[#allocation81_spill] sm:$0xff] }
 0xc5d   : > { %v3060_v15 = vpack.c.bf16 %v10130_v63, %v10124_v46 }
 0xc61   : > { %v6605_v25 = vpop.f32.mrb[64].mxu1 }
 0xc62   : > { %v3241_v1 = vsel %vm1657_vm1, %v6605_v25, -1e+30  ;;  %v3176_v55 = vpop.f32.mrb[65].mxu1  ;;  %vm11586_vm1 = vcmp.le.s32.totalorder %v9181_v9, %v11573_v20 }
 0xc63   : > { %3259 = vmax.xlane.f32.xlu0 %v3241_v1  ;;  %v6606_v32 = vpop.f32.mrb[66].mxu1  ;;  %v3239_v23 = vsel %vm1655_vm3, %v3176_v55, -1e+30  ;;  %vm3632_vm3 = vcmask 523264  }
 0xc64   : > { %v3179_v18 = vpop.f32.mrb[67].mxu1  ;;  %v3242_v59 = vsel %vm1658_vm2, %v6606_v32, -1e+30  ;;  %vm11588_vm2 = vmmov %vm11578_vm12 }
 0xc65   : > { %v3240_v29 = vsel %vm1656_vm4, %v3179_v18, -1e+30  ;;  %vm3649_vm4 = vcmask 785408  }
 0xc66   : > { %3257 = vmax.xlane.f32.xlu1 %v3240_v29 }
 0xc67   : > { %3255 = vmax.xlane.f32.xlu0 %v3239_v23 }
 0xc69   : > { %v6609_v22 = vpop.f32.mrb[68].mxu1 }
 0xc6a   : > { %v3192_v13 = vpop.f32.mrb[69].mxu1  ;;  %v3245_v37 = vsel %vm1661_vm5, %v6609_v22, -1e+30 }
 0xc6b   : > { %3261 = vmax.xlane.f32.xlu0 %v3242_v59  ;;  %v6610_v35 = vpop.f32.mrb[70].mxu1  ;;  %v3243_v57 = vsel %vm1659_vm7, %v3192_v13, -1e+30 }
 0xc6c   : > { %v3246_v16 = vsel %vm1662_vm6, %v6610_v35, -1e+30  ;;  %v3195_v38 = vpop.f32.mrb[71].mxu1 }
 0xc6d   : > { %3269 = vmax.xlane.f32.xlu1 %v3246_v16  ;;  %v10155_v3 = vsel %vm1660_vm8, %v3195_v38, -1e+30 }
 0xc6f   : > { %3267 = vmax.xlane.f32.xlu0 %v3245_v37 }
 0xc71   : > { %3265 = vmax.xlane.f32.xlu1 %v10155_v3  ;;  %v6613_v49 = vpop.f32.mrb[72].mxu1 }
 0xc72   : > { %v3208_v34 = vpop.f32.mrb[73].mxu1  ;;  %v10170_v0 = vsel %vm1665_vm9, %v6613_v49, -1e+30 }
 0xc73   : > { %3263 = vmax.xlane.f32.xlu0 %v3243_v57  ;;  %v6614_v58 = vpop.f32.mrb[74].mxu1  ;;  %v10182_v53 = vsel %vm1663_vm11, %v3208_v34, -1e+30 }
 0xc74   : > { %v10164_v47 = vsel %vm1666_vm10, %v6614_v58, -1e+30  ;;  %v3211_v31 = vpop.f32.mrb[75].mxu1 }
 0xc75   : > { %3277 = vmax.xlane.f32.xlu1 %v10164_v47  ;;  %v10176_v19 = vsel %vm11586_vm1, %v3211_v31, -1e+30 }
 0xc77   : > { %3275 = vmax.xlane.f32.xlu0 %v10170_v0 }
 0xc79   : > { %3273 = vmax.xlane.f32.xlu1 %v10176_v19  ;;  %v6617_v12 = vpop.f32.mrb[76].mxu1 }
 0xc7a   : > { %v3224_v50 = vpop.f32.mrb[77].mxu1  ;;  %v10188_v45 = vsel %vm1669_vm13, %v6617_v12, -1e+30 }
 0xc7b   : > { %3271 = vmax.xlane.f32.xlu0 %v10182_v53  ;;  %v6618_v62 = vpop.f32.mrb[78].mxu1  ;;  %v10194_v17 = vsel %vm11588_vm2, %v3224_v50, -1e+30 }
 0xc7c   : > { %v3227_v60 = vpop.f32.mrb[79].mxu1  ;;  %v10204_v51 = vsel %vm1670_vm15, %v6618_v62, -1e+30 }
 0xc7d   : > { %v10210_v56 = vsel %vm1668_vm14, %v3227_v60, -1e+30 }
 0xc7f   : > { %3283 = vmax.xlane.f32.xlu0 %v10188_v45 }
 0xc83   : > { %3279 = vmax.xlane.f32.xlu0 %v10194_v17 }
 0xc8a   : > { %3417 = vrot.lane.b32.xlu1 %v11589_v11, %s8046_s10 }
 0xc99   : > { %3415 = vrot.lane.b32.xlu0 %v11590_v28, %s8046_s10 }
 0xcae   : > { %3285 = vmax.xlane.f32.xlu1 %v10204_v51 }
 0xcb2   : > { %3281 = vmax.xlane.f32.xlu1 %v10210_v56 }
 0xcf0   : > { %v3260_v25 = vpop.xlane.xlu0 %3259 }
 0xcf1   : > { %v3289_v55 = vsub.f32 %v3241_v1, %v3260_v25 }
 0xcf3   : > { %v3307_v32 = vmul.f32 1.442695, %v3289_v55  ;;  %v3258_v22 = vpop.xlane.xlu1 %3257 }
 0xcf4   : > { %v3256_v18 = vpop.xlane.xlu0 %3255  ;;  %v3288_v38 = vsub.f32 %v3240_v29, %v3258_v22 }
 0xcf5   : > { %7262 = vpow2.f32 %v3307_v32  ;;  %v3287_v13 = vsub.f32 %v3239_v23, %v3256_v18 }
 0xcf6   : > { %v3305_v12 = vmul.f32 1.442695, %v3288_v38 }
 0xcf7   : > { %v3303_v35 = vmul.f32 1.442695, %v3287_v13 }
 0xcf8   : > { %v3262_v49 = vpop.xlane.xlu0 %3261 }
 0xcf9   : > { %7264 = vpow2.f32 %v3303_v35  ;;  %v3290_v34 = vsub.f32 %v3242_v59, %v3262_v49 }
 0xcfa   : > { %v3270_v58 = vpop.xlane.xlu1 %3269 }
 0xcfb   : > { %v3309_v31 = vmul.f32 1.442695, %v3290_v34  ;;  %v3294_v9 = vsub.f32 %v3246_v16, %v3270_v58  ;;  %v11593_v58 = vld [vmem:[#allocation65_spill] sm:$0xff] }
 0xcfc   : > { %v3268_v50 = vpop.xlane.xlu0 %3267 }
 0xcfd   : > { %7266 = vpow2.f32 %v3309_v31  ;;  %v3293_v62 = vsub.f32 %v3245_v37, %v3268_v50  ;;  %v3317_v11 = vmul.f32 1.442695, %v3294_v9  ;;  %v11594_v31 = vld [vmem:[#allocation66_spill] sm:$0xff] }
 0xcfe   : > { %v3266_v60 = vpop.xlane.xlu1 %3265  ;;  %7268 = vpow2.f32 %v3305_v12 }
 0xcff   : > { %v10213_v20 = vpop.eup %7262  ;;  %v3315_v1 = vmul.f32 1.442695, %v3293_v62  ;;  %v3292_v29 = vsub.f32 %v10155_v3, %v3266_v60 }
 0xd00   : > { %3339 = vadd.xlane.f32.xlu1 %v10213_v20  ;;  %v3264_v23 = vpop.xlane.xlu0 %3263 }
 0xd01   : > { %7270 = vpow2.f32 %v3315_v1  ;;  %v3291_v59 = vsub.f32 %v3243_v57, %v3264_v23  ;;  %v3313_v37 = vmul.f32 1.442695, %v3292_v29 }
 0xd02   : > { %7272 = vpow2.f32 %v3317_v11  ;;  %v3278_v32 = vpop.xlane.xlu1 %3277 }
 0xd03   : > { %v10217_v28 = vpop.eup %7264  ;;  %v3311_v2 = vmul.f32 1.442695, %v3291_v59  ;;  %v3298_v9 = vsub.f32 %v10164_v47, %v3278_v32 }
 0xd04   : > { %3335 = vadd.xlane.f32.xlu1 %v10217_v28  ;;  %v3276_v16 = vpop.xlane.xlu0 %3275 }
 0xd05   : > { %7274 = vpow2.f32 %v3311_v2  ;;  %v3325_v60 = vmul.f32 1.442695, %v3298_v9  ;;  %v3297_v1 = vsub.f32 %v10170_v0, %v3276_v16 }
 0xd06   : > { %7276 = vpow2.f32 %v3313_v37  ;;  %v3274_v13 = vpop.xlane.xlu1 %3273 }
 0xd07   : > { %v10220_v10 = vpop.eup %7266  ;;  %v3296_v50 = vsub.f32 %v10176_v19, %v3274_v13  ;;  %v3323_v29 = vmul.f32 1.442695, %v3297_v1 }
 0xd08   : > { %3341 = vadd.xlane.f32.xlu1 %v10220_v10  ;;  %v3272_v25 = vpop.xlane.xlu0 %3271  ;;  %v10223_v55 = vpop.eup %7268 }
 0xd09   : > { %v3295_v12 = vsub.f32 %v10182_v53, %v3272_v25  ;;  %v3321_v11 = vmul.f32 1.442695, %v3296_v50 }
 0xd0a   : > { %v3418_v34 = vpop.permute.xlu1 %3417 }
 0xd0b   : > { %v10225_v3 = vpop.eup %7270  ;;  %v3319_v62 = vmul.f32 1.442695, %v3295_v12  ;;  %v11599_v12 = vld [vmem:[#allocation95_spill] sm:$0xff] }
 0xd0c   : > { %3337 = vadd.xlane.f32.xlu1 %v10223_v55  ;;  %3347 = vadd.xlane.f32.xlu0 %v10225_v3  ;;  %v3284_v57 = vpop.xlane.xlu0 %3283  ;;  %v10229_v18 = vpop.eup %7272 }
 0xd0d   : > { %7278 = vpow2.f32 %v3319_v62  ;;  %v3301_v47 = vsub.f32 %v10188_v45, %v3284_v57 }
 0xd0e   : > { %7280 = vpow2.f32 %v3325_v60 }
 0xd0f   : > { %v10231_v22 = vpop.eup %7274  ;;  %7282 = vpow2.f32 %v3321_v11  ;;  %v3331_v16 = vmul.f32 1.442695, %v3301_v47 }
 0xd10   : > { %3349 = vadd.xlane.f32.xlu0 %v10229_v18  ;;  %3343 = vadd.xlane.f32.xlu1 %v10231_v22  ;;  %v3280_v35 = vpop.xlane.xlu0 %3279  ;;  %v10235_v38 = vpop.eup %7276  ;;  %7284 = vpow2.f32 %v3323_v29 }
 0xd11   : > { %v3299_v59 = vsub.f32 %v10194_v17, %v3280_v35 }
 0xd13   : > { %v3327_v19 = vmul.f32 1.442695, %v3299_v59 }
 0xd14   : > { %3345 = vadd.xlane.f32.xlu0 %v10235_v38  ;;  %v3416_v49 = vpop.permute.xlu0 %3415 }
 0xd15   : > { %6627 = vmatprep.subr.bf16.mxu0 %v3416_v49 }
 0xd16   : > { %6628 = vmatpush3.bf16.msra.mxu0 %v3416_v49  ;;  %v11595_v49 = vld [vmem:[#allocation96_spill] sm:$0xff] }
 0xd17   : > { %6629 = vmatprep.subr.bf16.mxu0 %v3418_v34  ;;  %v10250_v32 = vpop.eup %7278 }
 0xd18   : > { %v10253_v13 = vpop.eup %7280 }
 0xd19   : > { %v10255_v17 = vpop.eup %7282 }
 0xd1a   : > { %6630 = vmatpush3.bf16.msra.mxu0 %v3418_v34  ;;  %v10259_v45 = vpop.eup %7284  ;;  %v11596_v34 = vld [vmem:[#allocation70_spill] sm:$0xff] }
 0xd21   : > { %3421 = vrot.lane.b32.xlu1 %v11593_v58, %s8046_s10  ;;  %v11597_v58 = vpack.c.bf16 %v11595_v49, %v11596_v34 }
 0xd2a   : > { %3419 = vrot.lane.b32.xlu0 %v11594_v31, %s8046_s10  ;;  %v11598_v31 = vld [vmem:[#allocation97_spill] sm:$0xff] }
 0xd2b   : > { %v11600_v9 = vpack.c.bf16 %v11598_v31, %v11599_v12 }
 0xd3b   : > { %v3286_v23 = vpop.xlane.xlu1 %3285 }
 0xd3c   : > { %v3302_v37 = vsub.f32 %v10204_v51, %v3286_v23 }
 0xd3e   : > { %v3333_v0 = vmul.f32 1.442695, %v3302_v37 }
 0xd3f   : > { %v3282_v2 = vpop.xlane.xlu1 %3281 }
 0xd40   : > { %v3300_v53 = vsub.f32 %v10210_v56, %v3282_v2 }
 0xd42   : > { %v3329_v25 = vmul.f32 1.442695, %v3300_v53 }
 0xd44   : > { %7286 = vpow2.f32 %v3329_v25 }
 0xd45   : > { %3351 = vadd.xlane.f32.xlu1 %v10250_v32  ;;  %7288 = vpow2.f32 %v3327_v19 }
 0xd46   : > { %7290 = vpow2.f32 %v3333_v0 }
 0xd47   : > { %7292 = vpow2.f32 %v3331_v16 }
 0xd49   : > { %3353 = vadd.xlane.f32.xlu0 %v10255_v17  ;;  %3357 = vadd.xlane.f32.xlu1 %v10253_v13 }
 0xd4d   : > { %3355 = vadd.xlane.f32.xlu0 %v10259_v45 }
 0xd4e   : > { %v10262_v51 = vpop.eup %7286 }
 0xd4f   : > { %3361 = vadd.xlane.f32.xlu1 %v10262_v51  ;;  %v10265_v56 = vpop.eup %7288 }
 0xd50   : > { %v10268_v57 = vpop.eup %7290 }
 0xd51   : > { %3359 = vadd.xlane.f32.xlu0 %v10265_v56  ;;  %v10271_v35 = vpop.eup %7292 }
 0xd53   : > { %3365 = vadd.xlane.f32.xlu1 %v10268_v57 }
 0xd55   : > { %3363 = vadd.xlane.f32.xlu0 %v10271_v35 }
 0xd64   : > { %3546 = vrot.lane.b32.xlu1 %v11597_v58, %s8046_s10 }
 0xd68   : > { %3568 = vrot.lane.b32.xlu1 %v3054_v54, %s8045_s17 }
 0xd6b   : > { %3544 = vrot.lane.b32.xlu0 %v11600_v9, %s8046_s10 }
 0xd6c   : > { %3570 = vrot.lane.b32.xlu1 %v3055_v27, %s8045_s17 }
 0xd8d   : > { %v3340_v50 = vpop.xlane.xlu1 %3339 }
 0xd91   : > { %v3336_v62 = vpop.xlane.xlu1 %3335 }
 0xd92   : > { %7294 = vrcp.f32 %v3336_v62 }
 0xd95   : > { %v3342_v60 = vpop.xlane.xlu1 %3341 }
 0xd99   : > { %v3338_v1 = vpop.xlane.xlu1 %3337  ;;  %v3348_v11 = vpop.xlane.xlu0 %3347 }
 0xd9a   : > { %7296 = vrcp.f32 %v3338_v1 }
 0xd9b   : > { %7298 = vrcp.f32 %v3342_v60 }
 0xd9c   : > { %7300 = vrcp.f32 %v3340_v50  ;;  %v7295_v23 = vpop.eup %7294 }
 0xd9d   : > { %v3344_v5 = vpop.xlane.xlu1 %3343  ;;  %v3350_v40 = vpop.xlane.xlu0 %3349  ;;  %v3368_v4 = vmul.f32 %v7295_v23, %v10217_v28 }
 0xd9e   : > { %7302 = vrcp.f32 %v3344_v5 }
 0xda1   : > { %v3346_v54 = vpop.xlane.xlu0 %3345  ;;  %v3422_v37 = vpop.permute.xlu1 %3421 }
 0xda2   : > { %7304 = vrcp.f32 %v3346_v54 }
 0xda3   : > { %7306 = vrcp.f32 %v3350_v40 }
 0xda4   : > { %v7297_v29 = vpop.eup %7296  ;;  %7308 = vrcp.f32 %v3348_v11 }
 0xda5   : > { %v7299_v59 = vpop.eup %7298  ;;  %v3420_v52 = vpop.permute.xlu0 %3419  ;;  %v3370_v27 = vmul.f32 %v7297_v29, %v10223_v55 }
 0xda6   : > { %6631 = vmatprep.subr.bf16.mxu0 %v3420_v52  ;;  %v7301_v2 = vpop.eup %7300  ;;  %v3374_v47 = vmul.f32 %v7299_v59, %v10220_v10 }
 0xda7   : > { %6632 = vmatpush3.bf16.msra.mxu0 %v3420_v52  ;;  %v3399_v53 = vpack.c.bf16 %v3370_v27, %v3368_v4  ;;  %v3372_v25 = vmul.f32 %v7301_v2, %v10213_v20 }
 0xda8   : > { %6633 = vmatprep.subr.bf16.mxu0 %v3422_v37  ;;  %v7303_v19 = vpop.eup %7302 }
 0xda9   : > { %6635 = vmatprep.mubr.bf16.mxu0 %v3399_v53  ;;  %v3400_v16 = vpack.c.bf16 %v3374_v47, %v3372_v25  ;;  %v3376_v28 = vmul.f32 %v7303_v19, %v10231_v22  ;;  %v6950_v19 = vld [vmem:[%s8735_s6] sm:$0xff]   ;;  %v6951_v25 = vld [vmem:[%s8735_s6 + $0x8] sm:$0xff]  }
 0xdab   : > { %6634 = vmatpush3.bf16.msra.mxu0 %v3422_v37 }
 0xdac   : > { %v7305_v0 = vpop.eup %7304  ;;  %6651 = vmatprep.subr.bf16.mxu0 %v6950_v19 }
 0xdad   : > { %v7307_v49 = vpop.eup %7306  ;;  %v3378_v55 = vmul.f32 %v7305_v0, %v10235_v38  ;;  %v6954_v0 = vld [vmem:[%s8735_s6 + $0x20] sm:$0xff]  }
 0xdae   : > { %6636 = vmatmul.mubr.bf16.vlgmr.msra.gmra.mrb[80].mxu0 %v3400_v16  ;;  %v7309_v34 = vpop.eup %7308  ;;  %v3382_v31 = vmul.f32 %v7307_v49, %v10229_v18  ;;  %v6957_v16 = vld [vmem:[%s8735_s6 + $0x38] sm:$0xff]  }
 0xdaf   : > { %v3401_v58 = vpack.c.bf16 %v3378_v55, %v3376_v28  ;;  %v3380_v10 = vmul.f32 %v7309_v34, %v10225_v3  ;;  %6652 = vmatpush3.bf16.msra.mxu0 %v6950_v19 }
 0xdb0   : > { %6653 = vmatprep.subr.bf16.mxu0 %v6951_v25 }
 0xdb1   : > { %6639 = vmatprep.mubr.bf16.mxu0 %v3401_v58  ;;  %v3402_v12 = vpack.c.bf16 %v3382_v31, %v3380_v10 }
 0xdb3   : > { %6654 = vmatpush3.bf16.msra.mxu0 %v6951_v25 }
 0xdb6   : > { %6640 = vmatmul.mubr.bf16.gmra.mrb[84].mxu0 %v3402_v12  ;;  %v11601_v12 = vld [vmem:[#allocation100_spill] sm:$0xff] }
 0xdd2   : > { %v3352_v9 = vpop.xlane.xlu1 %3351 }
 0xdd3   : > { %7310 = vrcp.f32 %v3352_v9  ;;  %v11602_v9 = vld [vmem:[#allocation98_spill] sm:$0xff] }
 0xdd6   : > { %v3358_v20 = vpop.xlane.xlu1 %3357  ;;  %v3354_v50 = vpop.xlane.xlu0 %3353 }
 0xdd7   : > { %7312 = vrcp.f32 %v3354_v50 }
 0xdd8   : > { %7314 = vrcp.f32 %v3358_v20  ;;  %v11603_v20 = vpack.c.bf16 %v11601_v12, %v11602_v9  ;;  %v11628_v12 = vld [vmem:[#allocation85_spill] sm:$0xff]  ;;  %v11629_v9 = vld [vmem:[#allocation83_spill] sm:$0xff] }
 0xdda   : > { %v3356_v62 = vpop.xlane.xlu0 %3355 }
 0xddb   : > { %7316 = vrcp.f32 %v3356_v62  ;;  %v11604_v62 = vld [vmem:[#allocation101_spill] sm:$0xff] }
 0xddc   : > { %v3362_v22 = vpop.xlane.xlu1 %3361 }
 0xddd   : > { %7318 = vrcp.f32 %v3362_v22  ;;  %v7311_v60 = vpop.eup %7310  ;;  %v11605_v22 = vld [vmem:[#allocation99_spill] sm:$0xff] }
 0xdde   : > { %v3360_v38 = vpop.xlane.xlu0 %3359  ;;  %v3384_v5 = vmul.f32 %v7311_v60, %v10250_v32 }
 0xddf   : > { %7320 = vrcp.f32 %v3360_v38  ;;  %v11606_v38 = vpack.c.bf16 %v11604_v62, %v11605_v22 }
 0xde0   : > { %v3366_v1 = vpop.xlane.xlu1 %3365 }
 0xde1   : > { %7322 = vrcp.f32 %v3366_v1  ;;  %v7313_v18 = vpop.eup %7312 }
 0xde2   : > { %v3364_v11 = vpop.xlane.xlu0 %3363  ;;  %v7315_v3 = vpop.eup %7314  ;;  %v3386_v40 = vmul.f32 %v7313_v18, %v10255_v17 }
 0xde3   : > { %7324 = vrcp.f32 %v3364_v11  ;;  %v3390_v59 = vmul.f32 %v7315_v3, %v10253_v13  ;;  %v11607_v3 = vld [vmem:[#allocation104_spill] sm:$0xff] }
 0xde4   : > { %v3403_v23 = vpack.c.bf16 %v3386_v40, %v3384_v5  ;;  %v11608_v5 = vld [vmem:[#allocation102_spill] sm:$0xff] }
 0xde5   : > { %v7317_v54 = vpop.eup %7316  ;;  %v11609_v40 = vpack.c.bf16 %v11607_v3, %v11608_v5 }
 0xde6   : > { %v3388_v29 = vmul.f32 %v7317_v54, %v10259_v45  ;;  %6643 = vmatprep.mubr.bf16.mxu0 %v3403_v23  ;;  %v11610_v54 = vld [vmem:[#allocation105_spill] sm:$0xff]  ;;  %v11611_v23 = vld [vmem:[#allocation103_spill] sm:$0xff] }
 0xde7   : > { %v7319_v52 = vpop.eup %7318 }
 0xde8   : > { %v3404_v4 = vpack.c.bf16 %v3390_v59, %v3388_v29  ;;  %v3394_v32 = vmul.f32 %v7319_v52, %v10262_v51  ;;  %v6952_v51 = vld [vmem:[%s8735_s6 + $0x10] sm:$0xff]   ;;  %v11612_v29 = vpack.c.bf16 %v11610_v54, %v11611_v23  ;;  %v11613_v52 = vld [vmem:[#allocation108_spill] sm:$0xff] }
 0xde9   : > { %v7321_v27 = vpop.eup %7320  ;;  %6655 = vmatprep.subr.bf16.mxu0 %v6952_v51  ;;  %v11615_v26 = vpack.c.bf16 %v11613_v52, %v11614_v42  ;;  %v11632_v54 = vld [vmem:[#allocation88_spill] sm:$0xff] }
 0xdea   : > { %6644 = vmatmul.mubr.bf16.gmra.mrb[88].mxu0 %v3404_v4  ;;  %v3392_v2 = vmul.f32 %v7321_v27, %v10265_v56  ;;  %v6953_v56 = vld [vmem:[%s8735_s6 + $0x18] sm:$0xff]  }
 0xdeb   : > { %v7323_v37 = vpop.eup %7322  ;;  %6656 = vmatpush3.bf16.msra.mxu0 %v6952_v51 }
 0xdec   : > { %v3405_v17 = vpack.c.bf16 %v3394_v32, %v3392_v2  ;;  %v3398_v45 = vmul.f32 %v7323_v37, %v10268_v57  ;;  %6657 = vmatprep.subr.bf16.mxu0 %v6953_v56  ;;  %v6955_v57 = vld [vmem:[%s8735_s6 + $0x28] sm:$0xff]   ;;  %v3547_v37 = vpop.permute.xlu1 %3546 }
 0xded   : > { %v7325_v53 = vpop.eup %7324 }
 0xdee   : > { %6647 = vmatprep.mubr.bf16.mxu0 %v3405_v17  ;;  %v3396_v13 = vmul.f32 %v7325_v53, %v10271_v35  ;;  %v6956_v35 = vld [vmem:[%s8735_s6 + $0x30] sm:$0xff]   ;;  %v3545_v53 = vpop.permute.xlu0 %3544 }
 0xdef   : > { %6658 = vmatpush3.bf16.msra.mxu0 %v6953_v56 }
 0xdf0   : > { %v3406_v47 = vpack.c.bf16 %v3398_v45, %v3396_v13  ;;  %6659 = vmatprep.subr.bf16.mxu0 %v6954_v0  ;;  %v3569_v17 = vpop.permute.xlu1 %3568  ;;  %v11619_v45 = vld [vmem:[#allocation82_spill] sm:$0xff] }
 0xdf2   : > { %6648 = vmatmul.mubr.bf16.gmra.mrb[92].mxu0 %v3406_v47  ;;  %v11620_v47 = vld [vmem:[#allocation80_spill] sm:$0xff] }
 0xdf3   : > { %6660 = vmatpush3.bf16.msra.mxu0 %v6954_v0  ;;  %v11621_v19 = vpack.c.bf16 %v11619_v45, %v11620_v47 }
 0xdf4   : > { %6661 = vmatprep.subr.bf16.mxu0 %v6955_v57  ;;  %v3571_v13 = vpop.permute.xlu1 %3570 }
 0xdf5   : > { %v3610_v25 = vsel %vm1671_vm0, %v11621_v19, %v3545_v53  ;;  %v11641_v53 = vld [vmem:[#allocation91_spill] sm:$0xff] }
 0xdf7   : > { %6662 = vmatpush3.bf16.msra.mxu0 %v6955_v57 }
 0xdf8   : > { %6663 = vmatprep.subr.bf16.mxu0 %v6956_v35 }
 0xdfb   : > { %6664 = vmatpush3.bf16.msra.mxu0 %v6956_v35 }
 0xdfc   : > { %6665 = vmatprep.subr.bf16.mxu0 %v6957_v16 }
 0xdff   : > { %6666 = vmatpush3.bf16.msra.mxu0 %v6957_v16 }
 0xe81   : > { %v6637_v49 = vpop.f32.mrb[80].mxu0 }
 0xe82   : > { %v3465_v28 = vpop.f32.mrb[81].mxu0 }
 0xe83   : > { %v6638_v55 = vpop.f32.mrb[82].mxu0 }
 0xe84   : > { %v3529_v34 = vpack.c.bf16 %v6638_v55, %v6637_v49  ;;  %v3468_v58 = vpop.f32.mrb[83].mxu0  ;;  %v11625_v55 = vld [vmem:[#allocation86_spill] sm:$0xff] }
 0xe85   : > { %v3528_v31 = vpack.c.bf16 %v3468_v58, %v3465_v28 }
 0xe86   : > { %3594 = vrot.lane.b32.xlu1 %v3529_v34, %s8044_s7  ;;  %v11626_v34 = vld [vmem:[#allocation84_spill] sm:$0xff] }
 0xe87   : > { %3592 = vrot.lane.b32.xlu0 %v3528_v31, %s8044_s7  ;;  %v11627_v58 = vpack.c.bf16 %v11625_v55, %v11626_v34  ;;  %v11645_v34 = vld [vmem:[#allocation45_spill] sm:$0xff] }
 0xe89   : > { %v6641_v10 = vpop.f32.mrb[84].mxu0 }
 0xe8a   : > { %3550 = vrot.lane.b32.xlu1 %v11603_v20, %s8046_s10  ;;  %v3481_v50 = vpop.f32.mrb[85].mxu0  ;;  %v11630_v20 = vpack.c.bf16 %v11628_v12, %v11629_v9 }
 0xe8b   : > { %3548 = vrot.lane.b32.xlu0 %v11606_v38, %s8046_s10  ;;  %v6642_v60 = vpop.f32.mrb[86].mxu0 }
 0xe8c   : > { %v3531_v1 = vpack.c.bf16 %v6642_v60, %v6641_v10  ;;  %v3484_v18 = vpop.f32.mrb[87].mxu0 }
 0xe8d   : > { %v3530_v11 = vpack.c.bf16 %v3484_v18, %v3481_v50 }
 0xe8e   : > { %3574 = vrot.lane.b32.xlu1 %v3057_v48, %s8045_s17 }
 0xe8f   : > { %3572 = vrot.lane.b32.xlu0 %v3056_v8, %s8045_s17 }
 0xe92   : > { %3598 = vrot.lane.b32.xlu1 %v3531_v1, %s8044_s7 }
 0xe93   : > { %3596 = vrot.lane.b32.xlu0 %v3530_v11, %s8044_s7 }
 0xe96   : > { %3554 = vrot.lane.b32.xlu1 %v11609_v40, %s8046_s10  ;;  %v11631_v40 = vld [vmem:[#allocation90_spill] sm:$0xff] }
 0xe97   : > { %3552 = vrot.lane.b32.xlu0 %v11612_v29, %s8046_s10  ;;  %v11633_v23 = vpack.c.bf16 %v11631_v40, %v11632_v54  ;;  %v11650_v40 = vld [vmem:[#allocation51_spill] sm:$0xff] }
 0xe9a   : > { %3578 = vrot.lane.b32.xlu1 %v3059_v36, %s8045_s17 }
 0xe9b   : > { %3576 = vrot.lane.b32.xlu0 %v3058_v30, %s8045_s17  ;;  %v11618_v30 = vpack.c.bf16 %v11616_v33, %v11617_v61 }
 0xebd   : > { %v6645_v6 = vpop.f32.mrb[88].mxu0 }
 0xebe   : > { %v3497_v44 = vpop.f32.mrb[89].mxu0 }
 0xebf   : > { %v6646_v21 = vpop.f32.mrb[90].mxu0 }
 0xec0   : > { %v3533_v48 = vpack.c.bf16 %v6646_v21, %v6645_v6  ;;  %v3500_v43 = vpop.f32.mrb[91].mxu0  ;;  %v11635_v21 = vld [vmem:[#allocation87_spill] sm:$0xff] }
 0xec1   : > { %v3532_v8 = vpack.c.bf16 %v3500_v43, %v3497_v44  ;;  %v11634_v44 = vld [vmem:[#allocation89_spill] sm:$0xff] }
 0xec2   : > { %3602 = vrot.lane.b32.xlu1 %v3533_v48, %s8044_s7  ;;  %v11636_v48 = vpack.c.bf16 %v11634_v44, %v11635_v21  ;;  %v11653_v21 = vld [vmem:[#allocation50_spill] sm:$0xff] }
 0xec3   : > { %3600 = vrot.lane.b32.xlu0 %v3532_v8, %s8044_s7 }
 0xec5   : > { %v6649_v59 = vpop.f32.mrb[92].mxu0 }
 0xec6   : > { %3558 = vrot.lane.b32.xlu1 %v11615_v26, %s8046_s10  ;;  %v3513_v36 = vpop.f32.mrb[93].mxu0 }
 0xec7   : > { %3556 = vrot.lane.b32.xlu0 %v11618_v30, %s8046_s10  ;;  %v6650_v4 = vpop.f32.mrb[94].mxu0 }
 0xec8   : > { %v3535_v27 = vpack.c.bf16 %v6650_v4, %v6649_v59  ;;  %v3516_v2 = vpop.f32.mrb[95].mxu0  ;;  %v11637_v4 = vld [vmem:[#allocation94_spill] sm:$0xff] }
 0xec9   : > { %v3534_v32 = vpack.c.bf16 %v3516_v2, %v3513_v36 }
 0xeca   : > { %3582 = vrot.lane.b32.xlu1 %v3061_v7, %s8045_s17  ;;  %v11623_v7 = vld [vmem:[#allocation79_spill] sm:$0xff] }
 0xecb   : > { %3580 = vrot.lane.b32.xlu0 %v3060_v15, %s8045_s17  ;;  %v11624_v46 = vpack.c.bf16 %v11622_v41, %v11623_v7  ;;  %v3634_v15 = vsel %vm3632_vm3, %v3610_v25, %v3569_v17  ;;  %v11640_v17 = vld [vmem:[#allocation93_spill] sm:$0xff] }
 0xecc   : > { %v10421_v7 = vld [vmem:[%s761_s2] ss:$0 sm:$0xff] }
 0xecd   : > { %v3613_v63 = vsel %vm1671_vm0, %v11624_v46, %v3547_v37 }
 0xece   : > { %3606 = vrot.lane.b32.xlu1 %v3535_v27, %s8044_s7  ;;  %v3636_v56 = vsel %vm3632_vm3, %v3613_v63, %v3571_v13  ;;  %v11638_v27 = vld [vmem:[#allocation92_spill] sm:$0xff]  ;;  %v11642_v13 = vpack.c.bf16 %v11640_v17, %v11641_v53  ;;  %v11659_v17 = vld [vmem:[#allocation55_spill] sm:$0xff] }
 0xecf   : > { %3604 = vrot.lane.b32.xlu0 %v3534_v32, %s8044_s7  ;;  %v11639_v2 = vpack.c.bf16 %v11637_v4, %v11638_v27 }
 0xef8   : > { %v3595_v39 = vpop.permute.xlu1 %3594 }
 0xef9   : > { %v3593_v51 = vpop.permute.xlu0 %3592  ;;  %v3654_v57 = vsel %vm3649_vm4, %v3636_v56, %v3595_v39 }
 0xefa   : > { %v3651_v0 = vsel %vm3649_vm4, %v3634_v15, %v3593_v51 }
 0xefb   : > { %6667 = vmatprep.mubr.bf16.mxu0 %v3651_v0 }
 0xefc   : > { %v3551_v35 = vpop.permute.xlu1 %3550  ;;  %6668 = vmatmul.mubr.bf16.vlgmr.msra.gmra.mrb[96].mxu0 %v3654_v57 }
 0xefd   : > { %v3549_v16 = vpop.permute.xlu0 %3548  ;;  %v3619_v50 = vsel %vm1671_vm0, %v11630_v20, %v3551_v35 }
 0xefe   : > { %v3616_v31 = vsel %vm1671_vm0, %v11627_v58, %v3549_v16  ;;  %v11643_v16 = vld [vmem:[#allocation46_spill] sm:$0xff] }
 0xf00   : > { %v3575_v49 = vpop.permute.xlu1 %3574 }
 0xf01   : > { %v3573_v28 = vpop.permute.xlu0 %3572  ;;  %v3640_v38 = vsel %vm3632_vm3, %v3619_v50, %v3575_v49 }
 0xf02   : > { %v3638_v62 = vsel %vm3632_vm3, %v3616_v31, %v3573_v28  ;;  %v11644_v28 = vld [vmem:[#allocation48_spill] sm:$0xff]  ;;  %v11646_v31 = vld [vmem:[#allocation47_spill] sm:$0xff] }
 0xf04   : > { %v3599_v10 = vpop.permute.xlu1 %3598 }
 0xf05   : > { %v3597_v22 = vpop.permute.xlu0 %3596  ;;  %v3660_v1 = vsel %vm3649_vm4, %v3640_v38, %v3599_v10 }
 0xf06   : > { %v3657_v60 = vsel %vm3649_vm4, %v3638_v62, %v3597_v22 }
 0xf07   : > { %6671 = vmatprep.mubr.bf16.mxu0 %v3657_v60 }
 0xf08   : > { %6672 = vmatmul.mubr.bf16.gmra.mrb[100].mxu0 %v3660_v1  ;;  %v3555_v18 = vpop.permute.xlu1 %3554 }
 0xf09   : > { %v3553_v11 = vpop.permute.xlu0 %3552  ;;  %v3625_v43 = vsel %vm1671_vm0, %v11636_v48, %v3555_v18 }
 0xf0a   : > { %v3622_v29 = vsel %vm1671_vm0, %v11633_v23, %v3553_v11  ;;  %v11651_v23 = vld [vmem:[#allocation52_spill] sm:$0xff] }
 0xf0c   : > { %v3579_v3 = vpop.permute.xlu1 %3578 }
 0xf0d   : > { %v3577_v5 = vpop.permute.xlu0 %3576  ;;  %v3644_v52 = vsel %vm3632_vm3, %v3625_v43, %v3579_v3 }
 0xf0e   : > { %v3642_v8 = vsel %vm3632_vm3, %v3622_v29, %v3577_v5 }
 0xf34   : > { %v3603_v6 = vpop.permute.xlu1 %3602 }
 0xf35   : > { %v3601_v59 = vpop.permute.xlu0 %3600  ;;  %v3666_v26 = vsel %vm3649_vm4, %v3644_v52, %v3603_v6  ;;  %v11652_v6 = vld [vmem:[#allocation49_spill] sm:$0xff] }
 0xf36   : > { %v3663_v42 = vsel %vm3649_vm4, %v3642_v8, %v3601_v59 }
 0xf37   : > { %6675 = vmatprep.mubr.bf16.mxu0 %v3663_v42 }
 0xf38   : > { %v3559_v36 = vpop.permute.xlu1 %3558  ;;  %6676 = vmatmul.mubr.bf16.gmra.mrb[104].mxu0 %v3666_v26 }
 0xf39   : > { %v3557_v33 = vpop.permute.xlu0 %3556  ;;  %v3631_v45 = vsel %vm1671_vm0, %v11642_v13, %v3559_v36  ;;  %v11660_v13 = vld [vmem:[#allocation56_spill] sm:$0xff] }
 0xf3a   : > { %v3628_v32 = vsel %vm1671_vm0, %v11639_v2, %v3557_v33 }
 0xf3c   : > { %v3583_v61 = vpop.permute.xlu1 %3582 }
 0xf3d   : > { %v3581_v30 = vpop.permute.xlu0 %3580  ;;  %v3648_v25 = vsel %vm3632_vm3, %v3631_v45, %v3583_v61 }
 0xf3e   : > { %v3646_v47 = vsel %vm3632_vm3, %v3628_v32, %v3581_v30 }
 0xf40   : > { %v3607_v37 = vpop.permute.xlu1 %3606 }
 0xf41   : > { %v3605_v19 = vpop.permute.xlu0 %3604  ;;  %v3672_v41 = vsel %vm3649_vm4, %v3648_v25, %v3607_v37  ;;  %v11662_v25 = vld [vmem:[#allocation54_spill] sm:$0xff] }
 0xf42   : > { %v3669_v39 = vsel %vm3649_vm4, %v3646_v47, %v3605_v19  ;;  %v11661_v47 = vld [vmem:[#allocation53_spill] sm:$0xff] }
 0xf43   : > { %6679 = vmatprep.mubr.bf16.mxu0 %v3669_v39 }
 0xf44   : > { %6680 = vmatmul.mubr.bf16.gmra.mrb[108].mxu0 %v3672_v41 }
 0xf45   : > { %4471 = vmatprep.mubr.bf16.mxu0 %v11585_v14 }
 0xfcf   : > { %v6669_v46 = vpop.f32.mrb[96].mxu0 }
 0xfd0   : > { %v3788_v63 = vadd.f32 %v6669_v46, %v10421_v7  ;;  %v3779_v15 = vpop.f32.mrb[97].mxu0 }
 0xfd1   : > { %v3780_v51 = vadd.f32 %v10421_v7, %v3779_v15  ;;  %v6670_v56 = vpop.f32.mrb[98].mxu0 }
 0xfd2   : > { %v3791_v0 = vadd.f32 %v6670_v56, %v10421_v7  ;;  %v3782_v57 = vpop.f32.mrb[99].mxu0  ;;  %v3844_v49 = vadd.f32 %v3788_v63, %v11643_v16 }
 0xfd3   : > { %v3783_v35 = vadd.f32 %v10421_v7, %v3782_v57  ;;  %v3842_v58 = vadd.f32 %v3780_v51, %v11645_v34 }
 0xfd4   : > { %v3845_v55 = vadd.f32 %v3791_v0, %v11644_v28 }
 0xfd5   : > { %v3843_v10 = vadd.f32 %v3783_v35, %v11646_v31 }
 0xfd6   : > { %v3859_v12 = vpack.c.bf16 %v3845_v55, %v3844_v49 }
 0xfd7   : > { %v3858_v9 = vpack.c.bf16 %v3843_v10, %v3842_v58  ;;  %v11667_v58 = vld [vmem:[#allocation59_spill] sm:$0xff]  ;;  %v11668_v10 = vld [vmem:[#allocation60_spill] sm:$0xff] }
 0xfd8   : > { %v10439_v18 = vunpack.c.l.bf16 %v3859_v12  ;;  %v10448_v43 = vunpack.c.h.bf16 %v3859_v12 }
 0xfd9   : > { %v10431_v20 = vunpack.c.h.bf16 %v3858_v9  ;;  %v10433_v50 = vunpack.c.l.bf16 %v3858_v9  ;;  %v11669_v9 = vld [vmem:[#allocation57_spill] sm:$0xff] }
 0xfda   : > { %11649 = vst [vmem:[#allocation71_spill] sm:$0xff] %v10439_v18  ;;  %11654 = vst [vmem:[#allocation74_spill] sm:$0xff] %v10448_v43 }
 0xfdb   : > { %11647 = vst [vmem:[#allocation69_spill] sm:$0xff] %v10431_v20  ;;  %11648 = vst [vmem:[#allocation72_spill] sm:$0xff] %v10433_v50  ;;  %3886 = vadd.xlane.f32.xlu1 %v10431_v20  ;;  %3884 = vadd.xlane.f32.xlu0 %v10433_v50  ;;  %v6673_v62 = vpop.f32.mrb[100].mxu0 }
 0xfdc   : > { %v3804_v22 = vadd.f32 %v6673_v62, %v10421_v7  ;;  %v3795_v38 = vpop.f32.mrb[101].mxu0 }
 0xfdd   : > { %v3796_v60 = vadd.f32 %v10421_v7, %v3795_v38  ;;  %v6674_v1 = vpop.f32.mrb[102].mxu0 }
 0xfde   : > { %v3807_v11 = vadd.f32 %v6674_v1, %v10421_v7  ;;  %v3798_v3 = vpop.f32.mrb[103].mxu0  ;;  %v3848_v54 = vadd.f32 %v3804_v22, %v11650_v40  ;;  %v11670_v22 = vld [vmem:[#allocation58_spill] sm:$0xff] }
 0xfdf   : > { %v3799_v5 = vadd.f32 %v10421_v7, %v3798_v3  ;;  %3888 = vadd.xlane.f32.xlu0 %v10439_v18  ;;  %v3846_v44 = vadd.f32 %v3796_v60, %v11652_v6  ;;  %v6958_v40 = vld [vmem:[%s8744_s28] ss:$16 sps:$4 sm:$0xff]   ;;  %v6966_v6 = vld [vmem:[%s8744_s28 + $0x24] ss:$16 sps:$4 sm:$0xff]  }
 0xfe0   : > { %v3849_v29 = vadd.f32 %v3807_v11, %v11651_v23  ;;  %v6961_v23 = vld [vmem:[%s8744_s28 + $0x8] ss:$16 sps:$4 sm:$0xff]  }
 0xfe1   : > { %v3847_v48 = vadd.f32 %v3799_v5, %v11653_v21  ;;  %v6964_v21 = vld [vmem:[%s8744_s28 + $0x20] ss:$16 sps:$4 sm:$0xff]  }
 0xfe2   : > { %v3861_v8 = vpack.c.bf16 %v3849_v29, %v3848_v54  ;;  %v6960_v54 = vld [vmem:[%s8744_s28 + $0x4] ss:$16 sps:$4 sm:$0xff]   ;;  %v6963_v29 = vld [vmem:[%s8744_s28 + $0xc] ss:$16 sps:$4 sm:$0xff]  }
 0xfe3   : > { %v3860_v59 = vpack.c.bf16 %v3847_v48, %v3846_v44  ;;  %3890 = vadd.xlane.f32.xlu0 %v10448_v43  ;;  %4326 = vmatprep.subr.bf16.mxu1 %v6960_v54  ;;  %v6969_v44 = vld [vmem:[%s8744_s28 + $0x2c] ss:$16 sps:$4 sm:$0xff]   ;;  %v6967_v48 = vld [vmem:[%s8744_s28 + $0x28] ss:$16 sps:$4 sm:$0xff]  }
 0xfe4   : > { %v10457_v26 = vunpack.c.h.bf16 %v3861_v8  ;;  %v10459_v36 = vunpack.c.l.bf16 %v3861_v8  ;;  %4439 = vmatprep.subr.bf16.mxu0 %v6963_v29  ;;  %4327 = vmatpush1.bf16.msra.mxu1 %v6958_v40  ;;  %v6972_v8 = vld [vmem:[%s8744_s28 + $0x44] ss:$16 sps:$4 sm:$0xff]   ;;  %v6976_v40 = vld [vmem:[%s8744_s28 + $0x60] ss:$16 sps:$4 sm:$0xff]   ;;  %v6979_v54 = vld [vmem:[%s8744_s28 + $0x68] ss:$16 sps:$4 sm:$0xff]  }
 0xfe5   : > { %v10451_v52 = vunpack.c.h.bf16 %v3860_v59  ;;  %v10453_v42 = vunpack.c.l.bf16 %v3860_v59  ;;  %4440 = vmatpush1.bf16.msra.mxu0 %v6961_v23  ;;  %4328 = vmatprep.subr.bf16.mxu1 %v6966_v6  ;;  %v6975_v59 = vld [vmem:[%s8744_s28 + $0x4c] ss:$16 sps:$4 sm:$0xff]   ;;  %v6984_v23 = vld [vmem:[%s8744_s28 + $0x84] ss:$16 sps:$4 sm:$0xff]   ;;  %v6982_v6 = vld [vmem:[%s8744_s28 + $0x80] ss:$16 sps:$4 sm:$0xff]  }
 0xfe6   : > { %11657 = vst [vmem:[#allocation64_spill] sm:$0xff] %v10457_v26  ;;  %11658 = vst [vmem:[#allocation61_spill] sm:$0xff] %v10459_v36  ;;  %4441 = vmatprep.subr.bf16.mxu0 %v6969_v44  ;;  %v6987_v29 = vld [vmem:[%s8744_s28 + $0x8c] ss:$16 sps:$4 sm:$0xff]   ;;  %v6985_v44 = vld [vmem:[%s8744_s28 + $0x88] ss:$16 sps:$4 sm:$0xff]  }
 0xfe7   : > { %11655 = vst [vmem:[#allocation73_spill] sm:$0xff] %v10451_v52  ;;  %11656 = vst [vmem:[#allocation75_spill] sm:$0xff] %v10453_v42  ;;  %3894 = vadd.xlane.f32.xlu1 %v10451_v52  ;;  %3892 = vadd.xlane.f32.xlu0 %v10453_v42 }
 0xfe8   : > { %4329 = vmatpush1.bf16.msra.mxu1 %v6964_v21  ;;  %v6990_v21 = vld [vmem:[%s8744_s28 + $0xa4] ss:$16 sps:$4 sm:$0xff]  }
 0xfe9   : > { %4442 = vmatpush1.bf16.msra.mxu0 %v6967_v48  ;;  %4330 = vmatprep.subr.bf16.mxu1 %v6972_v8  ;;  %v6993_v48 = vld [vmem:[%s8744_s28 + $0xac] ss:$16 sps:$4 sm:$0xff]   ;;  %v6988_v8 = vld [vmem:[%s8744_s28 + $0xa0] ss:$16 sps:$4 sm:$0xff]  }
 0xfea   : > { %4443 = vmatprep.subr.bf16.mxu0 %v6975_v59  ;;  %v6991_v59 = vld [vmem:[%s8744_s28 + $0xa8] ss:$16 sps:$4 sm:$0xff]  }
 0xfeb   : > { %3898 = vadd.xlane.f32.xlu1 %v10457_v26  ;;  %3896 = vadd.xlane.f32.xlu0 %v10459_v36 }
0x100b   : > { %v6677_v33 = vpop.f32.mrb[104].mxu0 }
0x100c   : > { %v3820_v61 = vadd.f32 %v6677_v33, %v10421_v7  ;;  %v3811_v30 = vpop.f32.mrb[105].mxu0  ;;  %v6970_v33 = vld [vmem:[%s8744_s28 + $0x40] ss:$16 sps:$4 sm:$0xff]  }
0x100d   : > { %v3812_v4 = vadd.f32 %v10421_v7, %v3811_v30  ;;  %v6678_v27 = vpop.f32.mrb[106].mxu0  ;;  %4331 = vmatpush1.bf16.msra.mxu1 %v6970_v33  ;;  %v6996_v33 = vld [vmem:[%s8744_s28 + $0xc4] ss:$16 sps:$4 sm:$0xff]  }
0x100e   : > { %v3823_v2 = vadd.f32 %v6678_v27, %v10421_v7  ;;  %v3814_v32 = vpop.f32.mrb[107].mxu0  ;;  %v3852_v53 = vadd.f32 %v3820_v61, %v11659_v17  ;;  %v6973_v61 = vld [vmem:[%s8744_s28 + $0x48] ss:$16 sps:$4 sm:$0xff]  }
0x100f   : > { %v3815_v37 = vadd.f32 %v10421_v7, %v3814_v32  ;;  %v3850_v19 = vadd.f32 %v3812_v4, %v11661_v47  ;;  %4444 = vmatpush1.bf16.msra.mxu0 %v6973_v61  ;;  %v6999_v61 = vld [vmem:[%s8744_s28 + $0xcc] ss:$16 sps:$4 sm:$0xff]  }
0x1010   : > { %v3853_v45 = vadd.f32 %v3823_v2, %v11660_v13 }
0x1011   : > { %v3851_v39 = vadd.f32 %v3815_v37, %v11662_v25 }
0x1012   : > { %v3863_v41 = vpack.c.bf16 %v3853_v45, %v3852_v53 }
0x1013   : > { %v3862_v46 = vpack.c.bf16 %v3851_v39, %v3850_v19 }
0x1014   : > { %v10479_v16 = vunpack.c.h.bf16 %v3863_v41  ;;  %v10481_v49 = vunpack.c.l.bf16 %v3863_v41 }
0x1015   : > { %v10471_v63 = vunpack.c.h.bf16 %v3862_v46  ;;  %v10473_v15 = vunpack.c.l.bf16 %v3862_v46 }
0x1016   : > { %11665 = vst [vmem:[#allocation76_spill] sm:$0xff] %v10479_v16  ;;  %11666 = vst [vmem:[#allocation62_spill] sm:$0xff] %v10481_v49 }
0x1017   : > { %11663 = vst [vmem:[#allocation67_spill] sm:$0xff] %v10471_v63  ;;  %11664 = vst [vmem:[#allocation68_spill] sm:$0xff] %v10473_v15  ;;  %3902 = vadd.xlane.f32.xlu1 %v10471_v63  ;;  %3900 = vadd.xlane.f32.xlu0 %v10473_v15  ;;  %v6681_v51 = vpop.f32.mrb[108].mxu0 }
0x1018   : > { %v3836_v56 = vadd.f32 %v6681_v51, %v10421_v7  ;;  %v3827_v0 = vpop.f32.mrb[109].mxu0 }
0x1019   : > { %v3828_v57 = vadd.f32 %v10421_v7, %v3827_v0  ;;  %v6682_v35 = vpop.f32.mrb[110].mxu0 }
0x101a   : > { %v3839_v28 = vadd.f32 %v6682_v35, %v10421_v7  ;;  %v3830_v55 = vpop.f32.mrb[111].mxu0  ;;  %v3856_v31 = vadd.f32 %v3836_v56, %v11667_v58 }
0x101b   : > { %v3831_v34 = vadd.f32 %v10421_v7, %v3830_v55  ;;  %3906 = vadd.xlane.f32.xlu1 %v10479_v16  ;;  %3904 = vadd.xlane.f32.xlu0 %v10481_v49  ;;  %v3854_v62 = vadd.f32 %v3828_v57, %v11669_v9 }
0x101c   : > { %v3857_v12 = vadd.f32 %v3839_v28, %v11668_v10 }
0x101d   : > { %v3855_v38 = vadd.f32 %v3831_v34, %v11670_v22 }
0x101e   : > { %v3865_v60 = vpack.c.bf16 %v3857_v12, %v3856_v31 }
0x101f   : > { %v3864_v7 = vpack.c.bf16 %v3855_v38, %v3854_v62 }
0x1020   : > { %v10497_v3 = vunpack.c.h.bf16 %v3865_v60  ;;  %v10499_v5 = vunpack.c.l.bf16 %v3865_v60  ;;  %v6978_v60 = vld [vmem:[%s8744_s28 + $0x64] ss:$16 sps:$4 sm:$0xff]  }
0x1021   : > { %v10491_v1 = vunpack.c.h.bf16 %v3864_v7  ;;  %v10493_v11 = vunpack.c.l.bf16 %v3864_v7  ;;  %v6981_v7 = vld [vmem:[%s8744_s28 + $0x6c] ss:$16 sps:$4 sm:$0xff]   ;;  %4332 = vmatprep.subr.bf16.mxu1 %v6978_v60 }
0x1022   : > { %11673 = vst [vmem:[#allocation78_spill] sm:$0xff] %v10497_v3  ;;  %11674 = vst [vmem:[#allocation65_spill] sm:$0xff] %v10499_v5  ;;  %4445 = vmatprep.subr.bf16.mxu0 %v6981_v7  ;;  %4333 = vmatpush1.bf16.msra.mxu1 %v6976_v40 }
0x1023   : > { %11671 = vst [vmem:[#allocation63_spill] sm:$0xff] %v10491_v1  ;;  %11672 = vst [vmem:[#allocation77_spill] sm:$0xff] %v10493_v11  ;;  %3910 = vadd.xlane.f32.xlu1 %v10491_v1  ;;  %3908 = vadd.xlane.f32.xlu0 %v10493_v11 }
0x1024   : > { %4446 = vmatpush1.bf16.msra.mxu0 %v6979_v54  ;;  %4334 = vmatprep.subr.bf16.mxu1 %v6984_v23 }
0x1025   : > { %4447 = vmatprep.subr.bf16.mxu0 %v6987_v29 }
0x1026   : > { %4335 = vmatpush1.bf16.msra.mxu1 %v6982_v6 }
0x1027   : > { %3914 = vadd.xlane.f32.xlu1 %v10497_v3  ;;  %3912 = vadd.xlane.f32.xlu0 %v10499_v5 }
0x1028   : > { %4448 = vmatpush1.bf16.msra.mxu0 %v6985_v44  ;;  %4336 = vmatprep.subr.bf16.mxu1 %v6990_v21 }
0x1029   : > { %4449 = vmatprep.subr.bf16.mxu0 %v6993_v48 }
0x102a   : > { %4337 = vmatpush1.bf16.msra.mxu1 %v6988_v8 }
0x102b   : > { %4338 = vmatprep.subr.bf16.mxu1 %v6996_v33 }
0x102c   : > { %4450 = vmatpush1.bf16.msra.mxu0 %v6991_v59 }
0x102d   : > { %4451 = vmatprep.subr.bf16.mxu0 %v6999_v61 }
0x1068   : > { %v3887_v30 = vpop.xlane.xlu1 %3886  ;;  %v3885_v4 = vpop.xlane.xlu0 %3884 }
0x1069   : > { %v3917_v27 = vmul.f32 0.0078125, %v3887_v30  ;;  %v3916_v2 = vmul.f32 0.0078125, %v3885_v4  ;;  %v6994_v30 = vld [vmem:[%s8744_s28 + $0xc0] ss:$16 sps:$4 sm:$0xff]   ;;  %v6997_v4 = vld [vmem:[%s8744_s28 + $0xc8] ss:$16 sps:$4 sm:$0xff]  }
0x106a   : > { %4339 = vmatpush1.bf16.msra.mxu1 %v6994_v30  ;;  %4452 = vmatpush1.bf16.msra.mxu0 %v6997_v4  ;;  %v7006_v30 = vld [vmem:[%s8754_s21 + $0x40] sm:$0xff]  }
0x106b   : > { %v10516_v32 = vsub.f32 %v10431_v20, %v3917_v27  ;;  %v10519_v37 = vsub.f32 %v10433_v50, %v3916_v2  ;;  %v7002_v27 = vld [vmem:[%s8744_s28 + $0xe4] ss:$16 sps:$4 sm:$0xff]   ;;  %v7005_v2 = vld [vmem:[%s8744_s28 + $0xec] ss:$16 sps:$4 sm:$0xff]  }
0x106c   : > { %v3889_v17 = vpop.xlane.xlu0 %3888  ;;  %4340 = vmatprep.subr.bf16.mxu1 %v7002_v27  ;;  %4453 = vmatprep.subr.bf16.mxu0 %v7005_v2  ;;  %v10617_v4 = vld [vmem:[%s8754_s21 + $0xc0] sm:$0xff]  }
0x106d   : > { %v3918_v53 = vmul.f32 0.0078125, %v3889_v17  ;;  %v3949_v13 = vmul.f32 %v10516_v32, %v10516_v32  ;;  %v3948_v45 = vmul.f32 %v10519_v37, %v10519_v37  ;;  %v7000_v17 = vld [vmem:[%s8744_s28 + $0xe0] ss:$16 sps:$4 sm:$0xff]  }
0x106e   : > { %4341 = vmatpush1.bf16.msra.mxu1 %v7000_v17 }
0x106f   : > { %v10526_v47 = vsub.f32 %v10439_v18, %v3918_v53  ;;  %3966 = vadd.xlane.f32.xlu1 %v3949_v13  ;;  %3964 = vadd.xlane.f32.xlu0 %v3948_v45  ;;  %v7003_v53 = vld [vmem:[%s8744_s28 + $0xe8] ss:$16 sps:$4 sm:$0xff]  }
0x1070   : > { %v3891_v19 = vpop.xlane.xlu0 %3890  ;;  %4454 = vmatpush1.bf16.msra.mxu0 %v7003_v53  ;;  %6235 = vmatprep.subr.bf16.mxu1 %v7006_v30 }
0x1071   : > { %v3919_v25 = vmul.f32 0.0078125, %v3891_v19  ;;  %v3950_v39 = vmul.f32 %v10526_v47, %v10526_v47  ;;  %6299 = vmatprep.subr.bf16.mxu0 %v10617_v4 }
0x1073   : > { %v10531_v41 = vsub.f32 %v10448_v43, %v3919_v25  ;;  %3968 = vadd.xlane.f32.xlu0 %v3950_v39 }
0x1074   : > { %v3895_v46 = vpop.xlane.xlu1 %3894  ;;  %v3893_v51 = vpop.xlane.xlu0 %3892 }
0x1075   : > { %v3921_v56 = vmul.f32 0.0078125, %v3895_v46  ;;  %v3920_v0 = vmul.f32 0.0078125, %v3893_v51  ;;  %v3951_v57 = vmul.f32 %v10531_v41, %v10531_v41 }
0x1077   : > { %v10536_v35 = vsub.f32 %v10451_v52, %v3921_v56  ;;  %v10539_v28 = vsub.f32 %v10453_v42, %v3920_v0  ;;  %3970 = vadd.xlane.f32.xlu1 %v3951_v57 }
0x1078   : > { %v3899_v55 = vpop.xlane.xlu1 %3898  ;;  %v3897_v34 = vpop.xlane.xlu0 %3896 }
0x1079   : > { %v3923_v58 = vmul.f32 0.0078125, %v3899_v55  ;;  %v3922_v31 = vmul.f32 0.0078125, %v3897_v34  ;;  %v3953_v10 = vmul.f32 %v10536_v35, %v10536_v35  ;;  %v3952_v12 = vmul.f32 %v10539_v28, %v10539_v28 }
0x107b   : > { %v10546_v9 = vsub.f32 %v10457_v26, %v3923_v58  ;;  %v10549_v62 = vsub.f32 %v10459_v36, %v3922_v31  ;;  %3974 = vadd.xlane.f32.xlu1 %v3953_v10  ;;  %3972 = vadd.xlane.f32.xlu0 %v3952_v12 }
0x107d   : > { %v3955_v22 = vmul.f32 %v10546_v9, %v10546_v9  ;;  %v3954_v38 = vmul.f32 %v10549_v62, %v10549_v62 }
0x107f   : > { %3978 = vadd.xlane.f32.xlu1 %v3955_v22  ;;  %3976 = vadd.xlane.f32.xlu0 %v3954_v38 }
0x10a4   : > { %v3903_v13 = vpop.xlane.xlu1 %3902  ;;  %v3901_v45 = vpop.xlane.xlu0 %3900 }
0x10a5   : > { %v3925_v19 = vmul.f32 0.0078125, %v3903_v13  ;;  %v3924_v25 = vmul.f32 0.0078125, %v3901_v45 }
0x10a7   : > { %v10576_v39 = vsub.f32 %v10471_v63, %v3925_v19  ;;  %v10579_v46 = vsub.f32 %v10473_v15, %v3924_v25 }
0x10a8   : > { %v3907_v51 = vpop.xlane.xlu1 %3906  ;;  %v3905_v56 = vpop.xlane.xlu0 %3904 }
0x10a9   : > { %v3927_v0 = vmul.f32 0.0078125, %v3907_v51  ;;  %v3926_v57 = vmul.f32 0.0078125, %v3905_v56  ;;  %v3957_v55 = vmul.f32 %v10576_v39, %v10576_v39  ;;  %v3956_v34 = vmul.f32 %v10579_v46, %v10579_v46 }
0x10ab   : > { %v10586_v58 = vsub.f32 %v10479_v16, %v3927_v0  ;;  %v10589_v31 = vsub.f32 %v10481_v49, %v3926_v57  ;;  %3982 = vadd.xlane.f32.xlu1 %v3957_v55  ;;  %3980 = vadd.xlane.f32.xlu0 %v3956_v34 }
0x10ad   : > { %v3959_v10 = vmul.f32 %v10586_v58, %v10586_v58  ;;  %v3958_v12 = vmul.f32 %v10589_v31, %v10589_v31 }
0x10af   : > { %3986 = vadd.xlane.f32.xlu1 %v3959_v10  ;;  %3984 = vadd.xlane.f32.xlu0 %v3958_v12 }
0x10b0   : > { %v3911_v22 = vpop.xlane.xlu1 %3910  ;;  %v3909_v38 = vpop.xlane.xlu0 %3908 }
0x10b1   : > { %v3929_v60 = vmul.f32 0.0078125, %v3911_v22  ;;  %v3928_v7 = vmul.f32 0.0078125, %v3909_v38  ;;  %v10622_v38 = vld [vmem:[%s718_s1] ss:$0 sm:$0xff] }
0x10b3   : > { %v10596_v40 = vsub.f32 %v10491_v1, %v3929_v60  ;;  %v10599_v54 = vsub.f32 %v10493_v11, %v3928_v7 }
0x10b4   : > { %v3915_v23 = vpop.xlane.xlu1 %3914  ;;  %v3913_v29 = vpop.xlane.xlu0 %3912 }
0x10b5   : > { %v3931_v6 = vmul.f32 0.0078125, %v3915_v23  ;;  %v3930_v44 = vmul.f32 0.0078125, %v3913_v29  ;;  %v3961_v21 = vmul.f32 %v10596_v40, %v10596_v40  ;;  %v3960_v48 = vmul.f32 %v10599_v54, %v10599_v54 }
0x10b7   : > { %v10606_v8 = vsub.f32 %v10497_v3, %v3931_v6  ;;  %v10609_v59 = vsub.f32 %v10499_v5, %v3930_v44  ;;  %3990 = vadd.xlane.f32.xlu1 %v3961_v21  ;;  %3988 = vadd.xlane.f32.xlu0 %v3960_v48 }
0x10b9   : > { %v3963_v33 = vmul.f32 %v10606_v8, %v10606_v8  ;;  %v3962_v61 = vmul.f32 %v10609_v59, %v10609_v59 }
0x10bb   : > { %3994 = vadd.xlane.f32.xlu1 %v3963_v33  ;;  %3992 = vadd.xlane.f32.xlu0 %v3962_v61  ;;  %v10628_v61 = vld [vmem:[%s11675_s14] ss:$0 sm:$0xff] }
0x10fc   : > { %v3967_v27 = vpop.xlane.xlu1 %3966  ;;  %v3965_v2 = vpop.xlane.xlu0 %3964 }
0x10fd   : > { %v3997_v17 = vmul.f32 0.0078125, %v3967_v27  ;;  %v3996_v53 = vmul.f32 0.0078125, %v3965_v2 }
0x10ff   : > { %v4013_v13 = vadd.f32 1e-05, %v3997_v17  ;;  %v4012_v45 = vadd.f32 1e-05, %v3996_v53 }
0x1100   : > { %v3969_v19 = vpop.xlane.xlu0 %3968 }
0x1101   : > { %7326 = vrsqrt.f32 %v4013_v13  ;;  %v3998_v25 = vmul.f32 0.0078125, %v3969_v19 }
0x1102   : > { %7328 = vrsqrt.f32 %v4012_v45 }
0x1103   : > { %v4014_v51 = vadd.f32 1e-05, %v3998_v25  ;;  %v7007_v25 = vld [vmem:[%s8754_s21] sm:$0xff]  }
0x1104   : > { %v3971_v56 = vpop.xlane.xlu1 %3970 }
0x1105   : > { %7330 = vrsqrt.f32 %v4014_v51  ;;  %v3999_v0 = vmul.f32 0.0078125, %v3971_v56  ;;  %v10637_v51 = vld [vmem:[%s8754_s21 + $0x80] sm:$0xff]  }
0x1107   : > { %v4015_v57 = vadd.f32 1e-05, %v3999_v0 }
0x1108   : > { %v3975_v55 = vpop.xlane.xlu1 %3974  ;;  %v3973_v34 = vpop.xlane.xlu0 %3972 }
0x1109   : > { %7332 = vrsqrt.f32 %v4015_v57  ;;  %v4001_v10 = vmul.f32 0.0078125, %v3975_v55  ;;  %v4000_v12 = vmul.f32 0.0078125, %v3973_v34  ;;  %v7010_v57 = vld [vmem:[%s8754_s21 + $0x48] sm:$0xff]  }
0x110a   : > { %v10643_v55 = vld [vmem:[%s8754_s21 + $0xc8] sm:$0xff]  }
0x110b   : > { %v7327_v22 = vpop.eup %7326  ;;  %v4017_v60 = vadd.f32 1e-05, %v4001_v10  ;;  %v4016_v7 = vadd.f32 1e-05, %v4000_v12  ;;  %v7012_v10 = vld [vmem:[%s8754_s21 + $0x8] sm:$0xff]  }
0x110c   : > { %v7329_v23 = vpop.eup %7328  ;;  %v4045_v29 = vmul.f32 %v7327_v22, %v10516_v32  ;;  %v3979_v6 = vpop.xlane.xlu1 %3978  ;;  %v10651_v12 = vld [vmem:[%s8754_s21 + $0x88] sm:$0xff]  }
0x110d   : > { %v3977_v44 = vpop.xlane.xlu0 %3976  ;;  %v4044_v21 = vmul.f32 %v7329_v23, %v10519_v37  ;;  %7334 = vrsqrt.f32 %v4017_v60  ;;  %v4003_v48 = vmul.f32 0.0078125, %v3979_v6 }
0x110e   : > { %v4002_v33 = vmul.f32 0.0078125, %v3977_v44  ;;  %v4067_v30 = vmul.f32 %v10622_v38, %v4045_v29  ;;  %7336 = vrsqrt.f32 %v4016_v7 }
0x110f   : > { %v7331_v27 = vpop.eup %7330  ;;  %v4066_v32 = vmul.f32 %v10622_v38, %v4044_v21  ;;  %v4019_v2 = vadd.f32 1e-05, %v4003_v48 }
0x1110   : > { %v4018_v17 = vadd.f32 1e-05, %v4002_v33  ;;  %v4089_v37 = vadd.f32 %v10628_v61, %v4067_v30  ;;  %v4046_v53 = vmul.f32 %v7331_v27, %v10526_v47 }
0x1111   : > { %7338 = vrsqrt.f32 %v4019_v2  ;;  %v4088_v13 = vadd.f32 %v10628_v61, %v4066_v32 }
0x1112   : > { %7340 = vrsqrt.f32 %v4018_v17  ;;  %v4068_v0 = vmul.f32 %v10622_v38, %v4046_v53 }
0x1113   : > { %v7333_v45 = vpop.eup %7332  ;;  %v4104_v19 = vpack.c.bf16 %v4089_v37, %v4088_v13 }
0x1114   : > { %v4047_v56 = vmul.f32 %v7333_v45, %v10531_v41  ;;  %v4090_v22 = vadd.f32 %v10628_v61, %v4068_v0 }
0x1115   : > { %4359 = vmatmul.mubr.bf16.vlgmr.msra.gmra.mrb[80].mxu1 %v4104_v19  ;;  %4472 = vmatmul.mubr.bf16.vlgmr.msra.gmra.mrb[112].mxu0 %v4104_v19 }
0x1116   : > { %4368 = vmatprep.mubr.bf16.mxu1 %v11585_v14  ;;  %4481 = vmatprep.mubr.bf16.mxu0 %v11585_v14  ;;  %v4069_v47 = vmul.f32 %v10622_v38, %v4047_v56 }
0x1117   : > { %v7335_v34 = vpop.eup %7334  ;;  %6236 = vmatpush3.bf16.msra.mxu1 %v7007_v25  ;;  %6300 = vmatpush3.bf16.msra.mxu0 %v10637_v51 }
0x1118   : > { %v7337_v41 = vpop.eup %7336  ;;  %v4091_v60 = vadd.f32 %v10628_v61, %v4069_v47  ;;  %v4049_v7 = vmul.f32 %v7335_v34, %v10536_v35  ;;  %6237 = vmatprep.subr.bf16.mxu1 %v7010_v57  ;;  %6301 = vmatprep.subr.bf16.mxu0 %v10643_v55 }
0x1119   : > { %v4048_v23 = vmul.f32 %v7337_v41, %v10539_v28 }
0x111a   : > { %v4105_v29 = vpack.c.bf16 %v4091_v60, %v4090_v22  ;;  %v4071_v21 = vmul.f32 %v10622_v38, %v4049_v7 }
0x111b   : > { %v7339_v6 = vpop.eup %7338  ;;  %v4070_v44 = vmul.f32 %v10622_v38, %v4048_v23  ;;  %6238 = vmatpush3.bf16.msra.mxu1 %v7012_v10  ;;  %6302 = vmatpush3.bf16.msra.mxu0 %v10651_v12 }
0x111c   : > { %v7341_v48 = vpop.eup %7340  ;;  %v4093_v28 = vadd.f32 %v10628_v61, %v4071_v21  ;;  %v4051_v30 = vmul.f32 %v7339_v6, %v10546_v9 }
0x111d   : > { %4369 = vmatmul.mubr.bf16.gmra.mrb[84].mxu1 %v4105_v29  ;;  %4482 = vmatmul.mubr.bf16.gmra.mrb[116].mxu0 %v4105_v29  ;;  %v4092_v35 = vadd.f32 %v10628_v61, %v4070_v44  ;;  %v4050_v33 = vmul.f32 %v7341_v48, %v10549_v62 }
0x111e   : > { %4378 = vmatprep.mubr.bf16.mxu1 %v11585_v14  ;;  %4491 = vmatprep.mubr.bf16.mxu0 %v11585_v14  ;;  %v4073_v2 = vmul.f32 %v10622_v38, %v4051_v30 }
0x111f   : > { %v4106_v27 = vpack.c.bf16 %v4093_v28, %v4092_v35  ;;  %v4072_v32 = vmul.f32 %v10622_v38, %v4050_v33 }
0x1120   : > { %v4095_v37 = vadd.f32 %v10628_v61, %v4073_v2 }
0x1121   : > { %v4094_v17 = vadd.f32 %v10628_v61, %v4072_v32 }
0x1123   : > { %v4107_v53 = vpack.c.bf16 %v4095_v37, %v4094_v17 }
0x1125   : > { %4379 = vmatmul.mubr.bf16.gmra.mrb[88].mxu1 %v4106_v27  ;;  %4492 = vmatmul.mubr.bf16.gmra.mrb[120].mxu0 %v4106_v27 }
0x1126   : > { %4388 = vmatprep.mubr.bf16.mxu1 %v11585_v14  ;;  %4501 = vmatprep.mubr.bf16.mxu0 %v11585_v14 }
0x112d   : > { %4389 = vmatmul.mubr.bf16.gmra.mrb[92].mxu1 %v4107_v53  ;;  %4502 = vmatmul.mubr.bf16.gmra.mrb[124].mxu0 %v4107_v53 }
0x112e   : > { %4398 = vmatprep.mubr.bf16.mxu1 %v11585_v14  ;;  %4511 = vmatprep.mubr.bf16.mxu0 %v11585_v14 }
0x1138   : > { %v3983_v9 = vpop.xlane.xlu1 %3982  ;;  %v3981_v62 = vpop.xlane.xlu0 %3980 }
0x1139   : > { %v4005_v13 = vmul.f32 0.0078125, %v3983_v9  ;;  %v4004_v45 = vmul.f32 0.0078125, %v3981_v62 }
0x113b   : > { %v4021_v19 = vadd.f32 1e-05, %v4005_v13  ;;  %v4020_v25 = vadd.f32 1e-05, %v4004_v45 }
0x113c   : > { %v3987_v56 = vpop.xlane.xlu1 %3986  ;;  %v3985_v0 = vpop.xlane.xlu0 %3984 }
0x113d   : > { %7342 = vrsqrt.f32 %v4021_v19  ;;  %v4007_v57 = vmul.f32 0.0078125, %v3987_v56  ;;  %v4006_v47 = vmul.f32 0.0078125, %v3985_v0 }
0x113e   : > { %7344 = vrsqrt.f32 %v4020_v25 }
0x113f   : > { %v4023_v34 = vadd.f32 1e-05, %v4007_v57  ;;  %v4022_v10 = vadd.f32 1e-05, %v4006_v47 }
0x1141   : > { %7346 = vrsqrt.f32 %v4023_v34 }
0x1142   : > { %7348 = vrsqrt.f32 %v4022_v10 }
0x1144   : > { %v3991_v41 = vpop.xlane.xlu1 %3990  ;;  %v3989_v22 = vpop.xlane.xlu0 %3988 }
0x1145   : > { %v4009_v60 = vmul.f32 0.0078125, %v3991_v41  ;;  %v4008_v7 = vmul.f32 0.0078125, %v3989_v22 }
0x1147   : > { %v7343_v23 = vpop.eup %7342  ;;  %v4025_v29 = vadd.f32 1e-05, %v4009_v60  ;;  %v4024_v6 = vadd.f32 1e-05, %v4008_v7 }
0x1148   : > { %v7345_v44 = vpop.eup %7344  ;;  %v3995_v21 = vpop.xlane.xlu1 %3994  ;;  %v4053_v35 = vmul.f32 %v7343_v23, %v10576_v39 }
0x1149   : > { %v3993_v48 = vpop.xlane.xlu0 %3992  ;;  %7350 = vrsqrt.f32 %v4025_v29  ;;  %v4011_v28 = vmul.f32 0.0078125, %v3995_v21  ;;  %v4052_v30 = vmul.f32 %v7345_v44, %v10579_v46  ;;  %v7014_v21 = vld [vmem:[%s8754_s21 + $0x50] sm:$0xff]  }
0x114a   : > { %v4010_v33 = vmul.f32 0.0078125, %v3993_v48  ;;  %7352 = vrsqrt.f32 %v4024_v6  ;;  %v4075_v27 = vmul.f32 %v10622_v38, %v4053_v35  ;;  %6239 = vmatprep.subr.bf16.mxu1 %v7014_v21  ;;  %v7016_v48 = vld [vmem:[%s8754_s21 + $0x10] sm:$0xff]   ;;  %v10717_v35 = vld [vmem:[%s8754_s21 + $0xd8] sm:$0xff]  }
0x114b   : > { %v7347_v32 = vpop.eup %7346  ;;  %v4027_v2 = vadd.f32 1e-05, %v4011_v28  ;;  %v4074_v37 = vmul.f32 %v10622_v38, %v4052_v30  ;;  %6240 = vmatpush3.bf16.msra.mxu1 %v7016_v48  ;;  %v7020_v28 = vld [vmem:[%s8754_s21 + $0x18] sm:$0xff]   ;;  %v7022_v30 = vld [vmem:[%s8754_s21 + $0x60] sm:$0xff]  }
0x114c   : > { %v4026_v17 = vadd.f32 1e-05, %v4010_v33  ;;  %v7349_v53 = vpop.eup %7348  ;;  %v4097_v9 = vadd.f32 %v10628_v61, %v4075_v27  ;;  %v4055_v62 = vmul.f32 %v7347_v32, %v10586_v58  ;;  %v10721_v33 = vld [vmem:[%s8754_s21 + $0x98] sm:$0xff]   ;;  %v10727_v27 = vld [vmem:[%s8754_s21 + $0xe0] sm:$0xff]  }
0x114d   : > { %7354 = vrsqrt.f32 %v4027_v2  ;;  %v4096_v39 = vadd.f32 %v10628_v61, %v4074_v37  ;;  %v4054_v13 = vmul.f32 %v7349_v53, %v10589_v31  ;;  %v7024_v32 = vld [vmem:[%s8754_s21 + $0x20] sm:$0xff]   ;;  %v10737_v37 = vld [vmem:[%s8754_s21 + $0xe8] sm:$0xff]  }
0x114e   : > { %7356 = vrsqrt.f32 %v4026_v17  ;;  %v4077_v19 = vmul.f32 %v10622_v38, %v4055_v62  ;;  %v10732_v2 = vld [vmem:[%s8754_s21 + $0xa0] sm:$0xff]   ;;  %v7026_v17 = vld [vmem:[%s8754_s21 + $0x68] sm:$0xff]   ;;  %11677 = vst [vmem:[#allocation96_spill] sm:$0xff] %v10737_v37  ;;  %v7030_v62 = vld [vmem:[%s8754_s21 + $0x70] sm:$0xff]  }
0x114f   : > { %v4108_v46 = vpack.c.bf16 %v4097_v9, %v4096_v39  ;;  %v4076_v45 = vmul.f32 %v10622_v38, %v4054_v13  ;;  %11676 = vst [vmem:[#allocation66_spill] sm:$0xff] %v10732_v2  ;;  %v7028_v53 = vld [vmem:[%s8754_s21 + $0x28] sm:$0xff]   ;;  %v10747_v39 = vld [vmem:[%s8754_s21 + $0xf0] sm:$0xff]  }
0x1150   : > { %v4099_v56 = vadd.f32 %v10628_v61, %v4077_v19  ;;  %v10741_v9 = vld [vmem:[%s8754_s21 + $0xa8] sm:$0xff]   ;;  %11679 = vst [vmem:[#allocation97_spill] sm:$0xff] %v10747_v39  ;;  %v7032_v13 = vld [vmem:[%s8754_s21 + $0x30] sm:$0xff]   ;;  %v10757_v19 = vld [vmem:[%s8754_s21 + $0xf8] sm:$0xff]  }
0x1151   : > { %4399 = vmatmul.mubr.bf16.gmra.mrb[96].mxu1 %v4108_v46  ;;  %4512 = vmatmul.mubr.bf16.gmra.mrb[128].mxu0 %v4108_v46  ;;  %v4098_v58 = vadd.f32 %v10628_v61, %v4076_v45  ;;  %11678 = vst [vmem:[#allocation70_spill] sm:$0xff] %v10741_v9  ;;  %v10752_v46 = vld [vmem:[%s8754_s21 + $0xb0] sm:$0xff]   ;;  %v7034_v45 = vld [vmem:[%s8754_s21 + $0x78] sm:$0xff]   ;;  %11681 = vst [vmem:[#allocation100_spill] sm:$0xff] %v10757_v19 }
0x1152   : > { %4408 = vmatprep.mubr.bf16.mxu1 %v11585_v14  ;;  %4521 = vmatprep.mubr.bf16.mxu0 %v11585_v14  ;;  %11680 = vst [vmem:[#allocation95_spill] sm:$0xff] %v10752_v46 }
0x1153   : > { %v7351_v25 = vpop.eup %7350  ;;  %v4109_v34 = vpack.c.bf16 %v4099_v56, %v4098_v58  ;;  %v10761_v58 = vld [vmem:[%s8754_s21 + $0xb8] sm:$0xff]  }
0x1154   : > { %v7353_v0 = vpop.eup %7352  ;;  %v4057_v31 = vmul.f32 %v7351_v25, %v10596_v40  ;;  %v7036_v25 = vld [vmem:[%s8754_s21 + $0x38] sm:$0xff]   ;;  %11682 = vst [vmem:[#allocation98_spill] sm:$0xff] %v10761_v58 }
0x1155   : > { %v4056_v57 = vmul.f32 %v7353_v0, %v10599_v54  ;;  %v4144_v56 = vld [vmem:[%s8751_s30] sm:$0xf]  ;;  %v4160_v0 = vsub.s32 3, %v8991_v24 }
0x1156   : > { %v4079_v41 = vmul.f32 %v10622_v38, %v4057_v31  ;;  %v11683_v31 = vsub.s32 0, %v8991_v24 }
0x1157   : > { %v7355_v47 = vpop.eup %7354  ;;  %v4078_v10 = vmul.f32 %v10622_v38, %v4056_v57 }
0x1158   : > { %v7357_v22 = vpop.eup %7356  ;;  %v4101_v40 = vadd.f32 %v10628_v61, %v4079_v41  ;;  %v4059_v7 = vmul.f32 %v7355_v47, %v10606_v8  ;;  %v10770_v57 = vrot.slane %v4144_v56, %v11683_v31  ;;  %v11684_v47 = vsub.s32 2, %v8991_v24 }
0x1159   : > { %4409 = vmatmul.mubr.bf16.gmra.mrb[100].mxu1 %v4109_v34  ;;  %4522 = vmatmul.mubr.bf16.gmra.mrb[132].mxu0 %v4109_v34  ;;  %v4100_v60 = vadd.f32 %v10628_v61, %v4078_v10  ;;  %v4058_v54 = vmul.f32 %v7357_v22, %v10609_v59  ;;  %v11685_v10 = vsub.s32 1, %v8991_v24  ;;  %v10780_v22 = vrot.slane %v4144_v56, %v4160_v0 }
0x115a   : > { %4418 = vmatprep.mubr.bf16.mxu1 %v11585_v14  ;;  %4531 = vmatprep.mubr.bf16.mxu0 %v11585_v14  ;;  %v4081_v6 = vmul.f32 %v10622_v38, %v4059_v7  ;;  %v10774_v34 = vrot.slane %v4144_v56, %v11684_v47 }
0x115b   : > { %v4110_v23 = vpack.c.bf16 %v4101_v40, %v4100_v60  ;;  %v4080_v29 = vmul.f32 %v10622_v38, %v4058_v54  ;;  %v10707_v38 = vld [vmem:[%s8754_s21 + $0xd0] sm:$0xff]   ;;  %v10778_v41 = vrot.slane %v4144_v56, %v11685_v10 }
0x115c   : > { %v4103_v8 = vadd.f32 %v10628_v61, %v4081_v6  ;;  %6303 = vmatprep.subr.bf16.mxu0 %v10707_v38 }
0x115d   : > { %v4102_v59 = vadd.f32 %v10628_v61, %v4080_v29  ;;  %v7018_v61 = vld [vmem:[%s8754_s21 + $0x58] sm:$0xff]  }
0x115e   : > { %6241 = vmatprep.subr.bf16.mxu1 %v7018_v61 }
0x115f   : > { %v4111_v44 = vpack.c.bf16 %v4103_v8, %v4102_v59  ;;  %6242 = vmatpush3.bf16.msra.mxu1 %v7020_v28 }
0x1160   : > { %6243 = vmatprep.subr.bf16.mxu1 %v7022_v30 }
0x1161   : > { %4419 = vmatmul.mubr.bf16.gmra.mrb[104].mxu1 %v4110_v23  ;;  %4532 = vmatmul.mubr.bf16.gmra.mrb[136].mxu0 %v4110_v23 }
0x1162   : > { %4428 = vmatprep.mubr.bf16.mxu1 %v11585_v14  ;;  %4541 = vmatprep.mubr.bf16.mxu0 %v11585_v14  ;;  %v10712_v14 = vld [vmem:[%s8754_s21 + $0x90] sm:$0xff]  }
0x1163   : > { %6304 = vmatpush3.bf16.msra.mxu0 %v10712_v14  ;;  %6244 = vmatpush3.bf16.msra.mxu1 %v7024_v32 }
0x1164   : > { %6305 = vmatprep.subr.bf16.mxu0 %v10717_v35  ;;  %6245 = vmatprep.subr.bf16.mxu1 %v7026_v17 }
0x1167   : > { %6306 = vmatpush3.bf16.msra.mxu0 %v10721_v33  ;;  %6246 = vmatpush3.bf16.msra.mxu1 %v7028_v53 }
0x1168   : > { %6307 = vmatprep.subr.bf16.mxu0 %v10727_v27  ;;  %6247 = vmatprep.subr.bf16.mxu1 %v7030_v62 }
0x1169   : > { %4429 = vmatmul.mubr.bf16.gmra.mrb[108].mxu1 %v4111_v44  ;;  %4542 = vmatmul.mubr.bf16.gmra.mrb[140].mxu0 %v4111_v44 }
0x116b   : > { %6308 = vmatpush3.bf16.msra.mxu0 %v10732_v2  ;;  %6248 = vmatpush3.bf16.msra.mxu1 %v7032_v13 }
0x116c   : > { %6309 = vmatprep.subr.bf16.mxu0 %v10737_v37  ;;  %6249 = vmatprep.subr.bf16.mxu1 %v7034_v45 }
0x116f   : > { %6310 = vmatpush3.bf16.msra.mxu0 %v10741_v9  ;;  %6250 = vmatpush3.bf16.msra.mxu1 %v7036_v25 }
0x1170   : > { %6311 = vmatprep.subr.bf16.mxu0 %v10747_v39  ;;  %6683 = vmatprep.subr.bf16.mxu1 %v10617_v4 }
0x1173   : > { %6312 = vmatpush3.bf16.msra.mxu0 %v10752_v46 }
0x1174   : > { %6313 = vmatprep.subr.bf16.mxu0 %v10757_v19 }
0x1177   : > { %6314 = vmatpush3.bf16.msra.mxu0 %v10761_v58 }
0x11e8   : > { %v4360_v60 = vpop.f32.mrb[80].mxu1  ;;  %v4473_v40 = vpop.f32.mrb[112].mxu0 }
0x11e9   : > { %v4361_v4 = vadd.f32 %v4360_v60, %v10770_v57  ;;  %v4474_v54 = vadd.f32 %v4473_v40, %v10774_v34  ;;  %v4362_v7 = vpop.f32.mrb[81].mxu1  ;;  %v4475_v23 = vpop.f32.mrb[113].mxu0 }
0x11ea   : > { %v4363_v29 = vadd.f32 %v4362_v7, %v10778_v41  ;;  %v4476_v6 = vadd.f32 %v4475_v23, %v10780_v22  ;;  %v4364_v59 = vpop.f32.mrb[82].mxu1  ;;  %v4477_v8 = vpop.f32.mrb[114].mxu0 }
0x11eb   : > { %v4616_v44 = vmul.f32 0.70710677, %v4361_v4  ;;  %v4618_v24 = vmul.f32 0.70710677, %v4474_v54  ;;  %v4365_v61 = vadd.f32 %v4364_v59, %v10770_v57  ;;  %v4478_v28 = vadd.f32 %v4477_v8, %v10774_v34  ;;  %v4366_v30 = vpop.f32.mrb[83].mxu1  ;;  %v4479_v32 = vpop.f32.mrb[115].mxu0 }
0x11ec   : > { %v4617_v21 = vmul.f32 0.70710677, %v4363_v29  ;;  %v4619_v48 = vmul.f32 0.70710677, %v4476_v6  ;;  %v4367_v17 = vadd.f32 %v4366_v30, %v10778_v41  ;;  %v4480_v53 = vadd.f32 %v4479_v32, %v10780_v22 }
0x11ed   : > { %7358 = verf.f32 %v4616_v44  ;;  %v4620_v62 = vmul.f32 0.70710677, %v4365_v61  ;;  %v4622_v13 = vmul.f32 0.70710677, %v4478_v28 }
0x11ee   : > { %7360 = verf.f32 %v4618_v24  ;;  %v4621_v45 = vmul.f32 0.70710677, %v4367_v17  ;;  %v4623_v56 = vmul.f32 0.70710677, %v4480_v53  ;;  %v10801_v11 = vmul.f32 0.5, %v4367_v17 }
0x11ef   : > { %7362 = verf.f32 %v4617_v21  ;;  %v10804_v16 = vmul.f32 0.5, %v4480_v53 }
0x11f0   : > { %7364 = verf.f32 %v4619_v48  ;;  %v4370_v25 = vpop.f32.mrb[84].mxu1  ;;  %v4483_v31 = vpop.f32.mrb[116].mxu0  ;;  %v4552_v48 = vmul.f32 0.5, %v4361_v4  ;;  %v4556_v4 = vmul.f32 0.5, %v4365_v61 }
0x11f1   : > { %7366 = verf.f32 %v4620_v62  ;;  %v4371_v0 = vadd.f32 %v4370_v25, %v10770_v57  ;;  %v4372_v47 = vpop.f32.mrb[85].mxu1  ;;  %v4484_v10 = vadd.f32 %v4483_v31, %v10774_v34  ;;  %v4485_v40 = vpop.f32.mrb[117].mxu0  ;;  %v4554_v31 = vmul.f32 0.5, %v4474_v54 }
0x11f2   : > { %7368 = verf.f32 %v4622_v13  ;;  %v4373_v60 = vadd.f32 %v4372_v47, %v10778_v41  ;;  %v4374_v7 = vpop.f32.mrb[86].mxu1  ;;  %v4486_v59 = vadd.f32 %v4485_v40, %v10780_v22  ;;  %v4487_v8 = vpop.f32.mrb[118].mxu0  ;;  %v10797_v47 = vmul.f32 0.5, %v4363_v29 }
0x11f3   : > { %7370 = verf.f32 %v4621_v45  ;;  %v4624_v23 = vmul.f32 0.70710677, %v4371_v0  ;;  %v4376_v44 = vpop.f32.mrb[87].mxu1  ;;  %v4626_v24 = vmul.f32 0.70710677, %v4484_v10  ;;  %v4489_v21 = vpop.f32.mrb[119].mxu0  ;;  %v4375_v62 = vadd.f32 %v4374_v7, %v10770_v57 }
0x11f4   : > { %7372 = verf.f32 %v4623_v56  ;;  %v4625_v30 = vmul.f32 0.70710677, %v4373_v60  ;;  %v4627_v32 = vmul.f32 0.70710677, %v4486_v59  ;;  %v4488_v13 = vadd.f32 %v4487_v8, %v10774_v34 }
0x11f5   : > { %7374 = verf.f32 %v4624_v23  ;;  %v4377_v25 = vadd.f32 %v4376_v44, %v10778_v41  ;;  %v10799_v40 = vmul.f32 0.5, %v4476_v6  ;;  %v4628_v23 = vmul.f32 0.70710677, %v4375_v62 }
0x11f6   : > { %7376 = verf.f32 %v4626_v24  ;;  %v4558_v7 = vmul.f32 0.5, %v4478_v28  ;;  %v4630_v8 = vmul.f32 0.70710677, %v4488_v13  ;;  %v4490_v44 = vadd.f32 %v4489_v21, %v10780_v22 }
0x11f7   : > { %v7359_v45 = vpop.eup %7358  ;;  %7378 = verf.f32 %v4625_v30  ;;  %v10806_v6 = vmul.f32 0.5, %v4371_v0  ;;  %v4629_v30 = vmul.f32 0.70710677, %v4377_v25  ;;  %v10808_v63 = vmul.f32 0.5, %v4484_v10 }
0x11f8   : > { %v7361_v56 = vpop.eup %7360  ;;  %v4744_v3 = vadd.f32 1.0, %v7359_v45  ;;  %7380 = verf.f32 %v4627_v32  ;;  %v4380_v5 = vpop.f32.mrb[88].mxu1  ;;  %v10810_v15 = vmul.f32 0.5, %v4373_v60  ;;  %v10812_v28 = vmul.f32 0.5, %v4486_v59 }
0x11f9   : > { %v4493_v24 = vpop.f32.mrb[120].mxu0  ;;  %v7363_v1 = vpop.eup %7362  ;;  %v4746_v49 = vadd.f32 1.0, %v7361_v56  ;;  %7382 = verf.f32 %v4628_v23  ;;  %v4631_v10 = vmul.f32 0.70710677, %v4490_v44  ;;  %v4381_v60 = vadd.f32 %v4380_v5, %v10770_v57 }
0x11fa   : > { %v4382_v54 = vpop.f32.mrb[89].mxu1  ;;  %v7365_v29 = vpop.eup %7364  ;;  %v10816_v36 = vmul.f32 %v4744_v3, %v4552_v48  ;;  %v4745_v53 = vadd.f32 1.0, %v7363_v1  ;;  %7384 = verf.f32 %v4630_v8  ;;  %v4494_v20 = vadd.f32 %v4493_v24, %v10774_v34 }
0x11fb   : > { %v4495_v45 = vpop.f32.mrb[121].mxu0  ;;  %v4384_v61 = vpop.f32.mrb[90].mxu1  ;;  %v4747_v59 = vadd.f32 1.0, %v7365_v29  ;;  %7386 = verf.f32 %v4629_v30  ;;  %v10824_v48 = vmul.f32 %v4746_v49, %v4554_v31  ;;  %v4632_v23 = vmul.f32 0.70710677, %v4381_v60 }
0x11fc   : > { %v7367_v32 = vpop.eup %7366  ;;  %v4497_v17 = vpop.f32.mrb[122].mxu0  ;;  %v10831_v5 = vmul.f32 0.5, %v4375_v62  ;;  %v10833_v29 = vmul.f32 0.5, %v4488_v13  ;;  %v10839_v31 = vmul.f32 0.5, %v4490_v44  ;;  %7388 = verf.f32 %v4631_v10 }
0x11fd   : > { %v10814_v26 = vpop.f32.mrb[91].mxu1  ;;  %v7369_v21 = vpop.eup %7368  ;;  %v4748_v0 = vadd.f32 1.0, %v7367_v32  ;;  %v4383_v32 = vadd.f32 %v4382_v54, %v10778_v41  ;;  %v10842_v62 = vmul.f32 %v4745_v53, %v10797_v47  ;;  %v10845_v13 = vmul.f32 %v4747_v59, %v10799_v40 }
0x11fe   : > { %v10818_v52 = vpop.f32.mrb[123].mxu0  ;;  %v7371_v42 = vpop.eup %7370  ;;  %v4750_v43 = vadd.f32 1.0, %v7369_v21  ;;  %7390 = verf.f32 %v4632_v23  ;;  %v4496_v10 = vadd.f32 %v4495_v45, %v10780_v22  ;;  %v4385_v40 = vadd.f32 %v4384_v61, %v10770_v57 }
0x11ff   : > { %v7373_v56 = vpop.eup %7372  ;;  %v10821_v18 = vmul.f32 %v4748_v0, %v4556_v4  ;;  %v10835_v4 = vmul.f32 0.5, %v4377_v25  ;;  %v4749_v49 = vadd.f32 1.0, %v7371_v42  ;;  %v4634_v25 = vmul.f32 0.70710677, %v4494_v20 }
0x1200   : > { %v7375_v3 = vpop.eup %7374  ;;  %v10826_v1 = vmul.f32 %v4750_v43, %v4558_v7  ;;  %v4390_v30 = vpop.f32.mrb[92].mxu1  ;;  %v4751_v43 = vadd.f32 1.0, %v7373_v56  ;;  %v4633_v44 = vmul.f32 0.70710677, %v4383_v32  ;;  %v4498_v53 = vadd.f32 %v4497_v17, %v10774_v34 }
0x1201   : > { %v7377_v21 = vpop.eup %7376  ;;  %v4503_v24 = vpop.f32.mrb[124].mxu0  ;;  %v4752_v42 = vadd.f32 1.0, %v7375_v3  ;;  %7392 = verf.f32 %v4634_v25  ;;  %v4813_v59 = vmul.f32 %v4749_v49, %v10801_v11  ;;  %v10859_v9 = vmul.f32 0.5, %v4381_v60 }
0x1202   : > { %v7379_v0 = vpop.eup %7378  ;;  %v4392_v7 = vpop.f32.mrb[93].mxu1  ;;  %v4754_v47 = vadd.f32 1.0, %v7377_v21  ;;  %v10861_v3 = vmul.f32 0.5, %v4494_v20  ;;  %7394 = verf.f32 %v4633_v44  ;;  %v4635_v45 = vmul.f32 0.70710677, %v4496_v10 }
0x1203   : > { %v4505_v54 = vpop.f32.mrb[125].mxu0  ;;  %v7381_v50 = vpop.eup %7380  ;;  %v4753_v23 = vadd.f32 1.0, %v7379_v0  ;;  %v4636_v37 = vmul.f32 0.70710677, %v4385_v40  ;;  %v4815_v21 = vmul.f32 %v4751_v43, %v10804_v16  ;;  %v10865_v25 = vmul.f32 %v4752_v42, %v10806_v6 }
0x1204   : > { %v10847_v8 = vpop.f32.mrb[94].mxu1  ;;  %v10849_v58 = vpop.f32.mrb[126].mxu0  ;;  %v4755_v39 = vadd.f32 1.0, %v7381_v50  ;;  %v10867_v61 = vmul.f32 0.5, %v4383_v32  ;;  %v4638_v17 = vmul.f32 0.70710677, %v4498_v53  ;;  %v10870_v50 = vmul.f32 %v4754_v47, %v10808_v63 }
0x1205   : > { %v10852_v19 = vpop.f32.mrb[95].mxu1  ;;  %v10854_v46 = vpop.f32.mrb[127].mxu0  ;;  %7396 = verf.f32 %v4635_v45  ;;  %v4387_v20 = vadd.f32 %v10814_v26, %v10778_v41  ;;  %v4500_v60 = vadd.f32 %v10818_v52, %v10780_v22  ;;  %v10877_v0 = vmul.f32 %v4753_v23, %v10810_v15 }
0x1206   : > { %v7383_v56 = vpop.eup %7382  ;;  %v10880_v16 = vmul.f32 %v4755_v39, %v10812_v28  ;;  %7398 = verf.f32 %v4636_v37  ;;  %v10883_v6 = vadd.f32 %v4390_v30, %v10770_v57  ;;  %v10885_v63 = vmul.f32 0.5, %v4496_v10 }
0x1207   : > { %v7385_v2 = vpop.eup %7384  ;;  %v4756_v32 = vadd.f32 1.0, %v7383_v56  ;;  %7400 = verf.f32 %v4638_v17  ;;  %v4637_v43 = vmul.f32 0.70710677, %v4387_v20  ;;  %v4572_v44 = vmul.f32 0.5, %v4385_v40 }
0x1208   : > { %v7387_v11 = vpop.eup %7386  ;;  %v4758_v26 = vadd.f32 1.0, %v7385_v2  ;;  %v4639_v52 = vmul.f32 0.70710677, %v4500_v60  ;;  %v4640_v15 = vmul.f32 0.70710677, %v10883_v6  ;;  %v10889_v39 = vadd.f32 %v4503_v24, %v10774_v34 }
0x1209   : > { %v7389_v49 = vpop.eup %7388  ;;  %v4757_v42 = vadd.f32 1.0, %v7387_v11  ;;  %7402 = verf.f32 %v4637_v43  ;;  %v10892_v37 = vadd.f32 %v4392_v7, %v10778_v41  ;;  %v10895_v28 = vadd.f32 %v4505_v54, %v10780_v22 }
0x120a   : > { %v7391_v47 = vpop.eup %7390  ;;  %7404 = verf.f32 %v4639_v52  ;;  %v4873_v30 = vpack.c.bf16 %v4813_v59, %v10842_v62  ;;  %v4875_v2 = vpack.c.bf16 %v4815_v21, %v10845_v13  ;;  %v4820_v40 = vmul.f32 %v4756_v32, %v10831_v5 }
0x120b   : > { %v7393_v10 = vpop.eup %7392  ;;  %v4759_v23 = vadd.f32 1.0, %v7389_v49  ;;  %v4574_v56 = vmul.f32 0.5, %v4498_v53  ;;  %v4642_v45 = vmul.f32 0.70710677, %v10889_v39  ;;  %v10902_v24 = vmul.f32 %v4758_v26, %v10833_v29 }
0x120c   : > { %v4821_v7 = vmul.f32 %v4757_v42, %v10835_v4  ;;  %v4760_v17 = vadd.f32 1.0, %v7391_v47  ;;  %v4641_v54 = vmul.f32 0.70710677, %v10892_v37  ;;  %5199 = vmatprep.mubr.bf16.mxu1 %v4873_v30  ;;  %5296 = vmatprep.mubr.bf16.mxu0 %v4875_v2  ;;  %v7395_v62 = vpop.eup %7394  ;;  %v4573_v59 = vmul.f32 0.5, %v4387_v20 }
0x120d   : > { %7406 = verf.f32 %v4640_v15  ;;  %v4643_v13 = vmul.f32 0.70710677, %v10895_v28  ;;  %v10909_v5 = vadd.f32 %v10847_v8, %v10770_v57  ;;  %v11686_v29 = vpack.c.bf16 %v10821_v18, %v10816_v36 }
0x120e   : > { %v11687_v4 = vpack.c.bf16 %v10826_v1, %v10824_v48  ;;  %v4762_v53 = vadd.f32 1.0, %v7393_v10  ;;  %7408 = verf.f32 %v4642_v45  ;;  %v10919_v21 = vadd.f32 %v10849_v58, %v10774_v34 }
0x120f   : > { %5200 = vmatmul.mubr.bf16.vlgmr.msra.gmra.mrb[112].mxu1 %v11686_v29  ;;  %v10923_v11 = vadd.f32 %v10852_v19, %v10778_v41  ;;  %v7397_v8 = vpop.eup %7396  ;;  %v4823_v18 = vmul.f32 %v4759_v23, %v10839_v31  ;;  %v4575_v36 = vmul.f32 0.5, %v4500_v60  ;;  %7410 = verf.f32 %v4641_v54 }
0x1210   : > { %5297 = vmatmul.mubr.bf16.vlgmr.msra.gmra.mrb[144].mxu0 %v11687_v4  ;;  %6691 = vmatpush3.bf16.msra.mxu1 %v10637_v51  ;;  %v4644_v48 = vmul.f32 0.70710677, %v10909_v5  ;;  %v7399_v1 = vpop.eup %7398  ;;  %v10930_v20 = vmul.f32 %v4760_v17, %v10859_v9  ;;  %v4761_v58 = vadd.f32 1.0, %v7395_v62  ;;  %7412 = verf.f32 %v4643_v13 }
0x1211   : > { %6684 = vmatprep.subr.bf16.mxu1 %v10643_v55  ;;  %v4646_v19 = vmul.f32 0.70710677, %v10919_v21  ;;  %v7401_v32 = vpop.eup %7400  ;;  %v4764_v43 = vadd.f32 1.0, %v7399_v1  ;;  %v4645_v51 = vmul.f32 0.70710677, %v10923_v11  ;;  %v10936_v31 = vadd.f32 %v10854_v46, %v10780_v22 }
0x1212   : > { %7414 = verf.f32 %v4644_v48  ;;  %v10939_v60 = vmul.f32 %v4762_v53, %v10861_v3  ;;  %v4766_v55 = vadd.f32 1.0, %v7401_v32  ;;  %v4877_v9 = vpack.c.bf16 %v4821_v7, %v10877_v0  ;;  %v11689_v32 = vld [vmem:[#allocation96_spill] sm:$0xff] }
0x1213   : > { %7416 = verf.f32 %v4646_v19  ;;  %v7403_v49 = vpop.eup %7402  ;;  %v4763_v26 = vadd.f32 1.0, %v7397_v8  ;;  %v4828_v42 = vmul.f32 %v4764_v43, %v4572_v44  ;;  %v4647_v52 = vmul.f32 0.70710677, %v10936_v31 }
0x1214   : > { %6692 = vmatpush3.bf16.msra.mxu1 %v10651_v12  ;;  %7418 = verf.f32 %v4645_v51  ;;  %v7405_v47 = vpop.eup %7404  ;;  %v4830_v46 = vmul.f32 %v4766_v55, %v4574_v56  ;;  %v4765_v15 = vadd.f32 1.0, %v7403_v49  ;;  %5207 = vmatprep.mubr.bf16.mxu1 %v4877_v9  ;;  %v4879_v3 = vpack.c.bf16 %v4823_v18, %v10880_v16 }
0x1215   : > { %6685 = vmatprep.subr.bf16.mxu1 %v10707_v38  ;;  %v4876_v30 = vpack.c.bf16 %v4820_v40, %v10865_v25  ;;  %v4767_v2 = vadd.f32 1.0, %v7405_v47  ;;  %7420 = verf.f32 %v4647_v52  ;;  %v4878_v12 = vpack.c.bf16 %v10902_v24, %v10870_v50 }
0x1216   : > { %v4880_v0 = vpack.c.bf16 %v4828_v42, %v10930_v20  ;;  %v4825_v44 = vmul.f32 %v4761_v58, %v10867_v61  ;;  %v4829_v10 = vmul.f32 %v4765_v15, %v4573_v59  ;;  %5304 = vmatprep.mubr.bf16.mxu0 %v4879_v3  ;;  %v4882_v38 = vpack.c.bf16 %v4830_v46, %v10939_v60  ;;  %v11688_v20 = vld [vmem:[#allocation66_spill] sm:$0xff] }
0x1217   : > { %5208 = vmatmul.mubr.bf16.gmra.mrb[116].mxu1 %v4876_v30  ;;  %v7407_v23 = vpop.eup %7406  ;;  %v4827_v56 = vmul.f32 %v4763_v26, %v10885_v63  ;;  %v4831_v16 = vmul.f32 %v4767_v2, %v4575_v36  ;;  %v4576_v17 = vmul.f32 0.5, %v10883_v6  ;;  %v4578_v62 = vmul.f32 0.5, %v10889_v39  ;;  %v11690_v15 = vld [vmem:[#allocation70_spill] sm:$0xff] }
0x1218   : > { %5305 = vmatmul.mubr.bf16.gmra.mrb[148].mxu0 %v4878_v12  ;;  %6693 = vmatpush3.bf16.msra.mxu1 %v10712_v14  ;;  %v7409_v25 = vpop.eup %7408  ;;  %v4881_v40 = vpack.c.bf16 %v4829_v10, %v4825_v44  ;;  %v4768_v61 = vadd.f32 1.0, %v7407_v23  ;;  %v4580_v59 = vmul.f32 0.5, %v10909_v5  ;;  %v4577_v29 = vmul.f32 0.5, %v10892_v37 }
0x1219   : > { %6686 = vmatprep.subr.bf16.mxu1 %v10717_v35  ;;  %v7411_v50 = vpop.eup %7410  ;;  %v4883_v45 = vpack.c.bf16 %v4831_v16, %v4827_v56  ;;  %v4770_v54 = vadd.f32 1.0, %v7409_v25  ;;  %v4582_v53 = vmul.f32 0.5, %v10919_v21  ;;  %v4579_v5 = vmul.f32 0.5, %v10895_v28 }
0x121a   : > { %v7413_v24 = vpop.eup %7412  ;;  %5215 = vmatprep.mubr.bf16.mxu1 %v4881_v40  ;;  %v4769_v14 = vadd.f32 1.0, %v7411_v50  ;;  %v4832_v8 = vmul.f32 %v4768_v61, %v4576_v17  ;;  %v11692_v40 = vld [vmem:[#allocation95_spill] sm:$0xff] }
0x121b   : > { %5312 = vmatprep.mubr.bf16.mxu0 %v4883_v45  ;;  %v4771_v4 = vadd.f32 1.0, %v7413_v24  ;;  %v4834_v48 = vmul.f32 %v4770_v54, %v4578_v62  ;;  %v11693_v45 = vld [vmem:[#allocation100_spill] sm:$0xff] }
0x121c   : > { %v7415_v7 = vpop.eup %7414  ;;  %6694 = vmatpush3.bf16.msra.mxu1 %v10721_v33  ;;  %v4581_v33 = vmul.f32 0.5, %v10923_v11  ;;  %v4833_v37 = vmul.f32 %v4769_v14, %v4577_v29  ;;  %v11694_v29 = vld [vmem:[#allocation98_spill] sm:$0xff] }
0x121d   : > { %v7417_v63 = vpop.eup %7416  ;;  %v4772_v13 = vadd.f32 1.0, %v7415_v7  ;;  %6687 = vmatprep.subr.bf16.mxu1 %v10727_v27  ;;  %v4583_v27 = vmul.f32 0.5, %v10936_v31  ;;  %v4835_v43 = vmul.f32 %v4771_v4, %v4579_v5 }
0x121e   : > { %v7419_v35 = vpop.eup %7418  ;;  %v4774_v6 = vadd.f32 1.0, %v7417_v63 }
0x121f   : > { %v4836_v18 = vmul.f32 %v4772_v13, %v4580_v59  ;;  %v4773_v36 = vadd.f32 1.0, %v7419_v35  ;;  %5216 = vmatmul.mubr.bf16.gmra.mrb[120].mxu1 %v4880_v0  ;;  %v7421_v39 = vpop.eup %7420  ;;  %v11691_v0 = vld [vmem:[#allocation97_spill] sm:$0xff] }
0x1220   : > { %v4838_v1 = vmul.f32 %v4774_v6, %v4582_v53  ;;  %5313 = vmatmul.mubr.bf16.gmra.mrb[152].mxu0 %v4882_v38  ;;  %6695 = vmatpush3.bf16.msra.mxu1 %v11688_v20  ;;  %v4775_v21 = vadd.f32 1.0, %v7421_v39 }
0x1221   : > { %v4837_v58 = vmul.f32 %v4773_v36, %v4581_v33  ;;  %v4884_v19 = vpack.c.bf16 %v4836_v18, %v4832_v8  ;;  %6688 = vmatprep.subr.bf16.mxu1 %v11689_v32 }
0x1222   : > { %v4886_v11 = vpack.c.bf16 %v4838_v1, %v4834_v48  ;;  %v4839_v55 = vmul.f32 %v4775_v21, %v4583_v27 }
0x1223   : > { %v4885_v9 = vpack.c.bf16 %v4837_v58, %v4833_v37 }
0x1224   : > { %v4400_v51 = vpop.f32.mrb[96].mxu1  ;;  %v4513_v60 = vpop.f32.mrb[128].mxu0  ;;  %6696 = vmatpush3.bf16.msra.mxu1 %v11690_v15  ;;  %v4887_v3 = vpack.c.bf16 %v4839_v55, %v4835_v43 }
0x1225   : > { %v4401_v28 = vadd.f32 %v4400_v51, %v10770_v57  ;;  %v4514_v49 = vadd.f32 %v4513_v60, %v10774_v34  ;;  %v4402_v31 = vpop.f32.mrb[97].mxu1  ;;  %v4515_v26 = vpop.f32.mrb[129].mxu0  ;;  %5223 = vmatprep.mubr.bf16.mxu1 %v4885_v9  ;;  %6689 = vmatprep.subr.bf16.mxu1 %v11691_v0 }
0x1226   : > { %v4403_v42 = vadd.f32 %v4402_v31, %v10778_v41  ;;  %v4516_v52 = vadd.f32 %v4515_v26, %v10780_v22  ;;  %v4404_v47 = vpop.f32.mrb[98].mxu1  ;;  %v4517_v46 = vpop.f32.mrb[130].mxu0  ;;  %5320 = vmatprep.mubr.bf16.mxu0 %v4887_v3 }
0x1227   : > { %v4648_v30 = vmul.f32 0.70710677, %v4401_v28  ;;  %v4406_v2 = vpop.f32.mrb[99].mxu1  ;;  %v4519_v12 = vpop.f32.mrb[131].mxu0  ;;  %v4650_v44 = vmul.f32 0.70710677, %v4514_v49  ;;  %5224 = vmatmul.mubr.bf16.gmra.mrb[124].mxu1 %v4884_v19  ;;  %v4405_v23 = vadd.f32 %v4404_v47, %v10770_v57  ;;  %v4518_v56 = vadd.f32 %v4517_v46, %v10774_v34 }
0x1228   : > { %v4649_v10 = vmul.f32 0.70710677, %v4403_v42  ;;  %v4651_v38 = vmul.f32 0.70710677, %v4516_v52  ;;  %5321 = vmatmul.mubr.bf16.gmra.mrb[156].mxu0 %v4886_v11  ;;  %v4407_v16 = vadd.f32 %v4406_v2, %v10778_v41  ;;  %v4520_v25 = vadd.f32 %v4519_v12, %v10780_v22  ;;  %6697 = vmatpush3.bf16.msra.mxu1 %v11692_v40 }
0x1229   : > { %7422 = verf.f32 %v4648_v30  ;;  %v4652_v50 = vmul.f32 0.70710677, %v4405_v23  ;;  %6690 = vmatprep.subr.bf16.mxu1 %v11693_v45  ;;  %v4654_v24 = vmul.f32 0.70710677, %v4518_v56  ;;  %v4584_v36 = vmul.f32 0.5, %v4401_v28 }
0x122a   : > { %7424 = verf.f32 %v4650_v44  ;;  %v4653_v61 = vmul.f32 0.70710677, %v4407_v16  ;;  %v4655_v17 = vmul.f32 0.70710677, %v4520_v25  ;;  %v4586_v37 = vmul.f32 0.5, %v4514_v49 }
0x122b   : > { %7426 = verf.f32 %v4649_v10  ;;  %v4585_v58 = vmul.f32 0.5, %v4403_v42  ;;  %v4587_v21 = vmul.f32 0.5, %v4516_v52  ;;  %v4588_v32 = vmul.f32 0.5, %v4405_v23 }
0x122c   : > { %7428 = verf.f32 %v4651_v38  ;;  %v4410_v7 = vpop.f32.mrb[100].mxu1  ;;  %v4523_v63 = vpop.f32.mrb[132].mxu0  ;;  %6698 = vmatpush3.bf16.msra.mxu1 %v11694_v29  ;;  %v10987_v43 = vmul.f32 0.5, %v4518_v56  ;;  %v10990_v28 = vmul.f32 0.5, %v4407_v16  ;;  %v10992_v31 = vmul.f32 0.5, %v4520_v25 }
0x122d   : > { %7430 = verf.f32 %v4652_v50  ;;  %v4411_v54 = vadd.f32 %v4410_v7, %v10770_v57  ;;  %v4412_v62 = vpop.f32.mrb[101].mxu1  ;;  %v4524_v14 = vadd.f32 %v4523_v63, %v10774_v34  ;;  %v4525_v13 = vpop.f32.mrb[133].mxu0 }
0x122e   : > { %7432 = verf.f32 %v4654_v24  ;;  %v4413_v59 = vadd.f32 %v4412_v62, %v10778_v41  ;;  %v4414_v35 = vpop.f32.mrb[102].mxu1  ;;  %v4526_v53 = vadd.f32 %v4525_v13, %v10780_v22  ;;  %v4527_v6 = vpop.f32.mrb[134].mxu0 }
0x122f   : > { %7434 = verf.f32 %v4653_v61  ;;  %v4656_v4 = vmul.f32 0.70710677, %v4411_v54  ;;  %v4416_v8 = vpop.f32.mrb[103].mxu1  ;;  %v4658_v18 = vmul.f32 0.70710677, %v4524_v14  ;;  %v4529_v33 = vpop.f32.mrb[135].mxu0  ;;  %v4415_v5 = vadd.f32 %v4414_v35, %v10770_v57 }
0x1230   : > { %7436 = verf.f32 %v4655_v17  ;;  %v4657_v39 = vmul.f32 0.70710677, %v4413_v59  ;;  %v4659_v48 = vmul.f32 0.70710677, %v4526_v53  ;;  %v4528_v1 = vadd.f32 %v4527_v6, %v10774_v34 }
0x1231   : > { %7438 = verf.f32 %v4656_v4  ;;  %v4417_v27 = vadd.f32 %v4416_v8, %v10778_v41  ;;  %v4660_v11 = vmul.f32 0.70710677, %v4415_v5  ;;  %v4530_v51 = vadd.f32 %v4529_v33, %v10780_v22 }
0x1232   : > { %7440 = verf.f32 %v4658_v18  ;;  %v4662_v26 = vmul.f32 0.70710677, %v4528_v1  ;;  %v10994_v52 = vmul.f32 0.5, %v4411_v54  ;;  %v10996_v47 = vmul.f32 0.5, %v4524_v14 }
0x1233   : > { %v7423_v20 = vpop.eup %7422  ;;  %7442 = verf.f32 %v4657_v39  ;;  %v4661_v46 = vmul.f32 0.70710677, %v4417_v27  ;;  %v10998_v12 = vmul.f32 0.5, %v4413_v59  ;;  %v11000_v0 = vmul.f32 0.5, %v4526_v53 }
0x1234   : > { %v7425_v19 = vpop.eup %7424  ;;  %v4420_v60 = vpop.f32.mrb[104].mxu1  ;;  %7444 = verf.f32 %v4659_v48  ;;  %v4776_v2 = vadd.f32 1.0, %v7423_v20  ;;  %v4663_v16 = vmul.f32 0.70710677, %v4530_v51  ;;  %v11006_v17 = vmul.f32 0.5, %v4415_v5 }
0x1235   : > { %v4533_v55 = vpop.f32.mrb[136].mxu0  ;;  %v7427_v9 = vpop.eup %7426  ;;  %7446 = verf.f32 %v4660_v11  ;;  %v4778_v23 = vadd.f32 1.0, %v7425_v19  ;;  %v4421_v24 = vadd.f32 %v4420_v60, %v10770_v57  ;;  %v11008_v54 = vmul.f32 0.5, %v4528_v1 }
0x1236   : > { %v4422_v49 = vpop.f32.mrb[105].mxu1  ;;  %v7429_v42 = vpop.eup %7428  ;;  %7448 = verf.f32 %v4662_v26  ;;  %v4777_v56 = vadd.f32 1.0, %v7427_v9  ;;  %v4534_v61 = vadd.f32 %v4533_v55, %v10774_v34  ;;  %v11011_v14 = vmul.f32 %v4776_v2, %v4584_v36 }
0x1237   : > { %v4535_v15 = vpop.f32.mrb[137].mxu0  ;;  %v4424_v3 = vpop.f32.mrb[106].mxu1  ;;  %7450 = verf.f32 %v4661_v46  ;;  %v4779_v50 = vadd.f32 1.0, %v7429_v42  ;;  %v4423_v63 = vadd.f32 %v4422_v49, %v10778_v41  ;;  %v11013_v13 = vmul.f32 0.5, %v4417_v27 }
0x1238   : > { %v7431_v30 = vpop.eup %7430  ;;  %v4537_v44 = vpop.f32.mrb[138].mxu0  ;;  %7452 = verf.f32 %v4663_v16  ;;  %v4664_v35 = vmul.f32 0.70710677, %v4421_v24  ;;  %v11015_v4 = vmul.f32 %v4778_v23, %v4586_v37  ;;  %v11017_v53 = vmul.f32 %v4777_v56, %v4585_v58 }
0x1239   : > { %v4426_v10 = vpop.f32.mrb[107].mxu1  ;;  %v7433_v38 = vpop.eup %7432  ;;  %v4780_v45 = vadd.f32 1.0, %v7431_v30  ;;  %v11019_v6 = vmul.f32 0.5, %v4530_v51  ;;  %v4666_v8 = vmul.f32 0.70710677, %v4534_v61  ;;  %v11021_v48 = vmul.f32 %v4779_v50, %v4587_v21 }
0x123a   : > { %v11002_v25 = vpop.f32.mrb[139].mxu0  ;;  %v7435_v40 = vpop.eup %7434  ;;  %v4782_v59 = vadd.f32 1.0, %v7433_v38  ;;  %7454 = verf.f32 %v4664_v35  ;;  %v4665_v37 = vmul.f32 0.70710677, %v4423_v63  ;;  %v4425_v55 = vadd.f32 %v4424_v3, %v10770_v57 }
0x123b   : > { %v7437_v7 = vpop.eup %7436  ;;  %v11023_v5 = vmul.f32 %v4780_v45, %v4588_v32  ;;  %v4781_v36 = vadd.f32 1.0, %v7435_v40  ;;  %7456 = verf.f32 %v4666_v8  ;;  %v4536_v32 = vadd.f32 %v4535_v15, %v10780_v22 }
0x123c   : > { %v7439_v62 = vpop.eup %7438  ;;  %v4430_v18 = vpop.f32.mrb[108].mxu1  ;;  %v4783_v20 = vadd.f32 1.0, %v7437_v7  ;;  %v11030_v60 = vmul.f32 %v4782_v59, %v10987_v43  ;;  %7458 = verf.f32 %v4665_v37  ;;  %v4538_v46 = vadd.f32 %v4537_v44, %v10774_v34 }
0x123d   : > { %v7441_v29 = vpop.eup %7440  ;;  %v4543_v33 = vpop.f32.mrb[140].mxu0  ;;  %v4784_v19 = vadd.f32 1.0, %v7439_v62  ;;  %v4427_v30 = vadd.f32 %v4426_v10, %v10778_v41  ;;  %v4845_v43 = vmul.f32 %v4781_v36, %v10990_v28  ;;  %v4600_v38 = vmul.f32 0.5, %v4421_v24 }
0x123e   : > { %v7443_v39 = vpop.eup %7442  ;;  %v4432_v1 = vpop.f32.mrb[109].mxu1  ;;  %v4786_v21 = vadd.f32 1.0, %v7441_v29  ;;  %v11041_v23 = vmul.f32 0.5, %v4534_v61  ;;  %v4667_v15 = vmul.f32 0.70710677, %v4536_v32  ;;  %v4847_v3 = vmul.f32 %v4783_v20, %v10992_v31 }
0x123f   : > { %v4545_v27 = vpop.f32.mrb[141].mxu0  ;;  %v11025_v58 = vpop.f32.mrb[110].mxu1  ;;  %v4785_v42 = vadd.f32 1.0, %v7443_v39  ;;  %v11045_v16 = vmul.f32 %v4784_v19, %v10994_v52  ;;  %v11047_v40 = vmul.f32 0.5, %v4423_v63  ;;  %v4668_v50 = vmul.f32 0.70710677, %v4425_v55 }
0x1240   : > { %v11027_v11 = vpop.f32.mrb[142].mxu0  ;;  %v7445_v51 = vpop.eup %7444  ;;  %v11050_v44 = vmul.f32 %v4786_v21, %v10996_v47  ;;  %7460 = verf.f32 %v4667_v15  ;;  %v4670_v45 = vmul.f32 0.70710677, %v4538_v46  ;;  %v4669_v7 = vmul.f32 0.70710677, %v4427_v30 }
0x1241   : > { %v11034_v9 = vpop.f32.mrb[111].mxu1  ;;  %v11036_v26 = vpop.f32.mrb[143].mxu0  ;;  %v4787_v10 = vadd.f32 1.0, %v7445_v51  ;;  %v11053_v24 = vmul.f32 %v4785_v42, %v10998_v12  ;;  %7462 = verf.f32 %v4668_v50  ;;  %v4540_v52 = vadd.f32 %v11002_v25, %v10780_v22 }
0x1242   : > { %v7447_v49 = vpop.eup %7446  ;;  %7464 = verf.f32 %v4670_v45  ;;  %v11058_v47 = vadd.f32 %v4430_v18, %v10770_v57  ;;  %v11061_v63 = vadd.f32 %v4543_v33, %v10774_v34  ;;  %v11064_v59 = vadd.f32 %v4432_v1, %v10778_v41 }
0x1243   : > { %v7449_v2 = vpop.eup %7448  ;;  %v4788_v61 = vadd.f32 1.0, %v7447_v49  ;;  %7466 = verf.f32 %v4669_v7  ;;  %v11067_v35 = vmul.f32 %v4787_v10, %v11000_v0  ;;  %v4671_v8 = vmul.f32 0.70710677, %v4540_v52 }
0x1244   : > { %v7451_v56 = vpop.eup %7450  ;;  %v4790_v31 = vadd.f32 1.0, %v7449_v2  ;;  %v11070_v39 = vadd.f32 %v4545_v27, %v10780_v22  ;;  %v11072_v36 = vmul.f32 0.5, %v4536_v32  ;;  %v4604_v18 = vmul.f32 0.5, %v4425_v55 }
0x1245   : > { %v7453_v28 = vpop.eup %7452  ;;  %v4789_v62 = vadd.f32 1.0, %v7451_v56  ;;  %v4606_v20 = vmul.f32 0.5, %v4538_v46  ;;  %v4672_v33 = vmul.f32 0.70710677, %v11058_v47  ;;  %v11076_v19 = vmul.f32 %v4788_v61, %v11006_v17 }
0x1246   : > { %v7455_v12 = vpop.eup %7454  ;;  %v4791_v29 = vadd.f32 1.0, %v7453_v28  ;;  %v11079_v1 = vmul.f32 %v4790_v31, %v11008_v54  ;;  %7468 = verf.f32 %v4671_v8  ;;  %v4674_v0 = vmul.f32 0.70710677, %v11061_v63 }
0x1247   : > { %v7457_v25 = vpop.eup %7456  ;;  %v4853_v27 = vmul.f32 %v4789_v62, %v11013_v13  ;;  %v4792_v51 = vadd.f32 1.0, %v7455_v12  ;;  %v4605_v21 = vmul.f32 0.5, %v4427_v30  ;;  %v4673_v32 = vmul.f32 0.70710677, %v11064_v59 }
0x1248   : > { %v7459_v37 = vpop.eup %7458  ;;  %v4855_v55 = vmul.f32 %v4791_v29, %v11019_v6  ;;  %v4794_v49 = vadd.f32 1.0, %v7457_v25  ;;  %v4607_v42 = vmul.f32 0.5, %v4540_v52  ;;  %v4675_v17 = vmul.f32 0.70710677, %v11070_v39 }
0x1249   : > { %7470 = verf.f32 %v4672_v33  ;;  %v4889_v54 = vpack.c.bf16 %v4845_v43, %v11017_v53  ;;  %v4891_v46 = vpack.c.bf16 %v4847_v3, %v11021_v48  ;;  %v4435_v2 = vadd.f32 %v11025_v58, %v10770_v57 }
0x124a   : > { %v7461_v15 = vpop.eup %7460  ;;  %v4793_v13 = vadd.f32 1.0, %v7459_v37  ;;  %7472 = verf.f32 %v4674_v0  ;;  %v4548_v30 = vadd.f32 %v11027_v11, %v10774_v34  ;;  %v4888_v6 = vpack.c.bf16 %v11023_v5, %v11011_v14 }
0x124b   : > { %v7463_v56 = vpop.eup %7462  ;;  %v11094_v50 = vmul.f32 %v4792_v51, %v4600_v38  ;;  %7474 = verf.f32 %v4673_v32  ;;  %5231 = vmatprep.mubr.bf16.mxu1 %v4889_v54  ;;  %5328 = vmatprep.mubr.bf16.mxu0 %v4891_v46  ;;  %v4676_v53 = vmul.f32 0.70710677, %v4435_v2  ;;  %v4890_v48 = vpack.c.bf16 %v11030_v60, %v11015_v4 }
0x124c   : > { %v7465_v57 = vpop.eup %7464  ;;  %v4796_v58 = vadd.f32 1.0, %v7463_v56  ;;  %7476 = verf.f32 %v4675_v17  ;;  %v4678_v43 = vmul.f32 0.70710677, %v4548_v30  ;;  %5232 = vmatmul.mubr.bf16.gmra.mrb[128].mxu1 %v4888_v6  ;;  %v4437_v34 = vadd.f32 %v11034_v9, %v10778_v41 }
0x124d   : > { %v7467_v11 = vpop.eup %7466  ;;  %v11101_v14 = vmul.f32 %v4794_v49, %v11041_v23  ;;  %v4798_v5 = vadd.f32 1.0, %v7465_v57  ;;  %7478 = verf.f32 %v4676_v53  ;;  %5329 = vmatmul.mubr.bf16.gmra.mrb[160].mxu0 %v4890_v48  ;;  %v4550_v38 = vadd.f32 %v11036_v26, %v10780_v22 }
0x124e   : > { %v4857_v4 = vmul.f32 %v4793_v13, %v11047_v40  ;;  %v4860_v60 = vmul.f32 %v4796_v58, %v4604_v18  ;;  %v4797_v3 = vadd.f32 1.0, %v7467_v11  ;;  %7480 = verf.f32 %v4678_v43 }
0x124f   : > { %v4795_v10 = vadd.f32 1.0, %v7461_v15  ;;  %v11106_v45 = vmul.f32 %v4798_v5, %v4606_v20  ;;  %v4677_v28 = vmul.f32 0.70710677, %v4437_v34  ;;  %v4679_v41 = vmul.f32 0.70710677, %v4550_v38 }
0x1250   : > { %v7469_v9 = vpop.eup %7468  ;;  %v4861_v61 = vmul.f32 %v4797_v3, %v4605_v21  ;;  %v4893_v23 = vpack.c.bf16 %v4853_v27, %v11053_v24  ;;  %v4895_v7 = vpack.c.bf16 %v4855_v55, %v11067_v35  ;;  %v4892_v31 = vpack.c.bf16 %v11076_v19, %v11045_v16 }
0x1251   : > { %v4898_v22 = vpack.c.bf16 %v11106_v45, %v11101_v14  ;;  %v4799_v26 = vadd.f32 1.0, %v7469_v9  ;;  %7482 = verf.f32 %v4677_v28  ;;  %v4894_v40 = vpack.c.bf16 %v11079_v1, %v11050_v44 }
0x1252   : > { %7484 = verf.f32 %v4679_v41  ;;  %5239 = vmatprep.mubr.bf16.mxu1 %v4893_v23  ;;  %5336 = vmatprep.mubr.bf16.mxu0 %v4895_v7  ;;  %v4897_v62 = vpack.c.bf16 %v4861_v61, %v4857_v4  ;;  %v4896_v52 = vpack.c.bf16 %v4860_v60, %v11094_v50  ;;  %v4859_v12 = vmul.f32 %v4795_v10, %v11072_v36  ;;  %v11695_v7 = vld [vmem:[#allocation72_spill] sm:$0xff] }
0x1253   : > { %v7471_v24 = vpop.eup %7470  ;;  %v4863_v35 = vmul.f32 %v4799_v26, %v4607_v42  ;;  %v4608_v19 = vmul.f32 0.5, %v11058_v47  ;;  %v4612_v1 = vmul.f32 0.5, %v4435_v2  ;;  %v4610_v37 = vmul.f32 0.5, %v11061_v63 }
0x1254   : > { %v7473_v29 = vpop.eup %7472  ;;  %5240 = vmatmul.mubr.bf16.gmra.mrb[132].mxu1 %v4892_v31  ;;  %v4800_v18 = vadd.f32 1.0, %v7471_v24  ;;  %v4614_v27 = vmul.f32 0.5, %v4548_v30  ;;  %v4609_v46 = vmul.f32 0.5, %v11064_v59  ;;  %v4613_v15 = vmul.f32 0.5, %v4437_v34 }
0x1255   : > { %v7475_v16 = vpop.eup %7474  ;;  %5337 = vmatmul.mubr.bf16.gmra.mrb[164].mxu0 %v4894_v40  ;;  %5247 = vmatprep.mubr.bf16.mxu1 %v4897_v62  ;;  %v4899_v8 = vpack.c.bf16 %v4863_v35, %v4859_v12  ;;  %v4802_v44 = vadd.f32 1.0, %v7473_v29  ;;  %v4611_v2 = vmul.f32 0.5, %v11070_v39  ;;  %v4615_v6 = vmul.f32 0.5, %v4550_v38  ;;  %v11124_v39 = vld [vmem:[%s796_s25] ss:$0 sm:$0xff] }
0x1256   : > { %v7477_v25 = vpop.eup %7476  ;;  %v4864_v51 = vmul.f32 %v4800_v18, %v4608_v19  ;;  %v4801_v21 = vadd.f32 1.0, %v7475_v16 }
0x1257   : > { %v7479_v20 = vpop.eup %7478  ;;  %v4866_v49 = vmul.f32 %v4802_v44, %v4610_v37  ;;  %v4803_v42 = vadd.f32 1.0, %v7477_v25 }
0x1258   : > { %v7481_v33 = vpop.eup %7480  ;;  %v4804_v0 = vadd.f32 1.0, %v7479_v20  ;;  %v4865_v56 = vmul.f32 %v4801_v21, %v4609_v46  ;;  %v11698_v21 = vld [vmem:[#allocation74_spill] sm:$0xff] }
0x1259   : > { %v4806_v36 = vadd.f32 1.0, %v7481_v33  ;;  %v4867_v53 = vmul.f32 %v4803_v42, %v4611_v2 }
0x125a   : > { %v4868_v32 = vmul.f32 %v4804_v0, %v4612_v1 }
0x125b   : > { %v7483_v55 = vpop.eup %7482  ;;  %v4870_v17 = vmul.f32 %v4806_v36, %v4614_v27  ;;  %v11697_v36 = vld [vmem:[#allocation71_spill] sm:$0xff] }
0x125c   : > { %v7485_v54 = vpop.eup %7484  ;;  %v4805_v13 = vadd.f32 1.0, %v7483_v55  ;;  %5248 = vmatmul.mubr.bf16.gmra.mrb[136].mxu1 %v4896_v52  ;;  %v4900_v47 = vpack.c.bf16 %v4868_v32, %v4864_v51 }
0x125d   : > { %v4807_v63 = vadd.f32 1.0, %v7485_v54  ;;  %v4902_v30 = vpack.c.bf16 %v4870_v17, %v4866_v49 }
0x125e   : > { %v4869_v50 = vmul.f32 %v4805_v13, %v4613_v15 }
0x125f   : > { %v4871_v48 = vmul.f32 %v4807_v63, %v4615_v6 }
0x1260   : > { %v4901_v57 = vpack.c.bf16 %v4869_v50, %v4865_v56 }
0x1261   : > { %v4903_v58 = vpack.c.bf16 %v4871_v48, %v4867_v53 }
0x1262   : > { %5255 = vmatprep.mubr.bf16.mxu1 %v4901_v57  ;;  %v11699_v57 = vld [vmem:[#allocation75_spill] sm:$0xff] }
0x1264   : > { %5256 = vmatmul.mubr.bf16.gmra.mrb[140].mxu1 %v4900_v47 }
0x1265   : > { %5344 = vmatprep.mubr.bf16.mxu1 %v4899_v8 }
0x126c   : > { %5345 = vmatmul.mubr.bf16.vlgmr.msra.gmra.mrb[144].mxu1 %v4898_v22  ;;  %v11696_v22 = vld [vmem:[#allocation69_spill] sm:$0xff] }
0x126d   : > { %5352 = vmatprep.mubr.bf16.mxu1 %v4903_v58 }
0x1274   : > { %5353 = vmatmul.mubr.bf16.gmra.mrb[148].mxu1 %v4902_v30 }
0x12e2   : > { %v6251_v59 = vpop.f32.mrb[112].mxu1 }
0x12e3   : > { %v6315_v43 = vpop.f32.mrb[144].mxu0  ;;  %v6252_v34 = vpop.f32.mrb[113].mxu1 }
0x12e4   : > { %v6316_v11 = vpop.f32.mrb[145].mxu0  ;;  %v6253_v14 = vadd.f32 %v6252_v34, %v6251_v59  ;;  %v6254_v38 = vpop.f32.mrb[114].mxu1  ;;  %v11700_v59 = vld [vmem:[#allocation73_spill] sm:$0xff] }
0x12e5   : > { %v6317_v5 = vadd.f32 %v6316_v11, %v6315_v43  ;;  %v6318_v4 = vpop.f32.mrb[146].mxu0  ;;  %v6255_v60 = vpop.f32.mrb[115].mxu1 }
0x12e6   : > { %v6319_v3 = vpop.f32.mrb[147].mxu0  ;;  %v5202_v10 = vadd.f32 %v6253_v14, %v11124_v39  ;;  %v6256_v45 = vadd.f32 %v6255_v60, %v6254_v38 }
0x12e7   : > { %v6320_v28 = vadd.f32 %v6319_v3, %v6318_v4 }
0x12e8   : > { %v5299_v41 = vadd.f32 %v6317_v5, %v5202_v10  ;;  %v5205_v9 = vadd.f32 %v6256_v45, %v11124_v39 }
0x12ea   : > { %v5302_v61 = vadd.f32 %v6320_v28, %v5205_v9  ;;  %v6257_v23 = vpop.f32.mrb[116].mxu1  ;;  %v5361_v31 = vadd.f32 %v5299_v41, %v11695_v7 }
0x12eb   : > { %v6321_v40 = vpop.f32.mrb[148].mxu0  ;;  %v6258_v62 = vpop.f32.mrb[117].mxu1 }
0x12ec   : > { %v5362_v26 = vadd.f32 %v5302_v61, %v11696_v22  ;;  %v6259_v52 = vadd.f32 %v6258_v62, %v6257_v23  ;;  %v6322_v24 = vpop.f32.mrb[149].mxu0  ;;  %v6260_v12 = vpop.f32.mrb[118].mxu1  ;;  %v11701_v23 = vld [vmem:[#allocation61_spill] sm:$0xff] }
0x12ed   : > { %v6323_v29 = vadd.f32 %v6322_v24, %v6321_v40  ;;  %v6324_v16 = vpop.f32.mrb[150].mxu0  ;;  %v6261_v8 = vpop.f32.mrb[119].mxu1 }
0x12ee   : > { %v11130_v35 = vpack.c.bf16 %v5362_v26, %v5361_v31  ;;  %v5210_v25 = vadd.f32 %v6259_v52, %v11124_v39  ;;  %v6262_v18 = vadd.f32 %v6261_v8, %v6260_v12  ;;  %v6325_v20 = vpop.f32.mrb[151].mxu0  ;;  %v11702_v31 = vld [vmem:[#allocation64_spill] sm:$0xff] }
0x12ef   : > { %v6326_v44 = vadd.f32 %v6325_v20, %v6324_v16 }
0x12f0   : > { %5385 = vst [vmem:[#allocation2] sm:$0xff] %v11130_v35  ;;  %v5307_v33 = vadd.f32 %v6323_v29, %v5210_v25  ;;  %v5213_v19 = vadd.f32 %v6262_v18, %v11124_v39  ;;  %6032 = vst [vmem:[%s8763_s11] sm:$0xff] (!%p5984_p5), %v11130_v35  }
0x12f2   : > { %v5310_v1 = vadd.f32 %v6326_v44, %v5213_v19  ;;  %v6263_v0 = vpop.f32.mrb[120].mxu1  ;;  %v5363_v51 = vadd.f32 %v5307_v33, %v11697_v36 }
0x12f3   : > { %v6327_v37 = vpop.f32.mrb[152].mxu0  ;;  %v6264_v27 = vpop.f32.mrb[121].mxu1 }
0x12f4   : > { %v5364_v32 = vadd.f32 %v5310_v1, %v11698_v21  ;;  %v6265_v55 = vadd.f32 %v6264_v27, %v6263_v0  ;;  %v6328_v49 = vpop.f32.mrb[153].mxu0  ;;  %v6266_v42 = vpop.f32.mrb[122].mxu1 }
0x12f5   : > { %v6329_v17 = vadd.f32 %v6328_v49, %v6327_v37  ;;  %v6330_v54 = vpop.f32.mrb[154].mxu0  ;;  %v6267_v46 = vpop.f32.mrb[123].mxu1 }
0x12f6   : > { %v11137_v15 = vpack.c.bf16 %v5364_v32, %v5363_v51  ;;  %v5218_v13 = vadd.f32 %v6265_v55, %v11124_v39  ;;  %v6268_v47 = vadd.f32 %v6267_v46, %v6266_v42  ;;  %v6331_v2 = vpop.f32.mrb[155].mxu0  ;;  %v11703_v51 = vld [vmem:[#allocation68_spill] sm:$0xff]  ;;  %v11704_v32 = vld [vmem:[#allocation67_spill] sm:$0xff] }
0x12f7   : > { %v6332_v6 = vadd.f32 %v6331_v2, %v6330_v54 }
0x12f8   : > { %5386 = vst [vmem:[#allocation2 + $0x8] sm:$0xff] %v11137_v15  ;;  %v5315_v63 = vadd.f32 %v6329_v17, %v5218_v13  ;;  %v5221_v30 = vadd.f32 %v6268_v47, %v11124_v39  ;;  %6068 = vst [vmem:[%s8763_s11 + $0x8] sm:$0xff] (!%p5984_p5), %v11137_v15  }
0x12fa   : > { %v5318_v56 = vadd.f32 %v6332_v6, %v5221_v30  ;;  %v6269_v50 = vpop.f32.mrb[124].mxu1  ;;  %v5365_v58 = vadd.f32 %v5315_v63, %v11699_v57 }
0x12fb   : > { %v6333_v53 = vpop.f32.mrb[156].mxu0  ;;  %v6270_v48 = vpop.f32.mrb[125].mxu1 }
0x12fc   : > { %v5366_v43 = vadd.f32 %v5318_v56, %v11700_v59  ;;  %v6271_v34 = vadd.f32 %v6270_v48, %v6269_v50  ;;  %v6334_v11 = vpop.f32.mrb[157].mxu0  ;;  %v6272_v14 = vpop.f32.mrb[126].mxu1 }
0x12fd   : > { %v6335_v5 = vadd.f32 %v6334_v11, %v6333_v53  ;;  %v6336_v38 = vpop.f32.mrb[158].mxu0  ;;  %v6273_v4 = vpop.f32.mrb[127].mxu1 }
0x12fe   : > { %v11144_v60 = vpack.c.bf16 %v5366_v43, %v5365_v58  ;;  %v5226_v3 = vadd.f32 %v6271_v34, %v11124_v39  ;;  %v6274_v10 = vadd.f32 %v6273_v4, %v6272_v14  ;;  %v6337_v45 = vpop.f32.mrb[159].mxu0  ;;  %v11705_v58 = vld [vmem:[#allocation62_spill] sm:$0xff]  ;;  %v11706_v43 = vld [vmem:[#allocation76_spill] sm:$0xff] }
0x12ff   : > { %v6338_v28 = vadd.f32 %v6337_v45, %v6336_v38 }
0x1300   : > { %5387 = vst [vmem:[#allocation2 + $0x10] sm:$0xff] %v11144_v60  ;;  %v5323_v41 = vadd.f32 %v6335_v5, %v5226_v3  ;;  %v5229_v9 = vadd.f32 %v6274_v10, %v11124_v39  ;;  %6069 = vst [vmem:[%s8763_s11 + $0x10] sm:$0xff] (!%p5984_p5), %v11144_v60  }
0x1302   : > { %v5326_v61 = vadd.f32 %v6338_v28, %v5229_v9  ;;  %v5367_v7 = vadd.f32 %v5323_v41, %v11701_v23 }
0x1304   : > { %v5368_v22 = vadd.f32 %v5326_v61, %v11702_v31 }
0x1306   : > { %v11151_v26 = vpack.c.bf16 %v5368_v22, %v5367_v7 }
0x1308   : > { %5388 = vst [vmem:[#allocation2 + $0x18] sm:$0xff] %v11151_v26  ;;  %6070 = vst [vmem:[%s8763_s11 + $0x18] sm:$0xff] (!%p5984_p5), %v11151_v26  }
0x131f   : > { %v6275_v40 = vpop.f32.mrb[128].mxu1 }
0x1320   : > { %v6339_v62 = vpop.f32.mrb[160].mxu0  ;;  %v6276_v52 = vpop.f32.mrb[129].mxu1 }
0x1321   : > { %v6277_v24 = vadd.f32 %v6276_v52, %v6275_v40  ;;  %v6340_v12 = vpop.f32.mrb[161].mxu0  ;;  %v6278_v29 = vpop.f32.mrb[130].mxu1 }
0x1322   : > { %v6341_v16 = vadd.f32 %v6340_v12, %v6339_v62  ;;  %v6342_v8 = vpop.f32.mrb[162].mxu0  ;;  %v6279_v25 = vpop.f32.mrb[131].mxu1 }
0x1323   : > { %v5234_v18 = vadd.f32 %v6277_v24, %v11124_v39  ;;  %v6280_v20 = vadd.f32 %v6279_v25, %v6278_v29  ;;  %v6343_v44 = vpop.f32.mrb[163].mxu0  ;;  %v11707_v29 = vld [vmem:[#allocation77_spill] sm:$0xff] }
0x1324   : > { %v6344_v33 = vadd.f32 %v6343_v44, %v6342_v8  ;;  %v11708_v8 = vld [vmem:[#allocation63_spill] sm:$0xff] }
0x1325   : > { %v5331_v19 = vadd.f32 %v6341_v16, %v5234_v18  ;;  %v5237_v1 = vadd.f32 %v6280_v20, %v11124_v39 }
0x1327   : > { %v5334_v0 = vadd.f32 %v6344_v33, %v5237_v1  ;;  %v6281_v37 = vpop.f32.mrb[132].mxu1  ;;  %v5369_v21 = vadd.f32 %v5331_v19, %v11703_v51 }
0x1328   : > { %v6345_v27 = vpop.f32.mrb[164].mxu0  ;;  %v6282_v36 = vpop.f32.mrb[133].mxu1 }
0x1329   : > { %v5370_v55 = vadd.f32 %v5334_v0, %v11704_v32  ;;  %v6283_v49 = vadd.f32 %v6282_v36, %v6281_v37  ;;  %v6346_v42 = vpop.f32.mrb[165].mxu0  ;;  %v6284_v17 = vpop.f32.mrb[134].mxu1 }
0x132a   : > { %v6347_v54 = vadd.f32 %v6346_v42, %v6345_v27  ;;  %v6348_v46 = vpop.f32.mrb[166].mxu0  ;;  %v6285_v13 = vpop.f32.mrb[135].mxu1 }
0x132b   : > { %v5381_v47 = vpack.c.bf16 %v5370_v55, %v5369_v21  ;;  %v5242_v2 = vadd.f32 %v6283_v49, %v11124_v39  ;;  %v6286_v6 = vadd.f32 %v6285_v13, %v6284_v17  ;;  %v6349_v63 = vpop.f32.mrb[167].mxu0  ;;  %v11709_v21 = vld [vmem:[#allocation65_spill] sm:$0xff]  ;;  %v11710_v55 = vld [vmem:[#allocation78_spill] sm:$0xff] }
0x132c   : > { %v6350_v30 = vadd.f32 %v6349_v63, %v6348_v46 }
0x132d   : > { %5389 = vst [vmem:[#allocation2 + $0x20] sm:$0xff] %v5381_v47  ;;  %v5339_v56 = vadd.f32 %v6347_v54, %v5242_v2  ;;  %v5245_v50 = vadd.f32 %v6286_v6, %v11124_v39  ;;  %6071 = vst [vmem:[%s8763_s11 + $0x20] sm:$0xff] (!%p5984_p5), %v5381_v47  }
0x132f   : > { %v5342_v53 = vadd.f32 %v6350_v30, %v5245_v50  ;;  %v6287_v48 = vpop.f32.mrb[136].mxu1  ;;  %v5371_v59 = vadd.f32 %v5339_v56, %v11705_v58 }
0x1330   : > { %v6288_v57 = vpop.f32.mrb[137].mxu1 }
0x1331   : > { %v5372_v34 = vadd.f32 %v5342_v53, %v11706_v43  ;;  %v6289_v11 = vadd.f32 %v6288_v57, %v6287_v48  ;;  %v6290_v14 = vpop.f32.mrb[138].mxu1 }
0x1332   : > { %v6291_v5 = vpop.f32.mrb[139].mxu1 }
0x1333   : > { %v5382_v38 = vpack.c.bf16 %v5372_v34, %v5371_v59  ;;  %v6292_v4 = vadd.f32 %v6291_v5, %v6290_v14  ;;  %v5250_v7 = vadd.f32 %v6289_v11, %v11124_v39 }
0x1335   : > { %5390 = vst [vmem:[#allocation2 + $0x28] sm:$0xff] %v5382_v38  ;;  %v5253_v62 = vadd.f32 %v6292_v4, %v11124_v39  ;;  %6072 = vst [vmem:[%s8763_s11 + $0x28] sm:$0xff] (!%p5984_p5), %v5382_v38  }
0x1337   : > { %v6293_v3 = vpop.f32.mrb[140].mxu1 }
0x1338   : > { %v6294_v10 = vpop.f32.mrb[141].mxu1 }
0x1339   : > { %v6295_v45 = vadd.f32 %v6294_v10, %v6293_v3  ;;  %v6296_v28 = vpop.f32.mrb[142].mxu1 }
0x133a   : > { %v6297_v41 = vpop.f32.mrb[143].mxu1 }
0x133b   : > { %v6298_v9 = vadd.f32 %v6297_v41, %v6296_v28  ;;  %v5258_v44 = vadd.f32 %v6295_v45, %v11124_v39 }
0x133d   : > { %v5261_v37 = vadd.f32 %v6298_v9, %v11124_v39 }
0x133f   : > { %v6351_v61 = vpop.f32.mrb[144].mxu1 }
0x1340   : > { %v6352_v23 = vpop.f32.mrb[145].mxu1 }
0x1341   : > { %v6353_v31 = vadd.f32 %v6352_v23, %v6351_v61  ;;  %v6354_v22 = vpop.f32.mrb[146].mxu1 }
0x1342   : > { %v6355_v40 = vpop.f32.mrb[147].mxu1 }
0x1343   : > { %v5347_v52 = vadd.f32 %v6353_v31, %v5250_v7  ;;  %v6356_v24 = vadd.f32 %v6355_v40, %v6354_v22 }
0x1345   : > { %v5350_v12 = vadd.f32 %v6356_v24, %v5253_v62  ;;  %v5373_v16 = vadd.f32 %v5347_v52, %v11707_v29 }
0x1347   : > { %v5374_v25 = vadd.f32 %v5350_v12, %v11708_v8  ;;  %v6357_v18 = vpop.f32.mrb[148].mxu1 }
0x1348   : > { %v6358_v20 = vpop.f32.mrb[149].mxu1 }
0x1349   : > { %v5383_v33 = vpack.c.bf16 %v5374_v25, %v5373_v16  ;;  %v6359_v19 = vadd.f32 %v6358_v20, %v6357_v18  ;;  %v6360_v1 = vpop.f32.mrb[150].mxu1 }
0x134a   : > { %v6361_v0 = vpop.f32.mrb[151].mxu1 }
0x134b   : > { %5391 = vst [vmem:[#allocation2 + $0x30] sm:$0xff] %v5383_v33  ;;  %v5355_v27 = vadd.f32 %v6359_v19, %v5258_v44  ;;  %v6362_v36 = vadd.f32 %v6361_v0, %v6360_v1  ;;  %6073 = vst [vmem:[%s8763_s11 + $0x30] sm:$0xff] (!%p5984_p5), %v5383_v33  }
0x134d   : > { %v5358_v51 = vadd.f32 %v6362_v36, %v5261_v37  ;;  %v5375_v32 = vadd.f32 %v5355_v27, %v11709_v21  ;;  %5396 = sbr.rel (%p5984_p5) target bundleno = 4948 (0x1354), region = 132 }
0x134f   : > { %v5376_v49 = vadd.f32 %v5358_v51, %v11710_v55 }
0x1351   : > { %v5384_v42 = vpack.c.bf16 %v5376_v49, %v5375_v32 }
0x1353   : > { %5392 = vst [vmem:[#allocation2 + $0x38] sm:$0xff] %v5384_v42  ;;  %6074 = vst [vmem:[%s8763_s11 + $0x38] sm:$0xff] (!%p5984_p5), %v5384_v42  }
0x1354 PF: > { %s11712_s8 = sld [smem:[#allocation37_spill]]  ;;  %s11713_s27 = sld [smem:[#allocation123_spill]] }
0x1355   : > { %s5483_s2 = sshll.u32 %s8763_s11, 4  ;;  %s5470_s28 = scalar_lea.sflag [#allocation5], %s8690_s23  ;;  %s11190_s2 = int_to_ptr.vmem [resolvable:$true] %s5483_s2 }
0x1356   : > { %s7876_s15 = scalar_lea.vmem %s11190_s2, 1024  ;;  %p11715_p3 = scmp.ne.s32.totalorder %s11459_s9, 0 }
0x1357   : > { %p7877_p12 = scmp.ne.s32.totalorder %s11190_s2, %s7876_s15  ;;  %s8047_s30 = smov [#allocation24]  }
0x1358   : > { %s7880_s20 = sshll.u32 %s8047_s30, 4  ;;  %s7881_s20 = int_to_ptr.vmem [resolvable:$false] %s7880_s20 }
0x1359   : > { %p7878_p9 = pnand %p7877_p12, %p11715_p3  ;;  %s7882_s21 = scalar_lea.vmem %s7881_s20, 2048 }
0x135a   : > { %s6027_s12 = sshll.u32 %s11712_s8, 10  ;;  %s11714_s6 = smov %s11713_s27 }
0x135b   : > { %s11187_s4 = scalar_lea.hbm %s11713_s27, %s6027_s12  ;;  %p7879_p0 = pneg %p7878_p9 }
0x135c   : > { %p7883_p10 = scmp.lt.s32.totalorder %s11190_s2, %s7881_s20  ;;  %p7884_p4 = scmp.lt.s32.totalorder %s7882_s21, %s7876_s15 }
0x135e   : > { %p7885_p2 = por %p7884_p4, %p7883_p10 }
0x1360   : > { %p7886_p7 = pnand %p7885_p2, %p7879_p0 }
0x1362   : > { %7889 = shalt.err (!%p7886_p7)
}
0x1363   : > { %s7890_s11 = scalar_lea.hbm %s11187_s4, 1024  ;;  %s7894_s7 = scalar_lea.hbm %s11714_s6, 2048 }
0x1364   : > { %p7891_p11 = scmp.ne.s32.totalorder %s11187_s4, %s7890_s11  ;;  %p7895_p13 = scmp.lt.u32.totalorder %s11187_s4, %s11714_s6 }
0x1365   : > { %p7896_p6 = scmp.lt.u32.totalorder %s7894_s7, %s7890_s11  ;;  %p7898_p12 = scmp.lt.u32.totalorder %s7890_s11, %s11187_s4 }
0x1366   : > { %p7892_p1 = pnand %p7891_p11, %p11715_p3 }
0x1367   : > { %p7897_p5 = por %p7896_p6, %p7895_p13 }
0x1368   : > { %p7893_p8 = pneg %p7892_p1 }
0x1369   : > { %p7899_p9 = por %p7898_p12, %p7897_p5 }
0x136b   : > { %p7900_p0 = pnand %p7899_p9, %p7893_p8 }
0x136d   : > { %7903 = shalt.err (!%p7900_p0)
}
0x136e   : > { %s8048_s19 = smov 4  }
0x136f   : > { %6763 = dma.vmem_to_hbm [thread:$0]  (%p11715_p3), %s11190_s2, 1024, %s11187_s4, %s5470_s28, %s8045_s17, %s8045_s17, %s8048_s19  }
0x1370 PF: > { %s11716_s8 = sld [smem:[#allocation34_spill]]  ;;  %s11717_s12 = sld [smem:[#allocation44_spill]] }
0x1371   : > { %p6810_p10 = scmp.ge.s32.totalorder %s8022_s18, 2 }
0x1376   : > { %s5498_s1 = sand.u32 1, %s11716_s8   ;;  %p11718_p4 = scmp.ne.s32.totalorder %s11717_s12, 0 }
0x1377   : > { %s5499_s3 = scalar_lea.sflag [#allocation5], %s5498_s1 }
0x1378   : > { %p6806_p2 = pnand %p6810_p10, %p11718_p4 }
0x137a   : > { %7977 = dma.done.wait (!%p6806_p2), %s5499_s3, 1024  }
0x137b   : > { %7979 = vsyncadd (!%p6806_p2), %s5499_s3, 4294966272  ;;  %s47_s18 = sadd.s32 1, %s8022_s18   ;;  %s11719_s9 = sld [smem:[#allocation33_spill]] }
0x137c   : > { %p44_p7 = scmp.ge.s32.totalorder %s47_s18, 6   ;;  %s11720_s27 = sld [smem:[#allocation42_spill]] }
0x137d   : > { %s11721_s23 = sld [smem:[#allocation35_spill]]  ;;  %s11722_s30 = sld [smem:[#allocation43_spill]] }
0x137e   : > { %s11723_s15 = sld [smem:[#allocation38_spill]]  ;;  %s11724_s17 = sld [smem:[#allocation40_spill]] }
0x137f   : > { %s11725_s4 = sld [smem:[#allocation41_spill]]  ;;  %s11726_s25 = smov %s7986_s26 }
0x1380   : > { %s11728_s28 = smov %s7998_s29  ;;  %s11730_s14 = smov %s8014_s16 }
0x1381   : > { %s11727_s26 = smov %s11719_s9  ;;  %46 = sbr.rel (!%p44_p7) target bundleno = 36 (0x24), region = 269 }
0x1383   : > { %s11729_s29 = smov %s11721_s23 }
0x1384   : > { %s11731_s16 = smov %s11724_s17 }
0x1385   : > { %s11732_s17 = smov %s11725_s4 }
0x1388   :  { %5504 = vsyncpa [#allocation4], 1 }
0x1389   :  { %5506 = vsyncpa [#allocation4 + $0x1], 1 }
0x138a   :  { %5507 = vsyncpa [#allocation7], 1 }
0x138b   :  { %5509 = vsyncpa [#allocation7 + $0x1], 1 }
0x138c   :  { %5510 = vsyncpa [#allocation10], 1 }
0x138d   :  { %5512 = vsyncpa [#allocation10 + $0x1], 1 }
0x138e   :  { %5513 = vsyncpa [#allocation13], 1 }
0x138f   :  { %5515 = vsyncpa [#allocation13 + $0x1], 1 }
0x1390   :  { %5516 = vsyncpa [#allocation16], 1 }
0x1391   :  { %5518 = vsyncpa [#allocation16 + $0x1], 1 }
0x1392   :  { %5519 = vsyncpa [#allocation19], 1 }
0x1393   :  { %5521 = vsyncpa [#allocation19 + $0x1], 1 }
0x1394   :  { %5522 = vsyncpa [#allocation22], 1 }
0x1395   :  { %5524 = vsyncpa [#allocation22 + $0x1], 1 }
0x1396   :  { %5525 = vsyncpa [#allocation5], 1 }
0x1397   :  { %5527 = vsyncpa [#allocation5 + $0x1], 1 }

</bundles_post_ra>
